<compile_context>
chip_gen: v7x
topology: tpu7x:2x2x1
jax: 0.10.0
libtpu: 0.0.40
codegen_flags: <defaults>
</compile_context>

<pallas_src>
import jax
import jax.numpy as jnp
from jax import lax
from jax.experimental import pallas as pl
from jax.experimental.pallas import tpu as pltpu


def _mhsa_kernel(x_ref, w_ref, pos_ref, out_ref, attn_ref):
    # x_ref:   (1, C+1, N)   input for this batch element, last row = ones (bias)
    # w_ref:   (3C, C+1)     stacked [wq; wk; wv] with bias folded in as last col
    # pos_ref: (heads, d, N) relative-position embedding (rel_h + rel_w)
    # out_ref: (1, heads, d, N)
    # attn_ref:(1, heads, N, N)
    heads, d, n = pos_ref.shape
    c = heads * d

    x = x_ref[0]  # (C+1, N) f32

    # Fused QKV projection (bias folded into the matmul): one MXU pass.
    qkv = jnp.dot(w_ref[...], x, preferred_element_type=jnp.float32)  # (3C, N)

    for h in range(heads):  # static unroll; all heads live in one grid step
        q = qkv[h * d:(h + 1) * d]                  # (d, N)
        k = qkv[c + h * d:c + (h + 1) * d]          # (d, N)
        v = qkv[2 * c + h * d:2 * c + (h + 1) * d]  # (d, N)
        p = pos_ref[h]                              # (d, N)

        # Fused logits: energy = q^T k + pos^T q  ==  [q; pos]^T @ [k; q]
        # (single contraction of depth 2d; transposed-lhs dot_general, no .T).
        a_stack = jnp.concatenate([q, p], axis=0)   # (2d, N)
        b_stack = jnp.concatenate([k, q], axis=0)   # (2d, N)
        energy = lax.dot_general(
            a_stack, b_stack,
            dimension_numbers=(((0,), (0,)), ((), ())),
            preferred_element_type=jnp.float32)      # (N, N)

        # Row softmax in f32; the divide runs on the EUP reciprocal slot.
        m = jnp.max(energy, axis=-1, keepdims=True)
        e = jnp.exp(energy - m)                      # (N, N)
        l = jnp.sum(e, axis=-1, keepdims=True)       # (N, 1)
        attn = e * pl.reciprocal(l, approx=True)     # (N, N)
        attn_ref[0, h] = attn

        # out[i, m] = sum_n v[i, n] * attn[m, n]  -- bf16 operands, f32 accum;
        # uses the normalized attention tile directly (no denominator trick,
        # no transposes: both operands contract their lane dim).
        out_ref[0, h] = lax.dot_general(
            v.astype(jnp.bfloat16), attn.astype(jnp.bfloat16),
            dimension_numbers=(((1,), (1,)), ((), ())),
            preferred_element_type=jnp.float32)       # (d, N)


def mhsa_at_pallas(x, params, heads):
    """x: (B, C, W, H) float32 NCHW. Returns (out (B,C,W,H), attention (B,heads,N,N))."""
    B, C, W, H = x.shape
    N = W * H
    d = C // heads

    x_flat = x.reshape(B, C, N).astype(jnp.float32)
    # Append a ones row so the projection bias is folded into the matmul.
    x_aug = jnp.concatenate([x_flat, jnp.ones((B, 1, N), jnp.float32)], axis=1)  # (B, C+1, N)

    w_stack = jnp.concatenate([params["wq"], params["wk"], params["wv"]], axis=0)  # (3C, C)
    b_stack = jnp.concatenate([params["bq"], params["bk"], params["bv"]], axis=0)  # (3C,)
    w_aug = jnp.concatenate([w_stack, b_stack[:, None]], axis=1).astype(jnp.float32)  # (3C, C+1)

    # rel_w: (heads, d, W), rel_h: (heads, d, H) -> pos: (heads, d, N), n = w*H + h
    pos = (params["rel_w"][:, :, :, None] +
           params["rel_h"][:, :, None, :]).reshape(heads, d, N).astype(jnp.float32)

    out, attn = pl.pallas_call(
        _mhsa_kernel,
        out_shape=(
            jax.ShapeDtypeStruct((B, heads, d, N), jnp.float32),
            jax.ShapeDtypeStruct((B, heads, N, N), jnp.float32),
        ),
        grid_spec=pltpu.PrefetchScalarGridSpec(
            num_scalar_prefetch=0,
            grid=(B,),
            in_specs=[
                pl.BlockSpec((1, C + 1, N), lambda b: (b, 0, 0)),   # x (+ ones row)
                pl.BlockSpec((3 * C, C + 1), lambda b: (0, 0)),     # stacked qkv weight+bias
                pl.BlockSpec((heads, d, N), lambda b: (0, 0, 0)),   # positional embedding
            ],
            out_specs=[
                pl.BlockSpec((1, heads, d, N), lambda b: (b, 0, 0, 0)),
                pl.BlockSpec((1, heads, N, N), lambda b: (b, 0, 0, 0)),
            ],
        ),
        compiler_params=pltpu.CompilerParams(
            dimension_semantics=("parallel",)),
    )(x_aug, w_aug, pos)

    return out.reshape(B, C, W, H), attn


def mhsa_at_reference(x, params, heads):
    """Pure-JAX reference mirroring the PyTorch forward exactly (f32)."""
    B, C, W, H = x.shape
    N = W * H
    d = C // heads
    xf = x.reshape(B, C, N)

    def proj(w, b):
        y = jnp.einsum("oc,bcn->bon", w, xf) + b[None, :, None]
        return y.reshape(B, heads, d, N)

    q = proj(params["wq"], params["bq"])
    k = proj(params["wk"], params["bk"])
    v = proj(params["wv"], params["bv"])

    pos = (params["rel_w"][:, :, :, None] +
           params["rel_h"][:, :, None, :]).reshape(heads, d, N)

    cc = jnp.einsum("bhdn,bhdm->bhnm", q, k)
    cp = jnp.einsum("hdn,bhdm->bhnm", pos, q)
    attn = jax.nn.softmax(cc + cp, axis=-1)
    out = jnp.einsum("bhdn,bhmn->bhdm", v, attn)
    return out.reshape(B, C, W, H), attn


if __name__ == "__main__":
    # Small shapes consistent with the module: 16x16 resolution (N=256, as in
    # SEBoT's BOT_AT resolution=[16,16]), heads=4, a reduced channel count of
    # 64 (d=16), batch=2.
    B, C, W, H, heads = 2, 64, 16, 16, 4
    d = C // heads

    key = jax.random.PRNGKey(0)
    keys = jax.random.split(key, 10)
    params = {
        "wq": 0.1 * jax.random.normal(keys[0], (C, C), jnp.float32),
        "bq": 0.1 * jax.random.normal(keys[1], (C,), jnp.float32),
        "wk": 0.1 * jax.random.normal(keys[2], (C, C), jnp.float32),
        "bk": 0.1 * jax.random.normal(keys[3], (C,), jnp.float32),
        "wv": 0.1 * jax.random.normal(keys[4], (C, C), jnp.float32),
        "bv": 0.1 * jax.random.normal(keys[5], (C,), jnp.float32),
        "rel_h": 0.5 * jax.random.normal(keys[6], (heads, d, H), jnp.float32),
        "rel_w": 0.5 * jax.random.normal(keys[7], (heads, d, W), jnp.float32),
    }
    x = jax.random.normal(keys[8], (B, C, W, H), jnp.float32)

    out, attn = mhsa_at_pallas(x, params, heads)
    out = jax.block_until_ready(out)
    attn = jax.block_until_ready(attn)

    out_ref, attn_ref = mhsa_at_reference(x, params, heads)
    assert out.shape == (B, C, W, H) and attn.shape == (B, heads, W * H, W * H)
    # attn path is f32 end-to-end (tolerance covers the approx EUP reciprocal
    # and any reduced-precision matmul passes on either side);
    # out uses a bf16 aggregation matmul, hence the looser tolerance.
    assert jnp.allclose(attn, attn_ref, atol=1e-2, rtol=0.0)
    assert jnp.allclose(out, out_ref, atol=3e-2, rtol=2e-2)

    print("KERNEL_OK")
</pallas_src>

<mosaic_0001>
module attributes {stable_mosaic.version = 11 : i64} {
  func.func @_mhsa_kernel(%arg0: i32, %arg1: memref<1x65x256xf32, #tpu.memory_space<vmem>>, %arg2: memref<192x65xf32, #tpu.memory_space<vmem>>, %arg3: memref<4x16x256xf32, #tpu.memory_space<vmem>>, %arg4: memref<1x4x16x256xf32, #tpu.memory_space<vmem>>, %arg5: memref<1x4x256x256xf32, #tpu.memory_space<vmem>>) attributes {dimension_semantics = [#tpu.dimension_semantics<parallel>], iteration_bounds = array<i64: 2>, scalar_prefetch = 0 : i64, scratch_operands = 0 : i64, tpu.core_type = #tpu.core_type<tc>, window_params = [{transform_indices = @transform_0, window_bounds = array<i64: 1, 65, 256>}, {pipeline_mode = #tpu.pipeline_mode<synchronous>, transform_indices = @transform_1, window_bounds = array<i64: 192, 65>}, {pipeline_mode = #tpu.pipeline_mode<synchronous>, transform_indices = @transform_2, window_bounds = array<i64: 4, 16, 256>}, {transform_indices = @transform_3, window_bounds = array<i64: 1, 4, 16, 256>}, {transform_indices = @transform_4, window_bounds = array<i64: 1, 4, 256, 256>}]} {
    %c0 = arith.constant 0 : index
    %c0_0 = arith.constant 0 : index
    %c0_1 = arith.constant 0 : index
    %0 = vector.load %arg1[%c0, %c0_0, %c0_1] : memref<1x65x256xf32, #tpu.memory_space<vmem>>, vector<1x65x256xf32>
    %1 = vector.shape_cast %0 : vector<1x65x256xf32> to vector<65x256xf32>
    %c0_2 = arith.constant 0 : index
    %c0_3 = arith.constant 0 : index
    %2 = vector.load %arg2[%c0_2, %c0_3] : memref<192x65xf32, #tpu.memory_space<vmem>>, vector<192x65xf32>
    %cst = arith.constant dense<0.000000e+00> : vector<192x256xf32>
    %3 = tpu.matmul %2, %1, %cst {dimension_numbers = #tpu.dot_dimension_numbers<[1], [0], [0], [1], [0, 0, 1, 1], [], []>} : vector<192x65xf32>, vector<65x256xf32>, vector<192x256xf32> -> vector<192x256xf32>
    %4 = vector.extract_strided_slice %3 {offsets = [0, 0], sizes = [16, 256], strides = [1, 1]} : vector<192x256xf32> to vector<16x256xf32>
    %5 = vector.extract_strided_slice %3 {offsets = [64, 0], sizes = [16, 256], strides = [1, 1]} : vector<192x256xf32> to vector<16x256xf32>
    %6 = vector.extract_strided_slice %3 {offsets = [128, 0], sizes = [16, 256], strides = [1, 1]} : vector<192x256xf32> to vector<16x256xf32>
    %c0_4 = arith.constant 0 : index
    %c0_5 = arith.constant 0 : index
    %c0_6 = arith.constant 0 : index
    %7 = vector.load %arg3[%c0_4, %c0_5, %c0_6] : memref<4x16x256xf32, #tpu.memory_space<vmem>>, vector<1x16x256xf32>
    %8 = vector.shape_cast %7 : vector<1x16x256xf32> to vector<16x256xf32>
    %9 = tpu.concatenate %4, %8 in 0 : vector<16x256xf32>, vector<16x256xf32> -> vector<32x256xf32>
    %10 = tpu.concatenate %5, %4 in 0 : vector<16x256xf32>, vector<16x256xf32> -> vector<32x256xf32>
    %cst_7 = arith.constant dense<0.000000e+00> : vector<256x256xf32>
    %11 = tpu.matmul %9, %10, %cst_7 {dimension_numbers = #tpu.dot_dimension_numbers<[0], [0], [1], [1], [0, 1, 1, 1], [], []>} : vector<32x256xf32>, vector<32x256xf32>, vector<256x256xf32> -> vector<256x256xf32>
    %cst_8 = arith.constant dense<0xFF800000> : vector<256xf32>
    %12 = vector.multi_reduction <maximumf>, %11, %cst_8 [1] : vector<256x256xf32> to vector<256xf32>
    %13 = vector.shape_cast %12 : vector<256xf32> to vector<256x1xf32>
    %14 = vector.broadcast %13 : vector<256x1xf32> to vector<256x256xf32>
    %15 = arith.subf %11, %14 : vector<256x256xf32>
    %16 = math.exp %15 : vector<256x256xf32>
    %cst_9 = arith.constant dense<0.000000e+00> : vector<256xf32>
    %17 = vector.multi_reduction <add>, %16, %cst_9 [1] : vector<256x256xf32> to vector<256xf32>
    %18 = vector.shape_cast %17 : vector<256xf32> to vector<256x1xf32>
    %19 = tpu.reciprocal %18 {approx = true} : vector<256x1xf32> -> vector<256x1xf32>
    %20 = vector.broadcast %19 : vector<256x1xf32> to vector<256x256xf32>
    %21 = arith.mulf %16, %20 : vector<256x256xf32>
    %c0_10 = arith.constant 0 : index
    %c0_11 = arith.constant 0 : index
    %c0_12 = arith.constant 0 : index
    %c0_13 = arith.constant 0 : index
    %22 = vector.load %arg5[%c0_10, %c0_11, %c0_12, %c0_13] : memref<1x4x256x256xf32, #tpu.memory_space<vmem>>, vector<1x1x256x256xf32>
    %23 = vector.shape_cast %22 : vector<1x1x256x256xf32> to vector<256x256xf32>
    %24 = vector.shape_cast %21 : vector<256x256xf32> to vector<1x1x256x256xf32>
    tpu.vector_store %arg5[%c0_10, %c0_11, %c0_12, %c0_13], %24 {strides = array<i32>} : memref<1x4x256x256xf32, #tpu.memory_space<vmem>>, vector<1x1x256x256xf32>,
    %25 = arith.truncf %6 : vector<16x256xf32> to vector<16x256xbf16>
    %26 = arith.truncf %21 : vector<256x256xf32> to vector<256x256xbf16>
    %cst_14 = arith.constant dense<0.000000e+00> : vector<16x256xf32>
    %27 = tpu.matmul %25, %26, %cst_14 {dimension_numbers = #tpu.dot_dimension_numbers<[1], [1], [0], [0], [0, 0, 1, 0], [], []>} : vector<16x256xbf16>, vector<256x256xbf16>, vector<16x256xf32> -> vector<16x256xf32>
    %c0_15 = arith.constant 0 : index
    %c0_16 = arith.constant 0 : index
    %c0_17 = arith.constant 0 : index
    %c0_18 = arith.constant 0 : index
    %28 = vector.load %arg4[%c0_15, %c0_16, %c0_17, %c0_18] : memref<1x4x16x256xf32, #tpu.memory_space<vmem>>, vector<1x1x16x256xf32>
    %29 = vector.shape_cast %28 : vector<1x1x16x256xf32> to vector<16x256xf32>
    %30 = vector.shape_cast %27 : vector<16x256xf32> to vector<1x1x16x256xf32>
    tpu.vector_store %arg4[%c0_15, %c0_16, %c0_17, %c0_18], %30 {strides = array<i32>} : memref<1x4x16x256xf32, #tpu.memory_space<vmem>>, vector<1x1x16x256xf32>,
    %31 = vector.extract_strided_slice %3 {offsets = [16, 0], sizes = [16, 256], strides = [1, 1]} : vector<192x256xf32> to vector<16x256xf32>
    %32 = vector.extract_strided_slice %3 {offsets = [80, 0], sizes = [16, 256], strides = [1, 1]} : vector<192x256xf32> to vector<16x256xf32>
    %33 = vector.extract_strided_slice %3 {offsets = [144, 0], sizes = [16, 256], strides = [1, 1]} : vector<192x256xf32> to vector<16x256xf32>
    %c1 = arith.constant 1 : index
    %c0_19 = arith.constant 0 : index
    %c0_20 = arith.constant 0 : index
    %34 = vector.load %arg3[%c1, %c0_19, %c0_20] : memref<4x16x256xf32, #tpu.memory_space<vmem>>, vector<1x16x256xf32>
    %35 = vector.shape_cast %34 : vector<1x16x256xf32> to vector<16x256xf32>
    %36 = tpu.concatenate %31, %35 in 0 : vector<16x256xf32>, vector<16x256xf32> -> vector<32x256xf32>
    %37 = tpu.concatenate %32, %31 in 0 : vector<16x256xf32>, vector<16x256xf32> -> vector<32x256xf32>
    %cst_21 = arith.constant dense<0.000000e+00> : vector<256x256xf32>
    %38 = tpu.matmul %36, %37, %cst_21 {dimension_numbers = #tpu.dot_dimension_numbers<[0], [0], [1], [1], [0, 1, 1, 1], [], []>} : vector<32x256xf32>, vector<32x256xf32>, vector<256x256xf32> -> vector<256x256xf32>
    %cst_22 = arith.constant dense<0xFF800000> : vector<256xf32>
    %39 = vector.multi_reduction <maximumf>, %38, %cst_22 [1] : vector<256x256xf32> to vector<256xf32>
    %40 = vector.shape_cast %39 : vector<256xf32> to vector<256x1xf32>
    %41 = vector.broadcast %40 : vector<256x1xf32> to vector<256x256xf32>
    %42 = arith.subf %38, %41 : vector<256x256xf32>
    %43 = math.exp %42 : vector<256x256xf32>
    %cst_23 = arith.constant dense<0.000000e+00> : vector<256xf32>
    %44 = vector.multi_reduction <add>, %43, %cst_23 [1] : vector<256x256xf32> to vector<256xf32>
    %45 = vector.shape_cast %44 : vector<256xf32> to vector<256x1xf32>
    %46 = tpu.reciprocal %45 {approx = true} : vector<256x1xf32> -> vector<256x1xf32>
    %47 = vector.broadcast %46 : vector<256x1xf32> to vector<256x256xf32>
    %48 = arith.mulf %43, %47 : vector<256x256xf32>
    %c0_24 = arith.constant 0 : index
    %c1_25 = arith.constant 1 : index
    %c0_26 = arith.constant 0 : index
    %c0_27 = arith.constant 0 : index
    %49 = vector.load %arg5[%c0_24, %c1_25, %c0_26, %c0_27] : memref<1x4x256x256xf32, #tpu.memory_space<vmem>>, vector<1x1x256x256xf32>
    %50 = vector.shape_cast %49 : vector<1x1x256x256xf32> to vector<256x256xf32>
    %51 = vector.shape_cast %48 : vector<256x256xf32> to vector<1x1x256x256xf32>
    tpu.vector_store %arg5[%c0_24, %c1_25, %c0_26, %c0_27], %51 {strides = array<i32>} : memref<1x4x256x256xf32, #tpu.memory_space<vmem>>, vector<1x1x256x256xf32>,
    %52 = arith.truncf %33 : vector<16x256xf32> to vector<16x256xbf16>
    %53 = arith.truncf %48 : vector<256x256xf32> to vector<256x256xbf16>
    %cst_28 = arith.constant dense<0.000000e+00> : vector<16x256xf32>
    %54 = tpu.matmul %52, %53, %cst_28 {dimension_numbers = #tpu.dot_dimension_numbers<[1], [1], [0], [0], [0, 0, 1, 0], [], []>} : vector<16x256xbf16>, vector<256x256xbf16>, vector<16x256xf32> -> vector<16x256xf32>
    %c0_29 = arith.constant 0 : index
    %c1_30 = arith.constant 1 : index
    %c0_31 = arith.constant 0 : index
    %c0_32 = arith.constant 0 : index
    %55 = vector.load %arg4[%c0_29, %c1_30, %c0_31, %c0_32] : memref<1x4x16x256xf32, #tpu.memory_space<vmem>>, vector<1x1x16x256xf32>
    %56 = vector.shape_cast %55 : vector<1x1x16x256xf32> to vector<16x256xf32>
    %57 = vector.shape_cast %54 : vector<16x256xf32> to vector<1x1x16x256xf32>
    tpu.vector_store %arg4[%c0_29, %c1_30, %c0_31, %c0_32], %57 {strides = array<i32>} : memref<1x4x16x256xf32, #tpu.memory_space<vmem>>, vector<1x1x16x256xf32>,
    %58 = vector.extract_strided_slice %3 {offsets = [32, 0], sizes = [16, 256], strides = [1, 1]} : vector<192x256xf32> to vector<16x256xf32>
    %59 = vector.extract_strided_slice %3 {offsets = [96, 0], sizes = [16, 256], strides = [1, 1]} : vector<192x256xf32> to vector<16x256xf32>
    %60 = vector.extract_strided_slice %3 {offsets = [160, 0], sizes = [16, 256], strides = [1, 1]} : vector<192x256xf32> to vector<16x256xf32>
    %c2 = arith.constant 2 : index
    %c0_33 = arith.constant 0 : index
    %c0_34 = arith.constant 0 : index
    %61 = vector.load %arg3[%c2, %c0_33, %c0_34] : memref<4x16x256xf32, #tpu.memory_space<vmem>>, vector<1x16x256xf32>
    %62 = vector.shape_cast %61 : vector<1x16x256xf32> to vector<16x256xf32>
    %63 = tpu.concatenate %58, %62 in 0 : vector<16x256xf32>, vector<16x256xf32> -> vector<32x256xf32>
    %64 = tpu.concatenate %59, %58 in 0 : vector<16x256xf32>, vector<16x256xf32> -> vector<32x256xf32>
    %cst_35 = arith.constant dense<0.000000e+00> : vector<256x256xf32>
    %65 = tpu.matmul %63, %64, %cst_35 {dimension_numbers = #tpu.dot_dimension_numbers<[0], [0], [1], [1], [0, 1, 1, 1], [], []>} : vector<32x256xf32>, vector<32x256xf32>, vector<256x256xf32> -> vector<256x256xf32>
    %cst_36 = arith.constant dense<0xFF800000> : vector<256xf32>
    %66 = vector.multi_reduction <maximumf>, %65, %cst_36 [1] : vector<256x256xf32> to vector<256xf32>
    %67 = vector.shape_cast %66 : vector<256xf32> to vector<256x1xf32>
    %68 = vector.broadcast %67 : vector<256x1xf32> to vector<256x256xf32>
    %69 = arith.subf %65, %68 : vector<256x256xf32>
    %70 = math.exp %69 : vector<256x256xf32>
    %cst_37 = arith.constant dense<0.000000e+00> : vector<256xf32>
    %71 = vector.multi_reduction <add>, %70, %cst_37 [1] : vector<256x256xf32> to vector<256xf32>
    %72 = vector.shape_cast %71 : vector<256xf32> to vector<256x1xf32>
    %73 = tpu.reciprocal %72 {approx = true} : vector<256x1xf32> -> vector<256x1xf32>
    %74 = vector.broadcast %73 : vector<256x1xf32> to vector<256x256xf32>
    %75 = arith.mulf %70, %74 : vector<256x256xf32>
    %c0_38 = arith.constant 0 : index
    %c2_39 = arith.constant 2 : index
    %c0_40 = arith.constant 0 : index
    %c0_41 = arith.constant 0 : index
    %76 = vector.load %arg5[%c0_38, %c2_39, %c0_40, %c0_41] : memref<1x4x256x256xf32, #tpu.memory_space<vmem>>, vector<1x1x256x256xf32>
    %77 = vector.shape_cast %76 : vector<1x1x256x256xf32> to vector<256x256xf32>
    %78 = vector.shape_cast %75 : vector<256x256xf32> to vector<1x1x256x256xf32>
    tpu.vector_store %arg5[%c0_38, %c2_39, %c0_40, %c0_41], %78 {strides = array<i32>} : memref<1x4x256x256xf32, #tpu.memory_space<vmem>>, vector<1x1x256x256xf32>,
    %79 = arith.truncf %60 : vector<16x256xf32> to vector<16x256xbf16>
    %80 = arith.truncf %75 : vector<256x256xf32> to vector<256x256xbf16>
    %cst_42 = arith.constant dense<0.000000e+00> : vector<16x256xf32>
    %81 = tpu.matmul %79, %80, %cst_42 {dimension_numbers = #tpu.dot_dimension_numbers<[1], [1], [0], [0], [0, 0, 1, 0], [], []>} : vector<16x256xbf16>, vector<256x256xbf16>, vector<16x256xf32> -> vector<16x256xf32>
    %c0_43 = arith.constant 0 : index
    %c2_44 = arith.constant 2 : index
    %c0_45 = arith.constant 0 : index
    %c0_46 = arith.constant 0 : index
    %82 = vector.load %arg4[%c0_43, %c2_44, %c0_45, %c0_46] : memref<1x4x16x256xf32, #tpu.memory_space<vmem>>, vector<1x1x16x256xf32>
    %83 = vector.shape_cast %82 : vector<1x1x16x256xf32> to vector<16x256xf32>
    %84 = vector.shape_cast %81 : vector<16x256xf32> to vector<1x1x16x256xf32>
    tpu.vector_store %arg4[%c0_43, %c2_44, %c0_45, %c0_46], %84 {strides = array<i32>} : memref<1x4x16x256xf32, #tpu.memory_space<vmem>>, vector<1x1x16x256xf32>,
    %85 = vector.extract_strided_slice %3 {offsets = [48, 0], sizes = [16, 256], strides = [1, 1]} : vector<192x256xf32> to vector<16x256xf32>
    %86 = vector.extract_strided_slice %3 {offsets = [112, 0], sizes = [16, 256], strides = [1, 1]} : vector<192x256xf32> to vector<16x256xf32>
    %87 = vector.extract_strided_slice %3 {offsets = [176, 0], sizes = [16, 256], strides = [1, 1]} : vector<192x256xf32> to vector<16x256xf32>
    %c3 = arith.constant 3 : index
    %c0_47 = arith.constant 0 : index
    %c0_48 = arith.constant 0 : index
    %88 = vector.load %arg3[%c3, %c0_47, %c0_48] : memref<4x16x256xf32, #tpu.memory_space<vmem>>, vector<1x16x256xf32>
    %89 = vector.shape_cast %88 : vector<1x16x256xf32> to vector<16x256xf32>
    %90 = tpu.concatenate %85, %89 in 0 : vector<16x256xf32>, vector<16x256xf32> -> vector<32x256xf32>
    %91 = tpu.concatenate %86, %85 in 0 : vector<16x256xf32>, vector<16x256xf32> -> vector<32x256xf32>
    %cst_49 = arith.constant dense<0.000000e+00> : vector<256x256xf32>
    %92 = tpu.matmul %90, %91, %cst_49 {dimension_numbers = #tpu.dot_dimension_numbers<[0], [0], [1], [1], [0, 1, 1, 1], [], []>} : vector<32x256xf32>, vector<32x256xf32>, vector<256x256xf32> -> vector<256x256xf32>
    %cst_50 = arith.constant dense<0xFF800000> : vector<256xf32>
    %93 = vector.multi_reduction <maximumf>, %92, %cst_50 [1] : vector<256x256xf32> to vector<256xf32>
    %94 = vector.shape_cast %93 : vector<256xf32> to vector<256x1xf32>
    %95 = vector.broadcast %94 : vector<256x1xf32> to vector<256x256xf32>
    %96 = arith.subf %92, %95 : vector<256x256xf32>
    %97 = math.exp %96 : vector<256x256xf32>
    %cst_51 = arith.constant dense<0.000000e+00> : vector<256xf32>
    %98 = vector.multi_reduction <add>, %97, %cst_51 [1] : vector<256x256xf32> to vector<256xf32>
    %99 = vector.shape_cast %98 : vector<256xf32> to vector<256x1xf32>
    %100 = tpu.reciprocal %99 {approx = true} : vector<256x1xf32> -> vector<256x1xf32>
    %101 = vector.broadcast %100 : vector<256x1xf32> to vector<256x256xf32>
    %102 = arith.mulf %97, %101 : vector<256x256xf32>
    %c0_52 = arith.constant 0 : index
    %c3_53 = arith.constant 3 : index
    %c0_54 = arith.constant 0 : index
    %c0_55 = arith.constant 0 : index
    %103 = vector.load %arg5[%c0_52, %c3_53, %c0_54, %c0_55] : memref<1x4x256x256xf32, #tpu.memory_space<vmem>>, vector<1x1x256x256xf32>
    %104 = vector.shape_cast %103 : vector<1x1x256x256xf32> to vector<256x256xf32>
    %105 = vector.shape_cast %102 : vector<256x256xf32> to vector<1x1x256x256xf32>
    tpu.vector_store %arg5[%c0_52, %c3_53, %c0_54, %c0_55], %105 {strides = array<i32>} : memref<1x4x256x256xf32, #tpu.memory_space<vmem>>, vector<1x1x256x256xf32>,
    %106 = arith.truncf %87 : vector<16x256xf32> to vector<16x256xbf16>
    %107 = arith.truncf %102 : vector<256x256xf32> to vector<256x256xbf16>
    %cst_56 = arith.constant dense<0.000000e+00> : vector<16x256xf32>
    %108 = tpu.matmul %106, %107, %cst_56 {dimension_numbers = #tpu.dot_dimension_numbers<[1], [1], [0], [0], [0, 0, 1, 0], [], []>} : vector<16x256xbf16>, vector<256x256xbf16>, vector<16x256xf32> -> vector<16x256xf32>
    %c0_57 = arith.constant 0 : index
    %c3_58 = arith.constant 3 : index
    %c0_59 = arith.constant 0 : index
    %c0_60 = arith.constant 0 : index
    %109 = vector.load %arg4[%c0_57, %c3_58, %c0_59, %c0_60] : memref<1x4x16x256xf32, #tpu.memory_space<vmem>>, vector<1x1x16x256xf32>
    %110 = vector.shape_cast %109 : vector<1x1x16x256xf32> to vector<16x256xf32>
    %111 = vector.shape_cast %108 : vector<16x256xf32> to vector<1x1x16x256xf32>
    tpu.vector_store %arg4[%c0_57, %c3_58, %c0_59, %c0_60], %111 {strides = array<i32>} : memref<1x4x16x256xf32, #tpu.memory_space<vmem>>, vector<1x1x16x256xf32>,
    return
  }
  func.func @transform_0(%arg0: i32) -> (i32, i32, i32) {
    %c0_i32 = arith.constant 0 : i32
    %c0_i32_0 = arith.constant 0 : i32
    %c0_i32_1 = arith.constant 0 : i32
    return %arg0, %c0_i32, %c0_i32_0 : i32, i32, i32
  }
  func.func @transform_1(%arg0: i32) -> (i32, i32) {
    %c0_i32 = arith.constant 0 : i32
    %c0_i32_0 = arith.constant 0 : i32
    %c0_i32_1 = arith.constant 0 : i32
    return %c0_i32, %c0_i32_0 : i32, i32
  }
  func.func @transform_2(%arg0: i32) -> (i32, i32, i32) {
    %c0_i32 = arith.constant 0 : i32
    %c0_i32_0 = arith.constant 0 : i32
    %c0_i32_1 = arith.constant 0 : i32
    %c0_i32_2 = arith.constant 0 : i32
    return %c0_i32, %c0_i32_0, %c0_i32_1 : i32, i32, i32
  }
  func.func @transform_3(%arg0: i32) -> (i32, i32, i32, i32) {
    %c0_i32 = arith.constant 0 : i32
    %c0_i32_0 = arith.constant 0 : i32
    %c0_i32_1 = arith.constant 0 : i32
    %c0_i32_2 = arith.constant 0 : i32
    return %arg0, %c0_i32, %c0_i32_0, %c0_i32_1 : i32, i32, i32, i32
  }
  func.func @transform_4(%arg0: i32) -> (i32, i32, i32, i32) {
    %c0_i32 = arith.constant 0 : i32
    %c0_i32_0 = arith.constant 0 : i32
    %c0_i32_1 = arith.constant 0 : i32
    %c0_i32_2 = arith.constant 0 : i32
    return %arg0, %c0_i32, %c0_i32_0, %c0_i32_1 : i32, i32, i32, i32
  }
}

</mosaic_0001>

<bundles_post_ra>
// kernel: tpu_custom_call.1
= control target key start
LH: loop header
LB: loop body
LE: loop exit
PB: predicated region body
PF: predicated region fallthrough
CT: control target
= control target key end

     0   :  { %10 = vsyncpa [#allocation3], 0  ;;  %s9367_s0 = inlined_call_operand.vmem [shape: f32[2,65,256], index: 0, kind: input, shape index: {}]   ;;  %s9368_s1 = inlined_call_operand.vmem [shape: f32[192,65], index: 1, kind: input, shape index: {}]   ;;  %s9369_s2 = inlined_call_operand.hbm [shape: f32[4,16,256], index: 2, kind: input, shape index: {}]   ;;  %s9370_s3 = inlined_call_operand.hbm [shape: f32[2,4,16,256], index: 3, kind: output, shape index: {0}]   ;;  %s9371_s4 = inlined_call_operand.hbm [shape: f32[2,4,256,256], index: 4, kind: output, shape index: {1}]  }
   0x1   :  { %11 = vsyncpa [#allocation4], 0 }
   0x2   :  { %13 = vsyncpa [#allocation4 + $0x1], 0 }
   0x3   :  { %14 = vsyncpa [#allocation7], 0 }
   0x4   :  { %16 = vsyncpa [#allocation7 + $0x1], 0  ;;  %s6313_s15 = smov 0   ;;  %s6315_s16 = smov 0  }
   0x5   :  { %s6317_s17 = smov 0   ;;  %s6319_s18 = smov 0  }
   0x6 LB: > { %s6334_s19 = sadd.s32 4294967295, %s6278_s18   ;;  %s4888_s20 = sadd.s32 4294967294, %s6278_s18   ;;  %s6278_s18 = sphi %s6319_s18, %s10405_s18   ;;  %s6274_s17 = sphi %s6317_s17, %s10404_s17   ;;  %s6270_s16 = sphi %s6315_s16, %s10403_s16   ;;  %s6266_s15 = sphi %s6313_s15, %s10402_s15  }
   0x7   : > { %s6338_s21 = sadd.s32 1, %s6278_s18   ;;  %s97_s22 = sadd.s32 1, %s6274_s17 }
   0x8   : > { %s94_s23 = ssub.s32 %s6278_s18, %s6338_s21  ;;  %p107_p0 = scmp.ne.s32.totalorder %s6274_s17, %s6270_s16 }
   0x9   : > { %p95_p1 = scmp.eq.s32.totalorder %s94_s23, 0  ;;  %p108_p2 = scmp.eq.s32.totalorder %s6334_s19, 1 }
   0xa   : > { %p113_p3 = scmp.ne.s32.totalorder %s6270_s16, %s6266_s15  ;;  %p114_p4 = scmp.eq.s32.totalorder %s4888_s20, 1 }
   0xb   : > { %s6349_s24 = scalar_select %p95_p1, %s6274_s17, %s97_s22  }
   0xc   : > { %p6351_p5 = por %p108_p2, %p107_p0  ;;  %p6355_p6 = por %p114_p4, %p113_p3 }
   0xd   : > { %p4889_p7 = scmp.ge.s32.totalorder %s6278_s18, 1  ;;  %p147_p8 = scmp.lt.s32.totalorder %s6278_s18, 3 }
   0xe   : > { %s9716_s25 = scalar_select %p6351_p5, 1, 0 }
   0xf   : > { %s9717_s26 = scalar_select %p6355_p6, 1, 0 }
  0x10   : > { %p9372_p9 = scmp.eq.s32.totalorder %s6334_s19, 0  ;;  %p6362_p10 = pnand %p4889_p7, %p147_p8 }
  0x11   : > { %s6280_s28 = smov [#allocation2]   ;;  %s6152_s7 = scalar_lea.hbm %s9369_s2, 2048 }
  0x12   : > { %s9718_s27 = scalar_select %p6362_p10, 1, 0 }
  0x13   : > { %s162_s29 = sshll.u32 %s6280_s28, 4  ;;  %p5332_p11 = pneg %p6362_p10  ;;  %s163_s29 = int_to_ptr.vmem [resolvable:$true] %s162_s29 }
  0x14   : > { %p6153_p13 = scmp.ne.s32.totalorder %s9369_s2, %s6152_s7  ;;  %p6159_p3 = scmp.lt.u32.totalorder %s6152_s7, %s9369_s2 }
  0x15   : > { %p6370_p12 = pnand %p9372_p9, %p5332_p11 }
  0x17   : > { %p6154_p0 = pneg %p6370_p12 }
  0x19   : > { %p6155_p1 = pnand %p6154_p0, %p6153_p13 }
  0x1b   : > { %p6156_p2 = pneg %p6155_p1 }
  0x1d   : > { %p6161_p4 = pnand %p6159_p3, %p6156_p2 }
  0x1f   : > { %6164 = shalt.err (!%p6161_p4)
}
  0x20   : > { %s6165_s12 = scalar_lea.vmem %s163_s29, 2048  ;;  %p6173_p9 = scmp.lt.s32.totalorder %s163_s29, %s163_s29 }
  0x21   : > { %p6166_p7 = scmp.ne.s32.totalorder %s163_s29, %s6165_s12  ;;  %p6174_p6 = scmp.lt.s32.totalorder %s6165_s12, %s6165_s12 }
  0x23   : > { %p6168_p8 = pnand %p6166_p7, %p6154_p0  ;;  %p6175_p5 = por %p6174_p6, %p6173_p9 }
  0x25   : > { %p6169_p11 = pneg %p6168_p8 }
  0x27   : > { %p6176_p10 = pnand %p6175_p5, %p6169_p11 }
  0x29   : > { %6179 = shalt.err (!%p6176_p10)
}
  0x2a   : > { %s6281_s13 = smov 256   ;;  %s6282_s14 = smov 16  }
  0x2b   : > { %5335 = dma.hbm_to_vmem [thread:$0]  (!%p6370_p12), %s9369_s2, 2048, %s163_s29, [#allocation3], %s6281_s13, %s6281_s13, %s6282_s14  }
  0x2c   : > { %p9720_p13 = scmp.ne.s32.totalorder %s9718_s27, 0 }
  0x2e   : > { %186 = sbr.rel (%p9720_p13) target bundleno = 2010 (0x7da), region = 32 }
  0x35   : > { %p9721_p1 = scmp.eq.s32.totalorder %s6334_s19, 0 }
  0x37   : > { %6253 = dma.done.wait (%p9721_p1), [#allocation3], 2048   ;;  %p9722_p0 = pmov %p9721_p1 }
  0x38   : > { %p217_p5 = scmp.lt.s32.totalorder %s6334_s19, 1  ;;  %v9375_v0 = vmov 0.0   ;;  %vm337_vm0 = vcmask 1040384   ;;  %v240_v27 = vld [vmem:[%s9368_s1] sm:$0xff]  ;;  %vm264_vm1 = vcmask 531456   ;;  %v241_v28 = vld [vmem:[%s9368_s1 + $0x8] sm:$0xff] }
  0x39   : > { %6255 = vsyncadd (%p9722_p0), [#allocation3], 4294965248  ;;  %408 = vmatprep.mubr.f32.mxu0 %v9375_v0  ;;  %480 = vmatprep.mubr.f32.mxu1 %v9375_v0  ;;  %v242_v29 = vld [vmem:[%s9368_s1 + $0x10] sm:$0xff]  ;;  %v243_v30 = vld [vmem:[%s9368_s1 + $0x18] sm:$0xff]  ;;  %vm621_vm2 = vcmask 261120   ;;  %s7668_s29 = sand.u32 1, %s6270_s16  }
  0x3a   : > { %s218_s23 = scalar_select %p217_p5, %s6334_s19, 1  ;;  %v244_v31 = vld [vmem:[%s9368_s1 + $0x20] sm:$0xff]  ;;  %v245_v32 = vld [vmem:[%s9368_s1 + $0x28] sm:$0xff]  ;;  %v246_v33 = vld [vmem:[%s9368_s1 + $0x30] sm:$0xff] }
  0x3b   : > { %v247_v34 = vld [vmem:[%s9368_s1 + $0x38] sm:$0xff]  ;;  %v248_v35 = vld [vmem:[%s9368_s1 + $0x40] sm:$0xff]  ;;  %v249_v36 = vld [vmem:[%s9368_s1 + $0x48] sm:$0xff]  ;;  %s4895_s30 = sshll.u32 %s7668_s29, 11  ;;  %s4894_s5 = sshll.u32 %s7668_s29, 7 }
  0x3c   : > { %s5323_s28 = smul.u32 144, %s218_s23  ;;  %v250_v37 = vld [vmem:[%s9368_s1 + $0x50] sm:$0xff]  ;;  %v251_v38 = vld [vmem:[%s9368_s1 + $0x58] sm:$0xff]  ;;  %v252_v39 = vld [vmem:[%s9368_s1 + $0x60] sm:$0xff]  ;;  %s8102_s6 = scalar_lea.vmem [#allocation5], %s4894_s5 }
  0x3d   : > { %v253_v40 = vld [vmem:[%s9368_s1 + $0x68] sm:$0xff]  ;;  %v254_v41 = vld [vmem:[%s9368_s1 + $0x70] sm:$0xff]  ;;  %v255_v42 = vld [vmem:[%s9368_s1 + $0x78] sm:$0xff]  ;;  %s5264_s7 = sshll.u32 %s6334_s19, 15  ;;  %s4753_s12 = scalar_lea.sflag [#allocation7], %s7668_s29 }
  0x3e   : > { %s6403_s27 = scalar_lea.vmem %s9367_s0, %s5323_s28  ;;  %v256_v43 = vld [vmem:[%s9368_s1 + $0x80] sm:$0xff]  ;;  %v257_v44 = vld [vmem:[%s9368_s1 + $0x88] sm:$0xff]  ;;  %v258_v45 = vld [vmem:[%s9368_s1 + $0x90] sm:$0xff]  ;;  %s9275_s11 = scalar_lea.hbm %s9371_s4, %s5264_s7 }
  0x3f   : > { %v223_v1 = vld [vmem:[%s6403_s27 + $0x8] sm:$0xff]  ;;  %v225_v2 = vld [vmem:[%s6403_s27 + $0x18] sm:$0xff]  ;;  %v222_v3 = vld [vmem:[%s6403_s27] sm:$0xff]  ;;  %p10400_p9 = scmp.ne.s32.totalorder %s9716_s25, 0  ;;  %s6284_s14 = smov [#allocation6]  }
  0x40   : > { %v5265_v4 = vpack.c.bf16 %v225_v2, %v223_v1  ;;  %v224_v5 = vld [vmem:[%s6403_s27 + $0x10] sm:$0xff]  ;;  %v227_v6 = vld [vmem:[%s6403_s27 + $0x28] sm:$0xff]  ;;  %v229_v7 = vld [vmem:[%s6403_s27 + $0x38] sm:$0xff]  ;;  %s6184_s20 = sshll.u32 %s6284_s14, 4  ;;  %s6185_s20 = int_to_ptr.vmem [resolvable:$false] %s6184_s20 }
  0x41   : > { %v5267_v8 = vpack.c.bf16 %v224_v5, %v222_v3  ;;  %v5269_v9 = vpack.c.bf16 %v229_v7, %v227_v6  ;;  %v226_v10 = vld [vmem:[%s6403_s27 + $0x20] sm:$0xff]  ;;  %v228_v11 = vld [vmem:[%s6403_s27 + $0x30] sm:$0xff]  ;;  %v231_v12 = vld [vmem:[%s6403_s27 + $0x48] sm:$0xff]  ;;  %s6186_s22 = scalar_lea.vmem %s6185_s20, 65536 }
  0x42   : > { %5266 = vmatprep.subr.bf16.mxu0 %v5265_v4  ;;  %v233_v13 = vld [vmem:[%s6403_s27 + $0x58] sm:$0xff]  ;;  %5313 = vmatprep.subr.bf16.mxu1 %v5265_v4  ;;  %v5271_v14 = vpack.c.bf16 %v228_v11, %v226_v10  ;;  %v230_v16 = vld [vmem:[%s6403_s27 + $0x40] sm:$0xff]  ;;  %v232_v17 = vld [vmem:[%s6403_s27 + $0x50] sm:$0xff] }
  0x43   : > { %5268 = vmatpush1.bf16.msra.mxu0 %v5267_v8  ;;  %5318 = vmatpush1.bf16.msra.mxu1 %v5267_v8  ;;  %v5273_v15 = vpack.c.bf16 %v233_v13, %v231_v12  ;;  %v235_v18 = vld [vmem:[%s6403_s27 + $0x68] sm:$0xff]  ;;  %v237_v19 = vld [vmem:[%s6403_s27 + $0x78] sm:$0xff]  ;;  %v5275_v20 = vpack.c.bf16 %v232_v17, %v230_v16  ;;  %v234_v22 = vld [vmem:[%s6403_s27 + $0x60] sm:$0xff] }
  0x44   : > { %5270 = vmatprep.subr.bf16.mxu0 %v5269_v9  ;;  %5314 = vmatprep.subr.bf16.mxu1 %v5269_v9  ;;  %v5277_v21 = vpack.c.bf16 %v237_v19, %v235_v18  ;;  %v236_v23 = vld [vmem:[%s6403_s27 + $0x70] sm:$0xff]  ;;  %v239_v25 = vld [vmem:[%s6403_s27 + $0x88] sm:$0x1]  ;;  %v238_v26 = vld [vmem:[%s6403_s27 + $0x80] sm:$0x1]  ;;  %s7673_s27 = scalar_lea.vmem [#allocation6], %s4895_s30 }
  0x45   : > { %v5279_v24 = vpack.c.bf16 %v236_v23, %v234_v22  ;;  %v259_v46 = vld [vmem:[%s9368_s1 + $0x98] sm:$0xff]  ;;  %v260_v47 = vld [vmem:[%s9368_s1 + $0xa0] sm:$0xff]  ;;  %v261_v48 = vld [vmem:[%s9368_s1 + $0xa8] sm:$0xff]  ;;  %s4782_s8 = sshll.u32 %s7673_s27, 4  ;;  %s9277_s8 = int_to_ptr.vmem [resolvable:$true] %s4782_s8 }
  0x46   : > { %v262_v49 = vld [vmem:[%s9368_s1 + $0xb0] sm:$0xff]  ;;  %v263_v50 = vld [vmem:[%s9368_s1 + $0xb8] sm:$0xff]  ;;  %v553_v57 = vld [vmem:[#allocation2] sm:$0xff]  ;;  %s6180_s13 = scalar_lea.vmem %s9277_s8, 32768  ;;  %p6187_p2 = scmp.lt.s32.totalorder %s9277_s8, %s6185_s20 }
  0x47   : > { %5272 = vmatpush1.bf16.msra.mxu0 %v5271_v14  ;;  %5319 = vmatpush1.bf16.msra.mxu1 %v5271_v14  ;;  %v555_v60 = vld [vmem:[#allocation2 + $0x10] sm:$0xff]  ;;  %v1601_v2 = vld [vmem:[#allocation2 + $0x20] sm:$0xff]  ;;  %p6181_p6 = scmp.ne.s32.totalorder %s9277_s8, %s6180_s13  ;;  %p6188_p3 = scmp.lt.s32.totalorder %s6186_s22, %s6180_s13 }
  0x48   : > { %5274 = vmatprep.subr.bf16.mxu0 %v5273_v15  ;;  %5315 = vmatprep.subr.bf16.mxu1 %v5273_v15  ;;  %v1603_v5 = vld [vmem:[#allocation2 + $0x30] sm:$0xff] }
  0x49   : > { %p6182_p10 = pnand %p6181_p6, %p10400_p9  ;;  %p6189_p4 = por %p6188_p3, %p6187_p2 }
  0x4b   : > { %5276 = vmatpush1.bf16.msra.mxu0 %v5275_v20  ;;  %5320 = vmatpush1.bf16.msra.mxu1 %v5275_v20  ;;  %p6183_p12 = pneg %p6182_p10 }
  0x4c   : > { %5278 = vmatprep.subr.bf16.mxu0 %v5277_v21  ;;  %5316 = vmatprep.subr.bf16.mxu1 %v5277_v21 }
  0x4d   : > { %p6190_p7 = pnand %p6189_p4, %p6183_p12 }
  0x4f   : > { %5280 = vmatpush1.bf16.msra.mxu0 %v5279_v24  ;;  %5321 = vmatpush1.bf16.msra.mxu1 %v5279_v24 }
  0x50   : > { %4897 = vmatprep.subr.msk.mxu0 %vm337_vm0, %v239_v25  ;;  %5317 = vmatprep.subr.msk.mxu1 %vm337_vm0, %v239_v25 }
  0x53   : > { %4898 = vmatpush1.msk.msra.mxu0 %vm337_vm0, %v238_v26  ;;  %5322 = vmatpush1.msk.msra.mxu1 %vm337_vm0, %v238_v26 }
  0x54   : > { %4899 = vmatmul.mubr.msk.f32.vlgmr.msra.gmra.mrb[0].mxu0 %vm264_vm1, %v240_v27  ;;  %4911 = vmatmul.mubr.msk.f32.vlgmr.msra.gmra.mrb[0].mxu1 %vm264_vm1, %v252_v39 }
  0x55   : > { %414 = vmatprep.mubr.f32.mxu0 %v9375_v0  ;;  %486 = vmatprep.mubr.f32.mxu1 %v9375_v0 }
  0x58   : > { %4900 = vmatmul.mubr.msk.f32.gmra.mrb[2].mxu0 %vm264_vm1, %v241_v28  ;;  %4912 = vmatmul.mubr.msk.f32.gmra.mrb[2].mxu1 %vm264_vm1, %v253_v40  ;;  %v554_v28 = vld [vmem:[#allocation2 + $0x8] sm:$0xff] }
  0x59   : > { %420 = vmatprep.mubr.f32.mxu0 %v9375_v0  ;;  %492 = vmatprep.mubr.f32.mxu1 %v9375_v0 }
  0x5c   : > { %4901 = vmatmul.mubr.msk.f32.gmra.mrb[4].mxu0 %vm264_vm1, %v242_v29  ;;  %4913 = vmatmul.mubr.msk.f32.gmra.mrb[4].mxu1 %vm264_vm1, %v254_v41  ;;  %v556_v29 = vld [vmem:[#allocation2 + $0x18] sm:$0xff] }
  0x5d   : > { %426 = vmatprep.mubr.f32.mxu0 %v9375_v0  ;;  %498 = vmatprep.mubr.f32.mxu1 %v9375_v0 }
  0x60   : > { %4902 = vmatmul.mubr.msk.f32.gmra.mrb[6].mxu0 %vm264_vm1, %v243_v30  ;;  %4914 = vmatmul.mubr.msk.f32.gmra.mrb[6].mxu1 %vm264_vm1, %v255_v42  ;;  %v1602_v30 = vld [vmem:[#allocation2 + $0x28] sm:$0xff] }
  0x61   : > { %432 = vmatprep.mubr.f32.mxu0 %v9375_v0  ;;  %504 = vmatprep.mubr.f32.mxu1 %v9375_v0 }
  0x64   : > { %4903 = vmatmul.mubr.msk.f32.gmra.mrb[8].mxu0 %vm264_vm1, %v244_v31  ;;  %4915 = vmatmul.mubr.msk.f32.gmra.mrb[8].mxu1 %vm264_vm1, %v256_v43  ;;  %v1604_v31 = vld [vmem:[#allocation2 + $0x38] sm:$0xff] }
  0x65   : > { %438 = vmatprep.mubr.f32.mxu0 %v9375_v0  ;;  %510 = vmatprep.mubr.f32.mxu1 %v9375_v0 }
  0x68   : > { %4904 = vmatmul.mubr.msk.f32.gmra.mrb[10].mxu0 %vm264_vm1, %v245_v32  ;;  %4916 = vmatmul.mubr.msk.f32.gmra.mrb[10].mxu1 %vm264_vm1, %v257_v44 }
  0x69   : > { %444 = vmatprep.mubr.f32.mxu0 %v9375_v0  ;;  %516 = vmatprep.mubr.f32.mxu1 %v9375_v0 }
  0x6c   : > { %4905 = vmatmul.mubr.msk.f32.gmra.mrb[12].mxu0 %vm264_vm1, %v246_v33  ;;  %4917 = vmatmul.mubr.msk.f32.gmra.mrb[12].mxu1 %vm264_vm1, %v258_v45 }
  0x6d   : > { %450 = vmatprep.mubr.f32.mxu0 %v9375_v0  ;;  %522 = vmatprep.mubr.f32.mxu1 %v9375_v0 }
  0x70   : > { %4906 = vmatmul.mubr.msk.f32.gmra.mrb[14].mxu0 %vm264_vm1, %v247_v34  ;;  %4918 = vmatmul.mubr.msk.f32.gmra.mrb[14].mxu1 %vm264_vm1, %v259_v46 }
  0x71   : > { %456 = vmatprep.mubr.f32.mxu0 %v9375_v0  ;;  %528 = vmatprep.mubr.f32.mxu1 %v9375_v0 }
  0x74   : > { %4907 = vmatmul.mubr.msk.f32.gmra.mrb[16].mxu0 %vm264_vm1, %v248_v35  ;;  %4919 = vmatmul.mubr.msk.f32.gmra.mrb[16].mxu1 %vm264_vm1, %v260_v47 }
  0x75   : > { %462 = vmatprep.mubr.f32.mxu0 %v9375_v0  ;;  %534 = vmatprep.mubr.f32.mxu1 %v9375_v0 }
  0x78   : > { %4908 = vmatmul.mubr.msk.f32.gmra.mrb[18].mxu0 %vm264_vm1, %v249_v36  ;;  %4920 = vmatmul.mubr.msk.f32.gmra.mrb[18].mxu1 %vm264_vm1, %v261_v48 }
  0x79   : > { %468 = vmatprep.mubr.f32.mxu0 %v9375_v0  ;;  %540 = vmatprep.mubr.f32.mxu1 %v9375_v0 }
  0x7c   : > { %4909 = vmatmul.mubr.msk.f32.gmra.mrb[20].mxu0 %vm264_vm1, %v250_v37  ;;  %4921 = vmatmul.mubr.msk.f32.gmra.mrb[20].mxu1 %vm264_vm1, %v262_v49 }
  0x7d   : > { %474 = vmatprep.mubr.f32.mxu0 %v9375_v0  ;;  %546 = vmatprep.mubr.f32.mxu1 %v9375_v0 }
  0x80   : > { %4910 = vmatmul.mubr.msk.f32.gmra.mrb[22].mxu0 %vm264_vm1, %v251_v38  ;;  %4922 = vmatmul.mubr.msk.f32.gmra.mrb[22].mxu1 %vm264_vm1, %v263_v50 }
  0x81   : > { %1829 = vmatprep.mubr.f32.mxu0 %v9375_v0  ;;  %782 = vmatprep.mubr.f32.mxu1 %v9375_v0 }
 0x127   : > { %v410_v51 = vpop.f32.mrb[0].mxu0  ;;  %v6570_v34 = vpop.f32.mrb[0].mxu1 }
 0x128   : > { %557 = vxpose.xlu0.b32.start [1/4] (short) %v410_v51, 128  ;;  %v412_v52 = vpop.f32.mrb[1].mxu0  ;;  %9731 = vst [vmem:[#allocation19_spill] sm:$0xff] %v6570_v34  ;;  %v6573_v35 = vpop.f32.mrb[1].mxu1 }
 0x129   : > { %9732 = vst [vmem:[#allocation20_spill] sm:$0xff] %v6573_v35 }
 0x12b   : > { %v416_v53 = vpop.f32.mrb[2].mxu0  ;;  %v6597_v48 = vpop.f32.mrb[2].mxu1 }
 0x12c   : > { %v5287_v54 = vpack.c.bf16 %v416_v53, %v410_v51  ;;  %558 = vxpose.xlu0.b32.cont [2/4] (short) %v416_v53, 128  ;;  %v418_v55 = vpop.f32.mrb[3].mxu0  ;;  %9733 = vst [vmem:[#allocation21_spill] sm:$0xff] %v6597_v48  ;;  %v6603_v50 = vpop.f32.mrb[3].mxu1 }
 0x12d   : > { %v5285_v56 = vpack.c.bf16 %v418_v55, %v412_v52  ;;  %9734 = vst [vmem:[#allocation22_spill] sm:$0xff] %v6603_v50 }
 0x12f   : > { %v422_v58 = vpop.f32.mrb[4].mxu0 }
 0x130   : > { %559 = vxpose.xlu0.b32.cont [3/4] (short) %v553_v57, 128  ;;  %1605 = vxpose.xlu1.b32.start [1/4] (short) %v422_v58, 128  ;;  %v424_v59 = vpop.f32.mrb[5].mxu0 }
 0x133   : > { %v428_v61 = vpop.f32.mrb[6].mxu0 }
 0x134   : > { %v5295_v62 = vpack.c.bf16 %v428_v61, %v422_v58  ;;  %560 = vxpose.xlu0.b32.end [4/4] (short) %v555_v60, 128  ;;  %1606 = vxpose.xlu1.b32.cont [2/4] (short) %v428_v61, 128  ;;  %v430_v63 = vpop.f32.mrb[7].mxu0 }
 0x135   : > { %v5293_v1 = vpack.c.bf16 %v430_v63, %v424_v59 }
 0x137   : > { %v6543_v3 = vpop.f32.mrb[8].mxu0 }
 0x138   : > { %9723 = vst [vmem:[#allocation11_spill] sm:$0xff] %v6543_v3  ;;  %1607 = vxpose.xlu1.b32.cont [3/4] (short) %v1601_v2, 128  ;;  %v6545_v4 = vpop.f32.mrb[9].mxu0 }
 0x139   : > { %9724 = vst [vmem:[#allocation12_spill] sm:$0xff] %v6545_v4 }
 0x13b   : > { %v6547_v6 = vpop.f32.mrb[10].mxu0 }
 0x13c   : > { %9725 = vst [vmem:[#allocation13_spill] sm:$0xff] %v6547_v6  ;;  %1608 = vxpose.xlu1.b32.end [4/4] (short) %v1603_v5, 128  ;;  %v6551_v8 = vpop.f32.mrb[11].mxu0 }
 0x13d   : > { %9726 = vst [vmem:[#allocation14_spill] sm:$0xff] %v6551_v8 }
 0x13f   : > { %v6555_v10 = vpop.f32.mrb[12].mxu0 }
 0x140   : > { %9727 = vst [vmem:[#allocation15_spill] sm:$0xff] %v6555_v10  ;;  %v6557_v11 = vpop.f32.mrb[13].mxu0 }
 0x141   : > { %9728 = vst [vmem:[#allocation16_spill] sm:$0xff] %v6557_v11 }
 0x143   : > { %v6559_v12 = vpop.f32.mrb[14].mxu0 }
 0x144   : > { %9729 = vst [vmem:[#allocation17_spill] sm:$0xff] %v6559_v12  ;;  %v6563_v14 = vpop.f32.mrb[15].mxu0 }
 0x145   : > { %9730 = vst [vmem:[#allocation18_spill] sm:$0xff] %v6563_v14 }
 0x147   : > { %v458_v16 = vpop.f32.mrb[16].mxu0 }
 0x148   : > { %v460_v17 = vpop.f32.mrb[17].mxu0 }
 0x14b   : > { %v464_v18 = vpop.f32.mrb[18].mxu0 }
 0x14c   : > { %v5283_v19 = vpack.c.bf16 %v464_v18, %v458_v16  ;;  %v466_v20 = vpop.f32.mrb[19].mxu0 }
 0x14d   : > { %v5281_v21 = vpack.c.bf16 %v466_v20, %v460_v17 }
 0x14f   : > { %5282 = vmatprep.subr.bf16.mxu1 %v5281_v21  ;;  %v470_v22 = vpop.f32.mrb[20].mxu0 }
 0x150   : > { %5284 = vmatpush1.bf16.msra.mxu1 %v5283_v19  ;;  %v472_v23 = vpop.f32.mrb[21].mxu0 }
 0x151   : > { %5286 = vmatprep.subr.bf16.mxu1 %v5285_v56 }
 0x153   : > { %v476_v24 = vpop.f32.mrb[22].mxu0 }
 0x154   : > { %v5291_v25 = vpack.c.bf16 %v476_v24, %v470_v22  ;;  %v478_v26 = vpop.f32.mrb[23].mxu0  ;;  %5288 = vmatpush1.bf16.msra.mxu1 %v5287_v54  ;;  %v6609_v54 = vpop.f32.mrb[4].mxu1 }
 0x155   : > { %v5289_v27 = vpack.c.bf16 %v478_v26, %v472_v23  ;;  %9735 = vst [vmem:[#allocation23_spill] sm:$0xff] %v6609_v54 }
 0x157   : > { %5290 = vmatprep.subr.bf16.mxu0 %v5289_v27 }
 0x158   : > { %5292 = vmatpush1.bf16.msra.mxu0 %v5291_v25 }
 0x159   : > { %5294 = vmatprep.subr.bf16.mxu0 %v5293_v1 }
 0x15c   : > { %5296 = vmatpush1.bf16.msra.mxu0 %v5295_v62 }
 0x165   : > { %589 = vxpose.xlu0.b32.start [1/4] (short) %v412_v52, 128 }
 0x169   : > { %590 = vxpose.xlu0.b32.cont [2/4] (short) %v418_v55, 128  ;;  %v6613_v55 = vpop.f32.mrb[5].mxu1 }
 0x16a   : > { %9736 = vst [vmem:[#allocation24_spill] sm:$0xff] %v6613_v55  ;;  %v6617_v58 = vpop.f32.mrb[6].mxu1 }
 0x16b   : > { %9737 = vst [vmem:[#allocation25_spill] sm:$0xff] %v6617_v58  ;;  %v6623_v60 = vpop.f32.mrb[7].mxu1 }
 0x16c   : > { %9738 = vst [vmem:[#allocation26_spill] sm:$0xff] %v6623_v60  ;;  %v6629_v1 = vpop.f32.mrb[8].mxu1 }
 0x16d   : > { %1637 = vxpose.xlu1.b32.start [1/4] (short) %v424_v59, 128  ;;  %591 = vxpose.xlu0.b32.cont [3/4] (short) %v554_v28, 128  ;;  %9739 = vst [vmem:[#allocation27_spill] sm:$0xff] %v6629_v1  ;;  %v6633_v2 = vpop.f32.mrb[9].mxu1 }
 0x16e   : > { %v6637_v17 = vpop.f32.mrb[10].mxu1 }
 0x16f   : > { %9740 = vst [vmem:[#allocation28_spill] sm:$0xff] %v6637_v17  ;;  %v6643_v19 = vpop.f32.mrb[11].mxu1 }
 0x170   : > { %v1520_v20 = vpack.c.bf16 %v6643_v19, %v6633_v2  ;;  %v6649_v23 = vpop.f32.mrb[12].mxu1 }
 0x171   : > { %1638 = vxpose.xlu1.b32.cont [2/4] (short) %v430_v63, 128  ;;  %592 = vxpose.xlu0.b32.end [4/4] (short) %v556_v29, 128  ;;  %9741 = vst [vmem:[#allocation29_spill] sm:$0xff] %v6649_v23  ;;  %v6653_v24 = vpop.f32.mrb[13].mxu1 }
 0x172   : > { %v6657_v27 = vpop.f32.mrb[14].mxu1 }
 0x173   : > { %9742 = vst [vmem:[#allocation30_spill] sm:$0xff] %v6657_v27  ;;  %v6663_v29 = vpop.f32.mrb[15].mxu1 }
 0x175   : > { %1639 = vxpose.xlu1.b32.cont [3/4] (short) %v1602_v30, 128  ;;  %v2568_v30 = vpack.c.bf16 %v6663_v29, %v6653_v24 }
 0x179   : > { %1640 = vxpose.xlu1.b32.end [4/4] (short) %v1604_v31, 128 }
 0x1a8   : > { %v573_v32 = vpop.trf.xlu0 }
 0x1a9   : > { %4923 = vmatmul.mubr.msk.f32.vlgmr.msra.gmra.mrb[24].mxu1 %vm621_vm2, %v573_v32 }
 0x1aa   : > { %788 = vmatprep.mubr.f32.mxu1 %v9375_v0 }
 0x1ac   : > { %v574_v33 = vpop.trf.xlu0 }
 0x1ad   : > { %4924 = vmatmul.mubr.msk.f32.gmra.mrb[26].mxu1 %vm621_vm2, %v574_v33  ;;  %v6669_v33 = vpop.f32.mrb[16].mxu1 }
 0x1ae   : > { %794 = vmatprep.mubr.f32.mxu1 %v9375_v0  ;;  %9743 = vst [vmem:[#allocation31_spill] sm:$0xff] %v6669_v33 }
 0x1b0   : > { %v575_v36 = vpop.trf.xlu0  ;;  %v1621_v37 = vpop.trf.xlu1 }
 0x1b1   : > { %4925 = vmatmul.mubr.msk.f32.gmra.mrb[28].mxu1 %vm621_vm2, %v575_v36  ;;  %4955 = vmatmul.mubr.msk.f32.vlgmr.msra.gmra.mrb[24].mxu0 %vm621_vm2, %v1621_v37  ;;  %v6673_v36 = vpop.f32.mrb[17].mxu1 }
 0x1b2   : > { %1835 = vmatprep.mubr.f32.mxu0 %v9375_v0  ;;  %800 = vmatprep.mubr.f32.mxu1 %v9375_v0  ;;  %9744 = vst [vmem:[#allocation32_spill] sm:$0xff] %v6673_v36 }
 0x1b4   : > { %v1622_v38 = vpop.trf.xlu1  ;;  %v576_v39 = vpop.trf.xlu0 }
 0x1b5   : > { %4956 = vmatmul.mubr.msk.f32.gmra.mrb[26].mxu0 %vm621_vm2, %v1622_v38  ;;  %4926 = vmatmul.mubr.msk.f32.gmra.mrb[30].mxu1 %vm621_vm2, %v576_v39  ;;  %v6677_v39 = vpop.f32.mrb[18].mxu1 }
 0x1b6   : > { %1841 = vmatprep.mubr.f32.mxu0 %v9375_v0  ;;  %806 = vmatprep.mubr.f32.mxu1 %v9375_v0  ;;  %9745 = vst [vmem:[#allocation33_spill] sm:$0xff] %v6677_v39 }
 0x1b8   : > { %v1623_v40 = vpop.trf.xlu1  ;;  %v577_v41 = vpop.trf.xlu0 }
 0x1b9   : > { %4957 = vmatmul.mubr.msk.f32.gmra.mrb[28].mxu0 %vm621_vm2, %v1623_v40  ;;  %4927 = vmatmul.mubr.msk.f32.gmra.mrb[32].mxu1 %vm621_vm2, %v577_v41  ;;  %v6683_v41 = vpop.f32.mrb[19].mxu1 }
 0x1ba   : > { %1847 = vmatprep.mubr.f32.mxu0 %v9375_v0  ;;  %812 = vmatprep.mubr.f32.mxu1 %v9375_v0  ;;  %9746 = vst [vmem:[#allocation34_spill] sm:$0xff] %v6683_v41 }
 0x1bc   : > { %v1624_v42 = vpop.trf.xlu1  ;;  %v578_v43 = vpop.trf.xlu0 }
 0x1bd   : > { %4958 = vmatmul.mubr.msk.f32.gmra.mrb[30].mxu0 %vm621_vm2, %v1624_v42  ;;  %4928 = vmatmul.mubr.msk.f32.gmra.mrb[34].mxu1 %vm621_vm2, %v578_v43 }
 0x1be   : > { %1853 = vmatprep.mubr.f32.mxu0 %v9375_v0  ;;  %818 = vmatprep.mubr.f32.mxu1 %v9375_v0 }
 0x1c0   : > { %v1625_v44 = vpop.trf.xlu1  ;;  %v579_v45 = vpop.trf.xlu0 }
 0x1c1   : > { %4959 = vmatmul.mubr.msk.f32.gmra.mrb[32].mxu0 %vm621_vm2, %v1625_v44  ;;  %4929 = vmatmul.mubr.msk.f32.gmra.mrb[36].mxu1 %vm621_vm2, %v579_v45  ;;  %v6689_v45 = vpop.f32.mrb[20].mxu1 }
 0x1c2   : > { %1859 = vmatprep.mubr.f32.mxu0 %v9375_v0  ;;  %824 = vmatprep.mubr.f32.mxu1 %v9375_v0  ;;  %9747 = vst [vmem:[#allocation35_spill] sm:$0xff] %v6689_v45 }
 0x1c4   : > { %v1626_v46 = vpop.trf.xlu1  ;;  %v580_v47 = vpop.trf.xlu0 }
 0x1c5   : > { %4960 = vmatmul.mubr.msk.f32.gmra.mrb[34].mxu0 %vm621_vm2, %v1626_v46  ;;  %4930 = vmatmul.mubr.msk.f32.gmra.mrb[38].mxu1 %vm621_vm2, %v580_v47  ;;  %v6693_v46 = vpop.f32.mrb[21].mxu1 }
 0x1c6   : > { %1865 = vmatprep.mubr.f32.mxu0 %v9375_v0  ;;  %830 = vmatprep.mubr.f32.mxu1 %v9375_v0  ;;  %9748 = vst [vmem:[#allocation36_spill] sm:$0xff] %v6693_v46 }
 0x1c8   : > { %v1627_v52 = vpop.trf.xlu1  ;;  %v581_v53 = vpop.trf.xlu0 }
 0x1c9   : > { %4961 = vmatmul.mubr.msk.f32.gmra.mrb[36].mxu0 %vm621_vm2, %v1627_v52  ;;  %4931 = vmatmul.mubr.msk.f32.gmra.mrb[40].mxu1 %vm621_vm2, %v581_v53  ;;  %v6697_v53 = vpop.f32.mrb[22].mxu1 }
 0x1ca   : > { %1871 = vmatprep.mubr.f32.mxu0 %v9375_v0  ;;  %836 = vmatprep.mubr.f32.mxu1 %v9375_v0  ;;  %9749 = vst [vmem:[#allocation37_spill] sm:$0xff] %v6697_v53 }
 0x1cc   : > { %v1628_v56 = vpop.trf.xlu1  ;;  %v582_v57 = vpop.trf.xlu0 }
 0x1cd   : > { %4962 = vmatmul.mubr.msk.f32.gmra.mrb[38].mxu0 %vm621_vm2, %v1628_v56  ;;  %4932 = vmatmul.mubr.msk.f32.gmra.mrb[42].mxu1 %vm621_vm2, %v582_v57  ;;  %v6703_v57 = vpop.f32.mrb[23].mxu1 }
 0x1ce   : > { %1877 = vmatprep.mubr.f32.mxu0 %v9375_v0  ;;  %842 = vmatprep.mubr.f32.mxu1 %v9375_v0  ;;  %9750 = vst [vmem:[#allocation38_spill] sm:$0xff] %v6703_v57 }
 0x1d0   : > { %v1629_v62 = vpop.trf.xlu1  ;;  %v583_v63 = vpop.trf.xlu0 }
 0x1d1   : > { %4963 = vmatmul.mubr.msk.f32.gmra.mrb[40].mxu0 %vm621_vm2, %v1629_v62  ;;  %4933 = vmatmul.mubr.msk.f32.gmra.mrb[44].mxu1 %vm621_vm2, %v583_v63 }
 0x1d2   : > { %1883 = vmatprep.mubr.f32.mxu0 %v9375_v0  ;;  %848 = vmatprep.mubr.f32.mxu1 %v9375_v0 }
 0x1d4   : > { %v1630_v5 = vpop.trf.xlu1  ;;  %v584_v16 = vpop.trf.xlu0 }
 0x1d5   : > { %4964 = vmatmul.mubr.msk.f32.gmra.mrb[42].mxu0 %vm621_vm2, %v1630_v5  ;;  %4934 = vmatmul.mubr.msk.f32.gmra.mrb[46].mxu1 %vm621_vm2, %v584_v16 }
 0x1d6   : > { %1889 = vmatprep.mubr.f32.mxu0 %v9375_v0  ;;  %854 = vmatprep.mubr.f32.mxu1 %v9375_v0 }
 0x1d8   : > { %v1631_v21 = vpop.trf.xlu1  ;;  %v585_v22 = vpop.trf.xlu0 }
 0x1d9   : > { %4965 = vmatmul.mubr.msk.f32.gmra.mrb[44].mxu0 %vm621_vm2, %v1631_v21  ;;  %4935 = vmatmul.mubr.msk.f32.gmra.mrb[48].mxu1 %vm621_vm2, %v585_v22 }
 0x1da   : > { %1895 = vmatprep.mubr.f32.mxu0 %v9375_v0  ;;  %860 = vmatprep.mubr.f32.mxu1 %v9375_v0 }
 0x1dc   : > { %v1632_v25 = vpop.trf.xlu1  ;;  %v586_v26 = vpop.trf.xlu0 }
 0x1dd   : > { %4966 = vmatmul.mubr.msk.f32.gmra.mrb[46].mxu0 %vm621_vm2, %v1632_v25  ;;  %4936 = vmatmul.mubr.msk.f32.gmra.mrb[50].mxu1 %vm621_vm2, %v586_v26 }
 0x1de   : > { %1901 = vmatprep.mubr.f32.mxu0 %v9375_v0  ;;  %866 = vmatprep.mubr.f32.mxu1 %v9375_v0 }
 0x1e0   : > { %v1633_v31 = vpop.trf.xlu1  ;;  %v587_v32 = vpop.trf.xlu0 }
 0x1e1   : > { %4967 = vmatmul.mubr.msk.f32.gmra.mrb[48].mxu0 %vm621_vm2, %v1633_v31  ;;  %4937 = vmatmul.mubr.msk.f32.gmra.mrb[52].mxu1 %vm621_vm2, %v587_v32 }
 0x1e2   : > { %1907 = vmatprep.mubr.f32.mxu0 %v9375_v0  ;;  %872 = vmatprep.mubr.f32.mxu1 %v9375_v0 }
 0x1e4   : > { %v1634_v37 = vpop.trf.xlu1  ;;  %v588_v38 = vpop.trf.xlu0 }
 0x1e5   : > { %4968 = vmatmul.mubr.msk.f32.gmra.mrb[50].mxu0 %vm621_vm2, %v1634_v37  ;;  %4938 = vmatmul.mubr.msk.f32.gmra.mrb[54].mxu1 %vm621_vm2, %v588_v38 }
 0x1e6   : > { %1913 = vmatprep.mubr.f32.mxu0 %v9375_v0  ;;  %878 = vmatprep.mubr.f32.mxu1 %v9375_v0 }
 0x1e8   : > { %v1635_v43 = vpop.trf.xlu1  ;;  %v605_v44 = vpop.trf.xlu0 }
 0x1e9   : > { %4969 = vmatmul.mubr.msk.f32.gmra.mrb[52].mxu0 %vm621_vm2, %v1635_v43  ;;  %4939 = vmatmul.mubr.msk.f32.gmra.mrb[56].mxu1 %vm621_vm2, %v605_v44 }
 0x1ea   : > { %1919 = vmatprep.mubr.f32.mxu0 %v9375_v0  ;;  %884 = vmatprep.mubr.f32.mxu1 %v9375_v0 }
 0x1ec   : > { %v1636_v47 = vpop.trf.xlu1  ;;  %v606_v52 = vpop.trf.xlu0 }
 0x1ed   : > { %4970 = vmatmul.mubr.msk.f32.gmra.mrb[54].mxu0 %vm621_vm2, %v1636_v47  ;;  %4940 = vmatmul.mubr.msk.f32.gmra.mrb[58].mxu1 %vm621_vm2, %v606_v52 }
 0x1ee   : > { %1925 = vmatprep.mubr.f32.mxu0 %v9375_v0  ;;  %890 = vmatprep.mubr.f32.mxu1 %v9375_v0 }
 0x1f0   : > { %v1653_v63 = vpop.trf.xlu1  ;;  %v607_v5 = vpop.trf.xlu0 }
 0x1f1   : > { %4971 = vmatmul.mubr.msk.f32.gmra.mrb[56].mxu0 %vm621_vm2, %v1653_v63  ;;  %4941 = vmatmul.mubr.msk.f32.gmra.mrb[60].mxu1 %vm621_vm2, %v607_v5 }
 0x1f2   : > { %1931 = vmatprep.mubr.f32.mxu0 %v9375_v0  ;;  %896 = vmatprep.mubr.f32.mxu1 %v9375_v0 }
 0x1f4   : > { %v1654_v16 = vpop.trf.xlu1  ;;  %v608_v21 = vpop.trf.xlu0 }
 0x1f5   : > { %4972 = vmatmul.mubr.msk.f32.gmra.mrb[58].mxu0 %vm621_vm2, %v1654_v16  ;;  %4942 = vmatmul.mubr.msk.f32.gmra.mrb[62].mxu1 %vm621_vm2, %v608_v21 }
 0x1f6   : > { %1937 = vmatprep.mubr.f32.mxu0 %v9375_v0  ;;  %902 = vmatprep.mubr.f32.mxu1 %v9375_v0 }
 0x1f8   : > { %v1655_v22 = vpop.trf.xlu1  ;;  %v609_v25 = vpop.trf.xlu0 }
 0x1f9   : > { %4973 = vmatmul.mubr.msk.f32.gmra.mrb[60].mxu0 %vm621_vm2, %v1655_v22  ;;  %4943 = vmatmul.mubr.msk.f32.gmra.mrb[64].mxu1 %vm621_vm2, %v609_v25 }
 0x1fa   : > { %1943 = vmatprep.mubr.f32.mxu0 %v9375_v0  ;;  %908 = vmatprep.mubr.f32.mxu1 %v9375_v0 }
 0x1fc   : > { %v1656_v26 = vpop.trf.xlu1  ;;  %v610_v31 = vpop.trf.xlu0 }
 0x1fd   : > { %4974 = vmatmul.mubr.msk.f32.gmra.mrb[62].mxu0 %vm621_vm2, %v1656_v26  ;;  %4944 = vmatmul.mubr.msk.f32.gmra.mrb[66].mxu1 %vm621_vm2, %v610_v31 }
 0x1fe   : > { %1949 = vmatprep.mubr.f32.mxu0 %v9375_v0  ;;  %914 = vmatprep.mubr.f32.mxu1 %v9375_v0 }
 0x200   : > { %v1657_v32 = vpop.trf.xlu1  ;;  %v611_v37 = vpop.trf.xlu0 }
 0x201   : > { %4975 = vmatmul.mubr.msk.f32.gmra.mrb[64].mxu0 %vm621_vm2, %v1657_v32  ;;  %4945 = vmatmul.mubr.msk.f32.gmra.mrb[68].mxu1 %vm621_vm2, %v611_v37 }
 0x202   : > { %1955 = vmatprep.mubr.f32.mxu0 %v9375_v0  ;;  %920 = vmatprep.mubr.f32.mxu1 %v9375_v0 }
 0x204   : > { %v1658_v38 = vpop.trf.xlu1  ;;  %v612_v43 = vpop.trf.xlu0 }
 0x205   : > { %4976 = vmatmul.mubr.msk.f32.gmra.mrb[66].mxu0 %vm621_vm2, %v1658_v38  ;;  %4946 = vmatmul.mubr.msk.f32.gmra.mrb[70].mxu1 %vm621_vm2, %v612_v43 }
 0x206   : > { %1961 = vmatprep.mubr.f32.mxu0 %v9375_v0  ;;  %926 = vmatprep.mubr.f32.mxu1 %v9375_v0 }
 0x208   : > { %v1659_v44 = vpop.trf.xlu1  ;;  %v613_v47 = vpop.trf.xlu0 }
 0x209   : > { %4977 = vmatmul.mubr.msk.f32.gmra.mrb[68].mxu0 %vm621_vm2, %v1659_v44  ;;  %4947 = vmatmul.mubr.msk.f32.gmra.mrb[72].mxu1 %vm621_vm2, %v613_v47 }
 0x20a   : > { %1967 = vmatprep.mubr.f32.mxu0 %v9375_v0  ;;  %932 = vmatprep.mubr.f32.mxu1 %v9375_v0 }
 0x20c   : > { %v1660_v52 = vpop.trf.xlu1  ;;  %v614_v63 = vpop.trf.xlu0 }
 0x20d   : > { %4978 = vmatmul.mubr.msk.f32.gmra.mrb[70].mxu0 %vm621_vm2, %v1660_v52  ;;  %4948 = vmatmul.mubr.msk.f32.gmra.mrb[74].mxu1 %vm621_vm2, %v614_v63 }
 0x20e   : > { %1973 = vmatprep.mubr.f32.mxu0 %v9375_v0  ;;  %938 = vmatprep.mubr.f32.mxu1 %v9375_v0 }
 0x210   : > { %v1661_v5 = vpop.trf.xlu1  ;;  %v615_v16 = vpop.trf.xlu0 }
 0x211   : > { %4979 = vmatmul.mubr.msk.f32.gmra.mrb[72].mxu0 %vm621_vm2, %v1661_v5  ;;  %4949 = vmatmul.mubr.msk.f32.gmra.mrb[76].mxu1 %vm621_vm2, %v615_v16 }
 0x212   : > { %1979 = vmatprep.mubr.f32.mxu0 %v9375_v0  ;;  %944 = vmatprep.mubr.f32.mxu1 %v9375_v0 }
 0x214   : > { %v1662_v21 = vpop.trf.xlu1  ;;  %v616_v22 = vpop.trf.xlu0 }
 0x215   : > { %4980 = vmatmul.mubr.msk.f32.gmra.mrb[74].mxu0 %vm621_vm2, %v1662_v21  ;;  %4950 = vmatmul.mubr.msk.f32.gmra.mrb[78].mxu1 %vm621_vm2, %v616_v22 }
 0x216   : > { %1985 = vmatprep.mubr.f32.mxu0 %v9375_v0  ;;  %950 = vmatprep.mubr.f32.mxu1 %v9375_v0 }
 0x218   : > { %v1663_v25 = vpop.trf.xlu1  ;;  %v617_v26 = vpop.trf.xlu0 }
 0x219   : > { %4981 = vmatmul.mubr.msk.f32.gmra.mrb[76].mxu0 %vm621_vm2, %v1663_v25  ;;  %4951 = vmatmul.mubr.msk.f32.gmra.mrb[80].mxu1 %vm621_vm2, %v617_v26 }
 0x21a   : > { %1991 = vmatprep.mubr.f32.mxu0 %v9375_v0  ;;  %956 = vmatprep.mubr.f32.mxu1 %v9375_v0 }
 0x21c   : > { %v1664_v31 = vpop.trf.xlu1  ;;  %v618_v32 = vpop.trf.xlu0 }
 0x21d   : > { %4982 = vmatmul.mubr.msk.f32.gmra.mrb[78].mxu0 %vm621_vm2, %v1664_v31  ;;  %4952 = vmatmul.mubr.msk.f32.gmra.mrb[82].mxu1 %vm621_vm2, %v618_v32 }
 0x21e   : > { %1997 = vmatprep.mubr.f32.mxu0 %v9375_v0  ;;  %962 = vmatprep.mubr.f32.mxu1 %v9375_v0 }
 0x220   : > { %v1665_v37 = vpop.trf.xlu1  ;;  %v619_v38 = vpop.trf.xlu0 }
 0x221   : > { %4983 = vmatmul.mubr.msk.f32.gmra.mrb[80].mxu0 %vm621_vm2, %v1665_v37  ;;  %4953 = vmatmul.mubr.msk.f32.gmra.mrb[84].mxu1 %vm621_vm2, %v619_v38 }
 0x222   : > { %2003 = vmatprep.mubr.f32.mxu0 %v9375_v0  ;;  %968 = vmatprep.mubr.f32.mxu1 %v9375_v0 }
 0x224   : > { %v1666_v43 = vpop.trf.xlu1  ;;  %v620_v44 = vpop.trf.xlu0 }
 0x225   : > { %4984 = vmatmul.mubr.msk.f32.gmra.mrb[82].mxu0 %vm621_vm2, %v1666_v43  ;;  %4954 = vmatmul.mubr.msk.f32.gmra.mrb[86].mxu1 %vm621_vm2, %v620_v44 }
 0x226   : > { %2009 = vmatprep.mubr.f32.mxu0 %v9375_v0  ;;  %1585 = vmatprep.mubr.bf16.mxu1 %v1520_v20 }
 0x228   : > { %v1667_v47 = vpop.trf.xlu1 }
 0x229   : > { %4985 = vmatmul.mubr.msk.f32.gmra.mrb[84].mxu0 %vm621_vm2, %v1667_v47 }
 0x22a   : > { %2015 = vmatprep.mubr.f32.mxu0 %v9375_v0 }
 0x22c   : > { %v1668_v52 = vpop.trf.xlu1 }
 0x22d   : > { %4986 = vmatmul.mubr.msk.f32.gmra.mrb[86].mxu0 %vm621_vm2, %v1668_v52 }
 0x22e   : > { %2633 = vmatprep.mubr.bf16.mxu0 %v2568_v30 }
 0x27c   : > { %v6771_v63 = vpop.f32.mrb[24].mxu1 }
 0x27d   : > { %v6773_v5 = vpop.f32.mrb[25].mxu1 }
 0x27e   : > { %v975_v2 = vmax.f32 %v6771_v63, %v6773_v5 }
 0x280   : > { %976 = vmax.xlane.f32.xlu0 %v975_v2  ;;  %v6777_v19 = vpop.f32.mrb[26].mxu1 }
 0x281   : > { %v6779_v20 = vpop.f32.mrb[27].mxu1 }
 0x282   : > { %v978_v16 = vmax.f32 %v6777_v19, %v6779_v20 }
 0x284   : > { %979 = vmax.xlane.f32.xlu1 %v978_v16  ;;  %v6783_v21 = vpop.f32.mrb[28].mxu1  ;;  %v6785_v24 = vpop.f32.mrb[24].mxu0 }
 0x285   : > { %v6787_v29 = vpop.f32.mrb[29].mxu1  ;;  %v6789_v30 = vpop.f32.mrb[25].mxu0 }
 0x286   : > { %v981_v22 = vmax.f32 %v6783_v21, %v6787_v29  ;;  %v2022_v25 = vmax.f32 %v6785_v24, %v6789_v30 }
 0x288   : > { %982 = vmax.xlane.f32.xlu0 %v981_v22  ;;  %2023 = vmax.xlane.f32.xlu1 %v2022_v25  ;;  %v6795_v26 = vpop.f32.mrb[26].mxu0  ;;  %v6797_v31 = vpop.f32.mrb[30].mxu1 }
 0x289   : > { %v6799_v32 = vpop.f32.mrb[27].mxu0  ;;  %v6801_v37 = vpop.f32.mrb[31].mxu1 }
 0x28a   : > { %v2025_v38 = vmax.f32 %v6795_v26, %v6799_v32  ;;  %v984_v43 = vmax.f32 %v6797_v31, %v6801_v37 }
 0x28c   : > { %2026 = vmax.xlane.f32.xlu1 %v2025_v38  ;;  %v6807_v44 = vpop.f32.mrb[28].mxu0  ;;  %v6809_v47 = vpop.f32.mrb[32].mxu1 }
 0x28d   : > { %v6811_v52 = vpop.f32.mrb[29].mxu0  ;;  %v6813_v2 = vpop.f32.mrb[33].mxu1 }
 0x28e   : > { %v2028_v16 = vmax.f32 %v6807_v44, %v6811_v52  ;;  %v987_v22 = vmax.f32 %v6809_v47, %v6813_v2 }
 0x290   : > { %985 = vmax.xlane.f32.xlu1 %v984_v43  ;;  %2029 = vmax.xlane.f32.xlu0 %v2028_v16  ;;  %v6819_v25 = vpop.f32.mrb[30].mxu0  ;;  %v6821_v56 = vpop.f32.mrb[34].mxu1 }
 0x291   : > { %v6823_v38 = vpop.f32.mrb[31].mxu0  ;;  %v6825_v40 = vpop.f32.mrb[35].mxu1 }
 0x292   : > { %v2031_v62 = vmax.f32 %v6819_v25, %v6823_v38  ;;  %v990_v42 = vmax.f32 %v6821_v56, %v6825_v40 }
 0x294   : > { %988 = vmax.xlane.f32.xlu0 %v987_v22  ;;  %2032 = vmax.xlane.f32.xlu1 %v2031_v62  ;;  %v6831_v13 = vpop.f32.mrb[32].mxu0  ;;  %v6833_v43 = vpop.f32.mrb[36].mxu1 }
 0x295   : > { %v6835_v16 = vpop.f32.mrb[33].mxu0  ;;  %v6837_v15 = vpop.f32.mrb[37].mxu1 }
 0x296   : > { %v2034_v59 = vmax.f32 %v6831_v13, %v6835_v16  ;;  %v993_v7 = vmax.f32 %v6833_v43, %v6837_v15 }
 0x298   : > { %991 = vmax.xlane.f32.xlu1 %v990_v42  ;;  %2035 = vmax.xlane.f32.xlu0 %v2034_v59  ;;  %v6843_v28 = vpop.f32.mrb[34].mxu0  ;;  %v6845_v22 = vpop.f32.mrb[38].mxu1 }
 0x299   : > { %v6847_v62 = vpop.f32.mrb[35].mxu0  ;;  %v6849_v9 = vpop.f32.mrb[39].mxu1 }
 0x29a   : > { %v2037_v0 = vmax.f32 %v6843_v28, %v6847_v62  ;;  %v996_v49 = vmax.f32 %v6845_v22, %v6849_v9 }
 0x29c   : > { %994 = vmax.xlane.f32.xlu0 %v993_v7  ;;  %2038 = vmax.xlane.f32.xlu1 %v2037_v0  ;;  %v6855_v18 = vpop.f32.mrb[36].mxu0  ;;  %v6857_v42 = vpop.f32.mrb[40].mxu1 }
 0x29d   : > { %v6859_v59 = vpop.f32.mrb[37].mxu0  ;;  %v6861_v61 = vpop.f32.mrb[41].mxu1 }
 0x29e   : > { %v2040_v51 = vmax.f32 %v6855_v18, %v6859_v59  ;;  %v999_v45 = vmax.f32 %v6857_v42, %v6861_v61 }
 0x2a0   : > { %997 = vmax.xlane.f32.xlu1 %v996_v49  ;;  %2041 = vmax.xlane.f32.xlu0 %v2040_v51  ;;  %v6867_v53 = vpop.f32.mrb[38].mxu0  ;;  %v6869_v7 = vpop.f32.mrb[42].mxu1 }
 0x2a1   : > { %v6871_v0 = vpop.f32.mrb[39].mxu0  ;;  %v6873_v33 = vpop.f32.mrb[43].mxu1 }
 0x2a2   : > { %v2043_v39 = vmax.f32 %v6867_v53, %v6871_v0  ;;  %v1002_v46 = vmax.f32 %v6869_v7, %v6873_v33 }
 0x2a4   : > { %1000 = vmax.xlane.f32.xlu0 %v999_v45  ;;  %2044 = vmax.xlane.f32.xlu1 %v2043_v39  ;;  %v6879_v57 = vpop.f32.mrb[40].mxu0  ;;  %v6881_v49 = vpop.f32.mrb[44].mxu1 }
 0x2a5   : > { %v6883_v51 = vpop.f32.mrb[41].mxu0  ;;  %v6885_v36 = vpop.f32.mrb[45].mxu1 }
 0x2a6   : > { %v2046_v41 = vmax.f32 %v6879_v57, %v6883_v51  ;;  %v1005_v54 = vmax.f32 %v6881_v49, %v6885_v36 }
 0x2a8   : > { %1003 = vmax.xlane.f32.xlu1 %v1002_v46  ;;  %2047 = vmax.xlane.f32.xlu0 %v2046_v41  ;;  %v6891_v58 = vpop.f32.mrb[42].mxu0  ;;  %v6893_v45 = vpop.f32.mrb[46].mxu1 }
 0x2a9   : > { %v6895_v39 = vpop.f32.mrb[43].mxu0  ;;  %v6897_v23 = vpop.f32.mrb[47].mxu1 }
 0x2aa   : > { %v2049_v27 = vmax.f32 %v6891_v58, %v6895_v39  ;;  %v1008_v34 = vmax.f32 %v6893_v45, %v6897_v23 }
 0x2ac   : > { %1006 = vmax.xlane.f32.xlu0 %v1005_v54  ;;  %2050 = vmax.xlane.f32.xlu1 %v2049_v27  ;;  %v6903_v48 = vpop.f32.mrb[44].mxu0  ;;  %v6905_v46 = vpop.f32.mrb[48].mxu1 }
 0x2ad   : > { %v6907_v41 = vpop.f32.mrb[45].mxu0  ;;  %v6909_v1 = vpop.f32.mrb[49].mxu1 }
 0x2ae   : > { %v2052_v17 = vmax.f32 %v6903_v48, %v6907_v41  ;;  %v1011_v55 = vmax.f32 %v6905_v46, %v6909_v1 }
 0x2b0   : > { %1009 = vmax.xlane.f32.xlu1 %v1008_v34  ;;  %2053 = vmax.xlane.f32.xlu0 %v2052_v17  ;;  %v6915_v60 = vpop.f32.mrb[46].mxu0  ;;  %v6917_v54 = vpop.f32.mrb[50].mxu1 }
 0x2b1   : > { %9751 = vst [vmem:[#allocation39_spill] sm:$0xff] %v6917_v54  ;;  %v6919_v27 = vpop.f32.mrb[47].mxu0  ;;  %v6921_v35 = vpop.f32.mrb[51].mxu1 }
 0x2b2   : > { %9752 = vst [vmem:[#allocation40_spill] sm:$0xff] %v6919_v27  ;;  %9753 = vst [vmem:[#allocation41_spill] sm:$0xff] %v6921_v35  ;;  %v2055_v50 = vmax.f32 %v6915_v60, %v6919_v27  ;;  %v1014_v14 = vmax.f32 %v6917_v54, %v6921_v35 }
 0x2b4   : > { %1012 = vmax.xlane.f32.xlu0 %v1011_v55  ;;  %2056 = vmax.xlane.f32.xlu1 %v2055_v50  ;;  %v6927_v11 = vpop.f32.mrb[48].mxu0  ;;  %v6929_v34 = vpop.f32.mrb[52].mxu1 }
 0x2b5   : > { %9754 = vst [vmem:[#allocation42_spill] sm:$0xff] %v6927_v11  ;;  %9755 = vst [vmem:[#allocation43_spill] sm:$0xff] %v6929_v34  ;;  %v6931_v17 = vpop.f32.mrb[49].mxu0  ;;  %v6933_v8 = vpop.f32.mrb[53].mxu1 }
 0x2b6   : > { %9756 = vst [vmem:[#allocation44_spill] sm:$0xff] %v6931_v17  ;;  %9757 = vst [vmem:[#allocation45_spill] sm:$0xff] %v6933_v8  ;;  %v2058_v4 = vmax.f32 %v6927_v11, %v6931_v17  ;;  %v1017_v12 = vmax.f32 %v6929_v34, %v6933_v8 }
 0x2b8   : > { %1015 = vmax.xlane.f32.xlu1 %v1014_v14  ;;  %2059 = vmax.xlane.f32.xlu0 %v2058_v4  ;;  %v6939_v10 = vpop.f32.mrb[50].mxu0  ;;  %v6941_v55 = vpop.f32.mrb[54].mxu1 }
 0x2b9   : > { %9758 = vst [vmem:[#allocation46_spill] sm:$0xff] %v6939_v10  ;;  %9759 = vst [vmem:[#allocation47_spill] sm:$0xff] %v6941_v55  ;;  %v6943_v50 = vpop.f32.mrb[51].mxu0  ;;  %v6945_v6 = vpop.f32.mrb[55].mxu1 }
 0x2ba   : > { %9760 = vst [vmem:[#allocation48_spill] sm:$0xff] %v6943_v50  ;;  %9761 = vst [vmem:[#allocation49_spill] sm:$0xff] %v6945_v6  ;;  %v2061_v3 = vmax.f32 %v6939_v10, %v6943_v50  ;;  %v1020_v35 = vmax.f32 %v6941_v55, %v6945_v6 }
 0x2bc   : > { %1018 = vmax.xlane.f32.xlu0 %v1017_v12  ;;  %2062 = vmax.xlane.f32.xlu1 %v2061_v3  ;;  %v6951_v17 = vpop.f32.mrb[52].mxu0  ;;  %v6953_v14 = vpop.f32.mrb[56].mxu1 }
 0x2bd   : > { %9762 = vst [vmem:[#allocation50_spill] sm:$0xff] %v6951_v17  ;;  %9763 = vst [vmem:[#allocation51_spill] sm:$0xff] %v6953_v14  ;;  %v6955_v4 = vpop.f32.mrb[53].mxu0  ;;  %v6957_v8 = vpop.f32.mrb[57].mxu1 }
 0x2be   : > { %9764 = vst [vmem:[#allocation52_spill] sm:$0xff] %v6955_v4  ;;  %9765 = vst [vmem:[#allocation53_spill] sm:$0xff] %v6957_v8  ;;  %v2064_v34 = vmax.f32 %v6951_v17, %v6955_v4  ;;  %v1023_v11 = vmax.f32 %v6953_v14, %v6957_v8 }
 0x2c0   : > { %1021 = vmax.xlane.f32.xlu1 %v1020_v35  ;;  %2065 = vmax.xlane.f32.xlu0 %v2064_v34  ;;  %v6963_v50 = vpop.f32.mrb[54].mxu0  ;;  %v6965_v12 = vpop.f32.mrb[58].mxu1 }
 0x2c1   : > { %9766 = vst [vmem:[#allocation54_spill] sm:$0xff] %v6963_v50  ;;  %9767 = vst [vmem:[#allocation55_spill] sm:$0xff] %v6965_v12  ;;  %v6967_v3 = vpop.f32.mrb[55].mxu0  ;;  %v6969_v6 = vpop.f32.mrb[59].mxu1 }
 0x2c2   : > { %9768 = vst [vmem:[#allocation56_spill] sm:$0xff] %v6967_v3  ;;  %9769 = vst [vmem:[#allocation57_spill] sm:$0xff] %v6969_v6  ;;  %v1026_v55 = vmax.f32 %v6965_v12, %v6969_v6  ;;  %v2067_v10 = vmax.f32 %v6963_v50, %v6967_v3 }
 0x2c4   : > { %1024 = vmax.xlane.f32.xlu0 %v1023_v11  ;;  %2068 = vmax.xlane.f32.xlu1 %v2067_v10  ;;  %v6975_v4 = vpop.f32.mrb[56].mxu0  ;;  %v6977_v35 = vpop.f32.mrb[60].mxu1 }
 0x2c5   : > { %9770 = vst [vmem:[#allocation58_spill] sm:$0xff] %v6975_v4  ;;  %9771 = vst [vmem:[#allocation59_spill] sm:$0xff] %v6977_v35  ;;  %v6979_v34 = vpop.f32.mrb[57].mxu0  ;;  %v6981_v8 = vpop.f32.mrb[61].mxu1 }
 0x2c6   : > { %9772 = vst [vmem:[#allocation60_spill] sm:$0xff] %v6979_v34  ;;  %9773 = vst [vmem:[#allocation61_spill] sm:$0xff] %v6981_v8  ;;  %v1029_v14 = vmax.f32 %v6977_v35, %v6981_v8  ;;  %v2070_v17 = vmax.f32 %v6975_v4, %v6979_v34 }
 0x2c8   : > { %1027 = vmax.xlane.f32.xlu1 %v1026_v55  ;;  %2071 = vmax.xlane.f32.xlu0 %v2070_v17  ;;  %v6987_v6 = vpop.f32.mrb[58].mxu0  ;;  %v6989_v11 = vpop.f32.mrb[62].mxu1 }
 0x2c9   : > { %9774 = vst [vmem:[#allocation62_spill] sm:$0xff] %v6987_v6  ;;  %9775 = vst [vmem:[#allocation63_spill] sm:$0xff] %v6989_v11  ;;  %v6991_v10 = vpop.f32.mrb[59].mxu0  ;;  %v6993_v12 = vpop.f32.mrb[63].mxu1 }
 0x2ca   : > { %9776 = vst [vmem:[#allocation64_spill] sm:$0xff] %v6991_v10  ;;  %9777 = vst [vmem:[#allocation65_spill] sm:$0xff] %v6993_v12  ;;  %v2073_v3 = vmax.f32 %v6987_v6, %v6991_v10  ;;  %v1032_v50 = vmax.f32 %v6989_v11, %v6993_v12 }
 0x2cc   : > { %1030 = vmax.xlane.f32.xlu0 %v1029_v14  ;;  %2074 = vmax.xlane.f32.xlu1 %v2073_v3  ;;  %v6999_v8 = vpop.f32.mrb[60].mxu0  ;;  %v7001_v55 = vpop.f32.mrb[64].mxu1 }
 0x2cd   : > { %9778 = vst [vmem:[#allocation66_spill] sm:$0xff] %v6999_v8  ;;  %9779 = vst [vmem:[#allocation67_spill] sm:$0xff] %v7001_v55  ;;  %v7003_v17 = vpop.f32.mrb[61].mxu0  ;;  %v7005_v35 = vpop.f32.mrb[65].mxu1 }
 0x2ce   : > { %9780 = vst [vmem:[#allocation68_spill] sm:$0xff] %v7003_v17  ;;  %9781 = vst [vmem:[#allocation69_spill] sm:$0xff] %v7005_v35  ;;  %v2076_v34 = vmax.f32 %v6999_v8, %v7003_v17  ;;  %v1035_v4 = vmax.f32 %v7001_v55, %v7005_v35 }
 0x2d0   : > { %1033 = vmax.xlane.f32.xlu1 %v1032_v50  ;;  %2077 = vmax.xlane.f32.xlu0 %v2076_v34  ;;  %v7011_v10 = vpop.f32.mrb[62].mxu0  ;;  %v7013_v14 = vpop.f32.mrb[66].mxu1 }
 0x2d1   : > { %9782 = vst [vmem:[#allocation70_spill] sm:$0xff] %v7011_v10  ;;  %9783 = vst [vmem:[#allocation71_spill] sm:$0xff] %v7013_v14  ;;  %v7015_v3 = vpop.f32.mrb[63].mxu0  ;;  %v7017_v12 = vpop.f32.mrb[67].mxu1 }
 0x2d2   : > { %9784 = vst [vmem:[#allocation72_spill] sm:$0xff] %v7015_v3  ;;  %9785 = vst [vmem:[#allocation73_spill] sm:$0xff] %v7017_v12  ;;  %v2079_v11 = vmax.f32 %v7011_v10, %v7015_v3  ;;  %v1038_v6 = vmax.f32 %v7013_v14, %v7017_v12 }
 0x2d4   : > { %1036 = vmax.xlane.f32.xlu0 %v1035_v4  ;;  %2080 = vmax.xlane.f32.xlu1 %v2079_v11  ;;  %v7023_v17 = vpop.f32.mrb[64].mxu0  ;;  %v7025_v50 = vpop.f32.mrb[68].mxu1 }
 0x2d5   : > { %9786 = vst [vmem:[#allocation74_spill] sm:$0xff] %v7023_v17  ;;  %9787 = vst [vmem:[#allocation75_spill] sm:$0xff] %v7025_v50  ;;  %v7027_v34 = vpop.f32.mrb[65].mxu0  ;;  %v7029_v35 = vpop.f32.mrb[69].mxu1 }
 0x2d6   : > { %9788 = vst [vmem:[#allocation76_spill] sm:$0xff] %v7027_v34  ;;  %9789 = vst [vmem:[#allocation77_spill] sm:$0xff] %v7029_v35  ;;  %v2082_v55 = vmax.f32 %v7023_v17, %v7027_v34  ;;  %v1041_v8 = vmax.f32 %v7025_v50, %v7029_v35 }
 0x2d8   : > { %1039 = vmax.xlane.f32.xlu1 %v1038_v6  ;;  %2083 = vmax.xlane.f32.xlu0 %v2082_v55  ;;  %v7035_v3 = vpop.f32.mrb[66].mxu0  ;;  %v7037_v4 = vpop.f32.mrb[70].mxu1 }
 0x2d9   : > { %9790 = vst [vmem:[#allocation78_spill] sm:$0xff] %v7035_v3  ;;  %9791 = vst [vmem:[#allocation79_spill] sm:$0xff] %v7037_v4  ;;  %v7039_v11 = vpop.f32.mrb[67].mxu0  ;;  %v7041_v12 = vpop.f32.mrb[71].mxu1 }
 0x2da   : > { %9792 = vst [vmem:[#allocation80_spill] sm:$0xff] %v7039_v11  ;;  %9793 = vst [vmem:[#allocation81_spill] sm:$0xff] %v7041_v12  ;;  %v2085_v14 = vmax.f32 %v7035_v3, %v7039_v11  ;;  %v1044_v10 = vmax.f32 %v7037_v4, %v7041_v12 }
 0x2dc   : > { %1042 = vmax.xlane.f32.xlu0 %v1041_v8  ;;  %2086 = vmax.xlane.f32.xlu1 %v2085_v14  ;;  %v7047_v34 = vpop.f32.mrb[68].mxu0  ;;  %v7049_v6 = vpop.f32.mrb[72].mxu1 }
 0x2dd   : > { %9794 = vst [vmem:[#allocation82_spill] sm:$0xff] %v7047_v34  ;;  %9795 = vst [vmem:[#allocation83_spill] sm:$0xff] %v7049_v6  ;;  %v7051_v55 = vpop.f32.mrb[69].mxu0  ;;  %v7053_v35 = vpop.f32.mrb[73].mxu1 }
 0x2de   : > { %9796 = vst [vmem:[#allocation84_spill] sm:$0xff] %v7051_v55  ;;  %9797 = vst [vmem:[#allocation85_spill] sm:$0xff] %v7053_v35  ;;  %v2088_v50 = vmax.f32 %v7047_v34, %v7051_v55  ;;  %v1047_v17 = vmax.f32 %v7049_v6, %v7053_v35 }
 0x2e0   : > { %1045 = vmax.xlane.f32.xlu1 %v1044_v10  ;;  %2089 = vmax.xlane.f32.xlu0 %v2088_v50  ;;  %v7059_v11 = vpop.f32.mrb[70].mxu0  ;;  %v7061_v8 = vpop.f32.mrb[74].mxu1 }
 0x2e1   : > { %9798 = vst [vmem:[#allocation86_spill] sm:$0xff] %v7059_v11  ;;  %9799 = vst [vmem:[#allocation87_spill] sm:$0xff] %v7061_v8  ;;  %v7063_v14 = vpop.f32.mrb[71].mxu0  ;;  %v7065_v12 = vpop.f32.mrb[75].mxu1 }
 0x2e2   : > { %9800 = vst [vmem:[#allocation88_spill] sm:$0xff] %v7063_v14  ;;  %9801 = vst [vmem:[#allocation89_spill] sm:$0xff] %v7065_v12  ;;  %v2091_v4 = vmax.f32 %v7059_v11, %v7063_v14  ;;  %v1050_v3 = vmax.f32 %v7061_v8, %v7065_v12 }
 0x2e4   : > { %1048 = vmax.xlane.f32.xlu0 %v1047_v17  ;;  %2092 = vmax.xlane.f32.xlu1 %v2091_v4  ;;  %v7071_v55 = vpop.f32.mrb[72].mxu0  ;;  %v7073_v10 = vpop.f32.mrb[76].mxu1 }
 0x2e5   : > { %9802 = vst [vmem:[#allocation90_spill] sm:$0xff] %v7071_v55  ;;  %9803 = vst [vmem:[#allocation91_spill] sm:$0xff] %v7073_v10  ;;  %v7075_v50 = vpop.f32.mrb[73].mxu0  ;;  %v7077_v35 = vpop.f32.mrb[77].mxu1 }
 0x2e6   : > { %9804 = vst [vmem:[#allocation92_spill] sm:$0xff] %v7075_v50  ;;  %9805 = vst [vmem:[#allocation93_spill] sm:$0xff] %v7077_v35  ;;  %v2094_v6 = vmax.f32 %v7071_v55, %v7075_v50  ;;  %v1053_v34 = vmax.f32 %v7073_v10, %v7077_v35 }
 0x2e8   : > { %1051 = vmax.xlane.f32.xlu1 %v1050_v3  ;;  %2095 = vmax.xlane.f32.xlu0 %v2094_v6  ;;  %v7083_v14 = vpop.f32.mrb[74].mxu0  ;;  %v7085_v17 = vpop.f32.mrb[78].mxu1 }
 0x2e9   : > { %9806 = vst [vmem:[#allocation94_spill] sm:$0xff] %v7083_v14  ;;  %9807 = vst [vmem:[#allocation95_spill] sm:$0xff] %v7085_v17  ;;  %v7087_v4 = vpop.f32.mrb[75].mxu0  ;;  %v7089_v12 = vpop.f32.mrb[79].mxu1 }
 0x2ea   : > { %9808 = vst [vmem:[#allocation96_spill] sm:$0xff] %v7087_v4  ;;  %9809 = vst [vmem:[#allocation97_spill] sm:$0xff] %v7089_v12  ;;  %v2097_v8 = vmax.f32 %v7083_v14, %v7087_v4  ;;  %v1056_v11 = vmax.f32 %v7085_v17, %v7089_v12 }
 0x2ec   : > { %1054 = vmax.xlane.f32.xlu0 %v1053_v34  ;;  %2098 = vmax.xlane.f32.xlu1 %v2097_v8  ;;  %v7095_v50 = vpop.f32.mrb[76].mxu0  ;;  %v7097_v3 = vpop.f32.mrb[80].mxu1 }
 0x2ed   : > { %9810 = vst [vmem:[#allocation98_spill] sm:$0xff] %v7095_v50  ;;  %9811 = vst [vmem:[#allocation99_spill] sm:$0xff] %v7097_v3  ;;  %v7099_v6 = vpop.f32.mrb[77].mxu0  ;;  %v7101_v35 = vpop.f32.mrb[81].mxu1 }
 0x2ee   : > { %9812 = vst [vmem:[#allocation100_spill] sm:$0xff] %v7099_v6  ;;  %9813 = vst [vmem:[#allocation101_spill] sm:$0xff] %v7101_v35  ;;  %v2100_v10 = vmax.f32 %v7095_v50, %v7099_v6  ;;  %v1059_v55 = vmax.f32 %v7097_v3, %v7101_v35 }
 0x2f0   : > { %1057 = vmax.xlane.f32.xlu1 %v1056_v11  ;;  %2101 = vmax.xlane.f32.xlu0 %v2100_v10  ;;  %v7107_v4 = vpop.f32.mrb[78].mxu0  ;;  %v7109_v34 = vpop.f32.mrb[82].mxu1 }
 0x2f1   : > { %9814 = vst [vmem:[#allocation102_spill] sm:$0xff] %v7107_v4  ;;  %9815 = vst [vmem:[#allocation103_spill] sm:$0xff] %v7109_v34  ;;  %v7111_v8 = vpop.f32.mrb[79].mxu0  ;;  %v7113_v12 = vpop.f32.mrb[83].mxu1 }
 0x2f2   : > { %9816 = vst [vmem:[#allocation104_spill] sm:$0xff] %v7111_v8  ;;  %9817 = vst [vmem:[#allocation105_spill] sm:$0xff] %v7113_v12  ;;  %v2103_v17 = vmax.f32 %v7107_v4, %v7111_v8  ;;  %v1062_v14 = vmax.f32 %v7109_v34, %v7113_v12 }
 0x2f4   : > { %1060 = vmax.xlane.f32.xlu0 %v1059_v55  ;;  %2104 = vmax.xlane.f32.xlu1 %v2103_v17  ;;  %v7119_v6 = vpop.f32.mrb[80].mxu0  ;;  %v7121_v11 = vpop.f32.mrb[84].mxu1 }
 0x2f5   : > { %9818 = vst [vmem:[#allocation106_spill] sm:$0xff] %v7119_v6  ;;  %9819 = vst [vmem:[#allocation107_spill] sm:$0xff] %v7121_v11  ;;  %v7123_v10 = vpop.f32.mrb[81].mxu0  ;;  %v7125_v35 = vpop.f32.mrb[85].mxu1 }
 0x2f6   : > { %9820 = vst [vmem:[#allocation108_spill] sm:$0xff] %v7123_v10  ;;  %9821 = vst [vmem:[#allocation109_spill] sm:$0xff] %v7125_v35  ;;  %v2106_v3 = vmax.f32 %v7119_v6, %v7123_v10  ;;  %v1065_v50 = vmax.f32 %v7121_v11, %v7125_v35 }
 0x2f8   : > { %1063 = vmax.xlane.f32.xlu1 %v1062_v14  ;;  %2107 = vmax.xlane.f32.xlu0 %v2106_v3  ;;  %v7131_v8 = vpop.f32.mrb[82].mxu0  ;;  %v7133_v55 = vpop.f32.mrb[86].mxu1 }
 0x2f9   : > { %9822 = vst [vmem:[#allocation110_spill] sm:$0xff] %v7131_v8  ;;  %9823 = vst [vmem:[#allocation111_spill] sm:$0xff] %v7133_v55  ;;  %v7135_v17 = vpop.f32.mrb[83].mxu0  ;;  %v7137_v12 = vpop.f32.mrb[87].mxu1 }
 0x2fa   : > { %9824 = vst [vmem:[#allocation112_spill] sm:$0xff] %v7135_v17  ;;  %9825 = vst [vmem:[#allocation113_spill] sm:$0xff] %v7137_v12  ;;  %v2109_v34 = vmax.f32 %v7131_v8, %v7135_v17  ;;  %v1068_v4 = vmax.f32 %v7133_v55, %v7137_v12 }
 0x2fc   : > { %1066 = vmax.xlane.f32.xlu0 %v1065_v50  ;;  %2110 = vmax.xlane.f32.xlu1 %v2109_v34  ;;  %v7143_v10 = vpop.f32.mrb[84].mxu0 }
 0x2fd   : > { %9826 = vst [vmem:[#allocation114_spill] sm:$0xff] %v7143_v10  ;;  %v7145_v14 = vpop.f32.mrb[85].mxu0 }
 0x2fe   : > { %9827 = vst [vmem:[#allocation115_spill] sm:$0xff] %v7145_v14  ;;  %v2112_v3 = vmax.f32 %v7143_v10, %v7145_v14 }
 0x300   : > { %1069 = vmax.xlane.f32.xlu1 %v1068_v4  ;;  %2113 = vmax.xlane.f32.xlu0 %v2112_v3  ;;  %v7149_v35 = vpop.f32.mrb[86].mxu0 }
 0x301   : > { %v7151_v11 = vpop.f32.mrb[87].mxu0 }
 0x302   : > { %v2115_v17 = vmax.f32 %v7149_v35, %v7151_v11 }
 0x304   : > { %2116 = vmax.xlane.f32.xlu1 %v2115_v17 }
 0x30d   : > { %v977_v12 = vpop.xlane.xlu0 %976 }
 0x30e   : > { %v1071_v50 = vsub.f32 %v6771_v63, %v977_v12  ;;  %v1072_v34 = vsub.f32 %v6773_v5, %v977_v12 }
 0x310   : > { %v1135_v55 = vmul.f32 1.442695, %v1071_v50  ;;  %v1137_v8 = vmul.f32 1.442695, %v1072_v34 }
 0x311   : > { %v980_v6 = vpop.xlane.xlu1 %979 }
 0x312   : > { %5384 = vpow2.f32 %v1135_v55  ;;  %v1073_v4 = vsub.f32 %v6777_v19, %v980_v6  ;;  %v1074_v3 = vsub.f32 %v6779_v20, %v980_v6 }
 0x313   : > { %5386 = vpow2.f32 %v1137_v8 }
 0x314   : > { %v1139_v14 = vmul.f32 1.442695, %v1073_v4  ;;  %v1141_v10 = vmul.f32 1.442695, %v1074_v3 }
 0x315   : > { %v983_v54 = vpop.xlane.xlu0 %982  ;;  %v2024_v27 = vpop.xlane.xlu1 %2023 }
 0x316   : > { %5388 = vpow2.f32 %v1139_v14  ;;  %v1075_v17 = vsub.f32 %v6783_v21, %v983_v54  ;;  %v2118_v63 = vsub.f32 %v6785_v24, %v2024_v27  ;;  %v2119_v5 = vsub.f32 %v6789_v30, %v2024_v27 }
 0x317   : > { %5390 = vpow2.f32 %v1141_v10  ;;  %v1076_v12 = vsub.f32 %v6787_v29, %v983_v54 }
 0x318   : > { %v1143_v55 = vmul.f32 1.442695, %v1075_v17  ;;  %v2182_v50 = vmul.f32 1.442695, %v2118_v63  ;;  %v2184_v19 = vmul.f32 1.442695, %v2119_v5 }
 0x319   : > { %v2027_v34 = vpop.xlane.xlu1 %2026  ;;  %v1145_v14 = vmul.f32 1.442695, %v1076_v12 }
 0x31a   : > { %v2120_v20 = vsub.f32 %v6795_v26, %v2027_v34  ;;  %v2121_v6 = vsub.f32 %v6799_v32, %v2027_v34  ;;  %5392 = vpow2.f32 %v1143_v55 }
 0x31b   : > { %5394 = vpow2.f32 %v2182_v50 }
 0x31c   : > { %v7165_v8 = vpop.eup %5384  ;;  %v2186_v21 = vmul.f32 1.442695, %v2120_v20  ;;  %v2188_v24 = vmul.f32 1.442695, %v2121_v6  ;;  %5396 = vpow2.f32 %v2184_v19 }
 0x31d   : > { %v7167_v10 = vpop.eup %5386  ;;  %v986_v30 = vpop.xlane.xlu1 %985 }
 0x31e   : > { %v2030_v29 = vpop.xlane.xlu0 %2029  ;;  %5398 = vpow2.f32 %v2186_v21  ;;  %v1077_v54 = vsub.f32 %v6797_v31, %v986_v30  ;;  %v1078_v27 = vsub.f32 %v6801_v37, %v986_v30  ;;  %v1263_v4 = vadd.f32 %v7167_v10, %v7165_v8 }
 0x31f   : > { %v2122_v26 = vsub.f32 %v6807_v44, %v2030_v29  ;;  %5400 = vpow2.f32 %v2188_v24  ;;  %v2123_v32 = vsub.f32 %v6811_v52, %v2030_v29 }
 0x320   : > { %v7175_v3 = vpop.eup %5388  ;;  %5402 = vpow2.f32 %v1145_v14  ;;  %v1147_v17 = vmul.f32 1.442695, %v1077_v54  ;;  %v1149_v63 = vmul.f32 1.442695, %v1078_v27  ;;  %1264 = vadd.xlane.f32.xlu0 %v1263_v4 }
 0x321   : > { %v2190_v5 = vmul.f32 1.442695, %v2122_v26  ;;  %v7177_v12 = vpop.eup %5390  ;;  %v2192_v55 = vmul.f32 1.442695, %v2123_v32  ;;  %v2033_v37 = vpop.xlane.xlu1 %2032 }
 0x322   : > { %v989_v31 = vpop.xlane.xlu0 %988  ;;  %5404 = vpow2.f32 %v1147_v17  ;;  %v2124_v50 = vsub.f32 %v6819_v25, %v2033_v37  ;;  %v2125_v19 = vsub.f32 %v6823_v38, %v2033_v37  ;;  %v1266_v34 = vadd.f32 %v7177_v12, %v7175_v3 }
 0x323   : > { %v1079_v44 = vsub.f32 %v6809_v47, %v989_v31  ;;  %v1080_v52 = vsub.f32 %v6813_v2, %v989_v31  ;;  %5406 = vpow2.f32 %v1149_v63 }
 0x324   : > { %5408 = vpow2.f32 %v2190_v5  ;;  %v2194_v14 = vmul.f32 1.442695, %v2124_v50  ;;  %v7185_v21 = vpop.eup %5392  ;;  %v2196_v24 = vmul.f32 1.442695, %v2125_v19  ;;  %1267 = vadd.xlane.f32.xlu1 %v1266_v34 }
 0x325   : > { %v1151_v20 = vmul.f32 1.442695, %v1079_v44  ;;  %v1153_v6 = vmul.f32 1.442695, %v1080_v52  ;;  %5410 = vpow2.f32 %v2192_v55  ;;  %v992_v47 = vpop.xlane.xlu1 %991  ;;  %v7187_v2 = vpop.eup %5394 }
 0x326   : > { %v2036_v30 = vpop.xlane.xlu0 %2035  ;;  %v1081_v25 = vsub.f32 %v6821_v56, %v992_v47  ;;  %v1082_v38 = vsub.f32 %v6825_v40, %v992_v47  ;;  %v7192_v54 = vpop.eup %5396 }
 0x327   : > { %5412 = vpow2.f32 %v1151_v20  ;;  %v2126_v29 = vsub.f32 %v6831_v13, %v2036_v30  ;;  %v2127_v27 = vsub.f32 %v6835_v16, %v2036_v30  ;;  %v2310_v40 = vadd.f32 %v7192_v54, %v7187_v2 }
 0x328   : > { %5414 = vpow2.f32 %v1153_v6  ;;  %v7195_v26 = vpop.eup %5398  ;;  %v1155_v32 = vmul.f32 1.442695, %v1081_v25  ;;  %v1157_v4 = vmul.f32 1.442695, %v1082_v38 }
 0x329   : > { %5416 = vpow2.f32 %v2194_v14  ;;  %v2198_v17 = vmul.f32 1.442695, %v2126_v29  ;;  %v7197_v63 = vpop.eup %5400  ;;  %v2200_v5 = vmul.f32 1.442695, %v2127_v27  ;;  %v2039_v13 = vpop.xlane.xlu1 %2038  ;;  %2311 = vadd.xlane.f32.xlu0 %v2310_v40 }
 0x32a   : > { %5418 = vpow2.f32 %v2196_v24  ;;  %v995_v56 = vpop.xlane.xlu0 %994  ;;  %v7201_v55 = vpop.eup %5402  ;;  %v2128_v37 = vsub.f32 %v6843_v28, %v2039_v13  ;;  %v2129_v44 = vsub.f32 %v6847_v62, %v2039_v13  ;;  %v2313_v52 = vadd.f32 %v7197_v63, %v7195_v26 }
 0x32b   : > { %5420 = vpow2.f32 %v1155_v32  ;;  %v1083_v16 = vsub.f32 %v6833_v43, %v995_v56  ;;  %v1084_v31 = vsub.f32 %v6837_v15, %v995_v56  ;;  %v1269_v15 = vadd.f32 %v7201_v55, %v7185_v21 }
 0x32c   : > { %5422 = vpow2.f32 %v1157_v4  ;;  %v7209_v50 = vpop.eup %5404  ;;  %v2202_v20 = vmul.f32 1.442695, %v2128_v37  ;;  %v2204_v43 = vmul.f32 1.442695, %v2129_v44  ;;  %2314 = vadd.xlane.f32.xlu1 %v2313_v52 }
 0x32d   : > { %5424 = vpow2.f32 %v2198_v17  ;;  %v1159_v19 = vmul.f32 1.442695, %v1083_v16  ;;  %v1161_v34 = vmul.f32 1.442695, %v1084_v31  ;;  %v7211_v6 = vpop.eup %5406  ;;  %v998_v28 = vpop.xlane.xlu1 %997  ;;  %1270 = vadd.xlane.f32.xlu0 %v1269_v15 }
 0x32e   : > { %5426 = vpow2.f32 %v2200_v5  ;;  %v2042_v14 = vpop.xlane.xlu0 %2041  ;;  %v7215_v62 = vpop.eup %5408  ;;  %v1085_v24 = vsub.f32 %v6845_v22, %v998_v28  ;;  %v1086_v47 = vsub.f32 %v6849_v9, %v998_v28  ;;  %v1272_v29 = vadd.f32 %v7211_v6, %v7209_v50 }
 0x32f   : > { %5428 = vpow2.f32 %v1159_v19  ;;  %v2130_v30 = vsub.f32 %v6855_v18, %v2042_v14  ;;  %v7220_v25 = vpop.eup %5410  ;;  %v2131_v38 = vsub.f32 %v6859_v59, %v2042_v14 }
 0x330   : > { %5430 = vpow2.f32 %v1161_v34  ;;  %v1163_v32 = vmul.f32 1.442695, %v1085_v24  ;;  %v1165_v4 = vmul.f32 1.442695, %v1086_v47  ;;  %v2316_v18 = vadd.f32 %v7220_v25, %v7215_v62  ;;  %1273 = vadd.xlane.f32.xlu1 %v1272_v29 }
 0x331   : > { %v7225_v27 = vpop.eup %5412  ;;  %5432 = vpow2.f32 %v2202_v20  ;;  %v2206_v17 = vmul.f32 1.442695, %v2130_v30  ;;  %v2208_v9 = vmul.f32 1.442695, %v2131_v38  ;;  %v2045_v40 = vpop.xlane.xlu1 %2044 }
 0x332   : > { %v7227_v22 = vpop.eup %5414  ;;  %5434 = vpow2.f32 %v2204_v43  ;;  %v1001_v5 = vpop.xlane.xlu0 %1000  ;;  %v2132_v16 = vsub.f32 %v6867_v53, %v2045_v40  ;;  %2317 = vadd.xlane.f32.xlu0 %v2316_v18  ;;  %v2133_v37 = vsub.f32 %v6871_v0, %v2045_v40 }
 0x333   : > { %v7231_v59 = vpop.eup %5416  ;;  %5436 = vpow2.f32 %v1163_v32  ;;  %v1087_v56 = vsub.f32 %v6857_v42, %v1001_v5  ;;  %v1088_v13 = vsub.f32 %v6861_v61, %v1001_v5  ;;  %v1275_v44 = vadd.f32 %v7227_v22, %v7225_v27 }
 0x334   : > { %v7236_v31 = vpop.eup %5418  ;;  %5438 = vpow2.f32 %v1165_v4  ;;  %v2210_v20 = vmul.f32 1.442695, %v2132_v16  ;;  %v2212_v61 = vmul.f32 1.442695, %v2133_v37 }
 0x335   : > { %v7241_v52 = vpop.eup %5420  ;;  %5440 = vpow2.f32 %v2206_v17  ;;  %v1167_v19 = vmul.f32 1.442695, %v1087_v56  ;;  %v1169_v34 = vmul.f32 1.442695, %v1088_v13  ;;  %v2319_v53 = vadd.f32 %v7236_v31, %v7231_v59  ;;  %v1004_v43 = vpop.xlane.xlu1 %1003 }
 0x336   : > { %v7243_v42 = vpop.eup %5422  ;;  %5442 = vpow2.f32 %v2208_v9  ;;  %v2048_v15 = vpop.xlane.xlu0 %2047  ;;  %v1089_v0 = vsub.f32 %v6869_v7, %v1004_v43  ;;  %v1090_v14 = vsub.f32 %v6873_v33, %v1004_v43  ;;  %1276 = vadd.xlane.f32.xlu0 %v1275_v44 }
 0x337   : > { %v7247_v28 = vpop.eup %5424  ;;  %5444 = vpow2.f32 %v1167_v19  ;;  %v2134_v24 = vsub.f32 %v6879_v57, %v2048_v15  ;;  %2320 = vadd.xlane.f32.xlu1 %v2319_v53  ;;  %v2135_v30 = vsub.f32 %v6883_v51, %v2048_v15  ;;  %v1278_v38 = vadd.f32 %v7243_v42, %v7241_v52 }
 0x338   : > { %v7252_v47 = vpop.eup %5426  ;;  %5446 = vpow2.f32 %v1169_v34  ;;  %v1171_v32 = vmul.f32 1.442695, %v1089_v0  ;;  %v1173_v4 = vmul.f32 1.442695, %v1090_v14 }
 0x339   : > { %v7257_v29 = vpop.eup %5428  ;;  %5448 = vpow2.f32 %v2210_v20  ;;  %v2214_v7 = vmul.f32 1.442695, %v2134_v24  ;;  %v2216_v33 = vmul.f32 1.442695, %v2135_v30  ;;  %v2322_v57 = vadd.f32 %v7252_v47, %v7247_v28  ;;  %v2051_v18 = vpop.xlane.xlu1 %2050 }
 0x33a   : > { %v7259_v17 = vpop.eup %5430  ;;  %5450 = vpow2.f32 %v2212_v61  ;;  %v1007_v9 = vpop.xlane.xlu0 %1006  ;;  %v2136_v56 = vsub.f32 %v6891_v58, %v2051_v18  ;;  %v2137_v16 = vsub.f32 %v6895_v39, %v2051_v18 }
 0x33b   : > { %v7263_v5 = vpop.eup %5432  ;;  %5452 = vpow2.f32 %v1171_v32  ;;  %v1091_v51 = vsub.f32 %v6881_v49, %v1007_v9  ;;  %v1092_v40 = vsub.f32 %v6885_v36, %v1007_v9  ;;  %2323 = vadd.xlane.f32.xlu0 %v2322_v57  ;;  %1279 = vadd.xlane.f32.xlu1 %v1278_v38  ;;  %v1281_v37 = vadd.f32 %v7259_v17, %v7257_v29 }
 0x33c   : > { %v7268_v13 = vpop.eup %5434  ;;  %5454 = vpow2.f32 %v1173_v4  ;;  %v2218_v49 = vmul.f32 1.442695, %v2136_v56  ;;  %v2220_v58 = vmul.f32 1.442695, %v2137_v16  ;;  %v9828_v56 = vld [vmem:[#allocation40_spill] sm:$0xff] }
 0x33d   : > { %v7273_v44 = vpop.eup %5436  ;;  %5456 = vpow2.f32 %v2214_v7  ;;  %v1175_v19 = vmul.f32 1.442695, %v1091_v51  ;;  %v1177_v34 = vmul.f32 1.442695, %v1092_v40  ;;  %v2325_v36 = vadd.f32 %v7268_v13, %v7263_v5  ;;  %v1010_v61 = vpop.xlane.xlu1 %1009 }
 0x33e   : > { %v7275_v20 = vpop.eup %5438  ;;  %5458 = vpow2.f32 %v2216_v33  ;;  %v2054_v53 = vpop.xlane.xlu0 %2053  ;;  %v1093_v39 = vsub.f32 %v6893_v45, %v1010_v61  ;;  %v1094_v15 = vsub.f32 %v6897_v23, %v1010_v61 }
 0x33f   : > { %v7279_v43 = vpop.eup %5440  ;;  %5460 = vpow2.f32 %v1175_v19  ;;  %v2138_v0 = vsub.f32 %v6903_v48, %v2054_v53  ;;  %1282 = vadd.xlane.f32.xlu0 %v1281_v37  ;;  %2326 = vadd.xlane.f32.xlu1 %v2325_v36  ;;  %v2139_v24 = vsub.f32 %v6907_v41, %v2054_v53  ;;  %v1284_v30 = vadd.f32 %v7275_v20, %v7273_v44 }
 0x340   : > { %v7284_v14 = vpop.eup %5442  ;;  %5462 = vpow2.f32 %v1177_v34  ;;  %v1179_v32 = vmul.f32 1.442695, %v1093_v39  ;;  %v1181_v4 = vmul.f32 1.442695, %v1094_v15  ;;  %v9829_v39 = vld [vmem:[#allocation39_spill] sm:$0xff] }
 0x341   : > { %v7289_v38 = vpop.eup %5444  ;;  %5464 = vpow2.f32 %v2218_v49  ;;  %v2222_v45 = vmul.f32 1.442695, %v2138_v0  ;;  %v2224_v48 = vmul.f32 1.442695, %v2139_v24  ;;  %v2328_v23 = vadd.f32 %v7284_v14, %v7279_v43  ;;  %v2057_v57 = vpop.xlane.xlu1 %2056  ;;  %v9830_v0 = vld [vmem:[#allocation41_spill] sm:$0xff] }
 0x342   : > { %v7291_v7 = vpop.eup %5446  ;;  %5466 = vpow2.f32 %v2220_v58  ;;  %v1013_v33 = vpop.xlane.xlu0 %1012  ;;  %v2140_v51 = vsub.f32 %v6915_v60, %v2057_v57  ;;  %v2141_v16 = vsub.f32 %v9828_v56, %v2057_v57 }
 0x343   : > { %v7295_v9 = vpop.eup %5448  ;;  %5468 = vpow2.f32 %v1179_v32  ;;  %v1095_v41 = vsub.f32 %v6905_v46, %v1013_v33  ;;  %v1096_v18 = vsub.f32 %v6909_v1, %v1013_v33  ;;  %2329 = vadd.xlane.f32.xlu0 %v2328_v23  ;;  %1285 = vadd.xlane.f32.xlu1 %v1284_v30  ;;  %v1287_v37 = vadd.f32 %v7291_v7, %v7289_v38  ;;  %v9831_v30 = vld [vmem:[#allocation42_spill] sm:$0xff] }
 0x344   : > { %v7300_v40 = vpop.eup %5450  ;;  %5470 = vpow2.f32 %v1181_v4  ;;  %v2226_v46 = vmul.f32 1.442695, %v2140_v51  ;;  %v2228_v60 = vmul.f32 1.442695, %v2141_v16 }
 0x345   : > { %v7305_v19 = vpop.eup %5452  ;;  %5472 = vpow2.f32 %v2222_v45  ;;  %v1183_v34 = vmul.f32 1.442695, %v1095_v41  ;;  %v1185_v49 = vmul.f32 1.442695, %v1096_v18  ;;  %v2331_v1 = vadd.f32 %v7300_v40, %v7295_v9  ;;  %v1016_v36 = vpop.xlane.xlu1 %1015  ;;  %v9832_v45 = vld [vmem:[#allocation44_spill] sm:$0xff] }
 0x346   : > { %v7307_v58 = vpop.eup %5454  ;;  %5474 = vpow2.f32 %v2224_v48  ;;  %v2060_v61 = vpop.xlane.xlu0 %2059  ;;  %v1097_v15 = vsub.f32 %v9829_v39, %v1016_v36  ;;  %v1098_v24 = vsub.f32 %v9830_v0, %v1016_v36 }
 0x347   : > { %v7311_v53 = vpop.eup %5456  ;;  %5476 = vpow2.f32 %v1183_v34  ;;  %v2142_v32 = vsub.f32 %v9831_v30, %v2060_v61  ;;  %1288 = vadd.xlane.f32.xlu0 %v1287_v37  ;;  %2332 = vadd.xlane.f32.xlu1 %v2331_v1  ;;  %v2143_v48 = vsub.f32 %v9832_v45, %v2060_v61  ;;  %v1290_v23 = vadd.f32 %v7307_v58, %v7305_v19  ;;  %v9836_v1 = vld [vmem:[#allocation43_spill] sm:$0xff]  ;;  %v9837_v61 = vld [vmem:[#allocation45_spill] sm:$0xff] }
 0x348   : > { %v7316_v4 = vpop.eup %5458  ;;  %5478 = vpow2.f32 %v1185_v49  ;;  %v1187_v57 = vmul.f32 1.442695, %v1097_v15  ;;  %v1189_v41 = vmul.f32 1.442695, %v1098_v24 }
 0x349   : > { %v7321_v33 = vpop.eup %5460  ;;  %5480 = vpow2.f32 %v2226_v46  ;;  %v2230_v18 = vmul.f32 1.442695, %v2142_v32  ;;  %v2232_v56 = vmul.f32 1.442695, %v2143_v48  ;;  %v2334_v16 = vadd.f32 %v7316_v4, %v7311_v53  ;;  %v2063_v34 = vpop.xlane.xlu1 %2062  ;;  %v9838_v46 = vld [vmem:[#allocation46_spill] sm:$0xff] }
 0x34a   : > { %9833 = vst [vmem:[#allocation40_spill] sm:$0xff] %v7321_v33  ;;  %v7323_v51 = vpop.eup %5462  ;;  %5482 = vpow2.f32 %v2228_v60  ;;  %v1019_v37 = vpop.xlane.xlu0 %1018  ;;  %v2144_v15 = vsub.f32 %v9838_v46, %v2063_v34  ;;  %v9840_v60 = vld [vmem:[#allocation48_spill] sm:$0xff] }
 0x34b   : > { %9834 = vst [vmem:[#allocation39_spill] sm:$0xff] %v7323_v51  ;;  %v7327_v49 = vpop.eup %5464  ;;  %5484 = vpow2.f32 %v1187_v57  ;;  %v1099_v36 = vsub.f32 %v9836_v1, %v1019_v37  ;;  %v1100_v39 = vsub.f32 %v9837_v61, %v1019_v37  ;;  %2335 = vadd.xlane.f32.xlu0 %v2334_v16  ;;  %1291 = vadd.xlane.f32.xlu1 %v1290_v23 }
 0x34c   : > { %9835 = vst [vmem:[#allocation41_spill] sm:$0xff] %v7327_v49  ;;  %v7332_v0 = vpop.eup %5466  ;;  %5486 = vpow2.f32 %v1189_v41  ;;  %v2145_v24 = vsub.f32 %v9840_v60, %v2063_v34  ;;  %v1293_v30 = vadd.f32 %v7323_v51, %v7321_v33  ;;  %v2234_v57 = vmul.f32 1.442695, %v2144_v15  ;;  %v9844_v34 = vld [vmem:[#allocation47_spill] sm:$0xff]  ;;  %v9845_v60 = vld [vmem:[#allocation49_spill] sm:$0xff] }
 0x34d   : > { %9839 = vst [vmem:[#allocation42_spill] sm:$0xff] %v7332_v0  ;;  %v7337_v32 = vpop.eup %5468  ;;  %5488 = vpow2.f32 %v2230_v18  ;;  %v1191_v45 = vmul.f32 1.442695, %v1099_v36  ;;  %v1193_v48 = vmul.f32 1.442695, %v1100_v39  ;;  %v2337_v41 = vadd.f32 %v7332_v0, %v7327_v49  ;;  %v1022_v16 = vpop.xlane.xlu1 %1021  ;;  %v9846_v18 = vld [vmem:[#allocation50_spill] sm:$0xff] }
 0x34e   : > { %9841 = vst [vmem:[#allocation44_spill] sm:$0xff] %v7337_v32  ;;  %v7339_v1 = vpop.eup %5470  ;;  %5490 = vpow2.f32 %v2232_v56  ;;  %v2236_v37 = vmul.f32 1.442695, %v2145_v24  ;;  %v2066_v23 = vpop.xlane.xlu0 %2065  ;;  %v1101_v46 = vsub.f32 %v9844_v34, %v1022_v16  ;;  %v1102_v33 = vsub.f32 %v9845_v60, %v1022_v16  ;;  %v9848_v56 = vld [vmem:[#allocation52_spill] sm:$0xff] }
 0x34f   : > { %9842 = vst [vmem:[#allocation43_spill] sm:$0xff] %v7339_v1  ;;  %v7343_v61 = vpop.eup %5472  ;;  %5492 = vpow2.f32 %v1191_v45  ;;  %v2146_v36 = vsub.f32 %v9846_v18, %v2066_v23  ;;  %1294 = vadd.xlane.f32.xlu0 %v1293_v30  ;;  %2338 = vadd.xlane.f32.xlu1 %v2337_v41  ;;  %v2147_v15 = vsub.f32 %v9848_v56, %v2066_v23  ;;  %v9852_v23 = vld [vmem:[#allocation51_spill] sm:$0xff]  ;;  %v9853_v56 = vld [vmem:[#allocation53_spill] sm:$0xff] }
 0x350   : > { %9843 = vst [vmem:[#allocation45_spill] sm:$0xff] %v7343_v61  ;;  %v7348_v39 = vpop.eup %5474  ;;  %5494 = vpow2.f32 %v1193_v48  ;;  %v1296_v24 = vadd.f32 %v7339_v1, %v7337_v32  ;;  %v1195_v45 = vmul.f32 1.442695, %v1101_v46  ;;  %v1197_v0 = vmul.f32 1.442695, %v1102_v33 }
 0x351   : > { %9847 = vst [vmem:[#allocation46_spill] sm:$0xff] %v7348_v39  ;;  %v7353_v49 = vpop.eup %5476  ;;  %5496 = vpow2.f32 %v2234_v57  ;;  %v2238_v34 = vmul.f32 1.442695, %v2146_v36  ;;  %v2240_v16 = vmul.f32 1.442695, %v2147_v15  ;;  %v2340_v48 = vadd.f32 %v7348_v39, %v7343_v61  ;;  %v2069_v41 = vpop.xlane.xlu1 %2068  ;;  %v9854_v57 = vld [vmem:[#allocation54_spill] sm:$0xff] }
 0x352   : > { %9849 = vst [vmem:[#allocation48_spill] sm:$0xff] %v7353_v49  ;;  %v7355_v51 = vpop.eup %5478  ;;  %5498 = vpow2.f32 %v2236_v37  ;;  %v1025_v30 = vpop.xlane.xlu0 %1024  ;;  %v2148_v46 = vsub.f32 %v9854_v57, %v2069_v41  ;;  %v9856_v37 = vld [vmem:[#allocation56_spill] sm:$0xff] }
 0x353   : > { %9850 = vst [vmem:[#allocation47_spill] sm:$0xff] %v7355_v51  ;;  %v7359_v60 = vpop.eup %5480  ;;  %5500 = vpow2.f32 %v1195_v45  ;;  %v1103_v18 = vsub.f32 %v9852_v23, %v1025_v30  ;;  %v1104_v32 = vsub.f32 %v9853_v56, %v1025_v30  ;;  %2341 = vadd.xlane.f32.xlu0 %v2340_v48  ;;  %1297 = vadd.xlane.f32.xlu1 %v1296_v24 }
 0x354   : > { %9851 = vst [vmem:[#allocation49_spill] sm:$0xff] %v7359_v60  ;;  %v7364_v33 = vpop.eup %5482  ;;  %5502 = vpow2.f32 %v1197_v0  ;;  %v2149_v36 = vsub.f32 %v9856_v37, %v2069_v41  ;;  %v1299_v15 = vadd.f32 %v7355_v51, %v7353_v49  ;;  %v2242_v23 = vmul.f32 1.442695, %v2148_v46  ;;  %v9860_v41 = vld [vmem:[#allocation55_spill] sm:$0xff]  ;;  %v9861_v37 = vld [vmem:[#allocation57_spill] sm:$0xff] }
 0x355   : > { %9855 = vst [vmem:[#allocation50_spill] sm:$0xff] %v7364_v33  ;;  %v7369_v1 = vpop.eup %5484  ;;  %5504 = vpow2.f32 %v2238_v34  ;;  %v1199_v45 = vmul.f32 1.442695, %v1103_v18  ;;  %v1201_v61 = vmul.f32 1.442695, %v1104_v32  ;;  %v2343_v0 = vadd.f32 %v7364_v33, %v7359_v60  ;;  %v1028_v48 = vpop.xlane.xlu1 %1027  ;;  %v9862_v34 = vld [vmem:[#allocation58_spill] sm:$0xff] }
 0x356   : > { %9857 = vst [vmem:[#allocation52_spill] sm:$0xff] %v7369_v1  ;;  %v7371_v39 = vpop.eup %5486  ;;  %5506 = vpow2.f32 %v2240_v16  ;;  %v2244_v30 = vmul.f32 1.442695, %v2149_v36  ;;  %v2072_v24 = vpop.xlane.xlu0 %2071  ;;  %v1105_v57 = vsub.f32 %v9860_v41, %v1028_v48  ;;  %v1106_v49 = vsub.f32 %v9861_v37, %v1028_v48  ;;  %v9864_v16 = vld [vmem:[#allocation60_spill] sm:$0xff] }
 0x357   : > { %9858 = vst [vmem:[#allocation51_spill] sm:$0xff] %v7371_v39  ;;  %v7375_v56 = vpop.eup %5488  ;;  %5508 = vpow2.f32 %v1199_v45  ;;  %v2150_v18 = vsub.f32 %v9862_v34, %v2072_v24  ;;  %1300 = vadd.xlane.f32.xlu0 %v1299_v15  ;;  %2344 = vadd.xlane.f32.xlu1 %v2343_v0  ;;  %v2151_v46 = vsub.f32 %v9864_v16, %v2072_v24  ;;  %v9868_v24 = vld [vmem:[#allocation59_spill] sm:$0xff]  ;;  %v9869_v16 = vld [vmem:[#allocation61_spill] sm:$0xff] }
 0x358   : > { %9859 = vst [vmem:[#allocation53_spill] sm:$0xff] %v7375_v56  ;;  %v7380_v32 = vpop.eup %5490  ;;  %5510 = vpow2.f32 %v1201_v61  ;;  %v1302_v36 = vadd.f32 %v7371_v39, %v7369_v1  ;;  %v1203_v45 = vmul.f32 1.442695, %v1105_v57  ;;  %v1205_v33 = vmul.f32 1.442695, %v1106_v49 }
 0x359   : > { %9863 = vst [vmem:[#allocation54_spill] sm:$0xff] %v7380_v32  ;;  %v7385_v60 = vpop.eup %5492  ;;  %5512 = vpow2.f32 %v2242_v23  ;;  %v2246_v41 = vmul.f32 1.442695, %v2150_v18  ;;  %v2248_v48 = vmul.f32 1.442695, %v2151_v46  ;;  %v2346_v61 = vadd.f32 %v7380_v32, %v7375_v56  ;;  %v2075_v0 = vpop.xlane.xlu1 %2074  ;;  %v9870_v23 = vld [vmem:[#allocation62_spill] sm:$0xff] }
 0x35a   : > { %9865 = vst [vmem:[#allocation56_spill] sm:$0xff] %v7385_v60  ;;  %v7387_v51 = vpop.eup %5494  ;;  %5514 = vpow2.f32 %v2244_v30  ;;  %v1031_v15 = vpop.xlane.xlu0 %1030  ;;  %v2152_v57 = vsub.f32 %v9870_v23, %v2075_v0  ;;  %v9872_v30 = vld [vmem:[#allocation64_spill] sm:$0xff] }
 0x35b   : > { %9866 = vst [vmem:[#allocation55_spill] sm:$0xff] %v7387_v51  ;;  %v7391_v37 = vpop.eup %5496  ;;  %5516 = vpow2.f32 %v1203_v45  ;;  %v1107_v34 = vsub.f32 %v9868_v24, %v1031_v15  ;;  %v1108_v1 = vsub.f32 %v9869_v16, %v1031_v15  ;;  %2347 = vadd.xlane.f32.xlu0 %v2346_v61  ;;  %1303 = vadd.xlane.f32.xlu1 %v1302_v36 }
 0x35c   : > { %9867 = vst [vmem:[#allocation57_spill] sm:$0xff] %v7391_v37  ;;  %v7396_v49 = vpop.eup %5498  ;;  %5518 = vpow2.f32 %v1205_v33  ;;  %v2153_v18 = vsub.f32 %v9872_v30, %v2075_v0  ;;  %v1305_v46 = vadd.f32 %v7387_v51, %v7385_v60  ;;  %v2250_v24 = vmul.f32 1.442695, %v2152_v57  ;;  %v9876_v0 = vld [vmem:[#allocation63_spill] sm:$0xff]  ;;  %v9877_v30 = vld [vmem:[#allocation65_spill] sm:$0xff] }
 0x35d   : > { %9871 = vst [vmem:[#allocation58_spill] sm:$0xff] %v7396_v49  ;;  %v7401_v39 = vpop.eup %5500  ;;  %5520 = vpow2.f32 %v2246_v41  ;;  %v1207_v45 = vmul.f32 1.442695, %v1107_v34  ;;  %v1209_v56 = vmul.f32 1.442695, %v1108_v1  ;;  %v2349_v33 = vadd.f32 %v7396_v49, %v7391_v37  ;;  %v1034_v61 = vpop.xlane.xlu1 %1033  ;;  %v9878_v41 = vld [vmem:[#allocation66_spill] sm:$0xff] }
 0x35e   : > { %9873 = vst [vmem:[#allocation60_spill] sm:$0xff] %v7401_v39  ;;  %v7403_v32 = vpop.eup %5502  ;;  %5522 = vpow2.f32 %v2248_v48  ;;  %v2252_v15 = vmul.f32 1.442695, %v2153_v18  ;;  %v2078_v36 = vpop.xlane.xlu0 %2077  ;;  %v1109_v23 = vsub.f32 %v9876_v0, %v1034_v61  ;;  %v1110_v60 = vsub.f32 %v9877_v30, %v1034_v61  ;;  %v9880_v48 = vld [vmem:[#allocation68_spill] sm:$0xff] }
 0x35f   : > { %9874 = vst [vmem:[#allocation59_spill] sm:$0xff] %v7403_v32  ;;  %v7407_v16 = vpop.eup %5504  ;;  %5524 = vpow2.f32 %v1207_v45  ;;  %v2154_v34 = vsub.f32 %v9878_v41, %v2078_v36  ;;  %1306 = vadd.xlane.f32.xlu0 %v1305_v46  ;;  %2350 = vadd.xlane.f32.xlu1 %v2349_v33  ;;  %v2155_v57 = vsub.f32 %v9880_v48, %v2078_v36  ;;  %v9884_v36 = vld [vmem:[#allocation67_spill] sm:$0xff]  ;;  %v9885_v48 = vld [vmem:[#allocation69_spill] sm:$0xff] }
 0x360   : > { %9875 = vst [vmem:[#allocation61_spill] sm:$0xff] %v7407_v16  ;;  %v7412_v1 = vpop.eup %5506  ;;  %5526 = vpow2.f32 %v1209_v56  ;;  %v1308_v18 = vadd.f32 %v7403_v32, %v7401_v39  ;;  %v1211_v45 = vmul.f32 1.442695, %v1109_v23  ;;  %v1213_v49 = vmul.f32 1.442695, %v1110_v60 }
 0x361   : > { %9879 = vst [vmem:[#allocation62_spill] sm:$0xff] %v7412_v1  ;;  %v7417_v37 = vpop.eup %5508  ;;  %5528 = vpow2.f32 %v2250_v24  ;;  %v2254_v0 = vmul.f32 1.442695, %v2154_v34  ;;  %v2256_v61 = vmul.f32 1.442695, %v2155_v57  ;;  %v2352_v56 = vadd.f32 %v7412_v1, %v7407_v16  ;;  %v2081_v33 = vpop.xlane.xlu1 %2080  ;;  %v9886_v24 = vld [vmem:[#allocation70_spill] sm:$0xff] }
 0x362   : > { %9881 = vst [vmem:[#allocation64_spill] sm:$0xff] %v7417_v37  ;;  %v7419_v51 = vpop.eup %5510  ;;  %5530 = vpow2.f32 %v2252_v15  ;;  %v1037_v46 = vpop.xlane.xlu0 %1036  ;;  %v2156_v23 = vsub.f32 %v9886_v24, %v2081_v33  ;;  %v9888_v15 = vld [vmem:[#allocation72_spill] sm:$0xff] }
 0x363   : > { %9882 = vst [vmem:[#allocation63_spill] sm:$0xff] %v7419_v51  ;;  %v7423_v30 = vpop.eup %5512  ;;  %5532 = vpow2.f32 %v1211_v45  ;;  %v1111_v41 = vsub.f32 %v9884_v36, %v1037_v46  ;;  %v1112_v39 = vsub.f32 %v9885_v48, %v1037_v46  ;;  %2353 = vadd.xlane.f32.xlu0 %v2352_v56  ;;  %1309 = vadd.xlane.f32.xlu1 %v1308_v18 }
 0x364   : > { %9883 = vst [vmem:[#allocation65_spill] sm:$0xff] %v7423_v30  ;;  %v7428_v60 = vpop.eup %5514  ;;  %5534 = vpow2.f32 %v1213_v49  ;;  %v2157_v34 = vsub.f32 %v9888_v15, %v2081_v33  ;;  %v1311_v57 = vadd.f32 %v7419_v51, %v7417_v37  ;;  %v2258_v36 = vmul.f32 1.442695, %v2156_v23  ;;  %v9892_v33 = vld [vmem:[#allocation71_spill] sm:$0xff]  ;;  %v9893_v15 = vld [vmem:[#allocation73_spill] sm:$0xff] }
 0x365   : > { %9887 = vst [vmem:[#allocation66_spill] sm:$0xff] %v7428_v60  ;;  %v7433_v32 = vpop.eup %5516  ;;  %5536 = vpow2.f32 %v2254_v0  ;;  %v1215_v45 = vmul.f32 1.442695, %v1111_v41  ;;  %v1217_v16 = vmul.f32 1.442695, %v1112_v39  ;;  %v2355_v49 = vadd.f32 %v7428_v60, %v7423_v30  ;;  %v1040_v56 = vpop.xlane.xlu1 %1039  ;;  %v9894_v0 = vld [vmem:[#allocation74_spill] sm:$0xff] }
 0x366   : > { %9889 = vst [vmem:[#allocation68_spill] sm:$0xff] %v7433_v32  ;;  %v7435_v1 = vpop.eup %5518  ;;  %5538 = vpow2.f32 %v2256_v61  ;;  %v2260_v46 = vmul.f32 1.442695, %v2157_v34  ;;  %v2084_v18 = vpop.xlane.xlu0 %2083  ;;  %v1113_v24 = vsub.f32 %v9892_v33, %v1040_v56  ;;  %v1114_v37 = vsub.f32 %v9893_v15, %v1040_v56  ;;  %v9896_v61 = vld [vmem:[#allocation76_spill] sm:$0xff] }
 0x367   : > { %9890 = vst [vmem:[#allocation67_spill] sm:$0xff] %v7435_v1  ;;  %v7439_v48 = vpop.eup %5520  ;;  %5540 = vpow2.f32 %v1215_v45  ;;  %v2158_v41 = vsub.f32 %v9894_v0, %v2084_v18  ;;  %1312 = vadd.xlane.f32.xlu0 %v1311_v57  ;;  %2356 = vadd.xlane.f32.xlu1 %v2355_v49  ;;  %v2159_v23 = vsub.f32 %v9896_v61, %v2084_v18  ;;  %v9900_v18 = vld [vmem:[#allocation75_spill] sm:$0xff]  ;;  %v9901_v61 = vld [vmem:[#allocation77_spill] sm:$0xff] }
 0x368   : > { %9891 = vst [vmem:[#allocation69_spill] sm:$0xff] %v7439_v48  ;;  %v7444_v39 = vpop.eup %5522  ;;  %5542 = vpow2.f32 %v1217_v16  ;;  %v1314_v34 = vadd.f32 %v7435_v1, %v7433_v32  ;;  %v1219_v45 = vmul.f32 1.442695, %v1113_v24  ;;  %v1221_v60 = vmul.f32 1.442695, %v1114_v37 }
 0x369   : > { %9895 = vst [vmem:[#allocation70_spill] sm:$0xff] %v7444_v39  ;;  %v7449_v30 = vpop.eup %5524  ;;  %5544 = vpow2.f32 %v2258_v36  ;;  %v2262_v33 = vmul.f32 1.442695, %v2158_v41  ;;  %v2264_v56 = vmul.f32 1.442695, %v2159_v23  ;;  %v2358_v16 = vadd.f32 %v7444_v39, %v7439_v48  ;;  %v2087_v49 = vpop.xlane.xlu1 %2086  ;;  %v9902_v36 = vld [vmem:[#allocation78_spill] sm:$0xff] }
 0x36a   : > { %9897 = vst [vmem:[#allocation72_spill] sm:$0xff] %v7449_v30  ;;  %v7451_v51 = vpop.eup %5526  ;;  %5546 = vpow2.f32 %v2260_v46  ;;  %v1043_v57 = vpop.xlane.xlu0 %1042  ;;  %v2160_v24 = vsub.f32 %v9902_v36, %v2087_v49  ;;  %v9904_v46 = vld [vmem:[#allocation80_spill] sm:$0xff] }
 0x36b   : > { %9898 = vst [vmem:[#allocation71_spill] sm:$0xff] %v7451_v51  ;;  %v7455_v15 = vpop.eup %5528  ;;  %5548 = vpow2.f32 %v1219_v45  ;;  %v1115_v0 = vsub.f32 %v9900_v18, %v1043_v57  ;;  %v1116_v32 = vsub.f32 %v9901_v61, %v1043_v57  ;;  %2359 = vadd.xlane.f32.xlu0 %v2358_v16  ;;  %1315 = vadd.xlane.f32.xlu1 %v1314_v34 }
 0x36c   : > { %9899 = vst [vmem:[#allocation73_spill] sm:$0xff] %v7455_v15  ;;  %v7460_v37 = vpop.eup %5530  ;;  %5550 = vpow2.f32 %v1221_v60  ;;  %v2161_v41 = vsub.f32 %v9904_v46, %v2087_v49  ;;  %v1317_v23 = vadd.f32 %v7451_v51, %v7449_v30  ;;  %v2266_v18 = vmul.f32 1.442695, %v2160_v24  ;;  %v9908_v49 = vld [vmem:[#allocation79_spill] sm:$0xff]  ;;  %v9909_v46 = vld [vmem:[#allocation81_spill] sm:$0xff] }
 0x36d   : > { %9903 = vst [vmem:[#allocation74_spill] sm:$0xff] %v7460_v37  ;;  %v7465_v1 = vpop.eup %5532  ;;  %5552 = vpow2.f32 %v2262_v33  ;;  %v1223_v45 = vmul.f32 1.442695, %v1115_v0  ;;  %v1225_v48 = vmul.f32 1.442695, %v1116_v32  ;;  %v2361_v60 = vadd.f32 %v7460_v37, %v7455_v15  ;;  %v1046_v16 = vpop.xlane.xlu1 %1045  ;;  %v9910_v33 = vld [vmem:[#allocation82_spill] sm:$0xff] }
 0x36e   : > { %9905 = vst [vmem:[#allocation76_spill] sm:$0xff] %v7465_v1  ;;  %v7467_v39 = vpop.eup %5534  ;;  %5554 = vpow2.f32 %v2264_v56  ;;  %v2268_v57 = vmul.f32 1.442695, %v2161_v41  ;;  %v2090_v34 = vpop.xlane.xlu0 %2089  ;;  %v1117_v36 = vsub.f32 %v9908_v49, %v1046_v16  ;;  %v1118_v30 = vsub.f32 %v9909_v46, %v1046_v16  ;;  %v9912_v56 = vld [vmem:[#allocation84_spill] sm:$0xff] }
 0x36f   : > { %9906 = vst [vmem:[#allocation75_spill] sm:$0xff] %v7467_v39  ;;  %v7471_v61 = vpop.eup %5536  ;;  %5556 = vpow2.f32 %v1223_v45  ;;  %v2162_v0 = vsub.f32 %v9910_v33, %v2090_v34  ;;  %1318 = vadd.xlane.f32.xlu0 %v1317_v23  ;;  %2362 = vadd.xlane.f32.xlu1 %v2361_v60  ;;  %v2163_v24 = vsub.f32 %v9912_v56, %v2090_v34  ;;  %v9916_v34 = vld [vmem:[#allocation83_spill] sm:$0xff]  ;;  %v9917_v56 = vld [vmem:[#allocation85_spill] sm:$0xff] }
 0x370   : > { %9907 = vst [vmem:[#allocation77_spill] sm:$0xff] %v7471_v61  ;;  %v7476_v32 = vpop.eup %5538  ;;  %5558 = vpow2.f32 %v1225_v48  ;;  %v1320_v41 = vadd.f32 %v7467_v39, %v7465_v1  ;;  %v1227_v45 = vmul.f32 1.442695, %v1117_v36  ;;  %v1229_v37 = vmul.f32 1.442695, %v1118_v30 }
 0x371   : > { %9911 = vst [vmem:[#allocation78_spill] sm:$0xff] %v7476_v32  ;;  %v7481_v15 = vpop.eup %5540  ;;  %5560 = vpow2.f32 %v2266_v18  ;;  %v2270_v49 = vmul.f32 1.442695, %v2162_v0  ;;  %v2272_v16 = vmul.f32 1.442695, %v2163_v24  ;;  %v2364_v48 = vadd.f32 %v7476_v32, %v7471_v61  ;;  %v2093_v60 = vpop.xlane.xlu1 %2092  ;;  %v9918_v18 = vld [vmem:[#allocation86_spill] sm:$0xff] }
 0x372   : > { %9913 = vst [vmem:[#allocation80_spill] sm:$0xff] %v7481_v15  ;;  %v7483_v51 = vpop.eup %5542  ;;  %5562 = vpow2.f32 %v2268_v57  ;;  %v1049_v23 = vpop.xlane.xlu0 %1048  ;;  %v2164_v36 = vsub.f32 %v9918_v18, %v2093_v60  ;;  %v9920_v57 = vld [vmem:[#allocation88_spill] sm:$0xff] }
 0x373   : > { %9914 = vst [vmem:[#allocation79_spill] sm:$0xff] %v7483_v51  ;;  %v7487_v46 = vpop.eup %5544  ;;  %5564 = vpow2.f32 %v1227_v45  ;;  %v1119_v33 = vsub.f32 %v9916_v34, %v1049_v23  ;;  %v1120_v1 = vsub.f32 %v9917_v56, %v1049_v23  ;;  %2365 = vadd.xlane.f32.xlu0 %v2364_v48  ;;  %1321 = vadd.xlane.f32.xlu1 %v1320_v41 }
 0x374   : > { %9915 = vst [vmem:[#allocation81_spill] sm:$0xff] %v7487_v46  ;;  %v7492_v30 = vpop.eup %5546  ;;  %5566 = vpow2.f32 %v1229_v37  ;;  %v2165_v0 = vsub.f32 %v9920_v57, %v2093_v60  ;;  %v1323_v24 = vadd.f32 %v7483_v51, %v7481_v15  ;;  %v2274_v34 = vmul.f32 1.442695, %v2164_v36  ;;  %v9924_v60 = vld [vmem:[#allocation87_spill] sm:$0xff]  ;;  %v9925_v57 = vld [vmem:[#allocation89_spill] sm:$0xff] }
 0x375   : > { %9919 = vst [vmem:[#allocation82_spill] sm:$0xff] %v7492_v30  ;;  %v7497_v39 = vpop.eup %5548  ;;  %5568 = vpow2.f32 %v2270_v49  ;;  %v1231_v45 = vmul.f32 1.442695, %v1119_v33  ;;  %v1233_v61 = vmul.f32 1.442695, %v1120_v1  ;;  %v2367_v37 = vadd.f32 %v7492_v30, %v7487_v46  ;;  %v1052_v48 = vpop.xlane.xlu1 %1051  ;;  %v9926_v49 = vld [vmem:[#allocation90_spill] sm:$0xff] }
 0x376   : > { %9921 = vst [vmem:[#allocation84_spill] sm:$0xff] %v7497_v39  ;;  %v7499_v32 = vpop.eup %5550  ;;  %5570 = vpow2.f32 %v2272_v16  ;;  %v2276_v23 = vmul.f32 1.442695, %v2165_v0  ;;  %v2096_v41 = vpop.xlane.xlu0 %2095  ;;  %v1121_v18 = vsub.f32 %v9924_v60, %v1052_v48  ;;  %v1122_v15 = vsub.f32 %v9925_v57, %v1052_v48  ;;  %v9928_v16 = vld [vmem:[#allocation92_spill] sm:$0xff] }
 0x377   : > { %9922 = vst [vmem:[#allocation83_spill] sm:$0xff] %v7499_v32  ;;  %v7503_v56 = vpop.eup %5552  ;;  %5572 = vpow2.f32 %v1231_v45  ;;  %v2166_v33 = vsub.f32 %v9926_v49, %v2096_v41  ;;  %1324 = vadd.xlane.f32.xlu0 %v1323_v24  ;;  %2368 = vadd.xlane.f32.xlu1 %v2367_v37  ;;  %v2167_v36 = vsub.f32 %v9928_v16, %v2096_v41  ;;  %v9932_v41 = vld [vmem:[#allocation91_spill] sm:$0xff]  ;;  %v9933_v16 = vld [vmem:[#allocation93_spill] sm:$0xff] }
 0x378   : > { %9923 = vst [vmem:[#allocation85_spill] sm:$0xff] %v7503_v56  ;;  %v7508_v1 = vpop.eup %5554  ;;  %5574 = vpow2.f32 %v1233_v61  ;;  %v1326_v0 = vadd.f32 %v7499_v32, %v7497_v39  ;;  %v1235_v45 = vmul.f32 1.442695, %v1121_v18  ;;  %v1237_v30 = vmul.f32 1.442695, %v1122_v15 }
 0x379   : > { %9927 = vst [vmem:[#allocation86_spill] sm:$0xff] %v7508_v1  ;;  %v7513_v46 = vpop.eup %5556  ;;  %5576 = vpow2.f32 %v2274_v34  ;;  %v2278_v60 = vmul.f32 1.442695, %v2166_v33  ;;  %v2280_v48 = vmul.f32 1.442695, %v2167_v36  ;;  %v2370_v61 = vadd.f32 %v7508_v1, %v7503_v56  ;;  %v2099_v37 = vpop.xlane.xlu1 %2098  ;;  %v9934_v34 = vld [vmem:[#allocation94_spill] sm:$0xff] }
 0x37a   : > { %9929 = vst [vmem:[#allocation88_spill] sm:$0xff] %v7513_v46  ;;  %v7515_v51 = vpop.eup %5558  ;;  %5578 = vpow2.f32 %v2276_v23  ;;  %v1055_v24 = vpop.xlane.xlu0 %1054  ;;  %v2168_v18 = vsub.f32 %v9934_v34, %v2099_v37  ;;  %v9936_v23 = vld [vmem:[#allocation96_spill] sm:$0xff] }
 0x37b   : > { %9930 = vst [vmem:[#allocation87_spill] sm:$0xff] %v7515_v51  ;;  %v7519_v57 = vpop.eup %5560  ;;  %5580 = vpow2.f32 %v1235_v45  ;;  %v1123_v49 = vsub.f32 %v9932_v41, %v1055_v24  ;;  %v1124_v39 = vsub.f32 %v9933_v16, %v1055_v24  ;;  %2371 = vadd.xlane.f32.xlu0 %v2370_v61  ;;  %1327 = vadd.xlane.f32.xlu1 %v1326_v0 }
 0x37c   : > { %9931 = vst [vmem:[#allocation89_spill] sm:$0xff] %v7519_v57  ;;  %v7524_v15 = vpop.eup %5562  ;;  %5582 = vpow2.f32 %v1237_v30  ;;  %v2169_v33 = vsub.f32 %v9936_v23, %v2099_v37  ;;  %v1329_v36 = vadd.f32 %v7515_v51, %v7513_v46  ;;  %v2282_v41 = vmul.f32 1.442695, %v2168_v18  ;;  %v9940_v37 = vld [vmem:[#allocation95_spill] sm:$0xff]  ;;  %v9941_v23 = vld [vmem:[#allocation97_spill] sm:$0xff] }
 0x37d   : > { %9935 = vst [vmem:[#allocation90_spill] sm:$0xff] %v7524_v15  ;;  %v7529_v32 = vpop.eup %5564  ;;  %5584 = vpow2.f32 %v2278_v60  ;;  %v1239_v45 = vmul.f32 1.442695, %v1123_v49  ;;  %v1241_v56 = vmul.f32 1.442695, %v1124_v39  ;;  %v2373_v30 = vadd.f32 %v7524_v15, %v7519_v57  ;;  %v1058_v61 = vpop.xlane.xlu1 %1057  ;;  %v9942_v60 = vld [vmem:[#allocation98_spill] sm:$0xff] }
 0x37e   : > { %9937 = vst [vmem:[#allocation92_spill] sm:$0xff] %v7529_v32  ;;  %v7531_v1 = vpop.eup %5566  ;;  %5586 = vpow2.f32 %v2280_v48  ;;  %v2284_v24 = vmul.f32 1.442695, %v2169_v33  ;;  %v2102_v0 = vpop.xlane.xlu0 %2101  ;;  %v1125_v34 = vsub.f32 %v9940_v37, %v1058_v61  ;;  %v1126_v46 = vsub.f32 %v9941_v23, %v1058_v61  ;;  %v9944_v48 = vld [vmem:[#allocation100_spill] sm:$0xff] }
 0x37f   : > { %9938 = vst [vmem:[#allocation91_spill] sm:$0xff] %v7531_v1  ;;  %v7535_v16 = vpop.eup %5568  ;;  %5588 = vpow2.f32 %v1239_v45  ;;  %v2170_v49 = vsub.f32 %v9942_v60, %v2102_v0  ;;  %1330 = vadd.xlane.f32.xlu0 %v1329_v36  ;;  %2374 = vadd.xlane.f32.xlu1 %v2373_v30  ;;  %v2171_v18 = vsub.f32 %v9944_v48, %v2102_v0  ;;  %v9948_v0 = vld [vmem:[#allocation99_spill] sm:$0xff]  ;;  %v9949_v48 = vld [vmem:[#allocation101_spill] sm:$0xff] }
 0x380   : > { %9939 = vst [vmem:[#allocation93_spill] sm:$0xff] %v7535_v16  ;;  %v7540_v39 = vpop.eup %5570  ;;  %5590 = vpow2.f32 %v1241_v56  ;;  %v1332_v33 = vadd.f32 %v7531_v1, %v7529_v32  ;;  %v1243_v45 = vmul.f32 1.442695, %v1125_v34  ;;  %v1245_v15 = vmul.f32 1.442695, %v1126_v46 }
 0x381   : > { %9943 = vst [vmem:[#allocation94_spill] sm:$0xff] %v7540_v39  ;;  %v7545_v57 = vpop.eup %5572  ;;  %5592 = vpow2.f32 %v2282_v41  ;;  %v2286_v37 = vmul.f32 1.442695, %v2170_v49  ;;  %v2288_v61 = vmul.f32 1.442695, %v2171_v18  ;;  %v2376_v56 = vadd.f32 %v7540_v39, %v7535_v16  ;;  %v2105_v30 = vpop.xlane.xlu1 %2104  ;;  %v9950_v41 = vld [vmem:[#allocation102_spill] sm:$0xff] }
 0x382   : > { %9945 = vst [vmem:[#allocation96_spill] sm:$0xff] %v7545_v57  ;;  %v7547_v51 = vpop.eup %5574  ;;  %5594 = vpow2.f32 %v2284_v24  ;;  %v1061_v36 = vpop.xlane.xlu0 %1060  ;;  %v2172_v34 = vsub.f32 %v9950_v41, %v2105_v30  ;;  %v9952_v24 = vld [vmem:[#allocation104_spill] sm:$0xff] }
 0x383   : > { %9946 = vst [vmem:[#allocation95_spill] sm:$0xff] %v7547_v51  ;;  %v7551_v23 = vpop.eup %5576  ;;  %5596 = vpow2.f32 %v1243_v45  ;;  %v1127_v60 = vsub.f32 %v9948_v0, %v1061_v36  ;;  %v1128_v32 = vsub.f32 %v9949_v48, %v1061_v36  ;;  %2377 = vadd.xlane.f32.xlu0 %v2376_v56  ;;  %1333 = vadd.xlane.f32.xlu1 %v1332_v33 }
 0x384   : > { %9947 = vst [vmem:[#allocation97_spill] sm:$0xff] %v7551_v23  ;;  %v7556_v46 = vpop.eup %5578  ;;  %5598 = vpow2.f32 %v1245_v15  ;;  %v2173_v49 = vsub.f32 %v9952_v24, %v2105_v30  ;;  %v1335_v18 = vadd.f32 %v7547_v51, %v7545_v57  ;;  %v2290_v0 = vmul.f32 1.442695, %v2172_v34  ;;  %v9956_v30 = vld [vmem:[#allocation103_spill] sm:$0xff]  ;;  %v9957_v24 = vld [vmem:[#allocation105_spill] sm:$0xff] }
 0x385   : > { %9951 = vst [vmem:[#allocation98_spill] sm:$0xff] %v7556_v46  ;;  %v7561_v1 = vpop.eup %5580  ;;  %5600 = vpow2.f32 %v2286_v37  ;;  %v1247_v45 = vmul.f32 1.442695, %v1127_v60  ;;  %v1249_v16 = vmul.f32 1.442695, %v1128_v32  ;;  %v2379_v15 = vadd.f32 %v7556_v46, %v7551_v23  ;;  %v1064_v56 = vpop.xlane.xlu1 %1063  ;;  %v9958_v37 = vld [vmem:[#allocation106_spill] sm:$0xff] }
 0x386   : > { %9953 = vst [vmem:[#allocation100_spill] sm:$0xff] %v7561_v1  ;;  %v7563_v39 = vpop.eup %5582  ;;  %5602 = vpow2.f32 %v2288_v61  ;;  %v2292_v36 = vmul.f32 1.442695, %v2173_v49  ;;  %v2108_v33 = vpop.xlane.xlu0 %2107  ;;  %v1129_v41 = vsub.f32 %v9956_v30, %v1064_v56  ;;  %v1130_v57 = vsub.f32 %v9957_v24, %v1064_v56  ;;  %v9960_v61 = vld [vmem:[#allocation108_spill] sm:$0xff] }
 0x387   : > { %9954 = vst [vmem:[#allocation99_spill] sm:$0xff] %v7563_v39  ;;  %v7567_v48 = vpop.eup %5584  ;;  %5604 = vpow2.f32 %v1247_v45  ;;  %v2174_v60 = vsub.f32 %v9958_v37, %v2108_v33  ;;  %1336 = vadd.xlane.f32.xlu0 %v1335_v18  ;;  %2380 = vadd.xlane.f32.xlu1 %v2379_v15  ;;  %v2175_v34 = vsub.f32 %v9960_v61, %v2108_v33  ;;  %v9964_v33 = vld [vmem:[#allocation107_spill] sm:$0xff]  ;;  %v9965_v61 = vld [vmem:[#allocation109_spill] sm:$0xff] }
 0x388   : > { %9955 = vst [vmem:[#allocation101_spill] sm:$0xff] %v7567_v48  ;;  %v7572_v32 = vpop.eup %5586  ;;  %5606 = vpow2.f32 %v1249_v16  ;;  %v1338_v49 = vadd.f32 %v7563_v39, %v7561_v1  ;;  %v1251_v45 = vmul.f32 1.442695, %v1129_v41  ;;  %v1253_v46 = vmul.f32 1.442695, %v1130_v57 }
 0x389   : > { %9959 = vst [vmem:[#allocation102_spill] sm:$0xff] %v7572_v32  ;;  %v7577_v23 = vpop.eup %5588  ;;  %5608 = vpow2.f32 %v2290_v0  ;;  %v2294_v30 = vmul.f32 1.442695, %v2174_v60  ;;  %v2296_v56 = vmul.f32 1.442695, %v2175_v34  ;;  %v2382_v16 = vadd.f32 %v7572_v32, %v7567_v48  ;;  %v2111_v15 = vpop.xlane.xlu1 %2110  ;;  %v9966_v0 = vld [vmem:[#allocation110_spill] sm:$0xff] }
 0x38a   : > { %9961 = vst [vmem:[#allocation104_spill] sm:$0xff] %v7577_v23  ;;  %v7579_v51 = vpop.eup %5590  ;;  %5610 = vpow2.f32 %v2292_v36  ;;  %v1067_v18 = vpop.xlane.xlu0 %1066  ;;  %v2176_v41 = vsub.f32 %v9966_v0, %v2111_v15  ;;  %v9968_v36 = vld [vmem:[#allocation112_spill] sm:$0xff] }
 0x38b   : > { %9962 = vst [vmem:[#allocation103_spill] sm:$0xff] %v7579_v51  ;;  %v7583_v24 = vpop.eup %5592  ;;  %5612 = vpow2.f32 %v1251_v45  ;;  %v1131_v37 = vsub.f32 %v9964_v33, %v1067_v18  ;;  %v1132_v1 = vsub.f32 %v9965_v61, %v1067_v18  ;;  %2383 = vadd.xlane.f32.xlu0 %v2382_v16  ;;  %1339 = vadd.xlane.f32.xlu1 %v1338_v49 }
 0x38c   : > { %9963 = vst [vmem:[#allocation105_spill] sm:$0xff] %v7583_v24  ;;  %v7588_v57 = vpop.eup %5594  ;;  %5614 = vpow2.f32 %v1253_v46  ;;  %v2177_v60 = vsub.f32 %v9968_v36, %v2111_v15  ;;  %v1341_v34 = vadd.f32 %v7579_v51, %v7577_v23  ;;  %v2298_v33 = vmul.f32 1.442695, %v2176_v41  ;;  %v9969_v15 = vld [vmem:[#allocation111_spill] sm:$0xff]  ;;  %v9970_v36 = vld [vmem:[#allocation113_spill] sm:$0xff] }
 0x38d   : > { %9967 = vst [vmem:[#allocation106_spill] sm:$0xff] %v7588_v57  ;;  %v7593_v39 = vpop.eup %5596  ;;  %5616 = vpow2.f32 %v2294_v30  ;;  %v1255_v45 = vmul.f32 1.442695, %v1131_v37  ;;  %v1257_v48 = vmul.f32 1.442695, %v1132_v1  ;;  %v2385_v46 = vadd.f32 %v7588_v57, %v7583_v24  ;;  %v1070_v16 = vpop.xlane.xlu1 %1069  ;;  %v9971_v30 = vld [vmem:[#allocation114_spill] sm:$0xff] }
 0x38e   : > { %v7595_v32 = vpop.eup %5598  ;;  %5618 = vpow2.f32 %v2296_v56  ;;  %v2300_v18 = vmul.f32 1.442695, %v2177_v60  ;;  %v2114_v49 = vpop.xlane.xlu0 %2113  ;;  %v1133_v0 = vsub.f32 %v9969_v15, %v1070_v16  ;;  %v1134_v23 = vsub.f32 %v9970_v36, %v1070_v16  ;;  %v9972_v56 = vld [vmem:[#allocation115_spill] sm:$0xff] }
 0x38f   : > { %v7599_v61 = vpop.eup %5600  ;;  %5620 = vpow2.f32 %v1255_v45  ;;  %v2178_v37 = vsub.f32 %v9971_v30, %v2114_v49  ;;  %1342 = vadd.xlane.f32.xlu0 %v1341_v34  ;;  %2386 = vadd.xlane.f32.xlu1 %v2385_v46  ;;  %v2179_v41 = vsub.f32 %v9972_v56, %v2114_v49  ;;  %v1344_v60 = vadd.f32 %v7595_v32, %v7593_v39 }
 0x390   : > { %v7604_v1 = vpop.eup %5602  ;;  %5622 = vpow2.f32 %v1257_v48  ;;  %v1259_v45 = vmul.f32 1.442695, %v1133_v0  ;;  %v1261_v57 = vmul.f32 1.442695, %v1134_v23 }
 0x391   : > { %v7609_v24 = vpop.eup %5604  ;;  %5624 = vpow2.f32 %v2298_v33  ;;  %v2302_v15 = vmul.f32 1.442695, %v2178_v37  ;;  %v2304_v16 = vmul.f32 1.442695, %v2179_v41  ;;  %v2388_v48 = vadd.f32 %v7604_v1, %v7599_v61  ;;  %v2117_v34 = vpop.xlane.xlu1 %2116 }
 0x392   : > { %v7611_v51 = vpop.eup %5606  ;;  %5626 = vpow2.f32 %v2300_v18  ;;  %v2180_v49 = vsub.f32 %v7149_v35, %v2117_v34  ;;  %v2181_v36 = vsub.f32 %v7151_v11, %v2117_v34 }
 0x393   : > { %v7615_v46 = vpop.eup %5608  ;;  %5628 = vpow2.f32 %v1259_v45  ;;  %2389 = vadd.xlane.f32.xlu0 %v2388_v48  ;;  %1345 = vadd.xlane.f32.xlu1 %v1344_v60  ;;  %v1347_v23 = vadd.f32 %v7611_v51, %v7609_v24 }
 0x394   : > { %v7619_v30 = vpop.eup %5610  ;;  %5630 = vpow2.f32 %v1261_v57  ;;  %v2306_v18 = vmul.f32 1.442695, %v2180_v49  ;;  %v2308_v0 = vmul.f32 1.442695, %v2181_v36 }
 0x395   : > { %v7623_v33 = vpop.eup %5612  ;;  %5632 = vpow2.f32 %v2302_v15  ;;  %v2391_v37 = vadd.f32 %v7619_v30, %v7615_v46 }
 0x396   : > { %v7627_v56 = vpop.eup %5614  ;;  %5634 = vpow2.f32 %v2304_v16 }
 0x397   : > { %v7629_v35 = vpop.eup %5616  ;;  %5636 = vpow2.f32 %v2306_v18  ;;  %1348 = vadd.xlane.f32.xlu0 %v1347_v23  ;;  %2392 = vadd.xlane.f32.xlu1 %v2391_v37  ;;  %v1350_v57 = vadd.f32 %v7627_v56, %v7623_v33 }
 0x398   : > { %v7631_v11 = vpop.eup %5618  ;;  %5638 = vpow2.f32 %v2308_v0 }
 0x399   : > { %v7635_v41 = vpop.eup %5620  ;;  %v2394_v60 = vadd.f32 %v7631_v11, %v7629_v35 }
 0x39a   : > { %v7639_v45 = vpop.eup %5622 }
 0x39b   : > { %v7641_v15 = vpop.eup %5624  ;;  %2395 = vadd.xlane.f32.xlu0 %v2394_v60  ;;  %1351 = vadd.xlane.f32.xlu1 %v1350_v57  ;;  %v1353_v48 = vadd.f32 %v7639_v45, %v7635_v41 }
 0x39c   : > { %9973 = vst [vmem:[#allocation108_spill] sm:$0xff] %v7641_v15  ;;  %v7643_v16 = vpop.eup %5626 }
 0x39d   : > { %9974 = vst [vmem:[#allocation107_spill] sm:$0xff] %v7643_v16  ;;  %v7647_v34 = vpop.eup %5628  ;;  %v2397_v49 = vadd.f32 %v7643_v16, %v7641_v15 }
 0x39e   : > { %9975 = vst [vmem:[#allocation109_spill] sm:$0xff] %v7647_v34  ;;  %v7651_v36 = vpop.eup %5630 }
 0x39f   : > { %9976 = vst [vmem:[#allocation110_spill] sm:$0xff] %v7651_v36  ;;  %v7653_v23 = vpop.eup %5632  ;;  %1354 = vadd.xlane.f32.xlu0 %v1353_v48  ;;  %2398 = vadd.xlane.f32.xlu1 %v2397_v49  ;;  %v1356_v0 = vadd.f32 %v7651_v36, %v7647_v34 }
 0x3a0   : > { %9977 = vst [vmem:[#allocation112_spill] sm:$0xff] %v7653_v23  ;;  %v7655_v18 = vpop.eup %5634 }
 0x3a1   : > { %v7659_v37 = vpop.eup %5636  ;;  %v2400_v57 = vadd.f32 %v7655_v18, %v7653_v23 }
 0x3a2   : > { %9978 = vst [vmem:[#allocation111_spill] sm:$0xff] %v7659_v37  ;;  %v7663_v60 = vpop.eup %5638 }
 0x3a3   : > { %2401 = vadd.xlane.f32.xlu0 %v2400_v57  ;;  %1357 = vadd.xlane.f32.xlu1 %v1356_v0  ;;  %v2403_v15 = vadd.f32 %v7663_v60, %v7659_v37 }
 0x3a7   : > { %2404 = vadd.xlane.f32.xlu1 %v2403_v15 }
 0x3ad   : > { %v1265_v16 = vpop.xlane.xlu0 %1264 }
 0x3ae   : > { %5640 = vrcp.f32 %v1265_v16 }
 0x3b1   : > { %v1268_v48 = vpop.xlane.xlu1 %1267 }
 0x3b2   : > { %5642 = vrcp.f32 %v1268_v48 }
 0x3b6   : > { %v2312_v49 = vpop.xlane.xlu0 %2311 }
 0x3b7   : > { %5644 = vrcp.f32 %v2312_v49 }
 0x3b8   : > { %v5641_v34 = vpop.eup %5640 }
 0x3b9   : > { %v2315_v36 = vpop.xlane.xlu1 %2314  ;;  %v1392_v23 = vmul.f32 %v5641_v34, %v7167_v10  ;;  %v1391_v0 = vmul.f32 %v5641_v34, %v7165_v8 }
 0x3ba   : > { %5646 = vrcp.f32 %v2315_v36  ;;  %v1271_v57 = vpop.xlane.xlu0 %1270 }
 0x3bb   : > { %1456 = vst [vmem:[%s7673_s27 + $0x8] sm:$0xff] %v1392_v23  ;;  %1455 = vst [vmem:[%s7673_s27] sm:$0xff] %v1391_v0  ;;  %5648 = vrcp.f32 %v1271_v57 }
 0x3bc   : > { %v5643_v15 = vpop.eup %5642 }
 0x3bd   : > { %v1274_v16 = vpop.xlane.xlu1 %1273  ;;  %v1394_v48 = vmul.f32 %v5643_v15, %v7177_v12  ;;  %v1393_v49 = vmul.f32 %v5643_v15, %v7175_v3 }
 0x3be   : > { %5650 = vrcp.f32 %v1274_v16 }
 0x3bf   : > { %v2318_v10 = vpop.xlane.xlu0 %2317  ;;  %1458 = vst [vmem:[%s7673_s27 + $0x18] sm:$0xff] %v1394_v48  ;;  %v1522_v8 = vpack.c.bf16 %v1394_v48, %v1392_v23  ;;  %1457 = vst [vmem:[%s7673_s27 + $0x10] sm:$0xff] %v1393_v49  ;;  %v1521_v34 = vpack.c.bf16 %v1393_v49, %v1391_v0 }
 0x3c0   : > { %5652 = vrcp.f32 %v2318_v10 }
 0x3c1   : > { %1553 = vmatprep.subr.bf16.mxu1 %v1522_v8  ;;  %v5645_v36 = vpop.eup %5644 }
 0x3c2   : > { %1554 = vmatpush1.bf16.xpose.msra.mxu1 %v1521_v34  ;;  %v2439_v12 = vmul.f32 %v5645_v36, %v7192_v54  ;;  %v2438_v3 = vmul.f32 %v5645_v36, %v7187_v2 }
 0x3c3   : > { %v1277_v37 = vpop.xlane.xlu0 %1276 }
 0x3c4   : > { %v2321_v57 = vpop.xlane.xlu1 %2320  ;;  %v5647_v15 = vpop.eup %5646  ;;  %5654 = vrcp.f32 %v1277_v37  ;;  %4988 = vst [vmem:[%s7673_s27 + $0x208] sm:$0xff] %v2439_v12  ;;  %4987 = vst [vmem:[%s7673_s27 + $0x200] sm:$0xff] %v2438_v3 }
 0x3c5   : > { %5656 = vrcp.f32 %v2321_v57  ;;  %v2441_v23 = vmul.f32 %v5647_v15, %v7197_v63  ;;  %v2440_v0 = vmul.f32 %v5647_v15, %v7195_v26  ;;  %v5649_v16 = vpop.eup %5648  ;;  %v9979_v15 = vld [vmem:[#allocation11_spill] sm:$0xff] }
 0x3c6   : > { %v1396_v2 = vmul.f32 %v5649_v16, %v7201_v55  ;;  %v1395_v37 = vmul.f32 %v5649_v16, %v7185_v21 }
 0x3c7   : > { %4990 = vst [vmem:[%s7673_s27 + $0x218] sm:$0xff] %v2441_v23  ;;  %v2570_v10 = vpack.c.bf16 %v2441_v23, %v2439_v12  ;;  %4989 = vst [vmem:[%s7673_s27 + $0x210] sm:$0xff] %v2440_v0  ;;  %v2569_v54 = vpack.c.bf16 %v2440_v0, %v2438_v3 }
 0x3c8   : > { %v2324_v48 = vpop.xlane.xlu0 %2323  ;;  %v1280_v49 = vpop.xlane.xlu1 %1279  ;;  %1460 = vst [vmem:[%s7673_s27 + $0x28] sm:$0xff] %v1396_v2  ;;  %1459 = vst [vmem:[%s7673_s27 + $0x20] sm:$0xff] %v1395_v37 }
 0x3c9   : > { %v5651_v63 = vpop.eup %5650  ;;  %5658 = vrcp.f32 %v2324_v48  ;;  %2601 = vmatprep.subr.bf16.mxu0 %v2570_v10 }
 0x3ca   : > { %5660 = vrcp.f32 %v1280_v49  ;;  %v1398_v26 = vmul.f32 %v5651_v63, %v7211_v6  ;;  %v1397_v8 = vmul.f32 %v5651_v63, %v7209_v50  ;;  %v5653_v34 = vpop.eup %5652  ;;  %2602 = vmatpush1.bf16.xpose.msra.mxu0 %v2569_v54  ;;  %v2650_v63 = vld [vmem:[#allocation2 + $0x40] sm:$0xff] }
 0x3cb   : > { %v2443_v12 = vmul.f32 %v5653_v34, %v7220_v25  ;;  %v2442_v3 = vmul.f32 %v5653_v34, %v7215_v62 }
 0x3cc   : > { %v1283_v36 = vpop.xlane.xlu0 %1282  ;;  %v2327_v57 = vpop.xlane.xlu1 %2326  ;;  %1462 = vst [vmem:[%s7673_s27 + $0x38] sm:$0xff] %v1398_v26  ;;  %v1524_v55 = vpack.c.bf16 %v1398_v26, %v1396_v2  ;;  %1461 = vst [vmem:[%s7673_s27 + $0x30] sm:$0xff] %v1397_v8  ;;  %v1523_v21 = vpack.c.bf16 %v1397_v8, %v1395_v37  ;;  %v9980_v37 = vld [vmem:[#allocation13_spill] sm:$0xff] }
 0x3cd   : > { %5662 = vrcp.f32 %v1283_v36  ;;  %4992 = vst [vmem:[%s7673_s27 + $0x228] sm:$0xff] %v2443_v12  ;;  %4991 = vst [vmem:[%s7673_s27 + $0x220] sm:$0xff] %v2442_v3 }
 0x3ce   : > { %5664 = vrcp.f32 %v2327_v57  ;;  %1555 = vmatprep.subr.bf16.mxu1 %v1524_v55  ;;  %v5655_v50 = vpop.eup %5654 }
 0x3cf   : > { %1556 = vmatpush1.bf16.xpose.msra.mxu1 %v1523_v21  ;;  %v5657_v6 = vpop.eup %5656  ;;  %v1400_v25 = vmul.f32 %v5655_v50, %v7227_v22  ;;  %v1399_v62 = vmul.f32 %v5655_v50, %v7225_v27  ;;  %v2652_v21 = vld [vmem:[#allocation2 + $0x50] sm:$0xff]  ;;  %v9981_v50 = vld [vmem:[#allocation15_spill] sm:$0xff] }
 0x3d0   : > { %2654 = vxpose.xlu0.b32.start [1/4] (short) %v9979_v15, 128  ;;  %v2330_v23 = vpop.xlane.xlu0 %2329  ;;  %v1286_v0 = vpop.xlane.xlu1 %1285  ;;  %v2445_v16 = vmul.f32 %v5657_v6, %v7236_v31  ;;  %v2444_v48 = vmul.f32 %v5657_v6, %v7231_v59 }
 0x3d1   : > { %5666 = vrcp.f32 %v2330_v23  ;;  %1464 = vst [vmem:[%s7673_s27 + $0x48] sm:$0xff] %v1400_v25  ;;  %1463 = vst [vmem:[%s7673_s27 + $0x40] sm:$0xff] %v1399_v62 }
 0x3d2   : > { %5668 = vrcp.f32 %v1286_v0  ;;  %4994 = vst [vmem:[%s7673_s27 + $0x238] sm:$0xff] %v2445_v16  ;;  %v2572_v10 = vpack.c.bf16 %v2445_v16, %v2443_v12  ;;  %4993 = vst [vmem:[%s7673_s27 + $0x230] sm:$0xff] %v2444_v48  ;;  %v2571_v54 = vpack.c.bf16 %v2444_v48, %v2442_v3  ;;  %v9982_v48 = vld [vmem:[#allocation17_spill] sm:$0xff] }
 0x3d3   : > { %v5659_v49 = vpop.eup %5658 }
 0x3d4   : > { %v5661_v2 = vpop.eup %5660  ;;  %2655 = vxpose.xlu0.b32.cont [2/4] (short) %v9980_v37, 128  ;;  %v1289_v27 = vpop.xlane.xlu0 %1288  ;;  %v2447_v31 = vmul.f32 %v5659_v49, %v7252_v47  ;;  %v2446_v59 = vmul.f32 %v5659_v49, %v7247_v28  ;;  %2603 = vmatprep.subr.bf16.mxu0 %v2572_v10 }
 0x3d5   : > { %v2333_v22 = vpop.xlane.xlu1 %2332  ;;  %5670 = vrcp.f32 %v1289_v27  ;;  %v1402_v26 = vmul.f32 %v5661_v2, %v7243_v42  ;;  %v1401_v8 = vmul.f32 %v5661_v2, %v7241_v52  ;;  %2604 = vmatpush1.bf16.xpose.msra.mxu0 %v2571_v54 }
 0x3d6   : > { %5672 = vrcp.f32 %v2333_v22  ;;  %4996 = vst [vmem:[%s7673_s27 + $0x248] sm:$0xff] %v2447_v31  ;;  %4995 = vst [vmem:[%s7673_s27 + $0x240] sm:$0xff] %v2446_v59 }
 0x3d7   : > { %v5663_v34 = vpop.eup %5662  ;;  %1466 = vst [vmem:[%s7673_s27 + $0x58] sm:$0xff] %v1402_v26  ;;  %v1526_v36 = vpack.c.bf16 %v1402_v26, %v1400_v25  ;;  %1465 = vst [vmem:[%s7673_s27 + $0x50] sm:$0xff] %v1401_v8  ;;  %v1525_v57 = vpack.c.bf16 %v1401_v8, %v1399_v62  ;;  %v3701_v26 = vld [vmem:[#allocation2 + $0x70] sm:$0xff] }
 0x3d8   : > { %v5665_v47 = vpop.eup %5664  ;;  %2656 = vxpose.xlu0.b32.cont [3/4] (short) %v2650_v63, 128  ;;  %v2336_v28 = vpop.xlane.xlu0 %2335  ;;  %v1404_v42 = vmul.f32 %v5663_v34, %v7259_v17  ;;  %v1403_v52 = vmul.f32 %v5663_v34, %v7257_v29 }
 0x3d9   : > { %v1292_v55 = vpop.xlane.xlu1 %1291  ;;  %5674 = vrcp.f32 %v2336_v28  ;;  %1557 = vmatprep.subr.bf16.mxu1 %v1526_v36  ;;  %v2449_v12 = vmul.f32 %v5665_v47, %v7268_v13  ;;  %v2448_v3 = vmul.f32 %v5665_v47, %v7263_v5 }
 0x3da   : > { %5676 = vrcp.f32 %v1292_v55  ;;  %1558 = vmatpush1.bf16.xpose.msra.mxu1 %v1525_v57  ;;  %3703 = vxpose.xlu1.b32.start [1/4] (short) %v9981_v50, 128  ;;  %1468 = vst [vmem:[%s7673_s27 + $0x68] sm:$0xff] %v1404_v42  ;;  %1467 = vst [vmem:[%s7673_s27 + $0x60] sm:$0xff] %v1403_v52 }
 0x3db   : > { %v5667_v6 = vpop.eup %5666  ;;  %4998 = vst [vmem:[%s7673_s27 + $0x258] sm:$0xff] %v2449_v12  ;;  %v2574_v23 = vpack.c.bf16 %v2449_v12, %v2447_v31  ;;  %4997 = vst [vmem:[%s7673_s27 + $0x250] sm:$0xff] %v2448_v3  ;;  %v2573_v29 = vpack.c.bf16 %v2448_v3, %v2446_v59  ;;  %v9985_v12 = vld [vmem:[#allocation42_spill] sm:$0xff] }
 0x3dc   : > { %v5669_v17 = vpop.eup %5668  ;;  %2657 = vxpose.xlu0.b32.end [4/4] (short) %v2652_v21, 128  ;;  %v1295_v0 = vpop.xlane.xlu0 %1294  ;;  %v2451_v5 = vmul.f32 %v5667_v6, %v7284_v14  ;;  %v2450_v25 = vmul.f32 %v5667_v6, %v7279_v43  ;;  %v3699_v43 = vld [vmem:[#allocation2 + $0x60] sm:$0xff]  ;;  %v9986_v6 = vld [vmem:[#allocation41_spill] sm:$0xff] }
 0x3dd   : > { %v2339_v13 = vpop.xlane.xlu1 %2338  ;;  %5678 = vrcp.f32 %v1295_v0  ;;  %2605 = vmatprep.subr.bf16.mxu0 %v2574_v23  ;;  %v1406_v62 = vmul.f32 %v5669_v17, %v7275_v20  ;;  %v1405_v16 = vmul.f32 %v5669_v17, %v7273_v44 }
 0x3de   : > { %5680 = vrcp.f32 %v2339_v13  ;;  %2606 = vmatpush1.bf16.xpose.msra.mxu0 %v2573_v29  ;;  %3704 = vxpose.xlu1.b32.cont [2/4] (short) %v9982_v48, 128  ;;  %5000 = vst [vmem:[%s7673_s27 + $0x268] sm:$0xff] %v2451_v5  ;;  %4999 = vst [vmem:[%s7673_s27 + $0x260] sm:$0xff] %v2450_v25 }
 0x3df   : > { %v5671_v49 = vpop.eup %5670  ;;  %1470 = vst [vmem:[%s7673_s27 + $0x78] sm:$0xff] %v1406_v62  ;;  %v1528_v10 = vpack.c.bf16 %v1406_v62, %v1404_v42  ;;  %1469 = vst [vmem:[%s7673_s27 + $0x70] sm:$0xff] %v1405_v16  ;;  %v1527_v14 = vpack.c.bf16 %v1405_v16, %v1403_v52  ;;  %v9987_v62 = vld [vmem:[#allocation46_spill] sm:$0xff] }
 0x3e0   : > { %v5673_v54 = vpop.eup %5672  ;;  %v2342_v2 = vpop.xlane.xlu0 %2341  ;;  %v1408_v44 = vmul.f32 %v5671_v49, %v7291_v7  ;;  %v1407_v27 = vmul.f32 %v5671_v49, %v7289_v38  ;;  %v9988_v49 = vld [vmem:[#allocation45_spill] sm:$0xff] }
 0x3e1   : > { %v1298_v20 = vpop.xlane.xlu1 %1297  ;;  %5682 = vrcp.f32 %v2342_v2  ;;  %1559 = vmatprep.subr.bf16.mxu1 %v1528_v10  ;;  %v2453_v22 = vmul.f32 %v5673_v54, %v7300_v40  ;;  %v2452_v31 = vmul.f32 %v5673_v54, %v7295_v9  ;;  %v9990_v54 = vld [vmem:[#allocation44_spill] sm:$0xff] }
 0x3e2   : > { %5684 = vrcp.f32 %v1298_v20  ;;  %1560 = vmatpush1.bf16.xpose.msra.mxu1 %v1527_v14  ;;  %3705 = vxpose.xlu1.b32.cont [3/4] (short) %v3699_v43, 128  ;;  %1472 = vst [vmem:[%s7673_s27 + $0x88] sm:$0xff] %v1408_v44  ;;  %1471 = vst [vmem:[%s7673_s27 + $0x80] sm:$0xff] %v1407_v27  ;;  %v9989_v14 = vld [vmem:[#allocation43_spill] sm:$0xff] }
 0x3e3   : > { %v5675_v59 = vpop.eup %5674  ;;  %5002 = vst [vmem:[%s7673_s27 + $0x278] sm:$0xff] %v2453_v22  ;;  %v2576_v63 = vpack.c.bf16 %v2453_v22, %v2451_v5  ;;  %5001 = vst [vmem:[%s7673_s27 + $0x270] sm:$0xff] %v2452_v31  ;;  %v2575_v7 = vpack.c.bf16 %v2452_v31, %v2450_v25 }
 0x3e4   : > { %v5677_v38 = vpop.eup %5676  ;;  %v1301_v8 = vpop.xlane.xlu0 %1300  ;;  %v2455_v9 = vmul.f32 %v5675_v59, %v7316_v4  ;;  %v2454_v34 = vmul.f32 %v5675_v59, %v7311_v53 }
 0x3e5   : > { %v2345_v40 = vpop.xlane.xlu1 %2344  ;;  %5686 = vrcp.f32 %v1301_v8  ;;  %2607 = vmatprep.subr.bf16.mxu0 %v2576_v63  ;;  %v1410_v36 = vmul.f32 %v5677_v38, %v7307_v58  ;;  %v1409_v57 = vmul.f32 %v5677_v38, %v7305_v19  ;;  %v9983_v58 = vld [vmem:[#allocation39_spill] sm:$0xff]  ;;  %v9984_v19 = vld [vmem:[#allocation40_spill] sm:$0xff]  ;;  %v9993_v8 = vld [vmem:[#allocation50_spill] sm:$0xff] }
 0x3e6   : > { %5688 = vrcp.f32 %v2345_v40  ;;  %2608 = vmatpush1.bf16.xpose.msra.mxu0 %v2575_v7  ;;  %3706 = vxpose.xlu1.b32.end [4/4] (short) %v3701_v26, 128  ;;  %5004 = vst [vmem:[%s7673_s27 + $0x288] sm:$0xff] %v2455_v9  ;;  %5003 = vst [vmem:[%s7673_s27 + $0x280] sm:$0xff] %v2454_v34  ;;  %v9991_v63 = vld [vmem:[#allocation47_spill] sm:$0xff]  ;;  %v9992_v26 = vld [vmem:[#allocation48_spill] sm:$0xff] }
 0x3e7   : > { %v5679_v47 = vpop.eup %5678  ;;  %1474 = vst [vmem:[%s7673_s27 + $0x98] sm:$0xff] %v1410_v36  ;;  %v1530_v28 = vpack.c.bf16 %v1410_v36, %v1408_v44  ;;  %1473 = vst [vmem:[%s7673_s27 + $0x90] sm:$0xff] %v1409_v57  ;;  %v1529_v4 = vpack.c.bf16 %v1409_v57, %v1407_v27 }
 0x3e8   : > { %v5681_v53 = vpop.eup %5680  ;;  %v2348_v55 = vpop.xlane.xlu0 %2347  ;;  %v1412_v52 = vmul.f32 %v5679_v47, %v9983_v58  ;;  %v1411_v21 = vmul.f32 %v5679_v47, %v9984_v19  ;;  %v9996_v58 = vld [vmem:[#allocation53_spill] sm:$0xff]  ;;  %v9997_v19 = vld [vmem:[#allocation51_spill] sm:$0xff] }
 0x3e9   : > { %v1304_v42 = vpop.xlane.xlu1 %1303  ;;  %5690 = vrcp.f32 %v2348_v55  ;;  %1561 = vmatprep.subr.bf16.mxu1 %v1530_v28  ;;  %v2457_v3 = vmul.f32 %v5681_v53, %v9985_v12  ;;  %v2456_v23 = vmul.f32 %v5681_v53, %v9986_v6  ;;  %v9995_v55 = vld [vmem:[#allocation54_spill] sm:$0xff]  ;;  %v9998_v12 = vld [vmem:[#allocation52_spill] sm:$0xff] }
 0x3ea   : > { %5692 = vrcp.f32 %v1304_v42  ;;  %1562 = vmatpush1.bf16.xpose.msra.mxu1 %v1529_v4  ;;  %1476 = vst [vmem:[%s7673_s27 + $0xa8] sm:$0xff] %v1412_v52  ;;  %1475 = vst [vmem:[%s7673_s27 + $0xa0] sm:$0xff] %v1411_v21 }
 0x3eb   : > { %v5683_v29 = vpop.eup %5682  ;;  %5006 = vst [vmem:[%s7673_s27 + $0x298] sm:$0xff] %v2457_v3  ;;  %v2578_v17 = vpack.c.bf16 %v2457_v3, %v2455_v9  ;;  %5005 = vst [vmem:[%s7673_s27 + $0x290] sm:$0xff] %v2456_v23  ;;  %v2577_v0 = vpack.c.bf16 %v2456_v23, %v2454_v34  ;;  %v9994_v9 = vld [vmem:[#allocation49_spill] sm:$0xff] }
 0x3ec   : > { %v5685_v13 = vpop.eup %5684  ;;  %v1307_v5 = vpop.xlane.xlu0 %1306  ;;  %v2459_v16 = vmul.f32 %v5683_v29, %v9987_v62  ;;  %v2458_v10 = vmul.f32 %v5683_v29, %v9988_v49  ;;  %v10000_v62 = vld [vmem:[#allocation56_spill] sm:$0xff]  ;;  %v10001_v49 = vld [vmem:[#allocation58_spill] sm:$0xff] }
 0x3ed   : > { %v2351_v25 = vpop.xlane.xlu1 %2350  ;;  %5694 = vrcp.f32 %v1307_v5  ;;  %2609 = vmatprep.subr.bf16.mxu0 %v2578_v17  ;;  %v1414_v43 = vmul.f32 %v5685_v13, %v9989_v14  ;;  %v1413_v2 = vmul.f32 %v5685_v13, %v9990_v54  ;;  %v9999_v5 = vld [vmem:[#allocation55_spill] sm:$0xff]  ;;  %v10002_v14 = vld [vmem:[#allocation57_spill] sm:$0xff] }
 0x3ee   : > { %5696 = vrcp.f32 %v2351_v25  ;;  %2610 = vmatpush1.bf16.xpose.msra.mxu0 %v2577_v0  ;;  %5008 = vst [vmem:[%s7673_s27 + $0x2a8] sm:$0xff] %v2459_v16  ;;  %5007 = vst [vmem:[%s7673_s27 + $0x2a0] sm:$0xff] %v2458_v10 }
 0x3ef   : > { %v5687_v20 = vpop.eup %5686  ;;  %1478 = vst [vmem:[%s7673_s27 + $0xb8] sm:$0xff] %v1414_v43  ;;  %v1532_v44 = vpack.c.bf16 %v1414_v43, %v1412_v52  ;;  %1477 = vst [vmem:[%s7673_s27 + $0xb0] sm:$0xff] %v1413_v2  ;;  %v1531_v27 = vpack.c.bf16 %v1413_v2, %v1411_v21 }
 0x3f0   : > { %v5689_v22 = vpop.eup %5688  ;;  %v2354_v31 = vpop.xlane.xlu0 %2353  ;;  %v1416_v7 = vmul.f32 %v5687_v20, %v9991_v63  ;;  %v1415_v38 = vmul.f32 %v5687_v20, %v9992_v26  ;;  %v10004_v63 = vld [vmem:[#allocation61_spill] sm:$0xff]  ;;  %v10005_v26 = vld [vmem:[#allocation59_spill] sm:$0xff] }
 0x3f1   : > { %v1310_v59 = vpop.xlane.xlu1 %1309  ;;  %5698 = vrcp.f32 %v2354_v31  ;;  %1563 = vmatprep.subr.bf16.mxu1 %v1532_v44  ;;  %v2461_v40 = vmul.f32 %v5689_v22, %v9993_v8  ;;  %v2460_v34 = vmul.f32 %v5689_v22, %v9994_v9  ;;  %v10003_v31 = vld [vmem:[#allocation62_spill] sm:$0xff]  ;;  %v10006_v8 = vld [vmem:[#allocation60_spill] sm:$0xff] }
 0x3f2   : > { %5700 = vrcp.f32 %v1310_v59  ;;  %1564 = vmatpush1.bf16.xpose.msra.mxu1 %v1531_v27  ;;  %1480 = vst [vmem:[%s7673_s27 + $0xc8] sm:$0xff] %v1416_v7  ;;  %1479 = vst [vmem:[%s7673_s27 + $0xc0] sm:$0xff] %v1415_v38 }
 0x3f3   : > { %v5691_v36 = vpop.eup %5690  ;;  %5010 = vst [vmem:[%s7673_s27 + $0x2b8] sm:$0xff] %v2461_v40  ;;  %v2580_v57 = vpack.c.bf16 %v2461_v40, %v2459_v16  ;;  %5009 = vst [vmem:[%s7673_s27 + $0x2b0] sm:$0xff] %v2460_v34  ;;  %v2579_v47 = vpack.c.bf16 %v2460_v34, %v2458_v10 }
 0x3f4   : > { %v5693_v28 = vpop.eup %5692  ;;  %v1313_v4 = vpop.xlane.xlu0 %1312  ;;  %v2463_v42 = vmul.f32 %v5691_v36, %v9995_v55  ;;  %v2462_v52 = vmul.f32 %v5691_v36, %v9996_v58  ;;  %v10008_v55 = vld [vmem:[#allocation64_spill] sm:$0xff]  ;;  %v10009_v58 = vld [vmem:[#allocation66_spill] sm:$0xff] }
 0x3f5   : > { %v2357_v53 = vpop.xlane.xlu1 %2356  ;;  %5702 = vrcp.f32 %v1313_v4  ;;  %2611 = vmatprep.subr.bf16.mxu0 %v2580_v57  ;;  %v1418_v21 = vmul.f32 %v5693_v28, %v9997_v19  ;;  %v1417_v3 = vmul.f32 %v5693_v28, %v9998_v12  ;;  %v10007_v4 = vld [vmem:[#allocation63_spill] sm:$0xff]  ;;  %v10010_v19 = vld [vmem:[#allocation65_spill] sm:$0xff] }
 0x3f6   : > { %5704 = vrcp.f32 %v2357_v53  ;;  %2612 = vmatpush1.bf16.xpose.msra.mxu0 %v2579_v47  ;;  %5012 = vst [vmem:[%s7673_s27 + $0x2c8] sm:$0xff] %v2463_v42  ;;  %5011 = vst [vmem:[%s7673_s27 + $0x2c0] sm:$0xff] %v2462_v52 }
 0x3f7   : > { %v5695_v6 = vpop.eup %5694  ;;  %1482 = vst [vmem:[%s7673_s27 + $0xd8] sm:$0xff] %v1418_v21  ;;  %v1534_v23 = vpack.c.bf16 %v1418_v21, %v1416_v7  ;;  %1481 = vst [vmem:[%s7673_s27 + $0xd0] sm:$0xff] %v1417_v3  ;;  %v1533_v29 = vpack.c.bf16 %v1417_v3, %v1415_v38 }
 0x3f8   : > { %v5697_v17 = vpop.eup %5696  ;;  %v2360_v0 = vpop.xlane.xlu0 %2359  ;;  %v1420_v25 = vmul.f32 %v5695_v6, %v9999_v5  ;;  %v1419_v16 = vmul.f32 %v5695_v6, %v10000_v62  ;;  %v10012_v5 = vld [vmem:[#allocation69_spill] sm:$0xff]  ;;  %v10013_v62 = vld [vmem:[#allocation67_spill] sm:$0xff] }
 0x3f9   : > { %v1316_v13 = vpop.xlane.xlu1 %1315  ;;  %5706 = vrcp.f32 %v2360_v0  ;;  %1565 = vmatprep.subr.bf16.mxu1 %v1534_v23  ;;  %v2465_v10 = vmul.f32 %v5697_v17, %v10001_v49  ;;  %v2464_v43 = vmul.f32 %v5697_v17, %v10002_v14  ;;  %v10011_v0 = vld [vmem:[#allocation70_spill] sm:$0xff]  ;;  %v10014_v49 = vld [vmem:[#allocation68_spill] sm:$0xff] }
 0x3fa   : > { %5708 = vrcp.f32 %v1316_v13  ;;  %1566 = vmatpush1.bf16.xpose.msra.mxu1 %v1533_v29  ;;  %1484 = vst [vmem:[%s7673_s27 + $0xe8] sm:$0xff] %v1420_v25  ;;  %1483 = vst [vmem:[%s7673_s27 + $0xe0] sm:$0xff] %v1419_v16 }
 0x3fb   : > { %v5699_v54 = vpop.eup %5698  ;;  %5014 = vst [vmem:[%s7673_s27 + $0x2d8] sm:$0xff] %v2465_v10  ;;  %v2582_v2 = vpack.c.bf16 %v2465_v10, %v2463_v42  ;;  %5013 = vst [vmem:[%s7673_s27 + $0x2d0] sm:$0xff] %v2464_v43  ;;  %v2581_v20 = vpack.c.bf16 %v2464_v43, %v2462_v52 }
 0x3fc   : > { %v5701_v44 = vpop.eup %5700  ;;  %v1319_v27 = vpop.xlane.xlu0 %1318  ;;  %v2467_v59 = vmul.f32 %v5699_v54, %v10003_v31  ;;  %v2466_v7 = vmul.f32 %v5699_v54, %v10004_v63  ;;  %v10016_v31 = vld [vmem:[#allocation72_spill] sm:$0xff]  ;;  %v10017_v63 = vld [vmem:[#allocation74_spill] sm:$0xff] }
 0x3fd   : > { %v2363_v22 = vpop.xlane.xlu1 %2362  ;;  %5710 = vrcp.f32 %v1319_v27  ;;  %2613 = vmatprep.subr.bf16.mxu0 %v2582_v2  ;;  %v1422_v38 = vmul.f32 %v5701_v44, %v10005_v26  ;;  %v1421_v40 = vmul.f32 %v5701_v44, %v10006_v8  ;;  %v10015_v27 = vld [vmem:[#allocation71_spill] sm:$0xff]  ;;  %v10018_v26 = vld [vmem:[#allocation73_spill] sm:$0xff] }
 0x3fe   : > { %5712 = vrcp.f32 %v2363_v22  ;;  %2614 = vmatpush1.bf16.xpose.msra.mxu0 %v2581_v20  ;;  %5016 = vst [vmem:[%s7673_s27 + $0x2e8] sm:$0xff] %v2467_v59  ;;  %5015 = vst [vmem:[%s7673_s27 + $0x2e0] sm:$0xff] %v2466_v7 }
 0x3ff   : > { %v5703_v9 = vpop.eup %5702  ;;  %1486 = vst [vmem:[%s7673_s27 + $0xf8] sm:$0xff] %v1422_v38  ;;  %v1536_v34 = vpack.c.bf16 %v1422_v38, %v1420_v25  ;;  %1485 = vst [vmem:[%s7673_s27 + $0xf0] sm:$0xff] %v1421_v40  ;;  %v1535_v36 = vpack.c.bf16 %v1421_v40, %v1419_v16 }
 0x400   : > { %v5705_v57 = vpop.eup %5704  ;;  %v2366_v47 = vpop.xlane.xlu0 %2365  ;;  %v1424_v53 = vmul.f32 %v5703_v9, %v10007_v4  ;;  %v1423_v42 = vmul.f32 %v5703_v9, %v10008_v55  ;;  %v10020_v4 = vld [vmem:[#allocation77_spill] sm:$0xff]  ;;  %v10021_v55 = vld [vmem:[#allocation12_spill] sm:$0xff] }
 0x401   : > { %v1322_v28 = vpop.xlane.xlu1 %1321  ;;  %5714 = vrcp.f32 %v2366_v47  ;;  %1567 = vmatprep.subr.bf16.mxu1 %v1536_v34  ;;  %v2469_v52 = vmul.f32 %v5705_v57, %v10009_v58  ;;  %v2468_v21 = vmul.f32 %v5705_v57, %v10010_v19  ;;  %v10019_v47 = vld [vmem:[#allocation78_spill] sm:$0xff] }
 0x402   : > { %5716 = vrcp.f32 %v1322_v28  ;;  %1568 = vmatpush1.bf16.xpose.msra.mxu1 %v1535_v36  ;;  %1488 = vst [vmem:[%s7673_s27 + $0x108] sm:$0xff] %v1424_v53  ;;  %1487 = vst [vmem:[%s7673_s27 + $0x100] sm:$0xff] %v1423_v42 }
 0x403   : > { %v5707_v12 = vpop.eup %5706  ;;  %5018 = vst [vmem:[%s7673_s27 + $0x2f8] sm:$0xff] %v2469_v52  ;;  %v2584_v3 = vpack.c.bf16 %v2469_v52, %v2467_v59  ;;  %5017 = vst [vmem:[%s7673_s27 + $0x2f0] sm:$0xff] %v2468_v21  ;;  %v2583_v6 = vpack.c.bf16 %v2468_v21, %v2466_v7  ;;  %v10023_v52 = vld [vmem:[#allocation76_spill] sm:$0xff] }
 0x404   : > { %v5709_v23 = vpop.eup %5708  ;;  %v1325_v29 = vpop.xlane.xlu0 %1324  ;;  %v2471_v13 = vmul.f32 %v5707_v12, %v10011_v0  ;;  %v2470_v25 = vmul.f32 %v5707_v12, %v10012_v5 }
 0x405   : > { %v2369_v17 = vpop.xlane.xlu1 %2368  ;;  %5718 = vrcp.f32 %v1325_v29  ;;  %2615 = vmatprep.subr.bf16.mxu0 %v2584_v3  ;;  %v1426_v16 = vmul.f32 %v5709_v23, %v10013_v62  ;;  %v1425_v10 = vmul.f32 %v5709_v23, %v10014_v49  ;;  %v10027_v62 = vld [vmem:[#allocation82_spill] sm:$0xff]  ;;  %v10028_v49 = vld [vmem:[#allocation81_spill] sm:$0xff] }
 0x406   : > { %5720 = vrcp.f32 %v2369_v17  ;;  %2616 = vmatpush1.bf16.xpose.msra.mxu0 %v2583_v6  ;;  %5020 = vst [vmem:[%s7673_s27 + $0x308] sm:$0xff] %v2471_v13  ;;  %5019 = vst [vmem:[%s7673_s27 + $0x300] sm:$0xff] %v2470_v25  ;;  %v10024_v17 = vld [vmem:[#allocation79_spill] sm:$0xff] }
 0x407   : > { %v5711_v14 = vpop.eup %5710  ;;  %1490 = vst [vmem:[%s7673_s27 + $0x118] sm:$0xff] %v1426_v16  ;;  %v1538_v43 = vpack.c.bf16 %v1426_v16, %v1424_v53  ;;  %1489 = vst [vmem:[%s7673_s27 + $0x110] sm:$0xff] %v1425_v10  ;;  %v1537_v54 = vpack.c.bf16 %v1425_v10, %v1423_v42  ;;  %v10022_v42 = vld [vmem:[#allocation75_spill] sm:$0xff] }
 0x408   : > { %v5713_v2 = vpop.eup %5712  ;;  %v2372_v20 = vpop.xlane.xlu0 %2371  ;;  %v1428_v22 = vmul.f32 %v5711_v14, %v10015_v27  ;;  %v1427_v59 = vmul.f32 %v5711_v14, %v10016_v31  ;;  %v2651_v14 = vld [vmem:[#allocation2 + $0x48] sm:$0xff] }
 0x409   : > { %v1328_v44 = vpop.xlane.xlu1 %1327  ;;  %5722 = vrcp.f32 %v2372_v20  ;;  %1569 = vmatprep.subr.bf16.mxu1 %v1538_v43  ;;  %v2473_v7 = vmul.f32 %v5713_v2, %v10017_v63  ;;  %v2472_v38 = vmul.f32 %v5713_v2, %v10018_v26 }
 0x40a   : > { %5724 = vrcp.f32 %v1328_v44  ;;  %1570 = vmatpush1.bf16.xpose.msra.mxu1 %v1537_v54  ;;  %1492 = vst [vmem:[%s7673_s27 + $0x128] sm:$0xff] %v1428_v22  ;;  %1491 = vst [vmem:[%s7673_s27 + $0x120] sm:$0xff] %v1427_v59 }
 0x40b   : > { %v5715_v8 = vpop.eup %5714  ;;  %5022 = vst [vmem:[%s7673_s27 + $0x318] sm:$0xff] %v2473_v7  ;;  %v2586_v40 = vpack.c.bf16 %v2473_v7, %v2471_v13  ;;  %5021 = vst [vmem:[%s7673_s27 + $0x310] sm:$0xff] %v2472_v38  ;;  %v2585_v9 = vpack.c.bf16 %v2472_v38, %v2470_v25  ;;  %v10025_v13 = vld [vmem:[#allocation80_spill] sm:$0xff]  ;;  %v10026_v25 = vld [vmem:[#allocation14_spill] sm:$0xff] }
 0x40c   : > { %v5717_v34 = vpop.eup %5716  ;;  %v1331_v36 = vpop.xlane.xlu0 %1330  ;;  %v2475_v28 = vmul.f32 %v5715_v8, %v10019_v47  ;;  %v2474_v53 = vmul.f32 %v5715_v8, %v10020_v4  ;;  %v10031_v7 = vld [vmem:[#allocation83_spill] sm:$0xff]  ;;  %v10032_v38 = vld [vmem:[#allocation84_spill] sm:$0xff] }
 0x40d   : > { %v2375_v57 = vpop.xlane.xlu1 %2374  ;;  %5726 = vrcp.f32 %v1331_v36  ;;  %2617 = vmatprep.subr.bf16.mxu0 %v2586_v40  ;;  %2686 = vxpose.xlu0.b32.start [1/4] (short) %v10021_v55, 128  ;;  %v1430_v58 = vmul.f32 %v5717_v34, %v10022_v42  ;;  %v1429_v19 = vmul.f32 %v5717_v34, %v10023_v52  ;;  %v2653_v40 = vld [vmem:[#allocation2 + $0x58] sm:$0xff]  ;;  %v10033_v34 = vld [vmem:[#allocation16_spill] sm:$0xff] }
 0x40e   : > { %5728 = vrcp.f32 %v2375_v57  ;;  %2618 = vmatpush1.bf16.xpose.msra.mxu0 %v2585_v9  ;;  %5024 = vst [vmem:[%s7673_s27 + $0x328] sm:$0xff] %v2475_v28  ;;  %5023 = vst [vmem:[%s7673_s27 + $0x320] sm:$0xff] %v2474_v53 }
 0x40f   : > { %v5719_v21 = vpop.eup %5718  ;;  %1494 = vst [vmem:[%s7673_s27 + $0x138] sm:$0xff] %v1430_v58  ;;  %v1540_v12 = vpack.c.bf16 %v1430_v58, %v1428_v22  ;;  %1493 = vst [vmem:[%s7673_s27 + $0x130] sm:$0xff] %v1429_v19  ;;  %v1539_v3 = vpack.c.bf16 %v1429_v19, %v1427_v59  ;;  %v10029_v22 = vld [vmem:[#allocation86_spill] sm:$0xff]  ;;  %v10030_v59 = vld [vmem:[#allocation85_spill] sm:$0xff] }
 0x410   : > { %v5721_v6 = vpop.eup %5720  ;;  %v2378_v23 = vpop.xlane.xlu0 %2377  ;;  %v1432_v0 = vmul.f32 %v5719_v21, %v10024_v17  ;;  %v1431_v5 = vmul.f32 %v5719_v21, %v10025_v13  ;;  %v10035_v58 = vld [vmem:[#allocation88_spill] sm:$0xff]  ;;  %v10036_v19 = vld [vmem:[#allocation90_spill] sm:$0xff] }
 0x411   : > { %v1334_v29 = vpop.xlane.xlu1 %1333  ;;  %5730 = vrcp.f32 %v2378_v23  ;;  %1571 = vmatprep.subr.bf16.mxu1 %v1540_v12  ;;  %2687 = vxpose.xlu0.b32.cont [2/4] (short) %v10026_v25, 128  ;;  %v2477_v16 = vmul.f32 %v5721_v6, %v10027_v62  ;;  %v2476_v10 = vmul.f32 %v5721_v6, %v10028_v49  ;;  %v10037_v12 = vld [vmem:[#allocation89_spill] sm:$0xff]  ;;  %v10038_v23 = vld [vmem:[#allocation18_spill] sm:$0xff]  ;;  %v3700_v62 = vld [vmem:[#allocation2 + $0x68] sm:$0xff] }
 0x412   : > { %5732 = vrcp.f32 %v1334_v29  ;;  %1572 = vmatpush1.bf16.xpose.msra.mxu1 %v1539_v3  ;;  %1496 = vst [vmem:[%s7673_s27 + $0x148] sm:$0xff] %v1432_v0  ;;  %1495 = vst [vmem:[%s7673_s27 + $0x140] sm:$0xff] %v1431_v5 }
 0x413   : > { %v5723_v43 = vpop.eup %5722  ;;  %5026 = vst [vmem:[%s7673_s27 + $0x338] sm:$0xff] %v2477_v16  ;;  %v2588_v54 = vpack.c.bf16 %v2477_v16, %v2475_v28  ;;  %5025 = vst [vmem:[%s7673_s27 + $0x330] sm:$0xff] %v2476_v10  ;;  %v2587_v2 = vpack.c.bf16 %v2476_v10, %v2474_v53  ;;  %v10034_v53 = vld [vmem:[#allocation87_spill] sm:$0xff]  ;;  %v10039_v16 = vld [vmem:[#allocation94_spill] sm:$0xff] }
 0x414   : > { %v5725_v20 = vpop.eup %5724  ;;  %v1337_v44 = vpop.xlane.xlu0 %1336  ;;  %v2479_v31 = vmul.f32 %v5723_v43, %v10029_v22  ;;  %v2478_v63 = vmul.f32 %v5723_v43, %v10030_v59  ;;  %v10040_v10 = vld [vmem:[#allocation93_spill] sm:$0xff]  ;;  %v10041_v43 = vld [vmem:[#allocation91_spill] sm:$0xff] }
 0x415   : > { %v2381_v27 = vpop.xlane.xlu1 %2380  ;;  %5734 = vrcp.f32 %v1337_v44  ;;  %2619 = vmatprep.subr.bf16.mxu0 %v2588_v54  ;;  %2688 = vxpose.xlu0.b32.cont [3/4] (short) %v2651_v14, 128  ;;  %v1434_v26 = vmul.f32 %v5725_v20, %v10031_v7  ;;  %v1433_v8 = vmul.f32 %v5725_v20, %v10032_v38  ;;  %v3702_v7 = vld [vmem:[#allocation2 + $0x78] sm:$0xff] }
 0x416   : > { %5736 = vrcp.f32 %v2381_v27  ;;  %2620 = vmatpush1.bf16.xpose.msra.mxu0 %v2587_v2  ;;  %5028 = vst [vmem:[%s7673_s27 + $0x348] sm:$0xff] %v2479_v31  ;;  %5027 = vst [vmem:[%s7673_s27 + $0x340] sm:$0xff] %v2478_v63  ;;  %v10042_v2 = vld [vmem:[#allocation92_spill] sm:$0xff] }
 0x417   : > { %v5727_v9 = vpop.eup %5726  ;;  %3735 = vxpose.xlu1.b32.start [1/4] (short) %v10033_v34, 128  ;;  %1498 = vst [vmem:[%s7673_s27 + $0x158] sm:$0xff] %v1434_v26  ;;  %v1542_v36 = vpack.c.bf16 %v1434_v26, %v1432_v0  ;;  %1497 = vst [vmem:[%s7673_s27 + $0x150] sm:$0xff] %v1433_v8  ;;  %v1541_v57 = vpack.c.bf16 %v1433_v8, %v1431_v5  ;;  %v10043_v26 = vld [vmem:[#allocation95_spill] sm:$0xff]  ;;  %v10044_v8 = vld [vmem:[#allocation96_spill] sm:$0xff] }
 0x418   : > { %v5729_v47 = vpop.eup %5728  ;;  %v2384_v28 = vpop.xlane.xlu0 %2383  ;;  %v1436_v42 = vmul.f32 %v5727_v9, %v10034_v53  ;;  %v1435_v52 = vmul.f32 %v5727_v9, %v10035_v58  ;;  %v10045_v9 = vld [vmem:[#allocation98_spill] sm:$0xff] }
 0x419   : > { %v1340_v4 = vpop.xlane.xlu1 %1339  ;;  %5738 = vrcp.f32 %v2384_v28  ;;  %1573 = vmatprep.subr.bf16.mxu1 %v1542_v36  ;;  %2689 = vxpose.xlu0.b32.end [4/4] (short) %v2653_v40, 128  ;;  %v2481_v21 = vmul.f32 %v5729_v47, %v10036_v19  ;;  %v2480_v3 = vmul.f32 %v5729_v47, %v10037_v12  ;;  %v10047_v19 = vld [vmem:[#allocation102_spill] sm:$0xff]  ;;  %v10048_v12 = vld [vmem:[#allocation101_spill] sm:$0xff] }
 0x41a   : > { %5740 = vrcp.f32 %v1340_v4  ;;  %1574 = vmatpush1.bf16.xpose.msra.mxu1 %v1541_v57  ;;  %1500 = vst [vmem:[%s7673_s27 + $0x168] sm:$0xff] %v1436_v42  ;;  %1499 = vst [vmem:[%s7673_s27 + $0x160] sm:$0xff] %v1435_v52  ;;  %v10046_v57 = vld [vmem:[#allocation97_spill] sm:$0xff] }
 0x41b   : > { %v5731_v6 = vpop.eup %5730  ;;  %3736 = vxpose.xlu1.b32.cont [2/4] (short) %v10038_v23, 128  ;;  %5030 = vst [vmem:[%s7673_s27 + $0x358] sm:$0xff] %v2481_v21  ;;  %v2590_v29 = vpack.c.bf16 %v2481_v21, %v2479_v31  ;;  %5029 = vst [vmem:[%s7673_s27 + $0x350] sm:$0xff] %v2480_v3  ;;  %v2589_v17 = vpack.c.bf16 %v2480_v3, %v2478_v63 }
 0x41c   : > { %v5733_v0 = vpop.eup %5732  ;;  %v1343_v13 = vpop.xlane.xlu0 %1342  ;;  %v2483_v49 = vmul.f32 %v5731_v6, %v10039_v16  ;;  %v2482_v14 = vmul.f32 %v5731_v6, %v10040_v10  ;;  %v10049_v6 = vld [vmem:[#allocation99_spill] sm:$0xff] }
 0x41d   : > { %v2387_v5 = vpop.xlane.xlu1 %2386  ;;  %5742 = vrcp.f32 %v1343_v13  ;;  %2621 = vmatprep.subr.bf16.mxu0 %v2590_v29  ;;  %v1438_v54 = vmul.f32 %v5733_v0, %v10041_v43  ;;  %v1437_v20 = vmul.f32 %v5733_v0, %v10042_v2 }
 0x41e   : > { %5744 = vrcp.f32 %v2387_v5  ;;  %2622 = vmatpush1.bf16.xpose.msra.mxu0 %v2589_v17  ;;  %5032 = vst [vmem:[%s7673_s27 + $0x368] sm:$0xff] %v2483_v49  ;;  %5031 = vst [vmem:[%s7673_s27 + $0x360] sm:$0xff] %v2482_v14  ;;  %v10050_v17 = vld [vmem:[#allocation100_spill] sm:$0xff] }
 0x41f   : > { %v5735_v44 = vpop.eup %5734  ;;  %1502 = vst [vmem:[%s7673_s27 + $0x178] sm:$0xff] %v1438_v54  ;;  %v1544_v27 = vpack.c.bf16 %v1438_v54, %v1436_v42  ;;  %1501 = vst [vmem:[%s7673_s27 + $0x170] sm:$0xff] %v1437_v20  ;;  %v1543_v22 = vpack.c.bf16 %v1437_v20, %v1435_v52  ;;  %3737 = vxpose.xlu1.b32.cont [3/4] (short) %v3700_v62, 128  ;;  %v10052_v54 = vld [vmem:[#allocation104_spill] sm:$0xff]  ;;  %v10053_v20 = vld [vmem:[#allocation106_spill] sm:$0xff] }
 0x420   : > { %v5737_v31 = vpop.eup %5736  ;;  %v2390_v59 = vpop.xlane.xlu0 %2389  ;;  %v1440_v38 = vmul.f32 %v5735_v44, %v10043_v26  ;;  %v1439_v40 = vmul.f32 %v5735_v44, %v10044_v8 }
 0x421   : > { %v1346_v63 = vpop.xlane.xlu1 %1345  ;;  %5746 = vrcp.f32 %v2390_v59  ;;  %1575 = vmatprep.subr.bf16.mxu1 %v1544_v27  ;;  %v2485_v36 = vmul.f32 %v5737_v31, %v10045_v9  ;;  %v2484_v47 = vmul.f32 %v5737_v31, %v10046_v57  ;;  %v10054_v27 = vld [vmem:[#allocation105_spill] sm:$0xff] }
 0x422   : > { %5748 = vrcp.f32 %v1346_v63  ;;  %1576 = vmatpush1.bf16.xpose.msra.mxu1 %v1543_v22  ;;  %1504 = vst [vmem:[%s7673_s27 + $0x188] sm:$0xff] %v1440_v38  ;;  %1503 = vst [vmem:[%s7673_s27 + $0x180] sm:$0xff] %v1439_v40 }
 0x423   : > { %v5739_v28 = vpop.eup %5738  ;;  %5034 = vst [vmem:[%s7673_s27 + $0x378] sm:$0xff] %v2485_v36  ;;  %v2592_v4 = vpack.c.bf16 %v2485_v36, %v2483_v49  ;;  %5033 = vst [vmem:[%s7673_s27 + $0x370] sm:$0xff] %v2484_v47  ;;  %v2591_v53 = vpack.c.bf16 %v2484_v47, %v2482_v14  ;;  %3738 = vxpose.xlu1.b32.end [4/4] (short) %v3702_v7, 128  ;;  %v10051_v14 = vld [vmem:[#allocation103_spill] sm:$0xff] }
 0x424   : > { %v5741_v42 = vpop.eup %5740  ;;  %v1349_v58 = vpop.xlane.xlu0 %1348  ;;  %v2487_v21 = vmul.f32 %v5739_v28, %v10047_v19  ;;  %v2486_v3 = vmul.f32 %v5739_v28, %v10048_v12 }
 0x425   : > { %v2393_v52 = vpop.xlane.xlu1 %2392  ;;  %5750 = vrcp.f32 %v1349_v58  ;;  %2623 = vmatprep.subr.bf16.mxu0 %v2592_v4  ;;  %v1442_v29 = vmul.f32 %v5741_v42, %v10049_v6  ;;  %v1441_v0 = vmul.f32 %v5741_v42, %v10050_v17 }
 0x426   : > { %5752 = vrcp.f32 %v2393_v52  ;;  %2624 = vmatpush1.bf16.xpose.msra.mxu0 %v2591_v53  ;;  %5036 = vst [vmem:[%s7673_s27 + $0x388] sm:$0xff] %v2487_v21  ;;  %5035 = vst [vmem:[%s7673_s27 + $0x380] sm:$0xff] %v2486_v3 }
 0x427   : > { %v5743_v13 = vpop.eup %5742  ;;  %1506 = vst [vmem:[%s7673_s27 + $0x198] sm:$0xff] %v1442_v29  ;;  %v1546_v5 = vpack.c.bf16 %v1442_v29, %v1440_v38  ;;  %1505 = vst [vmem:[%s7673_s27 + $0x190] sm:$0xff] %v1441_v0  ;;  %v1545_v62 = vpack.c.bf16 %v1441_v0, %v1439_v40  ;;  %v10056_v0 = vld [vmem:[#allocation108_spill] sm:$0xff] }
 0x428   : > { %v5745_v16 = vpop.eup %5744  ;;  %v2396_v49 = vpop.xlane.xlu0 %2395  ;;  %v1444_v43 = vmul.f32 %v5743_v13, %v10051_v14  ;;  %v1443_v2 = vmul.f32 %v5743_v13, %v10052_v54  ;;  %v10058_v14 = vld [vmem:[#allocation110_spill] sm:$0xff]  ;;  %v10059_v54 = vld [vmem:[#allocation109_spill] sm:$0xff] }
 0x429   : > { %v1352_v10 = vpop.xlane.xlu1 %1351  ;;  %5754 = vrcp.f32 %v2396_v49  ;;  %1577 = vmatprep.subr.bf16.mxu1 %v1546_v5  ;;  %v2489_v44 = vmul.f32 %v5745_v16, %v10053_v20  ;;  %v2488_v22 = vmul.f32 %v5745_v16, %v10054_v27  ;;  %v10057_v49 = vld [vmem:[#allocation112_spill] sm:$0xff] }
 0x42a   : > { %5756 = vrcp.f32 %v1352_v10  ;;  %1578 = vmatpush1.bf16.xpose.msra.mxu1 %v1545_v62  ;;  %1508 = vst [vmem:[%s7673_s27 + $0x1a8] sm:$0xff] %v1444_v43  ;;  %1507 = vst [vmem:[%s7673_s27 + $0x1a0] sm:$0xff] %v1443_v2 }
 0x42b   : > { %v5747_v31 = vpop.eup %5746  ;;  %5038 = vst [vmem:[%s7673_s27 + $0x398] sm:$0xff] %v2489_v44  ;;  %v2594_v59 = vpack.c.bf16 %v2489_v44, %v2487_v21  ;;  %5037 = vst [vmem:[%s7673_s27 + $0x390] sm:$0xff] %v2488_v22  ;;  %v2593_v63 = vpack.c.bf16 %v2488_v22, %v2486_v3 }
 0x42c   : > { %v5749_v7 = vpop.eup %5748  ;;  %v1355_v26 = vpop.xlane.xlu0 %1354  ;;  %v2491_v8 = vmul.f32 %v5747_v31, %v7604_v1  ;;  %v2490_v40 = vmul.f32 %v5747_v31, %v7599_v61 }
 0x42d   : > { %v2399_v38 = vpop.xlane.xlu1 %2398  ;;  %5758 = vrcp.f32 %v1355_v26  ;;  %2625 = vmatprep.subr.bf16.mxu0 %v2594_v59  ;;  %v1446_v9 = vmul.f32 %v5749_v7, %v7595_v32  ;;  %v1445_v36 = vmul.f32 %v5749_v7, %v7593_v39  ;;  %v10061_v7 = vld [vmem:[#allocation22_spill] sm:$0xff]  ;;  %v10062_v26 = vld [vmem:[#allocation20_spill] sm:$0xff] }
 0x42e   : > { %5760 = vrcp.f32 %v2399_v38  ;;  %2626 = vmatpush1.bf16.xpose.msra.mxu0 %v2593_v63  ;;  %5040 = vst [vmem:[%s7673_s27 + $0x3a8] sm:$0xff] %v2491_v8  ;;  %5039 = vst [vmem:[%s7673_s27 + $0x3a0] sm:$0xff] %v2490_v40  ;;  %v10063_v38 = vpack.c.bf16 %v10061_v7, %v10062_v26 }
 0x42f   : > { %v5751_v57 = vpop.eup %5750  ;;  %1510 = vst [vmem:[%s7673_s27 + $0x1b8] sm:$0xff] %v1446_v9  ;;  %v1548_v47 = vpack.c.bf16 %v1446_v9, %v1444_v43  ;;  %1509 = vst [vmem:[%s7673_s27 + $0x1b0] sm:$0xff] %v1445_v36  ;;  %v1547_v1 = vpack.c.bf16 %v1445_v36, %v1443_v2  ;;  %v10067_v36 = vld [vmem:[#allocation28_spill] sm:$0xff] }
 0x430   : > { %v5753_v28 = vpop.eup %5752  ;;  %v2402_v61 = vpop.xlane.xlu0 %2401  ;;  %v1448_v32 = vmul.f32 %v5751_v57, %v7611_v51  ;;  %v1447_v39 = vmul.f32 %v5751_v57, %v7609_v24 }
 0x431   : > { %v1358_v4 = vpop.xlane.xlu1 %1357  ;;  %5762 = vrcp.f32 %v2402_v61  ;;  %1579 = vmatprep.subr.bf16.mxu1 %v1548_v47  ;;  %v2493_v53 = vmul.f32 %v5753_v28, %v7619_v30  ;;  %v2492_v42 = vmul.f32 %v5753_v28, %v7615_v46  ;;  %v10070_v47 = vld [vmem:[#allocation21_spill] sm:$0xff]  ;;  %v10073_v61 = vmov 0.0  }
 0x432   : > { %5764 = vrcp.f32 %v1358_v4  ;;  %1580 = vmatpush1.bf16.xpose.msra.mxu1 %v1547_v1  ;;  %1512 = vst [vmem:[%s7673_s27 + $0x1c8] sm:$0xff] %v1448_v32  ;;  %1511 = vst [vmem:[%s7673_s27 + $0x1c0] sm:$0xff] %v1447_v39  ;;  %v10071_v1 = vld [vmem:[#allocation19_spill] sm:$0xff]  ;;  %v10074_v4 = vpack.c.bf16 %v10026_v25, %v10021_v55  ;;  %v10083_v25 = vpack.c.bf16 %v9982_v48, %v9981_v50 }
 0x433   : > { %v5755_v58 = vpop.eup %5754  ;;  %5042 = vst [vmem:[%s7673_s27 + $0x3b8] sm:$0xff] %v2493_v53  ;;  %v2596_v52 = vpack.c.bf16 %v2493_v53, %v2491_v8  ;;  %5041 = vst [vmem:[%s7673_s27 + $0x3b0] sm:$0xff] %v2492_v42  ;;  %v2595_v51 = vpack.c.bf16 %v2492_v42, %v2490_v40  ;;  %v10064_v8 = vld [vmem:[#allocation26_spill] sm:$0xff]  ;;  %v10065_v40 = vld [vmem:[#allocation24_spill] sm:$0xff]  ;;  %v10072_v28 = vpack.c.bf16 %v10070_v47, %v10071_v1 }
 0x434   : > { %v5757_v24 = vpop.eup %5756  ;;  %v2495_v21 = vmul.f32 %v5755_v58, %v7631_v11  ;;  %v2494_v30 = vmul.f32 %v5755_v58, %v7629_v35  ;;  %v10066_v9 = vpack.c.bf16 %v10064_v8, %v10065_v40  ;;  %v10078_v42 = vpack.c.bf16 %v9980_v37, %v9979_v15  ;;  %v10079_v58 = vld [vmem:[#allocation25_spill] sm:$0xff] }
 0x435   : > { %v2405_v19 = vpop.xlane.xlu1 %2404  ;;  %2627 = vmatprep.subr.bf16.mxu0 %v2596_v52  ;;  %v1450_v46 = vmul.f32 %v5757_v24, %v7627_v56  ;;  %v1449_v12 = vmul.f32 %v5757_v24, %v7623_v33  ;;  %v10055_v56 = vld [vmem:[#allocation107_spill] sm:$0xff]  ;;  %v10082_v24 = vpack.c.bf16 %v10038_v23, %v10033_v34 }
 0x436   : > { %5766 = vrcp.f32 %v2405_v19  ;;  %2628 = vmatpush1.bf16.xpose.msra.mxu0 %v2595_v51  ;;  %5044 = vst [vmem:[%s7673_s27 + $0x3c8] sm:$0xff] %v2495_v21  ;;  %5043 = vst [vmem:[%s7673_s27 + $0x3c0] sm:$0xff] %v2494_v30  ;;  %v10080_v52 = vld [vmem:[#allocation23_spill] sm:$0xff] }
 0x437   : > { %v5759_v3 = vpop.eup %5758  ;;  %1514 = vst [vmem:[%s7673_s27 + $0x1d8] sm:$0xff] %v1450_v46  ;;  %v1550_v6 = vpack.c.bf16 %v1450_v46, %v1448_v32  ;;  %1513 = vst [vmem:[%s7673_s27 + $0x1d0] sm:$0xff] %v1449_v12  ;;  %v1549_v11 = vpack.c.bf16 %v1449_v12, %v1447_v39  ;;  %v10075_v32 = vld [vmem:[#allocation30_spill] sm:$0xff]  ;;  %v10076_v39 = vld [vmem:[#allocation29_spill] sm:$0xff]  ;;  %v10081_v51 = vpack.c.bf16 %v10079_v58, %v10080_v52 }
 0x438   : > { %v5761_v29 = vpop.eup %5760  ;;  %v1452_v35 = vmul.f32 %v5759_v3, %v7639_v45  ;;  %v1451_v17 = vmul.f32 %v5759_v3, %v7635_v41  ;;  %v10077_v53 = vpack.c.bf16 %v10075_v32, %v10076_v39 }
 0x439   : > { %1581 = vmatprep.subr.bf16.mxu1 %v1550_v6  ;;  %v2497_v33 = vmul.f32 %v5761_v29, %v10055_v56  ;;  %v2496_v13 = vmul.f32 %v5761_v29, %v10056_v0 }
 0x43a   : > { %1582 = vmatpush1.bf16.xpose.msra.mxu1 %v1549_v11  ;;  %1516 = vst [vmem:[%s7673_s27 + $0x1e8] sm:$0xff] %v1452_v35  ;;  %1515 = vst [vmem:[%s7673_s27 + $0x1e0] sm:$0xff] %v1451_v17 }
 0x43b   : > { %v5763_v5 = vpop.eup %5762  ;;  %5046 = vst [vmem:[%s7673_s27 + $0x3d8] sm:$0xff] %v2497_v33  ;;  %v2598_v62 = vpack.c.bf16 %v2497_v33, %v2495_v21  ;;  %5045 = vst [vmem:[%s7673_s27 + $0x3d0] sm:$0xff] %v2496_v13  ;;  %v2597_v16 = vpack.c.bf16 %v2496_v13, %v2494_v30 }
 0x43c   : > { %v5765_v45 = vpop.eup %5764  ;;  %v2499_v41 = vmul.f32 %v5763_v5, %v7655_v18  ;;  %v2498_v10 = vmul.f32 %v5763_v5, %v10057_v49  ;;  %v10060_v18 = vld [vmem:[#allocation111_spill] sm:$0xff] }
 0x43d   : > { %2629 = vmatprep.subr.bf16.mxu0 %v2598_v62  ;;  %v1454_v43 = vmul.f32 %v5765_v45, %v10058_v14  ;;  %v1453_v2 = vmul.f32 %v5765_v45, %v10059_v54 }
 0x43e   : > { %2630 = vmatpush1.bf16.xpose.msra.mxu0 %v2597_v16  ;;  %5048 = vst [vmem:[%s7673_s27 + $0x3e8] sm:$0xff] %v2499_v41  ;;  %5047 = vst [vmem:[%s7673_s27 + $0x3e0] sm:$0xff] %v2498_v10 }
 0x43f   : > { %1518 = vst [vmem:[%s7673_s27 + $0x1f8] sm:$0xff] %v1454_v43  ;;  %v1552_v44 = vpack.c.bf16 %v1454_v43, %v1452_v35  ;;  %1517 = vst [vmem:[%s7673_s27 + $0x1f0] sm:$0xff] %v1453_v2  ;;  %v1551_v27 = vpack.c.bf16 %v1453_v2, %v1451_v17 }
 0x440   : > { %v5767_v20 = vpop.eup %5766 }
 0x441   : > { %v2501_v22 = vmul.f32 %v5767_v20, %v7663_v60  ;;  %v2500_v31 = vmul.f32 %v5767_v20, %v10060_v18  ;;  %1583 = vmatprep.subr.bf16.mxu1 %v1552_v44  ;;  %v10068_v60 = vld [vmem:[#allocation27_spill] sm:$0xff] }
 0x442   : > { %1584 = vmatpush1.bf16.xpose.msra.mxu1 %v1551_v27  ;;  %v10069_v57 = vpack.c.bf16 %v10067_v36, %v10068_v60 }
 0x443   : > { %5050 = vst [vmem:[%s7673_s27 + $0x3f8] sm:$0xff] %v2501_v22  ;;  %v2600_v59 = vpack.c.bf16 %v2501_v22, %v2499_v41  ;;  %5049 = vst [vmem:[%s7673_s27 + $0x3f0] sm:$0xff] %v2500_v31  ;;  %v2599_v63 = vpack.c.bf16 %v2500_v31, %v2498_v10  ;;  %5298 = vmatprep.subr.bf16.mxu1 %v10063_v38 }
 0x445   : > { %2631 = vmatprep.subr.bf16.mxu0 %v2600_v59 }
 0x446   : > { %2632 = vmatpush1.bf16.xpose.msra.mxu0 %v2599_v63 }
 0x447   : > { %5306 = vmatprep.subr.bf16.mxu0 %v10066_v9 }
 0x449   : > { %1586 = vmatmul.mubr.bf16.vlgmr.msra.gmra.mrb[88].mxu1 %v10069_v57 }
 0x44a   : > { %5300 = vmatpush1.bf16.msra.mxu1 %v10072_v28  ;;  %2878 = vmatprep.mubr.f32.mxu1 %v10073_v61 }
 0x44b   : > { %5302 = vmatprep.subr.bf16.mxu1 %v10074_v4 }
 0x44d   : > { %2634 = vmatmul.mubr.bf16.vlgmr.msra.gmra.mrb[88].mxu0 %v10077_v53 }
 0x44e   : > { %5304 = vmatpush1.bf16.msra.mxu1 %v10078_v42  ;;  %5308 = vmatpush1.bf16.msra.mxu0 %v10081_v51 }
 0x44f   : > { %5310 = vmatprep.subr.bf16.mxu0 %v10082_v24  ;;  %3927 = vmatprep.mubr.f32.mxu0 %v10073_v61  ;;  %v10084_v24 = vld [vmem:[#allocation34_spill] sm:$0xff] }
 0x450   : > { %v2670_v55 = vpop.trf.xlu0 }
 0x451   : > { %5055 = vmatmul.mubr.msk.f32.vlgmr.msra.gmra.mrb[92].mxu1 %vm621_vm2, %v2670_v55  ;;  %v10085_v55 = vld [vmem:[#allocation32_spill] sm:$0xff] }
 0x452   : > { %5312 = vmatpush1.bf16.msra.mxu0 %v10083_v25  ;;  %2884 = vmatprep.mubr.f32.mxu1 %v10073_v61  ;;  %v10086_v25 = vpack.c.bf16 %v10084_v24, %v10085_v55 }
 0x454   : > { %v2671_v15 = vpop.trf.xlu0 }
 0x455   : > { %5056 = vmatmul.mubr.msk.f32.gmra.mrb[94].mxu1 %vm621_vm2, %v2671_v15 }
 0x456   : > { %2890 = vmatprep.mubr.f32.mxu1 %v10073_v61 }
 0x458   : > { %v2672_v37 = vpop.trf.xlu0 }
 0x459   : > { %5057 = vmatmul.mubr.msk.f32.gmra.mrb[96].mxu1 %vm621_vm2, %v2672_v37 }
 0x45a   : > { %v3719_v34 = vpop.trf.xlu1  ;;  %2896 = vmatprep.mubr.f32.mxu1 %v10073_v61 }
 0x45b   : > { %5155 = vmatmul.mubr.msk.f32.vlgmr.msra.gmra.mrb[92].mxu0 %vm621_vm2, %v3719_v34 }
 0x45c   : > { %v2673_v23 = vpop.trf.xlu0  ;;  %3933 = vmatprep.mubr.f32.mxu0 %v10073_v61 }
 0x45d   : > { %5058 = vmatmul.mubr.msk.f32.gmra.mrb[98].mxu1 %vm621_vm2, %v2673_v23  ;;  %v10087_v23 = vld [vmem:[#allocation38_spill] sm:$0xff] }
 0x45e   : > { %v3720_v50 = vpop.trf.xlu1  ;;  %2902 = vmatprep.mubr.f32.mxu1 %v10073_v61 }
 0x45f   : > { %5156 = vmatmul.mubr.msk.f32.gmra.mrb[94].mxu0 %vm621_vm2, %v3720_v50  ;;  %v10088_v50 = vld [vmem:[#allocation36_spill] sm:$0xff] }
 0x460   : > { %v2674_v48 = vpop.trf.xlu0  ;;  %3939 = vmatprep.mubr.f32.mxu0 %v10073_v61 }
 0x461   : > { %5059 = vmatmul.mubr.msk.f32.gmra.mrb[100].mxu1 %vm621_vm2, %v2674_v48  ;;  %v10089_v48 = vpack.c.bf16 %v10087_v23, %v10088_v50 }
 0x462   : > { %v3721_v19 = vpop.trf.xlu1  ;;  %2908 = vmatprep.mubr.f32.mxu1 %v10073_v61 }
 0x463   : > { %5157 = vmatmul.mubr.msk.f32.gmra.mrb[96].mxu0 %vm621_vm2, %v3721_v19 }
 0x464   : > { %v2675_v21 = vpop.trf.xlu0  ;;  %3945 = vmatprep.mubr.f32.mxu0 %v10073_v61 }
 0x465   : > { %5060 = vmatmul.mubr.msk.f32.gmra.mrb[102].mxu1 %vm621_vm2, %v2675_v21 }
 0x466   : > { %v3722_v30 = vpop.trf.xlu1  ;;  %2914 = vmatprep.mubr.f32.mxu1 %v10073_v61 }
 0x467   : > { %5158 = vmatmul.mubr.msk.f32.gmra.mrb[98].mxu0 %vm621_vm2, %v3722_v30 }
 0x468   : > { %v2676_v46 = vpop.trf.xlu0  ;;  %3951 = vmatprep.mubr.f32.mxu0 %v10073_v61 }
 0x469   : > { %5061 = vmatmul.mubr.msk.f32.gmra.mrb[104].mxu1 %vm621_vm2, %v2676_v46 }
 0x46a   : > { %v3723_v12 = vpop.trf.xlu1  ;;  %2920 = vmatprep.mubr.f32.mxu1 %v10073_v61 }
 0x46b   : > { %5159 = vmatmul.mubr.msk.f32.gmra.mrb[100].mxu0 %vm621_vm2, %v3723_v12 }
 0x46c   : > { %v2677_v3 = vpop.trf.xlu0  ;;  %3957 = vmatprep.mubr.f32.mxu0 %v10073_v61 }
 0x46d   : > { %5062 = vmatmul.mubr.msk.f32.gmra.mrb[106].mxu1 %vm621_vm2, %v2677_v3 }
 0x46e   : > { %v3724_v6 = vpop.trf.xlu1  ;;  %2926 = vmatprep.mubr.f32.mxu1 %v10073_v61 }
 0x46f   : > { %5160 = vmatmul.mubr.msk.f32.gmra.mrb[102].mxu0 %vm621_vm2, %v3724_v6 }
 0x470   : > { %v2678_v11 = vpop.trf.xlu0  ;;  %3963 = vmatprep.mubr.f32.mxu0 %v10073_v61 }
 0x471   : > { %5063 = vmatmul.mubr.msk.f32.gmra.mrb[108].mxu1 %vm621_vm2, %v2678_v11 }
 0x472   : > { %v3725_v29 = vpop.trf.xlu1  ;;  %2932 = vmatprep.mubr.f32.mxu1 %v10073_v61 }
 0x473   : > { %5161 = vmatmul.mubr.msk.f32.gmra.mrb[104].mxu0 %vm621_vm2, %v3725_v29 }
 0x474   : > { %v2679_v35 = vpop.trf.xlu0  ;;  %3969 = vmatprep.mubr.f32.mxu0 %v10073_v61 }
 0x475   : > { %5064 = vmatmul.mubr.msk.f32.gmra.mrb[110].mxu1 %vm621_vm2, %v2679_v35 }
 0x476   : > { %v3726_v17 = vpop.trf.xlu1  ;;  %2938 = vmatprep.mubr.f32.mxu1 %v10073_v61 }
 0x477   : > { %5162 = vmatmul.mubr.msk.f32.gmra.mrb[106].mxu0 %vm621_vm2, %v3726_v17 }
 0x478   : > { %v2680_v56 = vpop.trf.xlu0  ;;  %3975 = vmatprep.mubr.f32.mxu0 %v10073_v61 }
 0x479   : > { %5065 = vmatmul.mubr.msk.f32.gmra.mrb[112].mxu1 %vm621_vm2, %v2680_v56 }
 0x47a   : > { %v3727_v33 = vpop.trf.xlu1  ;;  %2944 = vmatprep.mubr.f32.mxu1 %v10073_v61 }
 0x47b   : > { %5163 = vmatmul.mubr.msk.f32.gmra.mrb[108].mxu0 %vm621_vm2, %v3727_v33 }
 0x47c   : > { %v2681_v0 = vpop.trf.xlu0  ;;  %3981 = vmatprep.mubr.f32.mxu0 %v10073_v61 }
 0x47d   : > { %5066 = vmatmul.mubr.msk.f32.gmra.mrb[114].mxu1 %vm621_vm2, %v2681_v0 }
 0x47e   : > { %v3728_v13 = vpop.trf.xlu1  ;;  %2950 = vmatprep.mubr.f32.mxu1 %v10073_v61 }
 0x47f   : > { %5164 = vmatmul.mubr.msk.f32.gmra.mrb[110].mxu0 %vm621_vm2, %v3728_v13 }
 0x480   : > { %v2682_v5 = vpop.trf.xlu0  ;;  %3987 = vmatprep.mubr.f32.mxu0 %v10073_v61 }
 0x481   : > { %5067 = vmatmul.mubr.msk.f32.gmra.mrb[116].mxu1 %vm621_vm2, %v2682_v5 }
 0x482   : > { %v3729_v62 = vpop.trf.xlu1  ;;  %2956 = vmatprep.mubr.f32.mxu1 %v10073_v61 }
 0x483   : > { %5165 = vmatmul.mubr.msk.f32.gmra.mrb[112].mxu0 %vm621_vm2, %v3729_v62 }
 0x484   : > { %v2683_v16 = vpop.trf.xlu0  ;;  %3993 = vmatprep.mubr.f32.mxu0 %v10073_v61 }
 0x485   : > { %5068 = vmatmul.mubr.msk.f32.gmra.mrb[118].mxu1 %vm621_vm2, %v2683_v16 }
 0x486   : > { %v3730_v45 = vpop.trf.xlu1  ;;  %2962 = vmatprep.mubr.f32.mxu1 %v10073_v61 }
 0x487   : > { %5166 = vmatmul.mubr.msk.f32.gmra.mrb[114].mxu0 %vm621_vm2, %v3730_v45 }
 0x488   : > { %v2684_v41 = vpop.trf.xlu0  ;;  %3999 = vmatprep.mubr.f32.mxu0 %v10073_v61 }
 0x489   : > { %5069 = vmatmul.mubr.msk.f32.gmra.mrb[120].mxu1 %vm621_vm2, %v2684_v41 }
 0x48a   : > { %v3731_v49 = vpop.trf.xlu1  ;;  %2968 = vmatprep.mubr.f32.mxu1 %v10073_v61 }
 0x48b   : > { %5167 = vmatmul.mubr.msk.f32.gmra.mrb[116].mxu0 %vm621_vm2, %v3731_v49 }
 0x48c   : > { %v2685_v10 = vpop.trf.xlu0  ;;  %4005 = vmatprep.mubr.f32.mxu0 %v10073_v61 }
 0x48d   : > { %5070 = vmatmul.mubr.msk.f32.gmra.mrb[122].mxu1 %vm621_vm2, %v2685_v10 }
 0x48e   : > { %v3732_v14 = vpop.trf.xlu1  ;;  %2974 = vmatprep.mubr.f32.mxu1 %v10073_v61 }
 0x48f   : > { %5168 = vmatmul.mubr.msk.f32.gmra.mrb[118].mxu0 %vm621_vm2, %v3732_v14 }
 0x490   : > { %v2702_v43 = vpop.trf.xlu0  ;;  %4011 = vmatprep.mubr.f32.mxu0 %v10073_v61 }
 0x491   : > { %5071 = vmatmul.mubr.msk.f32.gmra.mrb[124].mxu1 %vm621_vm2, %v2702_v43 }
 0x492   : > { %v3733_v54 = vpop.trf.xlu1  ;;  %2980 = vmatprep.mubr.f32.mxu1 %v10073_v61 }
 0x493   : > { %5169 = vmatmul.mubr.msk.f32.gmra.mrb[120].mxu0 %vm621_vm2, %v3733_v54 }
 0x494   : > { %v2703_v2 = vpop.trf.xlu0  ;;  %4017 = vmatprep.mubr.f32.mxu0 %v10073_v61 }
 0x495   : > { %5072 = vmatmul.mubr.msk.f32.gmra.mrb[126].mxu1 %vm621_vm2, %v2703_v2 }
 0x496   : > { %v3734_v20 = vpop.trf.xlu1  ;;  %2986 = vmatprep.mubr.f32.mxu1 %v10073_v61 }
 0x497   : > { %5170 = vmatmul.mubr.msk.f32.gmra.mrb[122].mxu0 %vm621_vm2, %v3734_v20 }
 0x498   : > { %v2704_v44 = vpop.trf.xlu0  ;;  %4023 = vmatprep.mubr.f32.mxu0 %v10073_v61 }
 0x499   : > { %5073 = vmatmul.mubr.msk.f32.gmra.mrb[128].mxu1 %vm621_vm2, %v2704_v44 }
 0x49a   : > { %v3751_v27 = vpop.trf.xlu1  ;;  %2992 = vmatprep.mubr.f32.mxu1 %v10073_v61 }
 0x49b   : > { %5171 = vmatmul.mubr.msk.f32.gmra.mrb[124].mxu0 %vm621_vm2, %v3751_v27 }
 0x49c   : > { %v2705_v22 = vpop.trf.xlu0  ;;  %4029 = vmatprep.mubr.f32.mxu0 %v10073_v61 }
 0x49d   : > { %5074 = vmatmul.mubr.msk.f32.gmra.mrb[130].mxu1 %vm621_vm2, %v2705_v22 }
 0x49e   : > { %v3752_v18 = vpop.trf.xlu1  ;;  %2998 = vmatprep.mubr.f32.mxu1 %v10073_v61 }
 0x49f   : > { %5172 = vmatmul.mubr.msk.f32.gmra.mrb[126].mxu0 %vm621_vm2, %v3752_v18 }
 0x4a0   : > { %v2706_v31 = vpop.trf.xlu0  ;;  %4035 = vmatprep.mubr.f32.mxu0 %v10073_v61 }
 0x4a1   : > { %5075 = vmatmul.mubr.msk.f32.gmra.mrb[132].mxu1 %vm621_vm2, %v2706_v31 }
 0x4a2   : > { %v3753_v59 = vpop.trf.xlu1  ;;  %3004 = vmatprep.mubr.f32.mxu1 %v10073_v61 }
 0x4a3   : > { %5173 = vmatmul.mubr.msk.f32.gmra.mrb[128].mxu0 %vm621_vm2, %v3753_v59 }
 0x4a4   : > { %v2707_v63 = vpop.trf.xlu0  ;;  %4041 = vmatprep.mubr.f32.mxu0 %v10073_v61 }
 0x4a5   : > { %5076 = vmatmul.mubr.msk.f32.gmra.mrb[134].mxu1 %vm621_vm2, %v2707_v63 }
 0x4a6   : > { %v3754_v7 = vpop.trf.xlu1  ;;  %3010 = vmatprep.mubr.f32.mxu1 %v10073_v61 }
 0x4a7   : > { %5174 = vmatmul.mubr.msk.f32.gmra.mrb[130].mxu0 %vm621_vm2, %v3754_v7 }
 0x4a8   : > { %v2708_v26 = vpop.trf.xlu0  ;;  %4047 = vmatprep.mubr.f32.mxu0 %v10073_v61 }
 0x4a9   : > { %5077 = vmatmul.mubr.msk.f32.gmra.mrb[136].mxu1 %vm621_vm2, %v2708_v26 }
 0x4aa   : > { %v3755_v38 = vpop.trf.xlu1  ;;  %3016 = vmatprep.mubr.f32.mxu1 %v10073_v61 }
 0x4ab   : > { %5175 = vmatmul.mubr.msk.f32.gmra.mrb[132].mxu0 %vm621_vm2, %v3755_v38 }
 0x4ac   : > { %v2709_v8 = vpop.trf.xlu0  ;;  %4053 = vmatprep.mubr.f32.mxu0 %v10073_v61 }
 0x4ad   : > { %5078 = vmatmul.mubr.msk.f32.gmra.mrb[138].mxu1 %vm621_vm2, %v2709_v8 }
 0x4ae   : > { %v3756_v40 = vpop.trf.xlu1  ;;  %3022 = vmatprep.mubr.f32.mxu1 %v10073_v61 }
 0x4af   : > { %5176 = vmatmul.mubr.msk.f32.gmra.mrb[134].mxu0 %vm621_vm2, %v3756_v40 }
 0x4b0   : > { %v2710_v9 = vpop.trf.xlu0  ;;  %4059 = vmatprep.mubr.f32.mxu0 %v10073_v61 }
 0x4b1   : > { %5079 = vmatmul.mubr.msk.f32.gmra.mrb[140].mxu1 %vm621_vm2, %v2710_v9 }
 0x4b2   : > { %v3757_v36 = vpop.trf.xlu1  ;;  %3028 = vmatprep.mubr.f32.mxu1 %v10073_v61 }
 0x4b3   : > { %5177 = vmatmul.mubr.msk.f32.gmra.mrb[136].mxu0 %vm621_vm2, %v3757_v36 }
 0x4b4   : > { %v2711_v60 = vpop.trf.xlu0  ;;  %4065 = vmatprep.mubr.f32.mxu0 %v10073_v61 }
 0x4b5   : > { %5080 = vmatmul.mubr.msk.f32.gmra.mrb[142].mxu1 %vm621_vm2, %v2711_v60 }
 0x4b6   : > { %v3758_v57 = vpop.trf.xlu1  ;;  %3034 = vmatprep.mubr.f32.mxu1 %v10073_v61 }
 0x4b7   : > { %5178 = vmatmul.mubr.msk.f32.gmra.mrb[138].mxu0 %vm621_vm2, %v3758_v57 }
 0x4b8   : > { %v2712_v47 = vpop.trf.xlu0  ;;  %4071 = vmatprep.mubr.f32.mxu0 %v10073_v61 }
 0x4b9   : > { %5081 = vmatmul.mubr.msk.f32.gmra.mrb[144].mxu1 %vm621_vm2, %v2712_v47 }
 0x4ba   : > { %v3759_v1 = vpop.trf.xlu1  ;;  %3040 = vmatprep.mubr.f32.mxu1 %v10073_v61 }
 0x4bb   : > { %5179 = vmatmul.mubr.msk.f32.gmra.mrb[140].mxu0 %vm621_vm2, %v3759_v1 }
 0x4bc   : > { %v2713_v28 = vpop.trf.xlu0  ;;  %4077 = vmatprep.mubr.f32.mxu0 %v10073_v61 }
 0x4bd   : > { %5082 = vmatmul.mubr.msk.f32.gmra.mrb[146].mxu1 %vm621_vm2, %v2713_v28 }
 0x4be   : > { %v3760_v4 = vpop.trf.xlu1  ;;  %3046 = vmatprep.mubr.f32.mxu1 %v10073_v61 }
 0x4bf   : > { %5180 = vmatmul.mubr.msk.f32.gmra.mrb[142].mxu0 %vm621_vm2, %v3760_v4 }
 0x4c0   : > { %v2714_v32 = vpop.trf.xlu0  ;;  %4083 = vmatprep.mubr.f32.mxu0 %v10073_v61 }
 0x4c1   : > { %5083 = vmatmul.mubr.msk.f32.gmra.mrb[148].mxu1 %vm621_vm2, %v2714_v32 }
 0x4c2   : > { %v3761_v39 = vpop.trf.xlu1  ;;  %3052 = vmatprep.mubr.f32.mxu1 %v10073_v61 }
 0x4c3   : > { %5181 = vmatmul.mubr.msk.f32.gmra.mrb[144].mxu0 %vm621_vm2, %v3761_v39 }
 0x4c4   : > { %v2715_v53 = vpop.trf.xlu0  ;;  %4089 = vmatprep.mubr.f32.mxu0 %v10073_v61 }
 0x4c5   : > { %5084 = vmatmul.mubr.msk.f32.gmra.mrb[150].mxu1 %vm621_vm2, %v2715_v53 }
 0x4c6   : > { %v3762_v42 = vpop.trf.xlu1  ;;  %3058 = vmatprep.mubr.f32.mxu1 %v10073_v61 }
 0x4c7   : > { %5182 = vmatmul.mubr.msk.f32.gmra.mrb[146].mxu0 %vm621_vm2, %v3762_v42 }
 0x4c8   : > { %v2716_v58 = vpop.trf.xlu0  ;;  %4095 = vmatprep.mubr.f32.mxu0 %v10073_v61 }
 0x4c9   : > { %5085 = vmatmul.mubr.msk.f32.gmra.mrb[152].mxu1 %vm621_vm2, %v2716_v58 }
 0x4ca   : > { %v3763_v52 = vpop.trf.xlu1  ;;  %3064 = vmatprep.mubr.f32.mxu1 %v10073_v61 }
 0x4cb   : > { %5183 = vmatmul.mubr.msk.f32.gmra.mrb[148].mxu0 %vm621_vm2, %v3763_v52 }
 0x4cc   : > { %v2717_v51 = vpop.trf.xlu0  ;;  %4101 = vmatprep.mubr.f32.mxu0 %v10073_v61 }
 0x4cd   : > { %5086 = vmatmul.mubr.msk.f32.gmra.mrb[154].mxu1 %vm621_vm2, %v2717_v51 }
 0x4ce   : > { %3682 = vmatprep.mubr.bf16.mxu1 %v10086_v25  ;;  %v3764_v15 = vpop.trf.xlu1 }
 0x4cf   : > { %5184 = vmatmul.mubr.msk.f32.gmra.mrb[150].mxu0 %vm621_vm2, %v3764_v15 }
 0x4d0   : > { %4107 = vmatprep.mubr.f32.mxu0 %v10073_v61 }
 0x4d2   : > { %v3765_v37 = vpop.trf.xlu1 }
 0x4d3   : > { %5185 = vmatmul.mubr.msk.f32.gmra.mrb[152].mxu0 %vm621_vm2, %v3765_v37 }
 0x4d4   : > { %4113 = vmatprep.mubr.f32.mxu0 %v10073_v61 }
 0x4d6   : > { %v3766_v34 = vpop.trf.xlu1 }
 0x4d7   : > { %5186 = vmatmul.mubr.msk.f32.gmra.mrb[154].mxu0 %vm621_vm2, %v3766_v34 }
 0x4d8   : > { %4731 = vmatprep.mubr.bf16.mxu0 %v10089_v48 }
 0x51c   : > { %v1587_v19 = vpop.f32.mrb[88].mxu1 }
 0x51d   : > { %1596 = vst [vmem:[%s8102_s6] sm:$0xff] %v1587_v19  ;;  %v1589_v61 = vpop.f32.mrb[89].mxu1 }
 0x51e   : > { %1597 = vst [vmem:[%s8102_s6 + $0x8] sm:$0xff] %v1589_v61  ;;  %v1591_v21 = vpop.f32.mrb[90].mxu1 }
 0x51f   : > { %1598 = vst [vmem:[%s8102_s6 + $0x10] sm:$0xff] %v1591_v21  ;;  %v1593_v30 = vpop.f32.mrb[91].mxu1 }
 0x520   : > { %1599 = vst [vmem:[%s8102_s6 + $0x18] sm:$0xff] %v1593_v30  ;;  %v2635_v46 = vpop.f32.mrb[88].mxu0 }
 0x521   : > { %5051 = vst [vmem:[%s8102_s6 + $0x20] sm:$0xff] %v2635_v46  ;;  %v2637_v12 = vpop.f32.mrb[89].mxu0 }
 0x522   : > { %5052 = vst [vmem:[%s8102_s6 + $0x28] sm:$0xff] %v2637_v12  ;;  %v2639_v3 = vpop.f32.mrb[90].mxu0 }
 0x523   : > { %5053 = vst [vmem:[%s8102_s6 + $0x30] sm:$0xff] %v2639_v3  ;;  %v2641_v6 = vpop.f32.mrb[91].mxu0 }
 0x524   : > { %5054 = vst [vmem:[%s8102_s6 + $0x38] sm:$0xff] %v2641_v6  ;;  %v8112_v11 = vpop.f32.mrb[92].mxu1 }
 0x525   : > { %v8114_v29 = vpop.f32.mrb[93].mxu1 }
 0x526   : > { %v3071_v35 = vmax.f32 %v8112_v11, %v8114_v29 }
 0x528   : > { %3072 = vmax.xlane.f32.xlu0 %v3071_v35  ;;  %v8118_v17 = vpop.f32.mrb[94].mxu1 }
 0x529   : > { %v8120_v56 = vpop.f32.mrb[95].mxu1 }
 0x52a   : > { %v3074_v33 = vmax.f32 %v8118_v17, %v8120_v56 }
 0x52c   : > { %3075 = vmax.xlane.f32.xlu1 %v3074_v33  ;;  %v8124_v0 = vpop.f32.mrb[96].mxu1 }
 0x52d   : > { %v8126_v13 = vpop.f32.mrb[97].mxu1 }
 0x52e   : > { %v8128_v5 = vpop.f32.mrb[92].mxu0  ;;  %v3077_v62 = vmax.f32 %v8124_v0, %v8126_v13 }
 0x52f   : > { %v8132_v16 = vpop.f32.mrb[93].mxu0 }
 0x530   : > { %v4120_v45 = vmax.f32 %v8128_v5, %v8132_v16  ;;  %v8136_v41 = vpop.f32.mrb[98].mxu1 }
 0x531   : > { %v8138_v49 = vpop.f32.mrb[99].mxu1 }
 0x532   : > { %4121 = vmax.xlane.f32.xlu0 %v4120_v45  ;;  %v8140_v10 = vpop.f32.mrb[94].mxu0  ;;  %v3080_v14 = vmax.f32 %v8136_v41, %v8138_v49 }
 0x533   : > { %v8144_v43 = vpop.f32.mrb[95].mxu0 }
 0x534   : > { %v4123_v54 = vmax.f32 %v8140_v10, %v8144_v43  ;;  %v8148_v2 = vpop.f32.mrb[100].mxu1 }
 0x535   : > { %v8150_v20 = vpop.f32.mrb[101].mxu1 }
 0x536   : > { %3078 = vmax.xlane.f32.xlu0 %v3077_v62  ;;  %4124 = vmax.xlane.f32.xlu1 %v4123_v54  ;;  %v8152_v44 = vpop.f32.mrb[96].mxu0  ;;  %v3083_v27 = vmax.f32 %v8148_v2, %v8150_v20 }
 0x537   : > { %v8156_v22 = vpop.f32.mrb[97].mxu0 }
 0x538   : > { %v4126_v18 = vmax.f32 %v8152_v44, %v8156_v22  ;;  %v8160_v31 = vpop.f32.mrb[102].mxu1 }
 0x539   : > { %v8162_v59 = vpop.f32.mrb[103].mxu1 }
 0x53a   : > { %3081 = vmax.xlane.f32.xlu1 %v3080_v14  ;;  %4127 = vmax.xlane.f32.xlu0 %v4126_v18  ;;  %v8164_v63 = vpop.f32.mrb[98].mxu0  ;;  %v3086_v7 = vmax.f32 %v8160_v31, %v8162_v59 }
 0x53b   : > { %v8168_v26 = vpop.f32.mrb[99].mxu0 }
 0x53c   : > { %v4129_v38 = vmax.f32 %v8164_v63, %v8168_v26  ;;  %v8172_v8 = vpop.f32.mrb[104].mxu1 }
 0x53d   : > { %v8174_v40 = vpop.f32.mrb[105].mxu1 }
 0x53e   : > { %3084 = vmax.xlane.f32.xlu0 %v3083_v27  ;;  %4130 = vmax.xlane.f32.xlu1 %v4129_v38  ;;  %v8176_v9 = vpop.f32.mrb[100].mxu0  ;;  %v3089_v36 = vmax.f32 %v8172_v8, %v8174_v40 }
 0x53f   : > { %v8180_v60 = vpop.f32.mrb[101].mxu0 }
 0x540   : > { %v4132_v57 = vmax.f32 %v8176_v9, %v8180_v60  ;;  %v8184_v47 = vpop.f32.mrb[106].mxu1 }
 0x541   : > { %v8186_v1 = vpop.f32.mrb[107].mxu1 }
 0x542   : > { %3087 = vmax.xlane.f32.xlu1 %v3086_v7  ;;  %4133 = vmax.xlane.f32.xlu0 %v4132_v57  ;;  %v8188_v28 = vpop.f32.mrb[102].mxu0  ;;  %v3092_v4 = vmax.f32 %v8184_v47, %v8186_v1 }
 0x543   : > { %v8192_v32 = vpop.f32.mrb[103].mxu0 }
 0x544   : > { %v4135_v39 = vmax.f32 %v8188_v28, %v8192_v32  ;;  %v8196_v53 = vpop.f32.mrb[108].mxu1 }
 0x545   : > { %v8198_v42 = vpop.f32.mrb[109].mxu1 }
 0x546   : > { %3090 = vmax.xlane.f32.xlu0 %v3089_v36  ;;  %4136 = vmax.xlane.f32.xlu1 %v4135_v39  ;;  %v8200_v58 = vpop.f32.mrb[104].mxu0  ;;  %v3095_v52 = vmax.f32 %v8196_v53, %v8198_v42 }
 0x547   : > { %v8204_v51 = vpop.f32.mrb[105].mxu0 }
 0x548   : > { %v4138_v24 = vmax.f32 %v8200_v58, %v8204_v51  ;;  %v8208_v55 = vpop.f32.mrb[110].mxu1 }
 0x549   : > { %v8210_v25 = vpop.f32.mrb[111].mxu1 }
 0x54a   : > { %3093 = vmax.xlane.f32.xlu1 %v3092_v4  ;;  %4139 = vmax.xlane.f32.xlu0 %v4138_v24  ;;  %v8212_v15 = vpop.f32.mrb[106].mxu0  ;;  %v3098_v37 = vmax.f32 %v8208_v55, %v8210_v25 }
 0x54b   : > { %v8216_v34 = vpop.f32.mrb[107].mxu0 }
 0x54c   : > { %v4141_v23 = vmax.f32 %v8212_v15, %v8216_v34  ;;  %v8220_v50 = vpop.f32.mrb[112].mxu1 }
 0x54d   : > { %v8222_v48 = vpop.f32.mrb[113].mxu1 }
 0x54e   : > { %3096 = vmax.xlane.f32.xlu0 %v3095_v52  ;;  %4142 = vmax.xlane.f32.xlu1 %v4141_v23  ;;  %v8224_v19 = vpop.f32.mrb[108].mxu0  ;;  %v3101_v61 = vmax.f32 %v8220_v50, %v8222_v48 }
 0x54f   : > { %v8228_v21 = vpop.f32.mrb[109].mxu0 }
 0x550   : > { %v4144_v30 = vmax.f32 %v8224_v19, %v8228_v21  ;;  %v8232_v46 = vpop.f32.mrb[114].mxu1 }
 0x551   : > { %v8234_v12 = vpop.f32.mrb[115].mxu1 }
 0x552   : > { %3099 = vmax.xlane.f32.xlu1 %v3098_v37  ;;  %4145 = vmax.xlane.f32.xlu0 %v4144_v30  ;;  %v8236_v3 = vpop.f32.mrb[110].mxu0  ;;  %v3104_v6 = vmax.f32 %v8232_v46, %v8234_v12 }
 0x553   : > { %v8240_v35 = vpop.f32.mrb[111].mxu0 }
 0x554   : > { %v4147_v33 = vmax.f32 %v8236_v3, %v8240_v35  ;;  %v8244_v62 = vpop.f32.mrb[116].mxu1 }
 0x555   : > { %v8246_v45 = vpop.f32.mrb[117].mxu1 }
 0x556   : > { %3102 = vmax.xlane.f32.xlu0 %v3101_v61  ;;  %4148 = vmax.xlane.f32.xlu1 %v4147_v33  ;;  %v8248_v14 = vpop.f32.mrb[112].mxu0  ;;  %v3107_v54 = vmax.f32 %v8244_v62, %v8246_v45 }
 0x557   : > { %v8252_v27 = vpop.f32.mrb[113].mxu0 }
 0x558   : > { %v4150_v18 = vmax.f32 %v8248_v14, %v8252_v27  ;;  %v8256_v7 = vpop.f32.mrb[118].mxu1 }
 0x559   : > { %10090 = vst [vmem:[#allocation113_spill] sm:$0xff] %v8256_v7  ;;  %v8258_v38 = vpop.f32.mrb[119].mxu1 }
 0x55a   : > { %10091 = vst [vmem:[#allocation114_spill] sm:$0xff] %v8258_v38  ;;  %3105 = vmax.xlane.f32.xlu1 %v3104_v6  ;;  %4151 = vmax.xlane.f32.xlu0 %v4150_v18  ;;  %v8260_v36 = vpop.f32.mrb[114].mxu0  ;;  %v3110_v57 = vmax.f32 %v8256_v7, %v8258_v38 }
 0x55b   : > { %v8264_v4 = vpop.f32.mrb[115].mxu0 }
 0x55c   : > { %v4153_v39 = vmax.f32 %v8260_v36, %v8264_v4  ;;  %v8268_v52 = vpop.f32.mrb[120].mxu1 }
 0x55d   : > { %10092 = vst [vmem:[#allocation115_spill] sm:$0xff] %v8268_v52  ;;  %v8270_v24 = vpop.f32.mrb[121].mxu1 }
 0x55e   : > { %10093 = vst [vmem:[#allocation11_spill] sm:$0xff] %v8270_v24  ;;  %3108 = vmax.xlane.f32.xlu0 %v3107_v54  ;;  %4154 = vmax.xlane.f32.xlu1 %v4153_v39  ;;  %v8272_v37 = vpop.f32.mrb[116].mxu0  ;;  %v3113_v23 = vmax.f32 %v8268_v52, %v8270_v24 }
 0x55f   : > { %v8276_v61 = vpop.f32.mrb[117].mxu0 }
 0x560   : > { %10094 = vst [vmem:[#allocation13_spill] sm:$0xff] %v8276_v61  ;;  %v4156_v30 = vmax.f32 %v8272_v37, %v8276_v61  ;;  %v8280_v6 = vpop.f32.mrb[122].mxu1 }
 0x561   : > { %10095 = vst [vmem:[#allocation15_spill] sm:$0xff] %v8280_v6  ;;  %v8282_v33 = vpop.f32.mrb[123].mxu1 }
 0x562   : > { %10096 = vst [vmem:[#allocation17_spill] sm:$0xff] %v8282_v33  ;;  %3111 = vmax.xlane.f32.xlu1 %v3110_v57  ;;  %4157 = vmax.xlane.f32.xlu0 %v4156_v30  ;;  %v8284_v18 = vpop.f32.mrb[118].mxu0  ;;  %v3116_v54 = vmax.f32 %v8280_v6, %v8282_v33 }
 0x563   : > { %10097 = vst [vmem:[#allocation39_spill] sm:$0xff] %v8284_v18  ;;  %v8288_v39 = vpop.f32.mrb[119].mxu0 }
 0x564   : > { %10098 = vst [vmem:[#allocation40_spill] sm:$0xff] %v8288_v39  ;;  %v4159_v24 = vmax.f32 %v8284_v18, %v8288_v39  ;;  %v8292_v52 = vpop.f32.mrb[124].mxu1 }
 0x565   : > { %10099 = vst [vmem:[#allocation42_spill] sm:$0xff] %v8292_v52  ;;  %v8294_v38 = vpop.f32.mrb[125].mxu1 }
 0x566   : > { %10100 = vst [vmem:[#allocation41_spill] sm:$0xff] %v8294_v38  ;;  %3114 = vmax.xlane.f32.xlu0 %v3113_v23  ;;  %4160 = vmax.xlane.f32.xlu1 %v4159_v24  ;;  %v8296_v7 = vpop.f32.mrb[120].mxu0  ;;  %v3119_v57 = vmax.f32 %v8292_v52, %v8294_v38 }
 0x567   : > { %10101 = vst [vmem:[#allocation46_spill] sm:$0xff] %v8296_v7  ;;  %v8300_v30 = vpop.f32.mrb[121].mxu0 }
 0x568   : > { %10102 = vst [vmem:[#allocation45_spill] sm:$0xff] %v8300_v30  ;;  %v4162_v33 = vmax.f32 %v8296_v7, %v8300_v30  ;;  %v8304_v6 = vpop.f32.mrb[126].mxu1 }
 0x569   : > { %10103 = vst [vmem:[#allocation43_spill] sm:$0xff] %v8304_v6  ;;  %v8306_v61 = vpop.f32.mrb[127].mxu1 }
 0x56a   : > { %10104 = vst [vmem:[#allocation44_spill] sm:$0xff] %v8306_v61  ;;  %3117 = vmax.xlane.f32.xlu1 %v3116_v54  ;;  %4163 = vmax.xlane.f32.xlu0 %v4162_v33  ;;  %v8308_v39 = vpop.f32.mrb[122].mxu0  ;;  %v3122_v24 = vmax.f32 %v8304_v6, %v8306_v61 }
 0x56b   : > { %10105 = vst [vmem:[#allocation47_spill] sm:$0xff] %v8308_v39  ;;  %v8312_v23 = vpop.f32.mrb[123].mxu0 }
 0x56c   : > { %10106 = vst [vmem:[#allocation48_spill] sm:$0xff] %v8312_v23  ;;  %v4165_v38 = vmax.f32 %v8308_v39, %v8312_v23  ;;  %v8316_v52 = vpop.f32.mrb[128].mxu1 }
 0x56d   : > { %10107 = vst [vmem:[#allocation50_spill] sm:$0xff] %v8316_v52  ;;  %v8318_v18 = vpop.f32.mrb[129].mxu1 }
 0x56e   : > { %10108 = vst [vmem:[#allocation49_spill] sm:$0xff] %v8318_v18  ;;  %3120 = vmax.xlane.f32.xlu0 %v3119_v57  ;;  %4166 = vmax.xlane.f32.xlu1 %v4165_v38  ;;  %v8320_v30 = vpop.f32.mrb[124].mxu0  ;;  %v3125_v33 = vmax.f32 %v8316_v52, %v8318_v18 }
 0x56f   : > { %10109 = vst [vmem:[#allocation54_spill] sm:$0xff] %v8320_v30  ;;  %v8324_v54 = vpop.f32.mrb[125].mxu0 }
 0x570   : > { %10110 = vst [vmem:[#allocation53_spill] sm:$0xff] %v8324_v54  ;;  %v4168_v61 = vmax.f32 %v8320_v30, %v8324_v54  ;;  %v8328_v6 = vpop.f32.mrb[130].mxu1 }
 0x571   : > { %10111 = vst [vmem:[#allocation51_spill] sm:$0xff] %v8328_v6  ;;  %v8330_v7 = vpop.f32.mrb[131].mxu1 }
 0x572   : > { %10112 = vst [vmem:[#allocation52_spill] sm:$0xff] %v8330_v7  ;;  %3123 = vmax.xlane.f32.xlu1 %v3122_v24  ;;  %4169 = vmax.xlane.f32.xlu0 %v4168_v61  ;;  %v8332_v23 = vpop.f32.mrb[126].mxu0  ;;  %v3128_v38 = vmax.f32 %v8328_v6, %v8330_v7 }
 0x573   : > { %10113 = vst [vmem:[#allocation55_spill] sm:$0xff] %v8332_v23  ;;  %v8336_v57 = vpop.f32.mrb[127].mxu0 }
 0x574   : > { %10114 = vst [vmem:[#allocation56_spill] sm:$0xff] %v8336_v57  ;;  %v4171_v18 = vmax.f32 %v8332_v23, %v8336_v57  ;;  %v8340_v52 = vpop.f32.mrb[132].mxu1 }
 0x575   : > { %10115 = vst [vmem:[#allocation58_spill] sm:$0xff] %v8340_v52  ;;  %v8342_v39 = vpop.f32.mrb[133].mxu1 }
 0x576   : > { %10116 = vst [vmem:[#allocation57_spill] sm:$0xff] %v8342_v39  ;;  %3126 = vmax.xlane.f32.xlu0 %v3125_v33  ;;  %4172 = vmax.xlane.f32.xlu1 %v4171_v18  ;;  %v8344_v54 = vpop.f32.mrb[128].mxu0  ;;  %v3131_v61 = vmax.f32 %v8340_v52, %v8342_v39 }
 0x577   : > { %10117 = vst [vmem:[#allocation62_spill] sm:$0xff] %v8344_v54  ;;  %v8348_v24 = vpop.f32.mrb[129].mxu0 }
 0x578   : > { %10118 = vst [vmem:[#allocation61_spill] sm:$0xff] %v8348_v24  ;;  %v4174_v7 = vmax.f32 %v8344_v54, %v8348_v24  ;;  %v8352_v6 = vpop.f32.mrb[134].mxu1 }
 0x579   : > { %10119 = vst [vmem:[#allocation59_spill] sm:$0xff] %v8352_v6  ;;  %v8354_v30 = vpop.f32.mrb[135].mxu1 }
 0x57a   : > { %10120 = vst [vmem:[#allocation60_spill] sm:$0xff] %v8354_v30  ;;  %3129 = vmax.xlane.f32.xlu1 %v3128_v38  ;;  %4175 = vmax.xlane.f32.xlu0 %v4174_v7  ;;  %v8356_v57 = vpop.f32.mrb[130].mxu0  ;;  %v3134_v18 = vmax.f32 %v8352_v6, %v8354_v30 }
 0x57b   : > { %10121 = vst [vmem:[#allocation63_spill] sm:$0xff] %v8356_v57  ;;  %v8360_v33 = vpop.f32.mrb[131].mxu0 }
 0x57c   : > { %10122 = vst [vmem:[#allocation64_spill] sm:$0xff] %v8360_v33  ;;  %v4177_v39 = vmax.f32 %v8356_v57, %v8360_v33  ;;  %v8364_v52 = vpop.f32.mrb[136].mxu1 }
 0x57d   : > { %10123 = vst [vmem:[#allocation66_spill] sm:$0xff] %v8364_v52  ;;  %v8366_v23 = vpop.f32.mrb[137].mxu1 }
 0x57e   : > { %10124 = vst [vmem:[#allocation65_spill] sm:$0xff] %v8366_v23  ;;  %3132 = vmax.xlane.f32.xlu0 %v3131_v61  ;;  %4178 = vmax.xlane.f32.xlu1 %v4177_v39  ;;  %v8368_v24 = vpop.f32.mrb[132].mxu0  ;;  %v3137_v7 = vmax.f32 %v8364_v52, %v8366_v23 }
 0x57f   : > { %10125 = vst [vmem:[#allocation70_spill] sm:$0xff] %v8368_v24  ;;  %v8372_v38 = vpop.f32.mrb[133].mxu0 }
 0x580   : > { %10126 = vst [vmem:[#allocation69_spill] sm:$0xff] %v8372_v38  ;;  %v4180_v30 = vmax.f32 %v8368_v24, %v8372_v38  ;;  %v8376_v6 = vpop.f32.mrb[138].mxu1 }
 0x581   : > { %10127 = vst [vmem:[#allocation67_spill] sm:$0xff] %v8376_v6  ;;  %v8378_v54 = vpop.f32.mrb[139].mxu1 }
 0x582   : > { %10128 = vst [vmem:[#allocation68_spill] sm:$0xff] %v8378_v54  ;;  %3135 = vmax.xlane.f32.xlu1 %v3134_v18  ;;  %4181 = vmax.xlane.f32.xlu0 %v4180_v30  ;;  %v8380_v33 = vpop.f32.mrb[134].mxu0  ;;  %v3140_v39 = vmax.f32 %v8376_v6, %v8378_v54 }
 0x583   : > { %10129 = vst [vmem:[#allocation71_spill] sm:$0xff] %v8380_v33  ;;  %v8384_v61 = vpop.f32.mrb[135].mxu0 }
 0x584   : > { %10130 = vst [vmem:[#allocation72_spill] sm:$0xff] %v8384_v61  ;;  %v4183_v23 = vmax.f32 %v8380_v33, %v8384_v61  ;;  %v8388_v52 = vpop.f32.mrb[140].mxu1 }
 0x585   : > { %10131 = vst [vmem:[#allocation74_spill] sm:$0xff] %v8388_v52  ;;  %v8390_v57 = vpop.f32.mrb[141].mxu1 }
 0x586   : > { %10132 = vst [vmem:[#allocation73_spill] sm:$0xff] %v8390_v57  ;;  %3138 = vmax.xlane.f32.xlu0 %v3137_v7  ;;  %4184 = vmax.xlane.f32.xlu1 %v4183_v23  ;;  %v8392_v38 = vpop.f32.mrb[136].mxu0  ;;  %v3143_v30 = vmax.f32 %v8388_v52, %v8390_v57 }
 0x587   : > { %10133 = vst [vmem:[#allocation78_spill] sm:$0xff] %v8392_v38  ;;  %v8396_v18 = vpop.f32.mrb[137].mxu0 }
 0x588   : > { %10134 = vst [vmem:[#allocation77_spill] sm:$0xff] %v8396_v18  ;;  %v4186_v54 = vmax.f32 %v8392_v38, %v8396_v18  ;;  %v8400_v6 = vpop.f32.mrb[142].mxu1 }
 0x589   : > { %10135 = vst [vmem:[#allocation12_spill] sm:$0xff] %v8400_v6  ;;  %v8402_v24 = vpop.f32.mrb[143].mxu1 }
 0x58a   : > { %10136 = vst [vmem:[#allocation75_spill] sm:$0xff] %v8402_v24  ;;  %3141 = vmax.xlane.f32.xlu1 %v3140_v39  ;;  %4187 = vmax.xlane.f32.xlu0 %v4186_v54  ;;  %v8404_v61 = vpop.f32.mrb[138].mxu0  ;;  %v3146_v23 = vmax.f32 %v8400_v6, %v8402_v24 }
 0x58b   : > { %10137 = vst [vmem:[#allocation76_spill] sm:$0xff] %v8404_v61  ;;  %v8408_v7 = vpop.f32.mrb[139].mxu0 }
 0x58c   : > { %10138 = vst [vmem:[#allocation79_spill] sm:$0xff] %v8408_v7  ;;  %v4189_v57 = vmax.f32 %v8404_v61, %v8408_v7  ;;  %v8412_v52 = vpop.f32.mrb[144].mxu1 }
 0x58d   : > { %10139 = vst [vmem:[#allocation80_spill] sm:$0xff] %v8412_v52  ;;  %v8414_v33 = vpop.f32.mrb[145].mxu1 }
 0x58e   : > { %10140 = vst [vmem:[#allocation14_spill] sm:$0xff] %v8414_v33  ;;  %3144 = vmax.xlane.f32.xlu0 %v3143_v30  ;;  %4190 = vmax.xlane.f32.xlu1 %v4189_v57  ;;  %v8416_v18 = vpop.f32.mrb[140].mxu0  ;;  %v3149_v54 = vmax.f32 %v8412_v52, %v8414_v33 }
 0x58f   : > { %10141 = vst [vmem:[#allocation82_spill] sm:$0xff] %v8416_v18  ;;  %v8420_v39 = vpop.f32.mrb[141].mxu0 }
 0x590   : > { %10142 = vst [vmem:[#allocation81_spill] sm:$0xff] %v8420_v39  ;;  %v4192_v24 = vmax.f32 %v8416_v18, %v8420_v39  ;;  %v8424_v6 = vpop.f32.mrb[146].mxu1 }
 0x591   : > { %10143 = vst [vmem:[#allocation86_spill] sm:$0xff] %v8424_v6  ;;  %v8426_v38 = vpop.f32.mrb[147].mxu1 }
 0x592   : > { %10144 = vst [vmem:[#allocation85_spill] sm:$0xff] %v8426_v38  ;;  %3147 = vmax.xlane.f32.xlu1 %v3146_v23  ;;  %4193 = vmax.xlane.f32.xlu0 %v4192_v24  ;;  %v8428_v7 = vpop.f32.mrb[142].mxu0  ;;  %v3152_v57 = vmax.f32 %v8424_v6, %v8426_v38 }
 0x593   : > { %10145 = vst [vmem:[#allocation83_spill] sm:$0xff] %v8428_v7  ;;  %v8432_v30 = vpop.f32.mrb[143].mxu0 }
 0x594   : > { %10146 = vst [vmem:[#allocation84_spill] sm:$0xff] %v8432_v30  ;;  %v4195_v33 = vmax.f32 %v8428_v7, %v8432_v30  ;;  %v8436_v52 = vpop.f32.mrb[148].mxu1 }
 0x595   : > { %10147 = vst [vmem:[#allocation16_spill] sm:$0xff] %v8436_v52  ;;  %v8438_v61 = vpop.f32.mrb[149].mxu1 }
 0x596   : > { %10148 = vst [vmem:[#allocation87_spill] sm:$0xff] %v8438_v61  ;;  %3150 = vmax.xlane.f32.xlu0 %v3149_v54  ;;  %4196 = vmax.xlane.f32.xlu1 %v4195_v33  ;;  %v8440_v39 = vpop.f32.mrb[144].mxu0  ;;  %v3155_v24 = vmax.f32 %v8436_v52, %v8438_v61 }
 0x597   : > { %10149 = vst [vmem:[#allocation88_spill] sm:$0xff] %v8440_v39  ;;  %v8444_v23 = vpop.f32.mrb[145].mxu0 }
 0x598   : > { %10150 = vst [vmem:[#allocation90_spill] sm:$0xff] %v8444_v23  ;;  %v4198_v38 = vmax.f32 %v8440_v39, %v8444_v23  ;;  %v8448_v6 = vpop.f32.mrb[150].mxu1 }
 0x599   : > { %10151 = vst [vmem:[#allocation89_spill] sm:$0xff] %v8448_v6  ;;  %v8450_v18 = vpop.f32.mrb[151].mxu1 }
 0x59a   : > { %10152 = vst [vmem:[#allocation18_spill] sm:$0xff] %v8450_v18  ;;  %3153 = vmax.xlane.f32.xlu1 %v3152_v57  ;;  %4199 = vmax.xlane.f32.xlu0 %v4198_v38  ;;  %v8452_v30 = vpop.f32.mrb[146].mxu0  ;;  %v3158_v33 = vmax.f32 %v8448_v6, %v8450_v18 }
 0x59b   : > { %10153 = vst [vmem:[#allocation94_spill] sm:$0xff] %v8452_v30  ;;  %v8456_v54 = vpop.f32.mrb[147].mxu0 }
 0x59c   : > { %10154 = vst [vmem:[#allocation93_spill] sm:$0xff] %v8456_v54  ;;  %v4201_v61 = vmax.f32 %v8452_v30, %v8456_v54  ;;  %v8460_v52 = vpop.f32.mrb[152].mxu1 }
 0x59d   : > { %10155 = vst [vmem:[#allocation91_spill] sm:$0xff] %v8460_v52  ;;  %v8462_v7 = vpop.f32.mrb[153].mxu1 }
 0x59e   : > { %10156 = vst [vmem:[#allocation92_spill] sm:$0xff] %v8462_v7  ;;  %3156 = vmax.xlane.f32.xlu0 %v3155_v24  ;;  %4202 = vmax.xlane.f32.xlu1 %v4201_v61  ;;  %v8464_v23 = vpop.f32.mrb[148].mxu0  ;;  %v3161_v38 = vmax.f32 %v8460_v52, %v8462_v7 }
 0x59f   : > { %10157 = vst [vmem:[#allocation95_spill] sm:$0xff] %v8464_v23  ;;  %v8468_v57 = vpop.f32.mrb[149].mxu0 }
 0x5a0   : > { %10158 = vst [vmem:[#allocation96_spill] sm:$0xff] %v8468_v57  ;;  %v4204_v18 = vmax.f32 %v8464_v23, %v8468_v57  ;;  %v8472_v6 = vpop.f32.mrb[154].mxu1 }
 0x5a1   : > { %10159 = vst [vmem:[#allocation98_spill] sm:$0xff] %v8472_v6  ;;  %v8474_v39 = vpop.f32.mrb[155].mxu1 }
 0x5a2   : > { %10160 = vst [vmem:[#allocation97_spill] sm:$0xff] %v8474_v39  ;;  %3159 = vmax.xlane.f32.xlu1 %v3158_v33  ;;  %4205 = vmax.xlane.f32.xlu0 %v4204_v18  ;;  %v8476_v54 = vpop.f32.mrb[150].mxu0  ;;  %v3164_v61 = vmax.f32 %v8472_v6, %v8474_v39 }
 0x5a3   : > { %10161 = vst [vmem:[#allocation102_spill] sm:$0xff] %v8476_v54  ;;  %v8480_v24 = vpop.f32.mrb[151].mxu0 }
 0x5a4   : > { %10162 = vst [vmem:[#allocation101_spill] sm:$0xff] %v8480_v24  ;;  %v4207_v7 = vmax.f32 %v8476_v54, %v8480_v24 }
 0x5a6   : > { %3162 = vmax.xlane.f32.xlu0 %v3161_v38  ;;  %4208 = vmax.xlane.f32.xlu1 %v4207_v7  ;;  %v8484_v52 = vpop.f32.mrb[152].mxu0 }
 0x5a7   : > { %10163 = vst [vmem:[#allocation99_spill] sm:$0xff] %v8484_v52  ;;  %v8486_v57 = vpop.f32.mrb[153].mxu0 }
 0x5a8   : > { %10164 = vst [vmem:[#allocation100_spill] sm:$0xff] %v8486_v57  ;;  %v4210_v33 = vmax.f32 %v8484_v52, %v8486_v57 }
 0x5aa   : > { %3165 = vmax.xlane.f32.xlu1 %v3164_v61  ;;  %4211 = vmax.xlane.f32.xlu0 %v4210_v33  ;;  %v8490_v18 = vpop.f32.mrb[154].mxu0 }
 0x5ab   : > { %10165 = vst [vmem:[#allocation103_spill] sm:$0xff] %v8490_v18  ;;  %v8492_v23 = vpop.f32.mrb[155].mxu0 }
 0x5ac   : > { %10166 = vst [vmem:[#allocation104_spill] sm:$0xff] %v8492_v23  ;;  %v4213_v39 = vmax.f32 %v8490_v18, %v8492_v23 }
 0x5ae   : > { %4214 = vmax.xlane.f32.xlu1 %v4213_v39 }
 0x5b5   : > { %v3073_v6 = vpop.xlane.xlu0 %3072 }
 0x5b6   : > { %v3167_v7 = vsub.f32 %v8112_v11, %v3073_v6  ;;  %v3168_v38 = vsub.f32 %v8114_v29, %v3073_v6 }
 0x5b8   : > { %v3231_v24 = vmul.f32 1.442695, %v3167_v7  ;;  %v3233_v54 = vmul.f32 1.442695, %v3168_v38 }
 0x5b9   : > { %v3076_v30 = vpop.xlane.xlu1 %3075 }
 0x5ba   : > { %5768 = vpow2.f32 %v3231_v24  ;;  %v3169_v61 = vsub.f32 %v8118_v17, %v3076_v30  ;;  %v3170_v33 = vsub.f32 %v8120_v56, %v3076_v30 }
 0x5bb   : > { %5770 = vpow2.f32 %v3233_v54 }
 0x5bc   : > { %v3235_v57 = vmul.f32 1.442695, %v3169_v61  ;;  %v3237_v52 = vmul.f32 1.442695, %v3170_v33 }
 0x5be   : > { %5772 = vpow2.f32 %v3235_v57 }
 0x5bf   : > { %5774 = vpow2.f32 %v3237_v52  ;;  %v4122_v23 = vpop.xlane.xlu0 %4121 }
 0x5c0   : > { %v4216_v39 = vsub.f32 %v8128_v5, %v4122_v23  ;;  %v4217_v11 = vsub.f32 %v8132_v16, %v4122_v23 }
 0x5c2   : > { %v4280_v18 = vmul.f32 1.442695, %v4216_v39  ;;  %v4282_v29 = vmul.f32 1.442695, %v4217_v11 }
 0x5c3   : > { %v3079_v6 = vpop.xlane.xlu0 %3078  ;;  %v4125_v7 = vpop.xlane.xlu1 %4124 }
 0x5c4   : > { %v8502_v38 = vpop.eup %5768  ;;  %5776 = vpow2.f32 %v4280_v18  ;;  %v3171_v17 = vsub.f32 %v8124_v0, %v3079_v6  ;;  %v3172_v56 = vsub.f32 %v8126_v13, %v3079_v6  ;;  %v4218_v30 = vsub.f32 %v8140_v10, %v4125_v7 }
 0x5c5   : > { %v8507_v54 = vpop.eup %5770  ;;  %5778 = vpow2.f32 %v4282_v29  ;;  %v4219_v5 = vsub.f32 %v8144_v43, %v4125_v7 }
 0x5c6   : > { %v3239_v52 = vmul.f32 1.442695, %v3171_v17  ;;  %v3241_v16 = vmul.f32 1.442695, %v3172_v56  ;;  %v4284_v23 = vmul.f32 1.442695, %v4218_v30  ;;  %v3359_v57 = vadd.f32 %v8507_v54, %v8502_v38 }
 0x5c7   : > { %v4286_v24 = vmul.f32 1.442695, %v4219_v5  ;;  %v4128_v61 = vpop.xlane.xlu0 %4127  ;;  %v3082_v18 = vpop.xlane.xlu1 %3081 }
 0x5c8   : > { %v8512_v33 = vpop.eup %5772  ;;  %5780 = vpow2.f32 %v3239_v52  ;;  %v4220_v0 = vsub.f32 %v8152_v44, %v4128_v61  ;;  %v4221_v13 = vsub.f32 %v8156_v22, %v4128_v61  ;;  %3360 = vadd.xlane.f32.xlu0 %v3359_v57  ;;  %v3173_v10 = vsub.f32 %v8136_v41, %v3082_v18 }
 0x5c9   : > { %v8517_v43 = vpop.eup %5774  ;;  %5782 = vpow2.f32 %v3241_v16  ;;  %v3174_v39 = vsub.f32 %v8138_v49, %v3082_v18 }
 0x5ca   : > { %5784 = vpow2.f32 %v4284_v23  ;;  %v4288_v11 = vmul.f32 1.442695, %v4220_v0  ;;  %v4290_v29 = vmul.f32 1.442695, %v4221_v13  ;;  %v3243_v6 = vmul.f32 1.442695, %v3173_v10 }
 0x5cb   : > { %5786 = vpow2.f32 %v4286_v24  ;;  %v3245_v7 = vmul.f32 1.442695, %v3174_v39  ;;  %v3085_v17 = vpop.xlane.xlu0 %3084  ;;  %v3362_v44 = vadd.f32 %v8517_v43, %v8512_v33  ;;  %v4131_v56 = vpop.xlane.xlu1 %4130 }
 0x5cc   : > { %5788 = vpow2.f32 %v4288_v11  ;;  %v3175_v22 = vsub.f32 %v8148_v2, %v3085_v17  ;;  %v3176_v41 = vsub.f32 %v8150_v20, %v3085_v17  ;;  %v4222_v30 = vsub.f32 %v8164_v63, %v4131_v56 }
 0x5cd   : > { %5790 = vpow2.f32 %v4290_v29  ;;  %3363 = vadd.xlane.f32.xlu1 %v3362_v44  ;;  %v4223_v49 = vsub.f32 %v8168_v26, %v4131_v56 }
 0x5ce   : > { %v8526_v5 = vpop.eup %5776  ;;  %5792 = vpow2.f32 %v3243_v6  ;;  %v3247_v52 = vmul.f32 1.442695, %v3175_v22  ;;  %v3249_v16 = vmul.f32 1.442695, %v3176_v41  ;;  %v4292_v23 = vmul.f32 1.442695, %v4222_v30 }
 0x5cf   : > { %v8528_v57 = vpop.eup %5778  ;;  %5794 = vpow2.f32 %v3245_v7  ;;  %v4294_v24 = vmul.f32 1.442695, %v4223_v49  ;;  %v4134_v61 = vpop.xlane.xlu0 %4133 }
 0x5d0   : > { %v3088_v2 = vpop.xlane.xlu1 %3087  ;;  %5796 = vpow2.f32 %v3247_v52  ;;  %v4224_v20 = vsub.f32 %v8176_v9, %v4134_v61  ;;  %v4225_v63 = vsub.f32 %v8180_v60, %v4134_v61  ;;  %v4408_v0 = vadd.f32 %v8528_v57, %v8526_v5 }
 0x5d1   : > { %v3177_v18 = vsub.f32 %v8160_v31, %v3088_v2  ;;  %5798 = vpow2.f32 %v3249_v16  ;;  %v3178_v26 = vsub.f32 %v8162_v59, %v3088_v2 }
 0x5d2   : > { %v8536_v13 = vpop.eup %5780  ;;  %5800 = vpow2.f32 %v4292_v23  ;;  %v4296_v10 = vmul.f32 1.442695, %v4224_v20  ;;  %v4298_v39 = vmul.f32 1.442695, %v4225_v63  ;;  %4409 = vadd.xlane.f32.xlu0 %v4408_v0 }
 0x5d3   : > { %v3251_v11 = vmul.f32 1.442695, %v3177_v18  ;;  %v8538_v29 = vpop.eup %5782  ;;  %5802 = vpow2.f32 %v4294_v24  ;;  %v3253_v9 = vmul.f32 1.442695, %v3178_v26  ;;  %v3091_v60 = vpop.xlane.xlu0 %3090 }
 0x5d4   : > { %v4137_v6 = vpop.xlane.xlu1 %4136  ;;  %v8540_v31 = vpop.eup %5784  ;;  %5804 = vpow2.f32 %v4296_v10  ;;  %v3179_v59 = vsub.f32 %v8172_v8, %v3091_v60  ;;  %v3180_v7 = vsub.f32 %v8174_v40, %v3091_v60  ;;  %v3365_v22 = vadd.f32 %v8538_v29, %v8536_v13 }
 0x5d5   : > { %v4226_v17 = vsub.f32 %v8188_v28, %v4137_v6  ;;  %v8545_v44 = vpop.eup %5786  ;;  %5806 = vpow2.f32 %v4298_v39  ;;  %v4227_v56 = vsub.f32 %v8192_v32, %v4137_v6 }
 0x5d6   : > { %v8550_v41 = vpop.eup %5788  ;;  %5808 = vpow2.f32 %v3251_v11  ;;  %v3255_v30 = vmul.f32 1.442695, %v3179_v59  ;;  %v3257_v49 = vmul.f32 1.442695, %v3180_v7  ;;  %3366 = vadd.xlane.f32.xlu0 %v3365_v22  ;;  %v4411_v40 = vadd.f32 %v8545_v44, %v8540_v31 }
 0x5d7   : > { %v4300_v52 = vmul.f32 1.442695, %v4226_v17  ;;  %v8552_v16 = vpop.eup %5790  ;;  %5810 = vpow2.f32 %v3253_v9  ;;  %v4302_v8 = vmul.f32 1.442695, %v4227_v56  ;;  %v4140_v28 = vpop.xlane.xlu0 %4139 }
 0x5d8   : > { %v3094_v23 = vpop.xlane.xlu1 %3093  ;;  %v8556_v32 = vpop.eup %5792  ;;  %5812 = vpow2.f32 %v3255_v30  ;;  %v4228_v24 = vsub.f32 %v8200_v58, %v4140_v28  ;;  %v4229_v61 = vsub.f32 %v8204_v51, %v4140_v28  ;;  %4412 = vadd.xlane.f32.xlu1 %v4411_v40  ;;  %v4414_v18 = vadd.f32 %v8552_v16, %v8550_v41 }
 0x5d9   : > { %v3181_v2 = vsub.f32 %v8184_v47, %v3094_v23  ;;  %v8561_v20 = vpop.eup %5794  ;;  %5814 = vpow2.f32 %v3257_v49  ;;  %v3182_v63 = vsub.f32 %v8186_v1, %v3094_v23 }
 0x5da   : > { %v8566_v26 = vpop.eup %5796  ;;  %5816 = vpow2.f32 %v4300_v52  ;;  %v4304_v0 = vmul.f32 1.442695, %v4228_v24  ;;  %v4306_v10 = vmul.f32 1.442695, %v4229_v61  ;;  %4415 = vadd.xlane.f32.xlu0 %v4414_v18  ;;  %v3368_v47 = vadd.f32 %v8561_v20, %v8556_v32 }
 0x5db   : > { %v3259_v39 = vmul.f32 1.442695, %v3181_v2  ;;  %v8568_v58 = vpop.eup %5798  ;;  %5818 = vpow2.f32 %v4302_v8  ;;  %v3261_v51 = vmul.f32 1.442695, %v3182_v63  ;;  %v3097_v11 = vpop.xlane.xlu0 %3096 }
 0x5dc   : > { %v4143_v9 = vpop.xlane.xlu1 %4142  ;;  %v8572_v1 = vpop.eup %5800  ;;  %5820 = vpow2.f32 %v4304_v0  ;;  %v3183_v60 = vsub.f32 %v8196_v53, %v3097_v11  ;;  %v3184_v6 = vsub.f32 %v8198_v42, %v3097_v11  ;;  %3369 = vadd.xlane.f32.xlu1 %v3368_v47  ;;  %v3371_v56 = vadd.f32 %v8568_v58, %v8566_v26 }
 0x5dd   : > { %v4230_v59 = vsub.f32 %v8212_v15, %v4143_v9  ;;  %v8577_v7 = vpop.eup %5802  ;;  %5822 = vpow2.f32 %v4306_v10  ;;  %v4231_v17 = vsub.f32 %v8216_v34, %v4143_v9 }
 0x5de   : > { %v8582_v22 = vpop.eup %5804  ;;  %5824 = vpow2.f32 %v3259_v39  ;;  %v3263_v30 = vmul.f32 1.442695, %v3183_v60  ;;  %v3265_v49 = vmul.f32 1.442695, %v3184_v6  ;;  %3372 = vadd.xlane.f32.xlu0 %v3371_v56  ;;  %v4417_v15 = vadd.f32 %v8577_v7, %v8572_v1 }
 0x5df   : > { %v4308_v52 = vmul.f32 1.442695, %v4230_v59  ;;  %v8584_v53 = vpop.eup %5806  ;;  %5826 = vpow2.f32 %v3261_v51  ;;  %v4310_v42 = vmul.f32 1.442695, %v4231_v17  ;;  %v4146_v8 = vpop.xlane.xlu0 %4145 }
 0x5e0   : > { %v3100_v40 = vpop.xlane.xlu1 %3099  ;;  %v8588_v34 = vpop.eup %5808  ;;  %5828 = vpow2.f32 %v3263_v30  ;;  %v4232_v28 = vsub.f32 %v8224_v19, %v4146_v8  ;;  %v4233_v23 = vsub.f32 %v8228_v21, %v4146_v8  ;;  %4418 = vadd.xlane.f32.xlu1 %v4417_v15  ;;  %v4420_v63 = vadd.f32 %v8584_v53, %v8582_v22 }
 0x5e1   : > { %v3185_v24 = vsub.f32 %v8208_v55, %v3100_v40  ;;  %v8593_v61 = vpop.eup %5810  ;;  %5830 = vpow2.f32 %v3265_v49  ;;  %v3186_v2 = vsub.f32 %v8210_v25, %v3100_v40 }
 0x5e2   : > { %v8598_v18 = vpop.eup %5812  ;;  %5832 = vpow2.f32 %v4308_v52  ;;  %v4312_v0 = vmul.f32 1.442695, %v4232_v28  ;;  %v4314_v10 = vmul.f32 1.442695, %v4233_v23  ;;  %4421 = vadd.xlane.f32.xlu0 %v4420_v63  ;;  %v3374_v55 = vadd.f32 %v8593_v61, %v8588_v34 }
 0x5e3   : > { %v3267_v39 = vmul.f32 1.442695, %v3185_v24  ;;  %v8600_v19 = vpop.eup %5814  ;;  %5834 = vpow2.f32 %v4310_v42  ;;  %v3269_v21 = vmul.f32 1.442695, %v3186_v2  ;;  %v3103_v51 = vpop.xlane.xlu0 %3102 }
 0x5e4   : > { %v4149_v47 = vpop.xlane.xlu1 %4148  ;;  %v8604_v25 = vpop.eup %5816  ;;  %5836 = vpow2.f32 %v4312_v0  ;;  %v3187_v11 = vsub.f32 %v8220_v50, %v3103_v51  ;;  %v3188_v9 = vsub.f32 %v8222_v48, %v3103_v51  ;;  %3375 = vadd.xlane.f32.xlu1 %v3374_v55  ;;  %v3377_v17 = vadd.f32 %v8600_v19, %v8598_v18 }
 0x5e5   : > { %v4234_v60 = vsub.f32 %v8236_v3, %v4149_v47  ;;  %v8609_v6 = vpop.eup %5818  ;;  %5838 = vpow2.f32 %v4314_v10  ;;  %v4235_v59 = vsub.f32 %v8240_v35, %v4149_v47 }
 0x5e6   : > { %v8614_v56 = vpop.eup %5820  ;;  %5840 = vpow2.f32 %v3267_v39  ;;  %v3271_v30 = vmul.f32 1.442695, %v3187_v11  ;;  %v3273_v49 = vmul.f32 1.442695, %v3188_v9  ;;  %3378 = vadd.xlane.f32.xlu0 %v3377_v17  ;;  %v4423_v3 = vadd.f32 %v8609_v6, %v8604_v25 }
 0x5e7   : > { %v4316_v52 = vmul.f32 1.442695, %v4234_v60  ;;  %v8616_v50 = vpop.eup %5822  ;;  %5842 = vpow2.f32 %v3269_v21  ;;  %v4318_v48 = vmul.f32 1.442695, %v4235_v59  ;;  %v4152_v42 = vpop.xlane.xlu0 %4151 }
 0x5e8   : > { %v3106_v15 = vpop.xlane.xlu1 %3105  ;;  %v8620_v35 = vpop.eup %5824  ;;  %5844 = vpow2.f32 %v3271_v30  ;;  %v4236_v8 = vsub.f32 %v8248_v14, %v4152_v42  ;;  %v4237_v40 = vsub.f32 %v8252_v27, %v4152_v42  ;;  %4424 = vadd.xlane.f32.xlu1 %v4423_v3  ;;  %v4426_v2 = vadd.f32 %v8616_v50, %v8614_v56 }
 0x5e9   : > { %v3189_v28 = vsub.f32 %v8232_v46, %v3106_v15  ;;  %v8625_v23 = vpop.eup %5826  ;;  %5846 = vpow2.f32 %v3273_v49  ;;  %v3190_v24 = vsub.f32 %v8234_v12, %v3106_v15  ;;  %v10167_v15 = vld [vmem:[#allocation13_spill] sm:$0xff] }
 0x5ea   : > { %v8630_v63 = vpop.eup %5828  ;;  %5848 = vpow2.f32 %v4316_v52  ;;  %v4320_v0 = vmul.f32 1.442695, %v4236_v8  ;;  %v4322_v10 = vmul.f32 1.442695, %v4237_v40  ;;  %4427 = vadd.xlane.f32.xlu0 %v4426_v2  ;;  %v3380_v46 = vadd.f32 %v8625_v23, %v8620_v35  ;;  %v10168_v40 = vld [vmem:[#allocation113_spill] sm:$0xff]  ;;  %v10169_v2 = vld [vmem:[#allocation114_spill] sm:$0xff] }
 0x5eb   : > { %v3275_v39 = vmul.f32 1.442695, %v3189_v28  ;;  %v8632_v14 = vpop.eup %5830  ;;  %5850 = vpow2.f32 %v4318_v48  ;;  %v3277_v27 = vmul.f32 1.442695, %v3190_v24  ;;  %v3109_v21 = vpop.xlane.xlu0 %3108 }
 0x5ec   : > { %v4155_v55 = vpop.xlane.xlu1 %4154  ;;  %v8636_v12 = vpop.eup %5832  ;;  %5852 = vpow2.f32 %v4320_v0  ;;  %v3191_v51 = vsub.f32 %v8244_v62, %v3109_v21  ;;  %v3192_v47 = vsub.f32 %v8246_v45, %v3109_v21  ;;  %3381 = vadd.xlane.f32.xlu1 %v3380_v46  ;;  %v3383_v59 = vadd.f32 %v8632_v14, %v8630_v63 }
 0x5ed   : > { %v4238_v11 = vsub.f32 %v8260_v36, %v4155_v55  ;;  %v8641_v9 = vpop.eup %5834  ;;  %5854 = vpow2.f32 %v4322_v10  ;;  %v4239_v60 = vsub.f32 %v8264_v4, %v4155_v55 }
 0x5ee   : > { %v8646_v17 = vpop.eup %5836  ;;  %5856 = vpow2.f32 %v3275_v39  ;;  %v3279_v30 = vmul.f32 1.442695, %v3191_v51  ;;  %v3281_v49 = vmul.f32 1.442695, %v3192_v47  ;;  %3384 = vadd.xlane.f32.xlu0 %v3383_v59  ;;  %v4429_v36 = vadd.f32 %v8641_v9, %v8636_v12  ;;  %v10171_v59 = vld [vmem:[#allocation115_spill] sm:$0xff] }
 0x5ef   : > { %v4324_v52 = vmul.f32 1.442695, %v4238_v11  ;;  %v8648_v62 = vpop.eup %5838  ;;  %5858 = vpow2.f32 %v3277_v27  ;;  %v4326_v45 = vmul.f32 1.442695, %v4239_v60  ;;  %v4158_v48 = vpop.xlane.xlu0 %4157 }
 0x5f0   : > { %v3112_v3 = vpop.xlane.xlu1 %3111  ;;  %v8652_v4 = vpop.eup %5840  ;;  %5860 = vpow2.f32 %v3279_v30  ;;  %v4240_v42 = vsub.f32 %v8272_v37, %v4158_v48  ;;  %v4241_v8 = vsub.f32 %v10167_v15, %v4158_v48  ;;  %4430 = vadd.xlane.f32.xlu1 %v4429_v36  ;;  %v4432_v10 = vadd.f32 %v8648_v62, %v8646_v17  ;;  %v10173_v36 = vld [vmem:[#allocation39_spill] sm:$0xff] }
 0x5f1   : > { %v3193_v28 = vsub.f32 %v10168_v40, %v3112_v3  ;;  %v8657_v24 = vpop.eup %5842  ;;  %5862 = vpow2.f32 %v3281_v49  ;;  %v3194_v0 = vsub.f32 %v10169_v2, %v3112_v3  ;;  %v10172_v49 = vld [vmem:[#allocation11_spill] sm:$0xff] }
 0x5f2   : > { %v8662_v39 = vpop.eup %5844  ;;  %5864 = vpow2.f32 %v4324_v52  ;;  %v4328_v27 = vmul.f32 1.442695, %v4240_v42  ;;  %v4330_v46 = vmul.f32 1.442695, %v4241_v8  ;;  %4433 = vadd.xlane.f32.xlu0 %v4432_v10  ;;  %v3386_v51 = vadd.f32 %v8657_v24, %v8652_v4 }
 0x5f3   : > { %v3283_v21 = vmul.f32 1.442695, %v3193_v28  ;;  %v8664_v37 = vpop.eup %5846  ;;  %5866 = vpow2.f32 %v4326_v45  ;;  %v3285_v55 = vmul.f32 1.442695, %v3194_v0  ;;  %v3115_v47 = vpop.xlane.xlu0 %3114  ;;  %v10174_v45 = vld [vmem:[#allocation40_spill] sm:$0xff] }
 0x5f4   : > { %v4161_v11 = vpop.xlane.xlu1 %4160  ;;  %v8668_v60 = vpop.eup %5848  ;;  %5868 = vpow2.f32 %v4328_v27  ;;  %v3195_v30 = vsub.f32 %v10171_v59, %v3115_v47  ;;  %v3196_v52 = vsub.f32 %v10172_v49, %v3115_v47  ;;  %3387 = vadd.xlane.f32.xlu1 %v3386_v51  ;;  %v3389_v15 = vadd.f32 %v8664_v37, %v8662_v39  ;;  %v10179_v49 = vld [vmem:[#allocation45_spill] sm:$0xff] }
 0x5f5   : > { %10170 = vst [vmem:[#allocation106_spill] sm:$0xff] %v8668_v60  ;;  %v4242_v48 = vsub.f32 %v10173_v36, %v4161_v11  ;;  %v8673_v3 = vpop.eup %5850  ;;  %5870 = vpow2.f32 %v4330_v46  ;;  %v4243_v42 = vsub.f32 %v10174_v45, %v4161_v11  ;;  %v10178_v11 = vld [vmem:[#allocation46_spill] sm:$0xff] }
 0x5f6   : > { %v8678_v8 = vpop.eup %5852  ;;  %5872 = vpow2.f32 %v3283_v21  ;;  %v3287_v40 = vmul.f32 1.442695, %v3195_v30  ;;  %v3289_v28 = vmul.f32 1.442695, %v3196_v52  ;;  %3390 = vadd.xlane.f32.xlu0 %v3389_v15  ;;  %v4435_v27 = vadd.f32 %v8673_v3, %v8668_v60  ;;  %v10180_v30 = vld [vmem:[#allocation15_spill] sm:$0xff] }
 0x5f7   : > { %10175 = vst [vmem:[#allocation105_spill] sm:$0xff] %v8678_v8  ;;  %v4332_v2 = vmul.f32 1.442695, %v4242_v48  ;;  %v8680_v0 = vpop.eup %5854  ;;  %5874 = vpow2.f32 %v3285_v55  ;;  %v4334_v10 = vmul.f32 1.442695, %v4243_v42  ;;  %v4164_v46 = vpop.xlane.xlu0 %4163  ;;  %v10182_v55 = vld [vmem:[#allocation17_spill] sm:$0xff] }
 0x5f8   : > { %10176 = vst [vmem:[#allocation107_spill] sm:$0xff] %v8680_v0  ;;  %v3118_v51 = vpop.xlane.xlu1 %3117  ;;  %v8684_v47 = vpop.eup %5856  ;;  %5876 = vpow2.f32 %v3287_v40  ;;  %v4244_v59 = vsub.f32 %v10178_v11, %v4164_v46  ;;  %v4245_v21 = vsub.f32 %v10179_v49, %v4164_v46  ;;  %4436 = vadd.xlane.f32.xlu1 %v4435_v27  ;;  %v4438_v45 = vadd.f32 %v8680_v0, %v8678_v8  ;;  %v10187_v8 = vld [vmem:[#allocation41_spill] sm:$0xff] }
 0x5f9   : > { %10177 = vst [vmem:[#allocation108_spill] sm:$0xff] %v8684_v47  ;;  %v3197_v52 = vsub.f32 %v10180_v30, %v3118_v51  ;;  %v8689_v36 = vpop.eup %5858  ;;  %5878 = vpow2.f32 %v3289_v28  ;;  %v3198_v48 = vsub.f32 %v10182_v55, %v3118_v51  ;;  %v10186_v30 = vld [vmem:[#allocation42_spill] sm:$0xff] }
 0x5fa   : > { %10181 = vst [vmem:[#allocation112_spill] sm:$0xff] %v8689_v36  ;;  %v8694_v42 = vpop.eup %5860  ;;  %5880 = vpow2.f32 %v4332_v2  ;;  %v4336_v15 = vmul.f32 1.442695, %v4244_v59  ;;  %v4338_v40 = vmul.f32 1.442695, %v4245_v21  ;;  %4439 = vadd.xlane.f32.xlu0 %v4438_v45  ;;  %v3392_v28 = vadd.f32 %v8689_v36, %v8684_v47  ;;  %v10188_v59 = vld [vmem:[#allocation47_spill] sm:$0xff] }
 0x5fb   : > { %10183 = vst [vmem:[#allocation110_spill] sm:$0xff] %v8694_v42  ;;  %v3291_v60 = vmul.f32 1.442695, %v3197_v52  ;;  %v8696_v11 = vpop.eup %5862  ;;  %5882 = vpow2.f32 %v4334_v10  ;;  %v3293_v46 = vmul.f32 1.442695, %v3198_v48  ;;  %v3121_v27 = vpop.xlane.xlu0 %3120  ;;  %v10190_v10 = vld [vmem:[#allocation48_spill] sm:$0xff] }
 0x5fc   : > { %10184 = vst [vmem:[#allocation109_spill] sm:$0xff] %v8696_v11  ;;  %v4167_v49 = vpop.xlane.xlu1 %4166  ;;  %v8700_v51 = vpop.eup %5864  ;;  %5884 = vpow2.f32 %v4336_v15  ;;  %v3199_v55 = vsub.f32 %v10186_v30, %v3121_v27  ;;  %v3200_v2 = vsub.f32 %v10187_v8, %v3121_v27  ;;  %3393 = vadd.xlane.f32.xlu1 %v3392_v28  ;;  %v3395_v45 = vadd.f32 %v8696_v11, %v8694_v42  ;;  %v10195_v42 = vld [vmem:[#allocation53_spill] sm:$0xff] }
 0x5fd   : > { %10185 = vst [vmem:[#allocation111_spill] sm:$0xff] %v8700_v51  ;;  %v4246_v21 = vsub.f32 %v10188_v59, %v4167_v49  ;;  %v8705_v52 = vpop.eup %5866  ;;  %5886 = vpow2.f32 %v4338_v40  ;;  %v4247_v48 = vsub.f32 %v10190_v10, %v4167_v49  ;;  %v10194_v59 = vld [vmem:[#allocation54_spill] sm:$0xff] }
 0x5fe   : > { %10189 = vst [vmem:[#allocation22_spill] sm:$0xff] %v8705_v52  ;;  %v8710_v47 = vpop.eup %5868  ;;  %5888 = vpow2.f32 %v3291_v60  ;;  %v3295_v36 = vmul.f32 1.442695, %v3199_v55  ;;  %v3297_v15 = vmul.f32 1.442695, %v3200_v2  ;;  %3396 = vadd.xlane.f32.xlu0 %v3395_v45  ;;  %v4441_v40 = vadd.f32 %v8705_v52, %v8700_v51  ;;  %v10196_v55 = vld [vmem:[#allocation43_spill] sm:$0xff] }
 0x5ff   : > { %10191 = vst [vmem:[#allocation20_spill] sm:$0xff] %v8710_v47  ;;  %v4340_v0 = vmul.f32 1.442695, %v4246_v21  ;;  %v8712_v30 = vpop.eup %5870  ;;  %5890 = vpow2.f32 %v3293_v46  ;;  %v4342_v8 = vmul.f32 1.442695, %v4247_v48  ;;  %v4170_v28 = vpop.xlane.xlu0 %4169  ;;  %v10198_v46 = vld [vmem:[#allocation44_spill] sm:$0xff] }
 0x600   : > { %10192 = vst [vmem:[#allocation26_spill] sm:$0xff] %v8712_v30  ;;  %v3124_v27 = vpop.xlane.xlu1 %3123  ;;  %v8716_v49 = vpop.eup %5872  ;;  %5892 = vpow2.f32 %v3295_v36  ;;  %v4248_v10 = vsub.f32 %v10194_v59, %v4170_v28  ;;  %v4249_v60 = vsub.f32 %v10195_v42, %v4170_v28  ;;  %4442 = vadd.xlane.f32.xlu1 %v4441_v40  ;;  %v4444_v45 = vadd.f32 %v8712_v30, %v8710_v47  ;;  %v10203_v47 = vld [vmem:[#allocation49_spill] sm:$0xff] }
 0x601   : > { %10193 = vst [vmem:[#allocation24_spill] sm:$0xff] %v8716_v49  ;;  %v3201_v2 = vsub.f32 %v10196_v55, %v3124_v27  ;;  %v8721_v21 = vpop.eup %5874  ;;  %5894 = vpow2.f32 %v3297_v15  ;;  %v3202_v48 = vsub.f32 %v10198_v46, %v3124_v27  ;;  %v10202_v55 = vld [vmem:[#allocation50_spill] sm:$0xff] }
 0x602   : > { %10197 = vst [vmem:[#allocation28_spill] sm:$0xff] %v8721_v21  ;;  %v8726_v51 = vpop.eup %5876  ;;  %5896 = vpow2.f32 %v4340_v0  ;;  %v4344_v52 = vmul.f32 1.442695, %v4248_v10  ;;  %v4346_v36 = vmul.f32 1.442695, %v4249_v60  ;;  %4445 = vadd.xlane.f32.xlu0 %v4444_v45  ;;  %v3398_v15 = vadd.f32 %v8721_v21, %v8716_v49  ;;  %v10204_v10 = vld [vmem:[#allocation55_spill] sm:$0xff] }
 0x603   : > { %10199 = vst [vmem:[#allocation27_spill] sm:$0xff] %v8726_v51  ;;  %v3299_v11 = vmul.f32 1.442695, %v3201_v2  ;;  %v8728_v59 = vpop.eup %5878  ;;  %5898 = vpow2.f32 %v4342_v8  ;;  %v3301_v42 = vmul.f32 1.442695, %v3202_v48  ;;  %v3127_v40 = vpop.xlane.xlu0 %3126  ;;  %v10206_v8 = vld [vmem:[#allocation56_spill] sm:$0xff] }
 0x604   : > { %10200 = vst [vmem:[#allocation21_spill] sm:$0xff] %v8728_v59  ;;  %v4173_v28 = vpop.xlane.xlu1 %4172  ;;  %v8732_v27 = vpop.eup %5880  ;;  %5900 = vpow2.f32 %v4344_v52  ;;  %v3203_v46 = vsub.f32 %v10202_v55, %v3127_v40  ;;  %v3204_v0 = vsub.f32 %v10203_v47, %v3127_v40  ;;  %3399 = vadd.xlane.f32.xlu1 %v3398_v15  ;;  %v3401_v45 = vadd.f32 %v8728_v59, %v8726_v51  ;;  %v10211_v51 = vld [vmem:[#allocation61_spill] sm:$0xff] }
 0x605   : > { %10201 = vst [vmem:[#allocation19_spill] sm:$0xff] %v8732_v27  ;;  %v4250_v60 = vsub.f32 %v10204_v10, %v4173_v28  ;;  %v8737_v2 = vpop.eup %5882  ;;  %5902 = vpow2.f32 %v4346_v36  ;;  %v4251_v48 = vsub.f32 %v10206_v8, %v4173_v28  ;;  %v10210_v10 = vld [vmem:[#allocation62_spill] sm:$0xff] }
 0x606   : > { %10205 = vst [vmem:[#allocation30_spill] sm:$0xff] %v8737_v2  ;;  %v8742_v49 = vpop.eup %5884  ;;  %5904 = vpow2.f32 %v3299_v11  ;;  %v3303_v21 = vmul.f32 1.442695, %v3203_v46  ;;  %v3305_v52 = vmul.f32 1.442695, %v3204_v0  ;;  %3402 = vadd.xlane.f32.xlu0 %v3401_v45  ;;  %v4447_v36 = vadd.f32 %v8737_v2, %v8732_v27  ;;  %v10212_v46 = vld [vmem:[#allocation51_spill] sm:$0xff] }
 0x607   : > { %10207 = vst [vmem:[#allocation29_spill] sm:$0xff] %v8742_v49  ;;  %v4348_v30 = vmul.f32 1.442695, %v4250_v60  ;;  %v8744_v55 = vpop.eup %5886  ;;  %5906 = vpow2.f32 %v3301_v42  ;;  %v4350_v47 = vmul.f32 1.442695, %v4251_v48  ;;  %v4176_v15 = vpop.xlane.xlu0 %4175  ;;  %v10214_v42 = vld [vmem:[#allocation52_spill] sm:$0xff] }
 0x608   : > { %10208 = vst [vmem:[#allocation25_spill] sm:$0xff] %v8744_v55  ;;  %v3130_v40 = vpop.xlane.xlu1 %3129  ;;  %v8748_v28 = vpop.eup %5888  ;;  %5908 = vpow2.f32 %v3303_v21  ;;  %v4252_v8 = vsub.f32 %v10210_v10, %v4176_v15  ;;  %v4253_v11 = vsub.f32 %v10211_v51, %v4176_v15  ;;  %4448 = vadd.xlane.f32.xlu1 %v4447_v36  ;;  %v4450_v45 = vadd.f32 %v8744_v55, %v8742_v49  ;;  %v10219_v49 = vld [vmem:[#allocation57_spill] sm:$0xff] }
 0x609   : > { %10209 = vst [vmem:[#allocation23_spill] sm:$0xff] %v8748_v28  ;;  %v3205_v0 = vsub.f32 %v10212_v46, %v3130_v40  ;;  %v8753_v60 = vpop.eup %5890  ;;  %5910 = vpow2.f32 %v3305_v52  ;;  %v3206_v48 = vsub.f32 %v10214_v42, %v3130_v40  ;;  %v10218_v46 = vld [vmem:[#allocation58_spill] sm:$0xff] }
 0x60a   : > { %10213 = vst [vmem:[#allocation34_spill] sm:$0xff] %v8753_v60  ;;  %v8758_v27 = vpop.eup %5892  ;;  %5912 = vpow2.f32 %v4348_v30  ;;  %v4352_v2 = vmul.f32 1.442695, %v4252_v8  ;;  %v4354_v21 = vmul.f32 1.442695, %v4253_v11  ;;  %4451 = vadd.xlane.f32.xlu0 %v4450_v45  ;;  %v3404_v52 = vadd.f32 %v8753_v60, %v8748_v28  ;;  %v10220_v8 = vld [vmem:[#allocation63_spill] sm:$0xff] }
 0x60b   : > { %10215 = vst [vmem:[#allocation32_spill] sm:$0xff] %v8758_v27  ;;  %v3307_v59 = vmul.f32 1.442695, %v3205_v0  ;;  %v8760_v10 = vpop.eup %5894  ;;  %5914 = vpow2.f32 %v4350_v47  ;;  %v3309_v51 = vmul.f32 1.442695, %v3206_v48  ;;  %v3133_v36 = vpop.xlane.xlu0 %3132  ;;  %v10222_v47 = vld [vmem:[#allocation64_spill] sm:$0xff] }
 0x60c   : > { %10216 = vst [vmem:[#allocation38_spill] sm:$0xff] %v8760_v10  ;;  %v4179_v15 = vpop.xlane.xlu1 %4178  ;;  %v8764_v40 = vpop.eup %5896  ;;  %5916 = vpow2.f32 %v4352_v2  ;;  %v3207_v42 = vsub.f32 %v10218_v46, %v3133_v36  ;;  %v3208_v30 = vsub.f32 %v10219_v49, %v3133_v36  ;;  %3405 = vadd.xlane.f32.xlu1 %v3404_v52  ;;  %v3407_v45 = vadd.f32 %v8760_v10, %v8758_v27  ;;  %v10227_v27 = vld [vmem:[#allocation69_spill] sm:$0xff] }
 0x60d   : > { %10217 = vst [vmem:[#allocation36_spill] sm:$0xff] %v8764_v40  ;;  %v4254_v11 = vsub.f32 %v10220_v8, %v4179_v15  ;;  %v8769_v0 = vpop.eup %5898  ;;  %5918 = vpow2.f32 %v4354_v21  ;;  %v4255_v48 = vsub.f32 %v10222_v47, %v4179_v15  ;;  %v10226_v8 = vld [vmem:[#allocation70_spill] sm:$0xff] }
 0x60e   : > { %10221 = vst [vmem:[#allocation13_spill] sm:$0xff] %v8769_v0  ;;  %v8774_v28 = vpop.eup %5900  ;;  %5920 = vpow2.f32 %v3307_v59  ;;  %v3311_v60 = vmul.f32 1.442695, %v3207_v42  ;;  %v3313_v2 = vmul.f32 1.442695, %v3208_v30  ;;  %3408 = vadd.xlane.f32.xlu0 %v3407_v45  ;;  %v4453_v21 = vadd.f32 %v8769_v0, %v8764_v40  ;;  %v10228_v42 = vld [vmem:[#allocation59_spill] sm:$0xff] }
 0x60f   : > { %10223 = vst [vmem:[#allocation113_spill] sm:$0xff] %v8774_v28  ;;  %v4356_v55 = vmul.f32 1.442695, %v4254_v11  ;;  %v8776_v46 = vpop.eup %5902  ;;  %5922 = vpow2.f32 %v3309_v51  ;;  %v4358_v49 = vmul.f32 1.442695, %v4255_v48  ;;  %v4182_v52 = vpop.xlane.xlu0 %4181  ;;  %v10230_v51 = vld [vmem:[#allocation60_spill] sm:$0xff] }
 0x610   : > { %10224 = vst [vmem:[#allocation114_spill] sm:$0xff] %v8776_v46  ;;  %v3136_v36 = vpop.xlane.xlu1 %3135  ;;  %v8780_v15 = vpop.eup %5904  ;;  %5924 = vpow2.f32 %v3311_v60  ;;  %v4256_v47 = vsub.f32 %v10226_v8, %v4182_v52  ;;  %v4257_v59 = vsub.f32 %v10227_v27, %v4182_v52  ;;  %4454 = vadd.xlane.f32.xlu1 %v4453_v21  ;;  %v4456_v45 = vadd.f32 %v8776_v46, %v8774_v28  ;;  %v10235_v28 = vld [vmem:[#allocation65_spill] sm:$0xff] }
 0x611   : > { %10225 = vst [vmem:[#allocation115_spill] sm:$0xff] %v8780_v15  ;;  %v3209_v30 = vsub.f32 %v10228_v42, %v3136_v36  ;;  %v8785_v11 = vpop.eup %5906  ;;  %5926 = vpow2.f32 %v3313_v2  ;;  %v3210_v48 = vsub.f32 %v10230_v51, %v3136_v36  ;;  %v10234_v42 = vld [vmem:[#allocation66_spill] sm:$0xff] }
 0x612   : > { %10229 = vst [vmem:[#allocation11_spill] sm:$0xff] %v8785_v11  ;;  %v8790_v40 = vpop.eup %5908  ;;  %5928 = vpow2.f32 %v4356_v55  ;;  %v4360_v0 = vmul.f32 1.442695, %v4256_v47  ;;  %v4362_v60 = vmul.f32 1.442695, %v4257_v59  ;;  %4457 = vadd.xlane.f32.xlu0 %v4456_v45  ;;  %v3410_v2 = vadd.f32 %v8785_v11, %v8780_v15  ;;  %v10236_v47 = vld [vmem:[#allocation71_spill] sm:$0xff] }
 0x613   : > { %10231 = vst [vmem:[#allocation39_spill] sm:$0xff] %v8790_v40  ;;  %v3315_v10 = vmul.f32 1.442695, %v3209_v30  ;;  %v8792_v8 = vpop.eup %5910  ;;  %5930 = vpow2.f32 %v4358_v49  ;;  %v3317_v27 = vmul.f32 1.442695, %v3210_v48  ;;  %v3139_v21 = vpop.xlane.xlu0 %3138  ;;  %v10238_v49 = vld [vmem:[#allocation72_spill] sm:$0xff] }
 0x614   : > { %10232 = vst [vmem:[#allocation40_spill] sm:$0xff] %v8792_v8  ;;  %v4185_v52 = vpop.xlane.xlu1 %4184  ;;  %v8796_v36 = vpop.eup %5912  ;;  %5932 = vpow2.f32 %v4360_v0  ;;  %v3211_v51 = vsub.f32 %v10234_v42, %v3139_v21  ;;  %v3212_v55 = vsub.f32 %v10235_v28, %v3139_v21  ;;  %3411 = vadd.xlane.f32.xlu1 %v3410_v2  ;;  %v3413_v45 = vadd.f32 %v8792_v8, %v8790_v40  ;;  %v10243_v40 = vld [vmem:[#allocation77_spill] sm:$0xff] }
 0x615   : > { %10233 = vst [vmem:[#allocation46_spill] sm:$0xff] %v8796_v36  ;;  %v4258_v59 = vsub.f32 %v10236_v47, %v4185_v52  ;;  %v8801_v30 = vpop.eup %5914  ;;  %5934 = vpow2.f32 %v4362_v60  ;;  %v4259_v48 = vsub.f32 %v10238_v49, %v4185_v52  ;;  %v10242_v47 = vld [vmem:[#allocation78_spill] sm:$0xff] }
 0x616   : > { %10237 = vst [vmem:[#allocation45_spill] sm:$0xff] %v8801_v30  ;;  %v8806_v15 = vpop.eup %5916  ;;  %5936 = vpow2.f32 %v3315_v10  ;;  %v3319_v11 = vmul.f32 1.442695, %v3211_v51  ;;  %v3321_v0 = vmul.f32 1.442695, %v3212_v55  ;;  %3414 = vadd.xlane.f32.xlu0 %v3413_v45  ;;  %v4459_v60 = vadd.f32 %v8801_v30, %v8796_v36  ;;  %v10244_v51 = vld [vmem:[#allocation67_spill] sm:$0xff] }
 0x617   : > { %10239 = vst [vmem:[#allocation15_spill] sm:$0xff] %v8806_v15  ;;  %v4364_v46 = vmul.f32 1.442695, %v4258_v59  ;;  %v8808_v42 = vpop.eup %5918  ;;  %5938 = vpow2.f32 %v3317_v27  ;;  %v4366_v28 = vmul.f32 1.442695, %v4259_v48  ;;  %v4188_v2 = vpop.xlane.xlu0 %4187  ;;  %v10246_v27 = vld [vmem:[#allocation68_spill] sm:$0xff] }
 0x618   : > { %10240 = vst [vmem:[#allocation17_spill] sm:$0xff] %v8808_v42  ;;  %v3142_v21 = vpop.xlane.xlu1 %3141  ;;  %v8812_v52 = vpop.eup %5920  ;;  %5940 = vpow2.f32 %v3319_v11  ;;  %v4260_v49 = vsub.f32 %v10242_v47, %v4188_v2  ;;  %v4261_v10 = vsub.f32 %v10243_v40, %v4188_v2  ;;  %4460 = vadd.xlane.f32.xlu1 %v4459_v60  ;;  %v4462_v45 = vadd.f32 %v8808_v42, %v8806_v15  ;;  %v10251_v15 = vld [vmem:[#allocation73_spill] sm:$0xff] }
 0x619   : > { %10241 = vst [vmem:[#allocation42_spill] sm:$0xff] %v8812_v52  ;;  %v3213_v55 = vsub.f32 %v10244_v51, %v3142_v21  ;;  %v8817_v59 = vpop.eup %5922  ;;  %5942 = vpow2.f32 %v3321_v0  ;;  %v3214_v48 = vsub.f32 %v10246_v27, %v3142_v21  ;;  %v10250_v51 = vld [vmem:[#allocation74_spill] sm:$0xff] }
 0x61a   : > { %10245 = vst [vmem:[#allocation41_spill] sm:$0xff] %v8817_v59  ;;  %v8822_v36 = vpop.eup %5924  ;;  %5944 = vpow2.f32 %v4364_v46  ;;  %v4368_v30 = vmul.f32 1.442695, %v4260_v49  ;;  %v4370_v11 = vmul.f32 1.442695, %v4261_v10  ;;  %4463 = vadd.xlane.f32.xlu0 %v4462_v45  ;;  %v3416_v0 = vadd.f32 %v8817_v59, %v8812_v52  ;;  %v10252_v49 = vld [vmem:[#allocation76_spill] sm:$0xff] }
 0x61b   : > { %10247 = vst [vmem:[#allocation47_spill] sm:$0xff] %v8822_v36  ;;  %v3323_v8 = vmul.f32 1.442695, %v3213_v55  ;;  %v8824_v47 = vpop.eup %5926  ;;  %5946 = vpow2.f32 %v4366_v28  ;;  %v3325_v40 = vmul.f32 1.442695, %v3214_v48  ;;  %v3145_v60 = vpop.xlane.xlu0 %3144  ;;  %v10254_v28 = vld [vmem:[#allocation79_spill] sm:$0xff] }
 0x61c   : > { %10248 = vst [vmem:[#allocation48_spill] sm:$0xff] %v8824_v47  ;;  %v4191_v2 = vpop.xlane.xlu1 %4190  ;;  %v8828_v21 = vpop.eup %5928  ;;  %5948 = vpow2.f32 %v4368_v30  ;;  %v3215_v27 = vsub.f32 %v10250_v51, %v3145_v60  ;;  %v3216_v46 = vsub.f32 %v10251_v15, %v3145_v60  ;;  %3417 = vadd.xlane.f32.xlu1 %v3416_v0  ;;  %v3419_v45 = vadd.f32 %v8824_v47, %v8822_v36  ;;  %v10259_v36 = vld [vmem:[#allocation81_spill] sm:$0xff] }
 0x61d   : > { %10249 = vst [vmem:[#allocation54_spill] sm:$0xff] %v8828_v21  ;;  %v4262_v10 = vsub.f32 %v10252_v49, %v4191_v2  ;;  %v8833_v55 = vpop.eup %5930  ;;  %5950 = vpow2.f32 %v4370_v11  ;;  %v4263_v48 = vsub.f32 %v10254_v28, %v4191_v2  ;;  %v10258_v49 = vld [vmem:[#allocation82_spill] sm:$0xff] }
 0x61e   : > { %10253 = vst [vmem:[#allocation53_spill] sm:$0xff] %v8833_v55  ;;  %v8838_v52 = vpop.eup %5932  ;;  %5952 = vpow2.f32 %v3323_v8  ;;  %v3327_v59 = vmul.f32 1.442695, %v3215_v27  ;;  %v3329_v30 = vmul.f32 1.442695, %v3216_v46  ;;  %3420 = vadd.xlane.f32.xlu0 %v3419_v45  ;;  %v4465_v11 = vadd.f32 %v8833_v55, %v8828_v21  ;;  %v10260_v27 = vld [vmem:[#allocation12_spill] sm:$0xff] }
 0x61f   : > { %10255 = vst [vmem:[#allocation43_spill] sm:$0xff] %v8838_v52  ;;  %v4372_v42 = vmul.f32 1.442695, %v4262_v10  ;;  %v8840_v51 = vpop.eup %5934  ;;  %5954 = vpow2.f32 %v3325_v40  ;;  %v4374_v15 = vmul.f32 1.442695, %v4263_v48  ;;  %v4194_v0 = vpop.xlane.xlu0 %4193  ;;  %v10262_v40 = vld [vmem:[#allocation75_spill] sm:$0xff] }
 0x620   : > { %10256 = vst [vmem:[#allocation44_spill] sm:$0xff] %v8840_v51  ;;  %v3148_v60 = vpop.xlane.xlu1 %3147  ;;  %v8844_v2 = vpop.eup %5936  ;;  %5956 = vpow2.f32 %v3327_v59  ;;  %v4264_v28 = vsub.f32 %v10258_v49, %v4194_v0  ;;  %v4265_v8 = vsub.f32 %v10259_v36, %v4194_v0  ;;  %4466 = vadd.xlane.f32.xlu1 %v4465_v11  ;;  %v4468_v45 = vadd.f32 %v8840_v51, %v8838_v52  ;;  %v10267_v52 = vld [vmem:[#allocation14_spill] sm:$0xff] }
 0x621   : > { %10257 = vst [vmem:[#allocation50_spill] sm:$0xff] %v8844_v2  ;;  %v3217_v46 = vsub.f32 %v10260_v27, %v3148_v60  ;;  %v8849_v10 = vpop.eup %5938  ;;  %5958 = vpow2.f32 %v3329_v30  ;;  %v3218_v48 = vsub.f32 %v10262_v40, %v3148_v60  ;;  %v10266_v27 = vld [vmem:[#allocation80_spill] sm:$0xff] }
 0x622   : > { %10261 = vst [vmem:[#allocation49_spill] sm:$0xff] %v8849_v10  ;;  %v8854_v21 = vpop.eup %5940  ;;  %5960 = vpow2.f32 %v4372_v42  ;;  %v4376_v55 = vmul.f32 1.442695, %v4264_v28  ;;  %v4378_v59 = vmul.f32 1.442695, %v4265_v8  ;;  %4469 = vadd.xlane.f32.xlu0 %v4468_v45  ;;  %v3422_v30 = vadd.f32 %v8849_v10, %v8844_v2  ;;  %v10268_v28 = vld [vmem:[#allocation83_spill] sm:$0xff] }
 0x623   : > { %10263 = vst [vmem:[#allocation55_spill] sm:$0xff] %v8854_v21  ;;  %v3331_v47 = vmul.f32 1.442695, %v3217_v46  ;;  %v8856_v49 = vpop.eup %5942  ;;  %5962 = vpow2.f32 %v4374_v15  ;;  %v3333_v36 = vmul.f32 1.442695, %v3218_v48  ;;  %v3151_v11 = vpop.xlane.xlu0 %3150  ;;  %v10270_v15 = vld [vmem:[#allocation84_spill] sm:$0xff] }
 0x624   : > { %10264 = vst [vmem:[#allocation56_spill] sm:$0xff] %v8856_v49  ;;  %v4197_v0 = vpop.xlane.xlu1 %4196  ;;  %v8860_v60 = vpop.eup %5944  ;;  %5964 = vpow2.f32 %v4376_v55  ;;  %v3219_v40 = vsub.f32 %v10266_v27, %v3151_v11  ;;  %v3220_v42 = vsub.f32 %v10267_v52, %v3151_v11  ;;  %3423 = vadd.xlane.f32.xlu1 %v3422_v30  ;;  %v3425_v45 = vadd.f32 %v8856_v49, %v8854_v21  ;;  %v10275_v21 = vld [vmem:[#allocation90_spill] sm:$0xff] }
 0x625   : > { %10265 = vst [vmem:[#allocation62_spill] sm:$0xff] %v8860_v60  ;;  %v4266_v8 = vsub.f32 %v10268_v28, %v4197_v0  ;;  %v8865_v46 = vpop.eup %5946  ;;  %5966 = vpow2.f32 %v4378_v59  ;;  %v4267_v48 = vsub.f32 %v10270_v15, %v4197_v0  ;;  %v10274_v28 = vld [vmem:[#allocation88_spill] sm:$0xff] }
 0x626   : > { %10269 = vst [vmem:[#allocation61_spill] sm:$0xff] %v8865_v46  ;;  %v8870_v2 = vpop.eup %5948  ;;  %5968 = vpow2.f32 %v3331_v47  ;;  %v3335_v10 = vmul.f32 1.442695, %v3219_v40  ;;  %v3337_v55 = vmul.f32 1.442695, %v3220_v42  ;;  %3426 = vadd.xlane.f32.xlu0 %v3425_v45  ;;  %v4471_v59 = vadd.f32 %v8865_v46, %v8860_v60  ;;  %v10276_v40 = vld [vmem:[#allocation86_spill] sm:$0xff] }
 0x627   : > { %10271 = vst [vmem:[#allocation51_spill] sm:$0xff] %v8870_v2  ;;  %v4380_v51 = vmul.f32 1.442695, %v4266_v8  ;;  %v8872_v27 = vpop.eup %5950  ;;  %5970 = vpow2.f32 %v3333_v36  ;;  %v4382_v52 = vmul.f32 1.442695, %v4267_v48  ;;  %v4200_v30 = vpop.xlane.xlu0 %4199  ;;  %v10278_v36 = vld [vmem:[#allocation85_spill] sm:$0xff] }
 0x628   : > { %10272 = vst [vmem:[#allocation52_spill] sm:$0xff] %v8872_v27  ;;  %v3154_v11 = vpop.xlane.xlu1 %3153  ;;  %v8876_v0 = vpop.eup %5952  ;;  %5972 = vpow2.f32 %v3335_v10  ;;  %v4268_v15 = vsub.f32 %v10274_v28, %v4200_v30  ;;  %v4269_v47 = vsub.f32 %v10275_v21, %v4200_v30  ;;  %4472 = vadd.xlane.f32.xlu1 %v4471_v59  ;;  %v4474_v45 = vadd.f32 %v8872_v27, %v8870_v2  ;;  %v10283_v2 = vld [vmem:[#allocation87_spill] sm:$0xff] }
 0x629   : > { %10273 = vst [vmem:[#allocation58_spill] sm:$0xff] %v8876_v0  ;;  %v3221_v42 = vsub.f32 %v10276_v40, %v3154_v11  ;;  %v8881_v8 = vpop.eup %5954  ;;  %5974 = vpow2.f32 %v3337_v55  ;;  %v3222_v48 = vsub.f32 %v10278_v36, %v3154_v11  ;;  %v10282_v40 = vld [vmem:[#allocation16_spill] sm:$0xff] }
 0x62a   : > { %10277 = vst [vmem:[#allocation57_spill] sm:$0xff] %v8881_v8  ;;  %v8886_v60 = vpop.eup %5956  ;;  %5976 = vpow2.f32 %v4380_v51  ;;  %v4384_v46 = vmul.f32 1.442695, %v4268_v15  ;;  %v4386_v10 = vmul.f32 1.442695, %v4269_v47  ;;  %4475 = vadd.xlane.f32.xlu0 %v4474_v45  ;;  %v3428_v55 = vadd.f32 %v8881_v8, %v8876_v0  ;;  %v10284_v15 = vld [vmem:[#allocation94_spill] sm:$0xff] }
 0x62b   : > { %10279 = vst [vmem:[#allocation63_spill] sm:$0xff] %v8886_v60  ;;  %v3339_v49 = vmul.f32 1.442695, %v3221_v42  ;;  %v8888_v28 = vpop.eup %5958  ;;  %5978 = vpow2.f32 %v4382_v52  ;;  %v3341_v21 = vmul.f32 1.442695, %v3222_v48  ;;  %v3157_v59 = vpop.xlane.xlu0 %3156  ;;  %v10286_v52 = vld [vmem:[#allocation93_spill] sm:$0xff] }
 0x62c   : > { %10280 = vst [vmem:[#allocation64_spill] sm:$0xff] %v8888_v28  ;;  %v4203_v30 = vpop.xlane.xlu1 %4202  ;;  %v8892_v11 = vpop.eup %5960  ;;  %5980 = vpow2.f32 %v4384_v46  ;;  %v3223_v36 = vsub.f32 %v10282_v40, %v3157_v59  ;;  %v3224_v51 = vsub.f32 %v10283_v2, %v3157_v59  ;;  %3429 = vadd.xlane.f32.xlu1 %v3428_v55  ;;  %v3431_v45 = vadd.f32 %v8888_v28, %v8886_v60  ;;  %v10291_v60 = vld [vmem:[#allocation96_spill] sm:$0xff] }
 0x62d   : > { %10281 = vst [vmem:[#allocation70_spill] sm:$0xff] %v8892_v11  ;;  %v4270_v47 = vsub.f32 %v10284_v15, %v4203_v30  ;;  %v8897_v42 = vpop.eup %5962  ;;  %5982 = vpow2.f32 %v4386_v10  ;;  %v4271_v48 = vsub.f32 %v10286_v52, %v4203_v30  ;;  %v10290_v15 = vld [vmem:[#allocation95_spill] sm:$0xff] }
 0x62e   : > { %10285 = vst [vmem:[#allocation69_spill] sm:$0xff] %v8897_v42  ;;  %v8902_v0 = vpop.eup %5964  ;;  %5984 = vpow2.f32 %v3339_v49  ;;  %v3343_v8 = vmul.f32 1.442695, %v3223_v36  ;;  %v3345_v46 = vmul.f32 1.442695, %v3224_v51  ;;  %3432 = vadd.xlane.f32.xlu0 %v3431_v45  ;;  %v4477_v10 = vadd.f32 %v8897_v42, %v8892_v11  ;;  %v10292_v36 = vld [vmem:[#allocation89_spill] sm:$0xff] }
 0x62f   : > { %10287 = vst [vmem:[#allocation59_spill] sm:$0xff] %v8902_v0  ;;  %v4388_v27 = vmul.f32 1.442695, %v4270_v47  ;;  %v8904_v40 = vpop.eup %5966  ;;  %5986 = vpow2.f32 %v3341_v21  ;;  %v4390_v2 = vmul.f32 1.442695, %v4271_v48  ;;  %v4206_v55 = vpop.xlane.xlu0 %4205  ;;  %v10294_v21 = vld [vmem:[#allocation18_spill] sm:$0xff] }
 0x630   : > { %10288 = vst [vmem:[#allocation60_spill] sm:$0xff] %v8904_v40  ;;  %v3160_v59 = vpop.xlane.xlu1 %3159  ;;  %v8908_v30 = vpop.eup %5968  ;;  %5988 = vpow2.f32 %v3343_v8  ;;  %v4272_v52 = vsub.f32 %v10290_v15, %v4206_v55  ;;  %v4273_v49 = vsub.f32 %v10291_v60, %v4206_v55  ;;  %4478 = vadd.xlane.f32.xlu1 %v4477_v10  ;;  %v4480_v45 = vadd.f32 %v8904_v40, %v8902_v0  ;;  %v10299_v0 = vld [vmem:[#allocation92_spill] sm:$0xff] }
 0x631   : > { %10289 = vst [vmem:[#allocation66_spill] sm:$0xff] %v8908_v30  ;;  %v3225_v51 = vsub.f32 %v10292_v36, %v3160_v59  ;;  %v8913_v47 = vpop.eup %5970  ;;  %5990 = vpow2.f32 %v3345_v46  ;;  %v3226_v48 = vsub.f32 %v10294_v21, %v3160_v59  ;;  %v10298_v36 = vld [vmem:[#allocation91_spill] sm:$0xff] }
 0x632   : > { %10293 = vst [vmem:[#allocation65_spill] sm:$0xff] %v8913_v47  ;;  %v8918_v11 = vpop.eup %5972  ;;  %5992 = vpow2.f32 %v4388_v27  ;;  %v4392_v42 = vmul.f32 1.442695, %v4272_v52  ;;  %v4394_v8 = vmul.f32 1.442695, %v4273_v49  ;;  %4481 = vadd.xlane.f32.xlu0 %v4480_v45  ;;  %v3434_v46 = vadd.f32 %v8913_v47, %v8908_v30  ;;  %v10300_v52 = vld [vmem:[#allocation102_spill] sm:$0xff] }
 0x633   : > { %10295 = vst [vmem:[#allocation71_spill] sm:$0xff] %v8918_v11  ;;  %v3347_v28 = vmul.f32 1.442695, %v3225_v51  ;;  %v8920_v15 = vpop.eup %5974  ;;  %5994 = vpow2.f32 %v4390_v2  ;;  %v3349_v60 = vmul.f32 1.442695, %v3226_v48  ;;  %v3163_v10 = vpop.xlane.xlu0 %3162  ;;  %v10302_v2 = vld [vmem:[#allocation101_spill] sm:$0xff] }
 0x634   : > { %10296 = vst [vmem:[#allocation72_spill] sm:$0xff] %v8920_v15  ;;  %v4209_v55 = vpop.xlane.xlu1 %4208  ;;  %v8924_v59 = vpop.eup %5976  ;;  %5996 = vpow2.f32 %v4392_v42  ;;  %v3227_v21 = vsub.f32 %v10298_v36, %v3163_v10  ;;  %v3228_v27 = vsub.f32 %v10299_v0, %v3163_v10  ;;  %3435 = vadd.xlane.f32.xlu1 %v3434_v46  ;;  %v3437_v45 = vadd.f32 %v8920_v15, %v8918_v11  ;;  %v10305_v11 = vld [vmem:[#allocation100_spill] sm:$0xff] }
 0x635   : > { %10297 = vst [vmem:[#allocation78_spill] sm:$0xff] %v8924_v59  ;;  %v4274_v49 = vsub.f32 %v10300_v52, %v4209_v55  ;;  %v8929_v51 = vpop.eup %5978  ;;  %5998 = vpow2.f32 %v4394_v8  ;;  %v4275_v48 = vsub.f32 %v10302_v2, %v4209_v55  ;;  %v10304_v52 = vld [vmem:[#allocation99_spill] sm:$0xff] }
 0x636   : > { %10301 = vst [vmem:[#allocation77_spill] sm:$0xff] %v8929_v51  ;;  %v8934_v30 = vpop.eup %5980  ;;  %6000 = vpow2.f32 %v3347_v28  ;;  %v3351_v47 = vmul.f32 1.442695, %v3227_v21  ;;  %v3353_v42 = vmul.f32 1.442695, %v3228_v27  ;;  %3438 = vadd.xlane.f32.xlu0 %v3437_v45  ;;  %v4483_v8 = vadd.f32 %v8929_v51, %v8924_v59  ;;  %v10306_v21 = vld [vmem:[#allocation98_spill] sm:$0xff] }
 0x637   : > { %10303 = vst [vmem:[#allocation67_spill] sm:$0xff] %v8934_v30  ;;  %v4396_v40 = vmul.f32 1.442695, %v4274_v49  ;;  %v8936_v36 = vpop.eup %5982  ;;  %6002 = vpow2.f32 %v3349_v60  ;;  %v4398_v0 = vmul.f32 1.442695, %v4275_v48  ;;  %v4212_v46 = vpop.xlane.xlu0 %4211  ;;  %v10307_v60 = vld [vmem:[#allocation97_spill] sm:$0xff] }
 0x638   : > { %v3166_v10 = vpop.xlane.xlu1 %3165  ;;  %v8940_v55 = vpop.eup %5984  ;;  %6004 = vpow2.f32 %v3351_v47  ;;  %v4276_v2 = vsub.f32 %v10304_v52, %v4212_v46  ;;  %v4277_v28 = vsub.f32 %v10305_v11, %v4212_v46  ;;  %4484 = vadd.xlane.f32.xlu1 %v4483_v8  ;;  %v4486_v45 = vadd.f32 %v8936_v36, %v8934_v30 }
 0x639   : > { %v3229_v27 = vsub.f32 %v10306_v21, %v3166_v10  ;;  %v8945_v49 = vpop.eup %5986  ;;  %6006 = vpow2.f32 %v3353_v42  ;;  %v3230_v48 = vsub.f32 %v10307_v60, %v3166_v10  ;;  %v10308_v10 = vld [vmem:[#allocation103_spill] sm:$0xff]  ;;  %v10309_v60 = vld [vmem:[#allocation104_spill] sm:$0xff] }
 0x63a   : > { %v8950_v59 = vpop.eup %5988  ;;  %6008 = vpow2.f32 %v4396_v40  ;;  %v4400_v51 = vmul.f32 1.442695, %v4276_v2  ;;  %v4402_v47 = vmul.f32 1.442695, %v4277_v28  ;;  %4487 = vadd.xlane.f32.xlu0 %v4486_v45  ;;  %v3440_v42 = vadd.f32 %v8945_v49, %v8940_v55 }
 0x63b   : > { %v3355_v15 = vmul.f32 1.442695, %v3229_v27  ;;  %v8952_v52 = vpop.eup %5990  ;;  %6010 = vpow2.f32 %v4398_v0  ;;  %v3357_v11 = vmul.f32 1.442695, %v3230_v48 }
 0x63c   : > { %v4215_v8 = vpop.xlane.xlu1 %4214  ;;  %v8956_v46 = vpop.eup %5992  ;;  %6012 = vpow2.f32 %v4400_v51  ;;  %v3443_v40 = vadd.f32 %v8952_v52, %v8950_v59  ;;  %3441 = vadd.xlane.f32.xlu1 %v3440_v42 }
 0x63d   : > { %v4278_v21 = vsub.f32 %v10308_v10, %v4215_v8  ;;  %v4279_v30 = vsub.f32 %v10309_v60, %v4215_v8  ;;  %v8962_v2 = vpop.eup %5994  ;;  %6014 = vpow2.f32 %v4402_v47 }
 0x63e   : > { %v8964_v0 = vpop.eup %5996  ;;  %6016 = vpow2.f32 %v3355_v15  ;;  %v4489_v48 = vadd.f32 %v8962_v2, %v8956_v46  ;;  %3444 = vadd.xlane.f32.xlu0 %v3443_v40 }
 0x63f   : > { %v4404_v28 = vmul.f32 1.442695, %v4278_v21  ;;  %v4406_v27 = vmul.f32 1.442695, %v4279_v30  ;;  %v8968_v51 = vpop.eup %5998  ;;  %6018 = vpow2.f32 %v3357_v11 }
 0x640   : > { %v8970_v45 = vpop.eup %6000  ;;  %v4492_v8 = vadd.f32 %v8968_v51, %v8964_v0  ;;  %4490 = vadd.xlane.f32.xlu1 %v4489_v48 }
 0x641   : > { %6020 = vpow2.f32 %v4404_v28  ;;  %v8974_v47 = vpop.eup %6002 }
 0x642   : > { %6022 = vpow2.f32 %v4406_v27  ;;  %v8976_v15 = vpop.eup %6004  ;;  %v3446_v30 = vadd.f32 %v8974_v47, %v8970_v45  ;;  %4493 = vadd.xlane.f32.xlu0 %v4492_v8 }
 0x643   : > { %10310 = vst [vmem:[#allocation68_spill] sm:$0xff] %v8976_v15  ;;  %v8980_v42 = vpop.eup %6006 }
 0x644   : > { %10311 = vst [vmem:[#allocation74_spill] sm:$0xff] %v8980_v42  ;;  %v8982_v11 = vpop.eup %6008  ;;  %v3449_v10 = vadd.f32 %v8980_v42, %v8976_v15  ;;  %3447 = vadd.xlane.f32.xlu1 %v3446_v30 }
 0x645   : > { %10312 = vst [vmem:[#allocation73_spill] sm:$0xff] %v8982_v11  ;;  %v8986_v21 = vpop.eup %6010 }
 0x646   : > { %v8988_v60 = vpop.eup %6012  ;;  %v4495_v40 = vadd.f32 %v8986_v21, %v8982_v11  ;;  %3450 = vadd.xlane.f32.xlu0 %v3449_v10 }
 0x647   : > { %10313 = vst [vmem:[#allocation76_spill] sm:$0xff] %v8988_v60  ;;  %v8992_v28 = vpop.eup %6014 }
 0x648   : > { %10314 = vst [vmem:[#allocation79_spill] sm:$0xff] %v8992_v28  ;;  %v8994_v27 = vpop.eup %6016  ;;  %v4498_v48 = vadd.f32 %v8992_v28, %v8988_v60  ;;  %4496 = vadd.xlane.f32.xlu1 %v4495_v40 }
 0x649   : > { %10315 = vst [vmem:[#allocation82_spill] sm:$0xff] %v8994_v27  ;;  %v8998_v8 = vpop.eup %6018 }
 0x64a   : > { %10316 = vst [vmem:[#allocation81_spill] sm:$0xff] %v8998_v8  ;;  %v3452_v30 = vadd.f32 %v8998_v8, %v8994_v27  ;;  %4499 = vadd.xlane.f32.xlu0 %v4498_v48 }
 0x64b   : > { %v9000_v15 = vpop.eup %6020 }
 0x64c   : > { %10317 = vst [vmem:[#allocation12_spill] sm:$0xff] %v9000_v15  ;;  %v9004_v42 = vpop.eup %6022  ;;  %3453 = vadd.xlane.f32.xlu1 %v3452_v30 }
 0x64d   : > { %10318 = vst [vmem:[#allocation75_spill] sm:$0xff] %v9004_v42  ;;  %v4501_v10 = vadd.f32 %v9004_v42, %v9000_v15 }
 0x650   : > { %4502 = vadd.xlane.f32.xlu1 %v4501_v10 }
 0x655   : > { %v3361_v11 = vpop.xlane.xlu0 %3360 }
 0x656   : > { %6024 = vrcp.f32 %v3361_v11 }
 0x65a   : > { %v3364_v60 = vpop.xlane.xlu1 %3363 }
 0x65b   : > { %6026 = vrcp.f32 %v3364_v60 }
 0x65f   : > { %v4410_v28 = vpop.xlane.xlu0 %4409 }
 0x660   : > { %v6025_v40 = vpop.eup %6024  ;;  %6028 = vrcp.f32 %v4410_v28 }
 0x661   : > { %v3488_v27 = vmul.f32 %v6025_v40, %v8507_v54  ;;  %v3487_v8 = vmul.f32 %v6025_v40, %v8502_v38 }
 0x663   : > { %5088 = vst [vmem:[%s7673_s27 + $0x408] sm:$0xff] %v3488_v27  ;;  %5087 = vst [vmem:[%s7673_s27 + $0x400] sm:$0xff] %v3487_v8  ;;  %v3367_v48 = vpop.xlane.xlu0 %3366 }
 0x664   : > { %6030 = vrcp.f32 %v3367_v48 }
 0x665   : > { %v6027_v30 = vpop.eup %6026  ;;  %v4413_v15 = vpop.xlane.xlu1 %4412 }
 0x666   : > { %v3490_v10 = vmul.f32 %v6027_v30, %v8517_v43  ;;  %v3489_v11 = vmul.f32 %v6027_v30, %v8512_v33  ;;  %6032 = vrcp.f32 %v4413_v15 }
 0x667   : > { %v4416_v60 = vpop.xlane.xlu0 %4415 }
 0x668   : > { %5090 = vst [vmem:[%s7673_s27 + $0x418] sm:$0xff] %v3490_v10  ;;  %v3619_v28 = vpack.c.bf16 %v3490_v10, %v3488_v27  ;;  %5089 = vst [vmem:[%s7673_s27 + $0x410] sm:$0xff] %v3489_v11  ;;  %v3618_v54 = vpack.c.bf16 %v3489_v11, %v3487_v8  ;;  %6034 = vrcp.f32 %v4416_v60 }
 0x669   : > { %v3370_v38 = vpop.xlane.xlu1 %3369 }
 0x66a   : > { %3650 = vmatprep.subr.bf16.mxu1 %v3619_v28  ;;  %v6029_v40 = vpop.eup %6028  ;;  %6036 = vrcp.f32 %v3370_v38 }
 0x66b   : > { %3651 = vmatpush1.bf16.xpose.msra.mxu1 %v3618_v54  ;;  %v3373_v48 = vpop.xlane.xlu0 %3372  ;;  %v4537_v42 = vmul.f32 %v6029_v40, %v8528_v57  ;;  %v4536_v33 = vmul.f32 %v6029_v40, %v8526_v5 }
 0x66c   : > { %6038 = vrcp.f32 %v3373_v48 }
 0x66d   : > { %v4419_v43 = vpop.xlane.xlu1 %4418  ;;  %5188 = vst [vmem:[%s7673_s27 + $0x608] sm:$0xff] %v4537_v42  ;;  %5187 = vst [vmem:[%s7673_s27 + $0x600] sm:$0xff] %v4536_v33 }
 0x66e   : > { %v6031_v15 = vpop.eup %6030  ;;  %6040 = vrcp.f32 %v4419_v43 }
 0x66f   : > { %v4422_v27 = vpop.xlane.xlu0 %4421  ;;  %v3492_v8 = vmul.f32 %v6031_v15, %v8538_v29  ;;  %v3491_v30 = vmul.f32 %v6031_v15, %v8536_v13 }
 0x670   : > { %v6033_v10 = vpop.eup %6032  ;;  %6042 = vrcp.f32 %v4422_v27 }
 0x671   : > { %v3376_v57 = vpop.xlane.xlu1 %3375  ;;  %v4539_v11 = vmul.f32 %v6033_v10, %v8545_v44  ;;  %v4538_v5 = vmul.f32 %v6033_v10, %v8540_v31  ;;  %5092 = vst [vmem:[%s7673_s27 + $0x428] sm:$0xff] %v3492_v8  ;;  %5091 = vst [vmem:[%s7673_s27 + $0x420] sm:$0xff] %v3491_v30 }
 0x672   : > { %v6035_v60 = vpop.eup %6034  ;;  %6044 = vrcp.f32 %v3376_v57 }
 0x673   : > { %v3379_v28 = vpop.xlane.xlu0 %3378  ;;  %5190 = vst [vmem:[%s7673_s27 + $0x618] sm:$0xff] %v4539_v11  ;;  %v4668_v54 = vpack.c.bf16 %v4539_v11, %v4537_v42  ;;  %5189 = vst [vmem:[%s7673_s27 + $0x610] sm:$0xff] %v4538_v5  ;;  %v4667_v29 = vpack.c.bf16 %v4538_v5, %v4536_v33  ;;  %v4541_v13 = vmul.f32 %v6035_v60, %v8552_v16 }
 0x674   : > { %v4540_v38 = vmul.f32 %v6035_v60, %v8550_v41  ;;  %v6037_v44 = vpop.eup %6036  ;;  %6046 = vrcp.f32 %v3379_v28 }
 0x675   : > { %4699 = vmatprep.subr.bf16.mxu0 %v4668_v54  ;;  %v4425_v31 = vpop.xlane.xlu1 %4424  ;;  %v3494_v40 = vmul.f32 %v6037_v44, %v8561_v20  ;;  %v3493_v48 = vmul.f32 %v6037_v44, %v8556_v32  ;;  %5192 = vst [vmem:[%s7673_s27 + $0x628] sm:$0xff] %v4541_v13 }
 0x676   : > { %5191 = vst [vmem:[%s7673_s27 + $0x620] sm:$0xff] %v4540_v38  ;;  %v6039_v43 = vpop.eup %6038  ;;  %6048 = vrcp.f32 %v4425_v31  ;;  %4700 = vmatpush1.bf16.xpose.msra.mxu0 %v4667_v29 }
 0x677   : > { %v4428_v42 = vpop.xlane.xlu0 %4427  ;;  %5094 = vst [vmem:[%s7673_s27 + $0x438] sm:$0xff] %v3494_v40  ;;  %v3621_v16 = vpack.c.bf16 %v3494_v40, %v3492_v8  ;;  %5093 = vst [vmem:[%s7673_s27 + $0x430] sm:$0xff] %v3493_v48  ;;  %v3620_v41 = vpack.c.bf16 %v3493_v48, %v3491_v30  ;;  %v3496_v33 = vmul.f32 %v6039_v43, %v8568_v58 }
 0x678   : > { %v3495_v20 = vmul.f32 %v6039_v43, %v8566_v26  ;;  %v6041_v15 = vpop.eup %6040  ;;  %6050 = vrcp.f32 %v4428_v42 }
 0x679   : > { %3652 = vmatprep.subr.bf16.mxu1 %v3621_v16  ;;  %v3382_v32 = vpop.xlane.xlu1 %3381  ;;  %v4543_v27 = vmul.f32 %v6041_v15, %v8577_v7  ;;  %v4542_v10 = vmul.f32 %v6041_v15, %v8572_v1  ;;  %5096 = vst [vmem:[%s7673_s27 + $0x448] sm:$0xff] %v3496_v33 }
 0x67a   : > { %5095 = vst [vmem:[%s7673_s27 + $0x440] sm:$0xff] %v3495_v20  ;;  %v6043_v57 = vpop.eup %6042  ;;  %6052 = vrcp.f32 %v3382_v32  ;;  %3653 = vmatpush1.bf16.xpose.msra.mxu1 %v3620_v41 }
 0x67b   : > { %v3385_v8 = vpop.xlane.xlu0 %3384  ;;  %5194 = vst [vmem:[%s7673_s27 + $0x638] sm:$0xff] %v4543_v27  ;;  %v4670_v58 = vpack.c.bf16 %v4543_v27, %v4541_v13  ;;  %5193 = vst [vmem:[%s7673_s27 + $0x630] sm:$0xff] %v4542_v10  ;;  %v4669_v26 = vpack.c.bf16 %v4542_v10, %v4540_v38  ;;  %v4545_v30 = vmul.f32 %v6043_v57, %v8584_v53 }
 0x67c   : > { %v4544_v7 = vmul.f32 %v6043_v57, %v8582_v22  ;;  %v6045_v11 = vpop.eup %6044  ;;  %6054 = vrcp.f32 %v3385_v8 }
 0x67d   : > { %4701 = vmatprep.subr.bf16.mxu0 %v4670_v58  ;;  %v4431_v1 = vpop.xlane.xlu1 %4430  ;;  %v3498_v5 = vmul.f32 %v6045_v11, %v8593_v61  ;;  %v3497_v60 = vmul.f32 %v6045_v11, %v8588_v34  ;;  %5196 = vst [vmem:[%s7673_s27 + $0x648] sm:$0xff] %v4545_v30 }
 0x67e   : > { %5195 = vst [vmem:[%s7673_s27 + $0x640] sm:$0xff] %v4544_v7  ;;  %v6047_v28 = vpop.eup %6046  ;;  %6056 = vrcp.f32 %v4431_v1  ;;  %4702 = vmatpush1.bf16.xpose.msra.mxu0 %v4669_v26 }
 0x67f   : > { %v4434_v54 = vpop.xlane.xlu0 %4433  ;;  %5098 = vst [vmem:[%s7673_s27 + $0x458] sm:$0xff] %v3498_v5  ;;  %v3623_v53 = vpack.c.bf16 %v3498_v5, %v3496_v33  ;;  %5097 = vst [vmem:[%s7673_s27 + $0x450] sm:$0xff] %v3497_v60  ;;  %v3622_v22 = vpack.c.bf16 %v3497_v60, %v3495_v20  ;;  %v3500_v29 = vmul.f32 %v6047_v28, %v8600_v19 }
 0x680   : > { %v3499_v61 = vmul.f32 %v6047_v28, %v8598_v18  ;;  %v6049_v13 = vpop.eup %6048  ;;  %6058 = vrcp.f32 %v4434_v54  ;;  %v10319_v28 = vld [vmem:[#allocation106_spill] sm:$0xff] }
 0x681   : > { %3654 = vmatprep.subr.bf16.mxu1 %v3623_v53  ;;  %v3388_v34 = vpop.xlane.xlu1 %3387  ;;  %v4547_v38 = vmul.f32 %v6049_v13, %v8609_v6  ;;  %v4546_v44 = vmul.f32 %v6049_v13, %v8604_v25  ;;  %5100 = vst [vmem:[%s7673_s27 + $0x468] sm:$0xff] %v3500_v29  ;;  %v10321_v13 = vld [vmem:[#allocation105_spill] sm:$0xff] }
 0x682   : > { %5099 = vst [vmem:[%s7673_s27 + $0x460] sm:$0xff] %v3499_v61  ;;  %v6051_v31 = vpop.eup %6050  ;;  %6060 = vrcp.f32 %v3388_v34  ;;  %3655 = vmatpush1.bf16.xpose.msra.mxu1 %v3622_v22 }
 0x683   : > { %v3391_v40 = vpop.xlane.xlu0 %3390  ;;  %5198 = vst [vmem:[%s7673_s27 + $0x658] sm:$0xff] %v4547_v38  ;;  %v4672_v19 = vpack.c.bf16 %v4547_v38, %v4545_v30  ;;  %5197 = vst [vmem:[%s7673_s27 + $0x650] sm:$0xff] %v4546_v44  ;;  %v4671_v18 = vpack.c.bf16 %v4546_v44, %v4544_v7  ;;  %v4549_v48 = vmul.f32 %v6051_v31, %v8616_v50  ;;  %v10322_v44 = vld [vmem:[#allocation112_spill] sm:$0xff] }
 0x684   : > { %v4548_v6 = vmul.f32 %v6051_v31, %v8614_v56  ;;  %v6053_v43 = vpop.eup %6052  ;;  %6062 = vrcp.f32 %v3391_v40  ;;  %v10323_v40 = vld [vmem:[#allocation108_spill] sm:$0xff] }
 0x685   : > { %4703 = vmatprep.subr.bf16.mxu0 %v4672_v19  ;;  %v4437_v25 = vpop.xlane.xlu1 %4436  ;;  %v3502_v42 = vmul.f32 %v6053_v43, %v8625_v23  ;;  %v3501_v16 = vmul.f32 %v6053_v43, %v8620_v35  ;;  %5200 = vst [vmem:[%s7673_s27 + $0x668] sm:$0xff] %v4549_v48 }
 0x686   : > { %5199 = vst [vmem:[%s7673_s27 + $0x660] sm:$0xff] %v4548_v6  ;;  %v6055_v41 = vpop.eup %6054  ;;  %6064 = vrcp.f32 %v4437_v25  ;;  %4704 = vmatpush1.bf16.xpose.msra.mxu0 %v4671_v18  ;;  %v10324_v25 = vld [vmem:[#allocation109_spill] sm:$0xff] }
 0x687   : > { %v4440_v33 = vpop.xlane.xlu0 %4439  ;;  %5102 = vst [vmem:[%s7673_s27 + $0x478] sm:$0xff] %v3502_v42  ;;  %v3625_v50 = vpack.c.bf16 %v3502_v42, %v3500_v29  ;;  %5101 = vst [vmem:[%s7673_s27 + $0x470] sm:$0xff] %v3501_v16  ;;  %v3624_v56 = vpack.c.bf16 %v3501_v16, %v3499_v61  ;;  %v3504_v20 = vmul.f32 %v6055_v41, %v8632_v14  ;;  %v10320_v29 = vld [vmem:[#allocation107_spill] sm:$0xff]  ;;  %v10325_v16 = vld [vmem:[#allocation110_spill] sm:$0xff] }
 0x688   : > { %v3503_v23 = vmul.f32 %v6055_v41, %v8630_v63  ;;  %v6057_v15 = vpop.eup %6056  ;;  %6066 = vrcp.f32 %v4440_v33 }
 0x689   : > { %3656 = vmatprep.subr.bf16.mxu1 %v3625_v50  ;;  %v3394_v35 = vpop.xlane.xlu1 %3393  ;;  %v4551_v32 = vmul.f32 %v6057_v15, %v8641_v9  ;;  %v4550_v27 = vmul.f32 %v6057_v15, %v8636_v12  ;;  %5104 = vst [vmem:[%s7673_s27 + $0x488] sm:$0xff] %v3504_v20 }
 0x68a   : > { %5103 = vst [vmem:[%s7673_s27 + $0x480] sm:$0xff] %v3503_v23  ;;  %v6059_v10 = vpop.eup %6058  ;;  %6068 = vrcp.f32 %v3394_v35  ;;  %3657 = vmatpush1.bf16.xpose.msra.mxu1 %v3624_v56  ;;  %v10326_v56 = vld [vmem:[#allocation22_spill] sm:$0xff] }
 0x68b   : > { %v3397_v57 = vpop.xlane.xlu0 %3396  ;;  %5202 = vst [vmem:[%s7673_s27 + $0x678] sm:$0xff] %v4551_v32  ;;  %v4674_v14 = vpack.c.bf16 %v4551_v32, %v4549_v48  ;;  %5201 = vst [vmem:[%s7673_s27 + $0x670] sm:$0xff] %v4550_v27  ;;  %v4673_v63 = vpack.c.bf16 %v4550_v27, %v4548_v6  ;;  %v4553_v8 = vmul.f32 %v6059_v10, %v8648_v62 }
 0x68c   : > { %v4552_v9 = vmul.f32 %v6059_v10, %v8646_v17  ;;  %v6061_v58 = vpop.eup %6060  ;;  %6070 = vrcp.f32 %v3397_v57  ;;  %v10328_v57 = vld [vmem:[#allocation26_spill] sm:$0xff] }
 0x68d   : > { %4705 = vmatprep.subr.bf16.mxu0 %v4674_v14  ;;  %v4443_v12 = vpop.xlane.xlu1 %4442  ;;  %v3506_v26 = vmul.f32 %v6061_v58, %v8657_v24  ;;  %v3505_v30 = vmul.f32 %v6061_v58, %v8652_v4  ;;  %5204 = vst [vmem:[%s7673_s27 + $0x688] sm:$0xff] %v4553_v8 }
 0x68e   : > { %5203 = vst [vmem:[%s7673_s27 + $0x680] sm:$0xff] %v4552_v9  ;;  %v6063_v7 = vpop.eup %6062  ;;  %6072 = vrcp.f32 %v4443_v12  ;;  %4706 = vmatpush1.bf16.xpose.msra.mxu0 %v4673_v63  ;;  %v10329_v63 = vld [vmem:[#allocation20_spill] sm:$0xff] }
 0x68f   : > { %v4446_v11 = vpop.xlane.xlu0 %4445  ;;  %5106 = vst [vmem:[%s7673_s27 + $0x498] sm:$0xff] %v3506_v26  ;;  %v3627_v62 = vpack.c.bf16 %v3506_v26, %v3504_v20  ;;  %5105 = vst [vmem:[%s7673_s27 + $0x490] sm:$0xff] %v3505_v30  ;;  %v3626_v17 = vpack.c.bf16 %v3505_v30, %v3503_v23  ;;  %v3508_v1 = vmul.f32 %v6063_v7, %v8664_v37  ;;  %v10327_v23 = vld [vmem:[#allocation111_spill] sm:$0xff]  ;;  %v10330_v12 = vld [vmem:[#allocation28_spill] sm:$0xff] }
 0x690   : > { %v3507_v24 = vmul.f32 %v6063_v7, %v8662_v39  ;;  %v6065_v5 = vpop.eup %6064  ;;  %6074 = vrcp.f32 %v4446_v11  ;;  %v10331_v30 = vld [vmem:[#allocation24_spill] sm:$0xff] }
 0x691   : > { %3658 = vmatprep.subr.bf16.mxu1 %v3627_v62  ;;  %v3400_v4 = vpop.xlane.xlu1 %3399  ;;  %v4555_v60 = vmul.f32 %v6065_v5, %v8673_v3  ;;  %v4554_v54 = vmul.f32 %v6065_v5, %v10319_v28  ;;  %5108 = vst [vmem:[%s7673_s27 + $0x4a8] sm:$0xff] %v3508_v1 }
 0x692   : > { %5107 = vst [vmem:[%s7673_s27 + $0x4a0] sm:$0xff] %v3507_v24  ;;  %v6067_v53 = vpop.eup %6066  ;;  %6076 = vrcp.f32 %v3400_v4  ;;  %3659 = vmatpush1.bf16.xpose.msra.mxu1 %v3626_v17  ;;  %v10333_v4 = vld [vmem:[#allocation27_spill] sm:$0xff] }
 0x693   : > { %v3403_v22 = vpop.xlane.xlu0 %3402  ;;  %5206 = vst [vmem:[%s7673_s27 + $0x698] sm:$0xff] %v4555_v60  ;;  %v4676_v37 = vpack.c.bf16 %v4555_v60, %v4553_v8  ;;  %5205 = vst [vmem:[%s7673_s27 + $0x690] sm:$0xff] %v4554_v54  ;;  %v4675_v39 = vpack.c.bf16 %v4554_v54, %v4552_v9  ;;  %v4557_v61 = vmul.f32 %v6067_v53, %v10320_v29 }
 0x694   : > { %v4556_v3 = vmul.f32 %v6067_v53, %v10321_v13  ;;  %v6069_v34 = vpop.eup %6068  ;;  %6078 = vrcp.f32 %v3403_v22  ;;  %v10334_v53 = vld [vmem:[#allocation30_spill] sm:$0xff] }
 0x695   : > { %4707 = vmatprep.subr.bf16.mxu0 %v4676_v37  ;;  %v4449_v38 = vpop.xlane.xlu1 %4448  ;;  %v3510_v31 = vmul.f32 %v6069_v34, %v10322_v44  ;;  %v3509_v19 = vmul.f32 %v6069_v34, %v10323_v40  ;;  %5208 = vst [vmem:[%s7673_s27 + $0x6a8] sm:$0xff] %v4557_v61  ;;  %v10335_v37 = vld [vmem:[#allocation19_spill] sm:$0xff]  ;;  %v10336_v34 = vld [vmem:[#allocation25_spill] sm:$0xff] }
 0x696   : > { %5207 = vst [vmem:[%s7673_s27 + $0x6a0] sm:$0xff] %v4556_v3  ;;  %v6071_v18 = vpop.eup %6070  ;;  %6080 = vrcp.f32 %v4449_v38  ;;  %4708 = vmatpush1.bf16.xpose.msra.mxu0 %v4675_v39  ;;  %v10337_v44 = vld [vmem:[#allocation29_spill] sm:$0xff] }
 0x697   : > { %v4452_v48 = vpop.xlane.xlu0 %4451  ;;  %5110 = vst [vmem:[%s7673_s27 + $0x4b8] sm:$0xff] %v3510_v31  ;;  %v3629_v6 = vpack.c.bf16 %v3510_v31, %v3508_v1  ;;  %5109 = vst [vmem:[%s7673_s27 + $0x4b0] sm:$0xff] %v3509_v19  ;;  %v3628_v43 = vpack.c.bf16 %v3509_v19, %v3507_v24  ;;  %v3512_v42 = vmul.f32 %v6071_v18, %v10324_v25  ;;  %v10332_v24 = vld [vmem:[#allocation21_spill] sm:$0xff] }
 0x698   : > { %v3511_v41 = vmul.f32 %v6071_v18, %v10325_v16  ;;  %v6073_v33 = vpop.eup %6072  ;;  %6082 = vrcp.f32 %v4452_v48  ;;  %v10338_v18 = vld [vmem:[#allocation34_spill] sm:$0xff] }
 0x699   : > { %3660 = vmatprep.subr.bf16.mxu1 %v3629_v6  ;;  %v3406_v50 = vpop.xlane.xlu1 %3405  ;;  %v4559_v20 = vmul.f32 %v6073_v33, %v10326_v56  ;;  %v4558_v15 = vmul.f32 %v6073_v33, %v10327_v23  ;;  %5112 = vst [vmem:[%s7673_s27 + $0x4c8] sm:$0xff] %v3512_v42  ;;  %v10339_v6 = vld [vmem:[#allocation23_spill] sm:$0xff]  ;;  %v10340_v33 = vld [vmem:[#allocation38_spill] sm:$0xff]  ;;  %v10341_v56 = vld [vmem:[#allocation32_spill] sm:$0xff] }
 0x69a   : > { %5111 = vst [vmem:[%s7673_s27 + $0x4c0] sm:$0xff] %v3511_v41  ;;  %v6075_v35 = vpop.eup %6074  ;;  %6084 = vrcp.f32 %v3406_v50  ;;  %3661 = vmatpush1.bf16.xpose.msra.mxu1 %v3628_v43 }
 0x69b   : > { %v3409_v32 = vpop.xlane.xlu0 %3408  ;;  %5210 = vst [vmem:[%s7673_s27 + $0x6b8] sm:$0xff] %v4559_v20  ;;  %v4678_v27 = vpack.c.bf16 %v4559_v20, %v4557_v61  ;;  %5209 = vst [vmem:[%s7673_s27 + $0x6b0] sm:$0xff] %v4558_v15  ;;  %v4677_v10 = vpack.c.bf16 %v4558_v15, %v4556_v3  ;;  %v4561_v14 = vmul.f32 %v6075_v35, %v10328_v57 }
 0x69c   : > { %v4560_v8 = vmul.f32 %v6075_v35, %v10329_v63  ;;  %v6077_v9 = vpop.eup %6076  ;;  %6086 = vrcp.f32 %v3409_v32  ;;  %v10342_v35 = vld [vmem:[#allocation13_spill] sm:$0xff] }
 0x69d   : > { %4709 = vmatprep.subr.bf16.mxu0 %v4678_v27  ;;  %v4455_v58 = vpop.xlane.xlu1 %4454  ;;  %v3514_v26 = vmul.f32 %v6077_v9, %v10330_v12  ;;  %v3513_v7 = vmul.f32 %v6077_v9, %v10331_v30  ;;  %5212 = vst [vmem:[%s7673_s27 + $0x6c8] sm:$0xff] %v4561_v14  ;;  %v10343_v27 = vld [vmem:[#allocation36_spill] sm:$0xff]  ;;  %v10344_v9 = vld [vmem:[#allocation114_spill] sm:$0xff]  ;;  %v10345_v12 = vld [vmem:[#allocation113_spill] sm:$0xff] }
 0x69e   : > { %5211 = vst [vmem:[%s7673_s27 + $0x6c0] sm:$0xff] %v4560_v8  ;;  %v6079_v11 = vpop.eup %6078  ;;  %6088 = vrcp.f32 %v4455_v58  ;;  %4710 = vmatpush1.bf16.xpose.msra.mxu0 %v4677_v10 }
 0x69f   : > { %v4458_v62 = vpop.xlane.xlu0 %4457  ;;  %5114 = vst [vmem:[%s7673_s27 + $0x4d8] sm:$0xff] %v3514_v26  ;;  %v3631_v17 = vpack.c.bf16 %v3514_v26, %v3512_v42  ;;  %5113 = vst [vmem:[%s7673_s27 + $0x4d0] sm:$0xff] %v3513_v7  ;;  %v3630_v1 = vpack.c.bf16 %v3513_v7, %v3511_v41  ;;  %v3516_v5 = vmul.f32 %v6079_v11, %v10332_v24 }
 0x6a0   : > { %v3515_v60 = vmul.f32 %v6079_v11, %v10333_v4  ;;  %v6081_v28 = vpop.eup %6080  ;;  %6090 = vrcp.f32 %v4458_v62  ;;  %v10346_v11 = vld [vmem:[#allocation11_spill] sm:$0xff] }
 0x6a1   : > { %3662 = vmatprep.subr.bf16.mxu1 %v3631_v17  ;;  %v3412_v54 = vpop.xlane.xlu1 %3411  ;;  %v4563_v22 = vmul.f32 %v6081_v28, %v10334_v53  ;;  %v4562_v39 = vmul.f32 %v6081_v28, %v10335_v37  ;;  %5116 = vst [vmem:[%s7673_s27 + $0x4e8] sm:$0xff] %v3516_v5  ;;  %v10347_v17 = vld [vmem:[#allocation115_spill] sm:$0xff]  ;;  %v10348_v28 = vld [vmem:[#allocation40_spill] sm:$0xff] }
 0x6a2   : > { %5115 = vst [vmem:[%s7673_s27 + $0x4e0] sm:$0xff] %v3515_v60  ;;  %v6083_v29 = vpop.eup %6082  ;;  %6092 = vrcp.f32 %v3412_v54  ;;  %3663 = vmatpush1.bf16.xpose.msra.mxu1 %v3630_v1  ;;  %v10349_v53 = vld [vmem:[#allocation39_spill] sm:$0xff] }
 0x6a3   : > { %v3415_v61 = vpop.xlane.xlu0 %3414  ;;  %5214 = vst [vmem:[%s7673_s27 + $0x6d8] sm:$0xff] %v4563_v22  ;;  %v4680_v13 = vpack.c.bf16 %v4563_v22, %v4561_v14  ;;  %5213 = vst [vmem:[%s7673_s27 + $0x6d0] sm:$0xff] %v4562_v39  ;;  %v4679_v3 = vpack.c.bf16 %v4562_v39, %v4560_v8  ;;  %v4565_v38 = vmul.f32 %v6083_v29, %v10336_v34 }
 0x6a4   : > { %v4564_v31 = vmul.f32 %v6083_v29, %v10337_v44  ;;  %v6085_v40 = vpop.eup %6084  ;;  %6094 = vrcp.f32 %v3415_v61  ;;  %v10350_v29 = vld [vmem:[#allocation45_spill] sm:$0xff] }
 0x6a5   : > { %4711 = vmatprep.subr.bf16.mxu0 %v4680_v13  ;;  %v4461_v19 = vpop.xlane.xlu1 %4460  ;;  %v3518_v48 = vmul.f32 %v6085_v40, %v10338_v18  ;;  %v3517_v43 = vmul.f32 %v6085_v40, %v10339_v6  ;;  %5216 = vst [vmem:[%s7673_s27 + $0x6e8] sm:$0xff] %v4565_v38  ;;  %v10351_v13 = vld [vmem:[#allocation46_spill] sm:$0xff]  ;;  %v10352_v40 = vld [vmem:[#allocation17_spill] sm:$0xff]  ;;  %v10353_v18 = vld [vmem:[#allocation15_spill] sm:$0xff] }
 0x6a6   : > { %5215 = vst [vmem:[%s7673_s27 + $0x6e0] sm:$0xff] %v4564_v31  ;;  %v6087_v25 = vpop.eup %6086  ;;  %6096 = vrcp.f32 %v4461_v19  ;;  %4712 = vmatpush1.bf16.xpose.msra.mxu0 %v4679_v3 }
 0x6a7   : > { %v4464_v42 = vpop.xlane.xlu0 %4463  ;;  %5118 = vst [vmem:[%s7673_s27 + $0x4f8] sm:$0xff] %v3518_v48  ;;  %v3633_v16 = vpack.c.bf16 %v3518_v48, %v3516_v5  ;;  %5117 = vst [vmem:[%s7673_s27 + $0x4f0] sm:$0xff] %v3517_v43  ;;  %v3632_v41 = vpack.c.bf16 %v3517_v43, %v3515_v60  ;;  %v3520_v50 = vmul.f32 %v6087_v25, %v10340_v33 }
 0x6a8   : > { %v3519_v20 = vmul.f32 %v6087_v25, %v10341_v56  ;;  %v6089_v23 = vpop.eup %6088  ;;  %6098 = vrcp.f32 %v4464_v42  ;;  %v10354_v25 = vld [vmem:[#allocation41_spill] sm:$0xff] }
 0x6a9   : > { %3664 = vmatprep.subr.bf16.mxu1 %v3633_v16  ;;  %v3418_v15 = vpop.xlane.xlu1 %3417  ;;  %v4567_v32 = vmul.f32 %v6089_v23, %v10342_v35  ;;  %v4566_v10 = vmul.f32 %v6089_v23, %v10343_v27  ;;  %5120 = vst [vmem:[%s7673_s27 + $0x508] sm:$0xff] %v3520_v50  ;;  %v10355_v16 = vld [vmem:[#allocation42_spill] sm:$0xff]  ;;  %v10356_v23 = vld [vmem:[#allocation48_spill] sm:$0xff]  ;;  %v10357_v35 = vld [vmem:[#allocation47_spill] sm:$0xff] }
 0x6aa   : > { %5119 = vst [vmem:[%s7673_s27 + $0x500] sm:$0xff] %v3519_v20  ;;  %v6091_v57 = vpop.eup %6090  ;;  %6100 = vrcp.f32 %v3418_v15  ;;  %3665 = vmatpush1.bf16.xpose.msra.mxu1 %v3632_v41 }
 0x6ab   : > { %v3421_v14 = vpop.xlane.xlu0 %3420  ;;  %5218 = vst [vmem:[%s7673_s27 + $0x6f8] sm:$0xff] %v4567_v32  ;;  %v4682_v63 = vpack.c.bf16 %v4567_v32, %v4565_v38  ;;  %5217 = vst [vmem:[%s7673_s27 + $0x6f0] sm:$0xff] %v4566_v10  ;;  %v4681_v8 = vpack.c.bf16 %v4566_v10, %v4564_v31  ;;  %v4569_v58 = vmul.f32 %v6091_v57, %v10344_v9 }
 0x6ac   : > { %v4568_v26 = vmul.f32 %v6091_v57, %v10345_v12  ;;  %v6093_v30 = vpop.eup %6092  ;;  %6102 = vrcp.f32 %v3421_v14  ;;  %v10358_v57 = vld [vmem:[#allocation53_spill] sm:$0xff] }
 0x6ad   : > { %4713 = vmatprep.subr.bf16.mxu0 %v4682_v63  ;;  %v4467_v7 = vpop.xlane.xlu1 %4466  ;;  %v3522_v62 = vmul.f32 %v6093_v30, %v10346_v11  ;;  %v3521_v1 = vmul.f32 %v6093_v30, %v10347_v17  ;;  %5220 = vst [vmem:[%s7673_s27 + $0x708] sm:$0xff] %v4569_v58  ;;  %v10359_v63 = vld [vmem:[#allocation54_spill] sm:$0xff]  ;;  %v10360_v30 = vld [vmem:[#allocation44_spill] sm:$0xff]  ;;  %v10361_v11 = vld [vmem:[#allocation43_spill] sm:$0xff] }
 0x6ae   : > { %5219 = vst [vmem:[%s7673_s27 + $0x700] sm:$0xff] %v4568_v26  ;;  %v6095_v24 = vpop.eup %6094  ;;  %6104 = vrcp.f32 %v4467_v7  ;;  %4714 = vmatpush1.bf16.xpose.msra.mxu0 %v4681_v8 }
 0x6af   : > { %v4470_v5 = vpop.xlane.xlu0 %4469  ;;  %5122 = vst [vmem:[%s7673_s27 + $0x518] sm:$0xff] %v3522_v62  ;;  %v3635_v4 = vpack.c.bf16 %v3522_v62, %v3520_v50  ;;  %5121 = vst [vmem:[%s7673_s27 + $0x510] sm:$0xff] %v3521_v1  ;;  %v3634_v60 = vpack.c.bf16 %v3521_v1, %v3519_v20  ;;  %v3524_v54 = vmul.f32 %v6095_v24, %v10348_v28 }
 0x6b0   : > { %v3523_v22 = vmul.f32 %v6095_v24, %v10349_v53  ;;  %v6097_v37 = vpop.eup %6096  ;;  %6106 = vrcp.f32 %v4470_v5  ;;  %v10362_v24 = vld [vmem:[#allocation49_spill] sm:$0xff] }
 0x6b1   : > { %3666 = vmatprep.subr.bf16.mxu1 %v3635_v4  ;;  %v3424_v39 = vpop.xlane.xlu1 %3423  ;;  %v4571_v61 = vmul.f32 %v6097_v37, %v10350_v29  ;;  %v4570_v3 = vmul.f32 %v6097_v37, %v10351_v13  ;;  %5124 = vst [vmem:[%s7673_s27 + $0x528] sm:$0xff] %v3524_v54  ;;  %v10363_v4 = vld [vmem:[#allocation50_spill] sm:$0xff]  ;;  %v10364_v37 = vld [vmem:[#allocation56_spill] sm:$0xff]  ;;  %v10365_v29 = vld [vmem:[#allocation55_spill] sm:$0xff] }
 0x6b2   : > { %5123 = vst [vmem:[%s7673_s27 + $0x520] sm:$0xff] %v3523_v22  ;;  %v6099_v34 = vpop.eup %6098  ;;  %6108 = vrcp.f32 %v3424_v39  ;;  %3667 = vmatpush1.bf16.xpose.msra.mxu1 %v3634_v60 }
 0x6b3   : > { %v3427_v38 = vpop.xlane.xlu0 %3426  ;;  %5222 = vst [vmem:[%s7673_s27 + $0x718] sm:$0xff] %v4571_v61  ;;  %v4684_v44 = vpack.c.bf16 %v4571_v61, %v4569_v58  ;;  %5221 = vst [vmem:[%s7673_s27 + $0x710] sm:$0xff] %v4570_v3  ;;  %v4683_v31 = vpack.c.bf16 %v4570_v3, %v4568_v26  ;;  %v4573_v19 = vmul.f32 %v6099_v34, %v10352_v40 }
 0x6b4   : > { %v4572_v48 = vmul.f32 %v6099_v34, %v10353_v18  ;;  %v6101_v6 = vpop.eup %6100  ;;  %6110 = vrcp.f32 %v3427_v38  ;;  %v10366_v34 = vld [vmem:[#allocation61_spill] sm:$0xff] }
 0x6b5   : > { %4715 = vmatprep.subr.bf16.mxu0 %v4684_v44  ;;  %v4473_v43 = vpop.xlane.xlu1 %4472  ;;  %v3526_v42 = vmul.f32 %v6101_v6, %v10354_v25  ;;  %v3525_v41 = vmul.f32 %v6101_v6, %v10355_v16  ;;  %5224 = vst [vmem:[%s7673_s27 + $0x728] sm:$0xff] %v4573_v19  ;;  %v10367_v44 = vld [vmem:[#allocation62_spill] sm:$0xff]  ;;  %v10368_v6 = vld [vmem:[#allocation52_spill] sm:$0xff]  ;;  %v10369_v25 = vld [vmem:[#allocation51_spill] sm:$0xff] }
 0x6b6   : > { %5223 = vst [vmem:[%s7673_s27 + $0x720] sm:$0xff] %v4572_v48  ;;  %v6103_v33 = vpop.eup %6102  ;;  %6112 = vrcp.f32 %v4473_v43  ;;  %4716 = vmatpush1.bf16.xpose.msra.mxu0 %v4683_v31 }
 0x6b7   : > { %v4476_v50 = vpop.xlane.xlu0 %4475  ;;  %5126 = vst [vmem:[%s7673_s27 + $0x538] sm:$0xff] %v3526_v42  ;;  %v3637_v56 = vpack.c.bf16 %v3526_v42, %v3524_v54  ;;  %5125 = vst [vmem:[%s7673_s27 + $0x530] sm:$0xff] %v3525_v41  ;;  %v3636_v20 = vpack.c.bf16 %v3525_v41, %v3523_v22  ;;  %v3528_v15 = vmul.f32 %v6103_v33, %v10356_v23 }
 0x6b8   : > { %v3527_v32 = vmul.f32 %v6103_v33, %v10357_v35  ;;  %v6105_v27 = vpop.eup %6104  ;;  %6114 = vrcp.f32 %v4476_v50  ;;  %v10370_v33 = vld [vmem:[#allocation57_spill] sm:$0xff] }
 0x6b9   : > { %3668 = vmatprep.subr.bf16.mxu1 %v3637_v56  ;;  %v3430_v10 = vpop.xlane.xlu1 %3429  ;;  %v4575_v14 = vmul.f32 %v6105_v27, %v10358_v57  ;;  %v4574_v8 = vmul.f32 %v6105_v27, %v10359_v63  ;;  %5128 = vst [vmem:[%s7673_s27 + $0x548] sm:$0xff] %v3528_v15  ;;  %v10371_v56 = vld [vmem:[#allocation58_spill] sm:$0xff]  ;;  %v10372_v27 = vld [vmem:[#allocation64_spill] sm:$0xff]  ;;  %v10373_v57 = vld [vmem:[#allocation63_spill] sm:$0xff] }
 0x6ba   : > { %5127 = vst [vmem:[%s7673_s27 + $0x540] sm:$0xff] %v3527_v32  ;;  %v6107_v9 = vpop.eup %6106  ;;  %6116 = vrcp.f32 %v3430_v10  ;;  %3669 = vmatpush1.bf16.xpose.msra.mxu1 %v3636_v20 }
 0x6bb   : > { %v3433_v58 = vpop.xlane.xlu0 %3432  ;;  %5226 = vst [vmem:[%s7673_s27 + $0x738] sm:$0xff] %v4575_v14  ;;  %v4686_v12 = vpack.c.bf16 %v4575_v14, %v4573_v19  ;;  %5225 = vst [vmem:[%s7673_s27 + $0x730] sm:$0xff] %v4574_v8  ;;  %v4685_v26 = vpack.c.bf16 %v4574_v8, %v4572_v48  ;;  %v4577_v7 = vmul.f32 %v6107_v9, %v10360_v30 }
 0x6bc   : > { %v4576_v62 = vmul.f32 %v6107_v9, %v10361_v11  ;;  %v6109_v17 = vpop.eup %6108  ;;  %6118 = vrcp.f32 %v3433_v58  ;;  %v10374_v9 = vld [vmem:[#allocation69_spill] sm:$0xff] }
 0x6bd   : > { %4717 = vmatprep.subr.bf16.mxu0 %v4686_v12  ;;  %v4479_v1 = vpop.xlane.xlu1 %4478  ;;  %v3530_v5 = vmul.f32 %v6109_v17, %v10362_v24  ;;  %v3529_v60 = vmul.f32 %v6109_v17, %v10363_v4  ;;  %5228 = vst [vmem:[%s7673_s27 + $0x748] sm:$0xff] %v4577_v7  ;;  %v10375_v12 = vld [vmem:[#allocation70_spill] sm:$0xff]  ;;  %v10376_v17 = vld [vmem:[#allocation60_spill] sm:$0xff]  ;;  %v10377_v24 = vld [vmem:[#allocation59_spill] sm:$0xff] }
 0x6be   : > { %5227 = vst [vmem:[%s7673_s27 + $0x740] sm:$0xff] %v4576_v62  ;;  %v6111_v28 = vpop.eup %6110  ;;  %6120 = vrcp.f32 %v4479_v1  ;;  %4718 = vmatpush1.bf16.xpose.msra.mxu0 %v4685_v26 }
 0x6bf   : > { %v4482_v54 = vpop.xlane.xlu0 %4481  ;;  %5130 = vst [vmem:[%s7673_s27 + $0x558] sm:$0xff] %v3530_v5  ;;  %v3639_v53 = vpack.c.bf16 %v3530_v5, %v3528_v15  ;;  %5129 = vst [vmem:[%s7673_s27 + $0x550] sm:$0xff] %v3529_v60  ;;  %v3638_v22 = vpack.c.bf16 %v3529_v60, %v3527_v32  ;;  %v3532_v39 = vmul.f32 %v6111_v28, %v10364_v37 }
 0x6c0   : > { %v3531_v61 = vmul.f32 %v6111_v28, %v10365_v29  ;;  %v6113_v13 = vpop.eup %6112  ;;  %6122 = vrcp.f32 %v4482_v54  ;;  %v10378_v28 = vld [vmem:[#allocation65_spill] sm:$0xff] }
 0x6c1   : > { %3670 = vmatprep.subr.bf16.mxu1 %v3639_v53  ;;  %v3436_v3 = vpop.xlane.xlu1 %3435  ;;  %v4579_v38 = vmul.f32 %v6113_v13, %v10366_v34  ;;  %v4578_v31 = vmul.f32 %v6113_v13, %v10367_v44  ;;  %5132 = vst [vmem:[%s7673_s27 + $0x568] sm:$0xff] %v3532_v39  ;;  %v10379_v53 = vld [vmem:[#allocation66_spill] sm:$0xff]  ;;  %v10380_v13 = vld [vmem:[#allocation72_spill] sm:$0xff]  ;;  %v10381_v34 = vld [vmem:[#allocation71_spill] sm:$0xff] }
 0x6c2   : > { %5131 = vst [vmem:[%s7673_s27 + $0x560] sm:$0xff] %v3531_v61  ;;  %v6115_v40 = vpop.eup %6114  ;;  %6124 = vrcp.f32 %v3436_v3  ;;  %3671 = vmatpush1.bf16.xpose.msra.mxu1 %v3638_v22 }
 0x6c3   : > { %v3439_v19 = vpop.xlane.xlu0 %3438  ;;  %5230 = vst [vmem:[%s7673_s27 + $0x758] sm:$0xff] %v4579_v38  ;;  %v4688_v18 = vpack.c.bf16 %v4579_v38, %v4577_v7  ;;  %5229 = vst [vmem:[%s7673_s27 + $0x750] sm:$0xff] %v4578_v31  ;;  %v4687_v48 = vpack.c.bf16 %v4578_v31, %v4576_v62  ;;  %v4581_v43 = vmul.f32 %v6115_v40, %v10368_v6 }
 0x6c4   : > { %v4580_v42 = vmul.f32 %v6115_v40, %v10369_v25  ;;  %v6117_v16 = vpop.eup %6116  ;;  %6126 = vrcp.f32 %v3439_v19  ;;  %v10382_v40 = vld [vmem:[#allocation77_spill] sm:$0xff] }
 0x6c5   : > { %4719 = vmatprep.subr.bf16.mxu0 %v4688_v18  ;;  %v4485_v41 = vpop.xlane.xlu1 %4484  ;;  %v3534_v50 = vmul.f32 %v6117_v16, %v10370_v33  ;;  %v3533_v20 = vmul.f32 %v6117_v16, %v10371_v56  ;;  %5232 = vst [vmem:[%s7673_s27 + $0x768] sm:$0xff] %v4581_v43  ;;  %v10383_v18 = vld [vmem:[#allocation78_spill] sm:$0xff] }
 0x6c6   : > { %5231 = vst [vmem:[%s7673_s27 + $0x760] sm:$0xff] %v4580_v42  ;;  %v6119_v23 = vpop.eup %6118  ;;  %6128 = vrcp.f32 %v4485_v41  ;;  %4720 = vmatpush1.bf16.xpose.msra.mxu0 %v4687_v48  ;;  %v10384_v41 = vld [vmem:[#allocation67_spill] sm:$0xff] }
 0x6c7   : > { %v4488_v15 = vpop.xlane.xlu0 %4487  ;;  %5134 = vst [vmem:[%s7673_s27 + $0x578] sm:$0xff] %v3534_v50  ;;  %v3641_v35 = vpack.c.bf16 %v3534_v50, %v3532_v39  ;;  %5133 = vst [vmem:[%s7673_s27 + $0x570] sm:$0xff] %v3533_v20  ;;  %v3640_v32 = vpack.c.bf16 %v3533_v20, %v3531_v61  ;;  %v3536_v10 = vmul.f32 %v6119_v23, %v10372_v27 }
 0x6c8   : > { %v3535_v14 = vmul.f32 %v6119_v23, %v10373_v57  ;;  %v6121_v63 = vpop.eup %6120  ;;  %6130 = vrcp.f32 %v4488_v15 }
 0x6c9   : > { %3672 = vmatprep.subr.bf16.mxu1 %v3641_v35  ;;  %v3442_v8 = vpop.xlane.xlu1 %3441  ;;  %v4583_v58 = vmul.f32 %v6121_v63, %v10374_v9  ;;  %v4582_v26 = vmul.f32 %v6121_v63, %v10375_v12  ;;  %5136 = vst [vmem:[%s7673_s27 + $0x588] sm:$0xff] %v3536_v10 }
 0x6ca   : > { %5135 = vst [vmem:[%s7673_s27 + $0x580] sm:$0xff] %v3535_v14  ;;  %v6123_v30 = vpop.eup %6122  ;;  %6132 = vrcp.f32 %v3442_v8  ;;  %3673 = vmatpush1.bf16.xpose.msra.mxu1 %v3640_v32 }
 0x6cb   : > { %v3445_v7 = vpop.xlane.xlu0 %3444  ;;  %5234 = vst [vmem:[%s7673_s27 + $0x778] sm:$0xff] %v4583_v58  ;;  %v4690_v11 = vpack.c.bf16 %v4583_v58, %v4581_v43  ;;  %5233 = vst [vmem:[%s7673_s27 + $0x770] sm:$0xff] %v4582_v26  ;;  %v4689_v62 = vpack.c.bf16 %v4582_v26, %v4580_v42  ;;  %v4585_v1 = vmul.f32 %v6123_v30, %v10376_v17  ;;  %v10387_v17 = vld [vmem:[#allocation73_spill] sm:$0xff] }
 0x6cc   : > { %v4584_v5 = vmul.f32 %v6123_v30, %v10377_v24  ;;  %v6125_v4 = vpop.eup %6124  ;;  %6134 = vrcp.f32 %v3445_v7  ;;  %v10385_v30 = vld [vmem:[#allocation74_spill] sm:$0xff] }
 0x6cd   : > { %4721 = vmatprep.subr.bf16.mxu0 %v4690_v11  ;;  %v4491_v60 = vpop.xlane.xlu1 %4490  ;;  %v3538_v54 = vmul.f32 %v6125_v4, %v10378_v28  ;;  %v3537_v22 = vmul.f32 %v6125_v4, %v10379_v53  ;;  %5236 = vst [vmem:[%s7673_s27 + $0x788] sm:$0xff] %v4585_v1  ;;  %v10386_v11 = vld [vmem:[#allocation68_spill] sm:$0xff] }
 0x6ce   : > { %5235 = vst [vmem:[%s7673_s27 + $0x780] sm:$0xff] %v4584_v5  ;;  %v6127_v37 = vpop.eup %6126  ;;  %6136 = vrcp.f32 %v4491_v60  ;;  %4722 = vmatpush1.bf16.xpose.msra.mxu0 %v4689_v62  ;;  %v10388_v60 = vld [vmem:[#allocation79_spill] sm:$0xff] }
 0x6cf   : > { %v4494_v39 = vpop.xlane.xlu0 %4493  ;;  %5138 = vst [vmem:[%s7673_s27 + $0x598] sm:$0xff] %v3538_v54  ;;  %v3643_v29 = vpack.c.bf16 %v3538_v54, %v3536_v10  ;;  %5137 = vst [vmem:[%s7673_s27 + $0x590] sm:$0xff] %v3537_v22  ;;  %v3642_v61 = vpack.c.bf16 %v3537_v22, %v3535_v14  ;;  %v3540_v3 = vmul.f32 %v6127_v37, %v10380_v13  ;;  %v10389_v54 = vld [vmem:[#allocation76_spill] sm:$0xff] }
 0x6d0   : > { %v3539_v38 = vmul.f32 %v6127_v37, %v10381_v34  ;;  %v6129_v44 = vpop.eup %6128  ;;  %6138 = vrcp.f32 %v4494_v39  ;;  %v10391_v39 = vld [vmem:[#allocation82_spill] sm:$0xff]  ;;  %v10392_v34 = vld [vmem:[#allocation75_spill] sm:$0xff] }
 0x6d1   : > { %3674 = vmatprep.subr.bf16.mxu1 %v3643_v29  ;;  %v3448_v31 = vpop.xlane.xlu1 %3447  ;;  %v4587_v19 = vmul.f32 %v6129_v44, %v10382_v40  ;;  %v4586_v48 = vmul.f32 %v6129_v44, %v10383_v18  ;;  %5140 = vst [vmem:[%s7673_s27 + $0x5a8] sm:$0xff] %v3540_v3  ;;  %v10393_v44 = vld [vmem:[#allocation12_spill] sm:$0xff]  ;;  %v10394_v18 = vld [vmem:[#allocation33_spill] sm:$0xff] }
 0x6d2   : > { %5139 = vst [vmem:[%s7673_s27 + $0x5a0] sm:$0xff] %v3539_v38  ;;  %v6131_v6 = vpop.eup %6130  ;;  %6140 = vrcp.f32 %v3448_v31  ;;  %3675 = vmatpush1.bf16.xpose.msra.mxu1 %v3642_v61 }
 0x6d3   : > { %v3451_v43 = vpop.xlane.xlu0 %3450  ;;  %5238 = vst [vmem:[%s7673_s27 + $0x798] sm:$0xff] %v4587_v19  ;;  %v4692_v25 = vpack.c.bf16 %v4587_v19, %v4585_v1  ;;  %5237 = vst [vmem:[%s7673_s27 + $0x790] sm:$0xff] %v4586_v48  ;;  %v4691_v42 = vpack.c.bf16 %v4586_v48, %v4584_v5  ;;  %v4589_v16 = vmul.f32 %v6131_v6, %v8936_v36  ;;  %v10395_v48 = vld [vmem:[#allocation31_spill] sm:$0xff] }
 0x6d4   : > { %v4588_v33 = vmul.f32 %v6131_v6, %v10384_v41  ;;  %v6133_v50 = vpop.eup %6132  ;;  %6142 = vrcp.f32 %v3451_v43  ;;  %v10396_v6 = vpack.c.bf16 %v10394_v18, %v10395_v48  ;;  %v10397_v43 = vld [vmem:[#allocation37_spill] sm:$0xff] }
 0x6d5   : > { %4723 = vmatprep.subr.bf16.mxu0 %v4692_v25  ;;  %v4497_v56 = vpop.xlane.xlu1 %4496  ;;  %v3542_v20 = vmul.f32 %v6133_v50, %v8945_v49  ;;  %v3541_v23 = vmul.f32 %v6133_v50, %v8940_v55  ;;  %5240 = vst [vmem:[%s7673_s27 + $0x7a8] sm:$0xff] %v4589_v16  ;;  %v10398_v25 = vld [vmem:[#allocation35_spill] sm:$0xff] }
 0x6d6   : > { %5239 = vst [vmem:[%s7673_s27 + $0x7a0] sm:$0xff] %v4588_v33  ;;  %v6135_v15 = vpop.eup %6134  ;;  %6144 = vrcp.f32 %v4497_v56  ;;  %4724 = vmatpush1.bf16.xpose.msra.mxu0 %v4691_v42  ;;  %v10399_v42 = vpack.c.bf16 %v10397_v43, %v10398_v25 }
 0x6d7   : > { %v4500_v35 = vpop.xlane.xlu0 %4499  ;;  %5142 = vst [vmem:[%s7673_s27 + $0x5b8] sm:$0xff] %v3542_v20  ;;  %v3645_v36 = vpack.c.bf16 %v3542_v20, %v3540_v3  ;;  %5141 = vst [vmem:[%s7673_s27 + $0x5b0] sm:$0xff] %v3541_v23  ;;  %v3644_v32 = vpack.c.bf16 %v3541_v23, %v3539_v38  ;;  %v3544_v27 = vmul.f32 %v6135_v15, %v8952_v52 }
 0x6d8   : > { %v3543_v49 = vmul.f32 %v6135_v15, %v8950_v59  ;;  %v6137_v10 = vpop.eup %6136  ;;  %6146 = vrcp.f32 %v4500_v35 }
 0x6d9   : > { %3676 = vmatprep.subr.bf16.mxu1 %v3645_v36  ;;  %v3454_v55 = vpop.xlane.xlu1 %3453  ;;  %v4591_v57 = vmul.f32 %v6137_v10, %v8962_v2  ;;  %v4590_v14 = vmul.f32 %v6137_v10, %v8956_v46  ;;  %5144 = vst [vmem:[%s7673_s27 + $0x5c8] sm:$0xff] %v3544_v27 }
 0x6da   : > { %5143 = vst [vmem:[%s7673_s27 + $0x5c0] sm:$0xff] %v3543_v49  ;;  %v6139_v63 = vpop.eup %6138  ;;  %6148 = vrcp.f32 %v3454_v55  ;;  %3677 = vmatpush1.bf16.xpose.msra.mxu1 %v3644_v32 }
 0x6db   : > { %5242 = vst [vmem:[%s7673_s27 + $0x7b8] sm:$0xff] %v4591_v57  ;;  %v4694_v52 = vpack.c.bf16 %v4591_v57, %v4589_v16  ;;  %5241 = vst [vmem:[%s7673_s27 + $0x7b0] sm:$0xff] %v4590_v14  ;;  %v4693_v59 = vpack.c.bf16 %v4590_v14, %v4588_v33  ;;  %v4593_v8 = vmul.f32 %v6139_v63, %v8968_v51 }
 0x6dc   : > { %v4592_v9 = vmul.f32 %v6139_v63, %v8964_v0  ;;  %v6141_v2 = vpop.eup %6140 }
 0x6dd   : > { %4725 = vmatprep.subr.bf16.mxu0 %v4694_v52  ;;  %v4503_v46 = vpop.xlane.xlu1 %4502  ;;  %v3546_v58 = vmul.f32 %v6141_v2, %v8974_v47  ;;  %v3545_v12 = vmul.f32 %v6141_v2, %v8970_v45  ;;  %5244 = vst [vmem:[%s7673_s27 + $0x7c8] sm:$0xff] %v4593_v8 }
 0x6de   : > { %5243 = vst [vmem:[%s7673_s27 + $0x7c0] sm:$0xff] %v4592_v9  ;;  %v6143_v26 = vpop.eup %6142  ;;  %6150 = vrcp.f32 %v4503_v46  ;;  %4726 = vmatpush1.bf16.xpose.msra.mxu0 %v4693_v59 }
 0x6df   : > { %5146 = vst [vmem:[%s7673_s27 + $0x5d8] sm:$0xff] %v3546_v58  ;;  %v3647_v51 = vpack.c.bf16 %v3546_v58, %v3544_v27  ;;  %5145 = vst [vmem:[%s7673_s27 + $0x5d0] sm:$0xff] %v3545_v12  ;;  %v3646_v0 = vpack.c.bf16 %v3545_v12, %v3543_v49  ;;  %v3548_v7 = vmul.f32 %v6143_v26, %v10385_v30 }
 0x6e0   : > { %v3547_v62 = vmul.f32 %v6143_v26, %v10386_v11  ;;  %v6145_v47 = vpop.eup %6144 }
 0x6e1   : > { %3678 = vmatprep.subr.bf16.mxu1 %v3647_v51  ;;  %v4595_v45 = vmul.f32 %v6145_v47, %v8986_v21  ;;  %v4594_v1 = vmul.f32 %v6145_v47, %v10387_v17  ;;  %5148 = vst [vmem:[%s7673_s27 + $0x5e8] sm:$0xff] %v3548_v7  ;;  %v10390_v21 = vld [vmem:[#allocation81_spill] sm:$0xff] }
 0x6e2   : > { %5147 = vst [vmem:[%s7673_s27 + $0x5e0] sm:$0xff] %v3547_v62  ;;  %v6147_v24 = vpop.eup %6146  ;;  %3679 = vmatpush1.bf16.xpose.msra.mxu1 %v3646_v0 }
 0x6e3   : > { %5246 = vst [vmem:[%s7673_s27 + $0x7d8] sm:$0xff] %v4595_v45  ;;  %v4696_v5 = vpack.c.bf16 %v4595_v45, %v4593_v8  ;;  %5245 = vst [vmem:[%s7673_s27 + $0x7d0] sm:$0xff] %v4594_v1  ;;  %v4695_v4 = vpack.c.bf16 %v4594_v1, %v4592_v9  ;;  %v4597_v28 = vmul.f32 %v6147_v24, %v10388_v60 }
 0x6e4   : > { %v4596_v53 = vmul.f32 %v6147_v24, %v10389_v54  ;;  %v6149_v22 = vpop.eup %6148 }
 0x6e5   : > { %4727 = vmatprep.subr.bf16.mxu0 %v4696_v5  ;;  %v3550_v37 = vmul.f32 %v6149_v22, %v10390_v21  ;;  %v3549_v29 = vmul.f32 %v6149_v22, %v10391_v39  ;;  %5248 = vst [vmem:[%s7673_s27 + $0x7e8] sm:$0xff] %v4597_v28 }
 0x6e6   : > { %5247 = vst [vmem:[%s7673_s27 + $0x7e0] sm:$0xff] %v4596_v53  ;;  %4728 = vmatpush1.bf16.xpose.msra.mxu0 %v4695_v4 }
 0x6e7   : > { %5150 = vst [vmem:[%s7673_s27 + $0x5f8] sm:$0xff] %v3550_v37  ;;  %v3649_v61 = vpack.c.bf16 %v3550_v37, %v3548_v7  ;;  %5149 = vst [vmem:[%s7673_s27 + $0x5f0] sm:$0xff] %v3549_v29  ;;  %v3648_v13 = vpack.c.bf16 %v3549_v29, %v3547_v62 }
 0x6e8   : > { %v6151_v3 = vpop.eup %6150 }
 0x6e9   : > { %3680 = vmatprep.subr.bf16.mxu1 %v3649_v61  ;;  %v4599_v38 = vmul.f32 %v6151_v3, %v10392_v34  ;;  %v4598_v31 = vmul.f32 %v6151_v3, %v10393_v44 }
 0x6ea   : > { %3681 = vmatpush1.bf16.xpose.msra.mxu1 %v3648_v13 }
 0x6eb   : > { %5250 = vst [vmem:[%s7673_s27 + $0x7f8] sm:$0xff] %v4599_v38  ;;  %v4698_v40 = vpack.c.bf16 %v4599_v38, %v4597_v28  ;;  %5249 = vst [vmem:[%s7673_s27 + $0x7f0] sm:$0xff] %v4598_v31  ;;  %v4697_v19 = vpack.c.bf16 %v4598_v31, %v4596_v53 }
 0x6ed   : > { %4729 = vmatprep.subr.bf16.mxu0 %v4698_v40 }
 0x6ee   : > { %4730 = vmatpush1.bf16.xpose.msra.mxu0 %v4697_v19 }
 0x6f1   : > { %3683 = vmatmul.mubr.bf16.vlgmr.msra.gmra.mrb[156].mxu1 %v10396_v6 }
 0x6f5   : > { %4732 = vmatmul.mubr.bf16.vlgmr.msra.gmra.mrb[156].mxu0 %v10399_v42 }
 0x6f6   : > { %6193 = shalt.err (!%p6190_p7)
}
 0x6f7   : > { %s6194_s23 = scalar_lea.hbm %s9275_s11, 32768  ;;  %s6198_s27 = scalar_lea.hbm %s9371_s4, 65536 }
 0x6f8   : > { %p6195_p8 = scmp.ne.s32.totalorder %s9275_s11, %s6194_s23  ;;  %p6199_p1 = scmp.lt.u32.totalorder %s9275_s11, %s9371_s4 }
 0x6f9   : > { %p6200_p0 = scmp.lt.u32.totalorder %s6198_s27, %s6194_s23  ;;  %p6202_p6 = scmp.lt.u32.totalorder %s6194_s23, %s9275_s11 }
 0x6fa   : > { %p6196_p11 = pnand %p6195_p8, %p10400_p9 }
 0x6fb   : > { %p6201_p5 = por %p6200_p0, %p6199_p1 }
 0x6fc   : > { %p6197_p13 = pneg %p6196_p11 }
 0x6fd   : > { %p6203_p10 = por %p6202_p6, %p6201_p5 }
 0x6ff   : > { %p6204_p12 = pnand %p6203_p10, %p6197_p13 }
 0x701   : > { %6207 = shalt.err (!%p6204_p12)
}
 0x702   : > { %s6285_s9 = smov 256   ;;  %s6286_s10 = smov 16  }
 0x703   : > { %5329 = dma.vmem_to_hbm [thread:$0]  (%p10400_p9), %s9277_s8, 32768, %s9275_s11, %s4753_s12, %s6285_s9, %s6285_s9, %s6286_s10  }
 0x704   : > { %s5263_s13 = sshll.u32 %s6334_s19, 11  ;;  %s4766_s14 = sshll.u32 %s8102_s6, 4  ;;  %s9319_s14 = int_to_ptr.vmem [resolvable:$true] %s4766_s14 }
 0x705   : > { %s9317_s12 = scalar_lea.hbm %s9370_s3, %s5263_s13  ;;  %s4748_s19 = scalar_lea.sflag [#allocation4], %s7668_s29 }
 0x706   : > { %s6208_s20 = scalar_lea.vmem %s9319_s14, 2048  ;;  %s6287_s22 = smov [#allocation5]  }
 0x707   : > { %p6209_p2 = scmp.ne.s32.totalorder %s9319_s14, %s6208_s20  ;;  %s6212_s23 = sshll.u32 %s6287_s22, 4  ;;  %s6213_s23 = int_to_ptr.vmem [resolvable:$false] %s6212_s23 }
 0x708   : > { %s6214_s28 = scalar_lea.vmem %s6213_s23, 4096  ;;  %p6215_p7 = scmp.lt.s32.totalorder %s9319_s14, %s6213_s23 }
 0x709   : > { %p6210_p3 = pnand %p6209_p2, %p10400_p9  ;;  %p6216_p8 = scmp.lt.s32.totalorder %s6214_s28, %s6208_s20 }
 0x70b   : > { %p6211_p4 = pneg %p6210_p3  ;;  %p6217_p11 = por %p6216_p8, %p6215_p7 }
 0x70d   : > { %p6218_p13 = pnand %p6217_p11, %p6211_p4 }
 0x7c4   : > { %v3684_v16 = vpop.f32.mrb[156].mxu1 }
 0x7c5   : > { %5151 = vst [vmem:[%s8102_s6 + $0x40] sm:$0xff] %v3684_v16  ;;  %v3686_v41 = vpop.f32.mrb[157].mxu1 }
 0x7c6   : > { %5152 = vst [vmem:[%s8102_s6 + $0x48] sm:$0xff] %v3686_v41  ;;  %v3688_v33 = vpop.f32.mrb[158].mxu1 }
 0x7c7   : > { %5153 = vst [vmem:[%s8102_s6 + $0x50] sm:$0xff] %v3688_v33  ;;  %v3690_v50 = vpop.f32.mrb[159].mxu1 }
 0x7c8   : > { %5154 = vst [vmem:[%s8102_s6 + $0x58] sm:$0xff] %v3690_v50  ;;  %v4733_v56 = vpop.f32.mrb[156].mxu0 }
 0x7c9   : > { %5251 = vst [vmem:[%s8102_s6 + $0x60] sm:$0xff] %v4733_v56  ;;  %v4735_v20 = vpop.f32.mrb[157].mxu0 }
 0x7ca   : > { %5252 = vst [vmem:[%s8102_s6 + $0x68] sm:$0xff] %v4735_v20  ;;  %v4737_v23 = vpop.f32.mrb[158].mxu0 }
 0x7cb   : > { %5253 = vst [vmem:[%s8102_s6 + $0x70] sm:$0xff] %v4737_v23  ;;  %v4739_v15 = vpop.f32.mrb[159].mxu0 }
 0x7cc   : > { %5254 = vst [vmem:[%s8102_s6 + $0x78] sm:$0xff] %v4739_v15 }
 0x7cd   : > { %6221 = shalt.err (!%p6218_p13)
}
 0x7ce   : > { %s6222_s6 = scalar_lea.hbm %s9317_s12, 2048  ;;  %s6226_s5 = scalar_lea.hbm %s9370_s3, 4096 }
 0x7cf   : > { %p6223_p1 = scmp.ne.s32.totalorder %s9317_s12, %s6222_s6  ;;  %p6227_p6 = scmp.lt.u32.totalorder %s9317_s12, %s9370_s3 }
 0x7d0   : > { %p6228_p10 = scmp.lt.u32.totalorder %s6226_s5, %s6222_s6  ;;  %p6230_p2 = scmp.lt.u32.totalorder %s6222_s6, %s9317_s12 }
 0x7d1   : > { %p6224_p0 = pnand %p6223_p1, %p10400_p9 }
 0x7d2   : > { %p6229_p12 = por %p6228_p10, %p6227_p6 }
 0x7d3   : > { %p6225_p5 = pneg %p6224_p0 }
 0x7d4   : > { %p6231_p3 = por %p6230_p2, %p6229_p12 }
 0x7d6   : > { %p6232_p4 = pnand %p6231_p3, %p6225_p5 }
 0x7d8   : > { %6235 = shalt.err (!%p6232_p4)
}
 0x7d9   : > { %5328 = dma.vmem_to_hbm [thread:$0]  (%p10400_p9), %s9319_s14, 2048, %s9317_s12, %s4748_s19, %s6285_s9, %s6285_s9, %s6286_s10  }
 0x7da PF: > { %p5345_p7 = scmp.ge.s32.totalorder %s6278_s18, 2  ;;  %s4797_s8 = sand.u32 1, %s6266_s15  }
 0x7db   : > { %p10401_p8 = scmp.ne.s32.totalorder %s9717_s26, 0  ;;  %s4798_s11 = scalar_lea.sflag [#allocation4], %s4797_s8 }
 0x7dd   : > { %p5337_p11 = pnand %p5345_p7, %p10401_p8 }
 0x7df   : > { %6257 = dma.done.wait (!%p5337_p11), %s4798_s11, 2048  }
 0x7e0   : > { %6259 = vsyncadd (!%p5337_p11), %s4798_s11, 4294965248  ;;  %s4807_s25 = scalar_lea.sflag [#allocation7], %s4797_s8 }
 0x7e1   : > { %6261 = dma.done.wait (!%p5337_p11), %s4807_s25, 32768  }
 0x7e2   : > { %6263 = vsyncadd (!%p5337_p11), %s4807_s25, 4294934528  ;;  %p19_p9 = scmp.ge.s32.totalorder %s6338_s21, 4   ;;  %s10402_s15 = smov %s6270_s16 }
 0x7e3   : > { %s10403_s16 = smov %s6274_s17  ;;  %s10404_s17 = smov %s6349_s24 }
 0x7e4   : > { %s10405_s18 = smov %s6338_s21  ;;  %21 = sbr.rel (!%p19_p9) target bundleno = 6 (0x6), region = 98 }
 0x7eb   :  { %4812 = vsyncpa [#allocation3], 1 }
 0x7ec   :  { %4814 = vsyncpa [#allocation3 + $0x1], 1 }
 0x7ed   :  { %4815 = vsyncpa [#allocation4], 1 }
 0x7ee   :  { %4817 = vsyncpa [#allocation4 + $0x1], 1 }
 0x7ef   :  { %4818 = vsyncpa [#allocation7], 1 }
 0x7f0   :  { %4820 = vsyncpa [#allocation7 + $0x1], 1 }

</bundles_post_ra>
